<compile_context>
chip_gen: v7x
topology: tpu7x:2x2x1
jax: 0.10.0
libtpu: 0.0.40
codegen_flags: <defaults>
</compile_context>

<pallas_src>
import jax
import jax.numpy as jnp
from jax.experimental import pallas as pl
from jax.experimental.pallas import tpu as pltpu


_VMEM = pl.BlockSpec(memory_space=pltpu.MemorySpace.VMEM)


# ----------------------------------------------------------------------------- utils
def _round_up(v, m):
    return ((v + m - 1) // m) * m


def _lrelu(x):
    return jnp.where(x >= 0, x, 0.2 * x)


def _dot_k_chunked(a_ref, b_ref, k_chunk):
    """f32-accumulating dot of two VMEM refs, chunked along K with static slices.
    Chunk starts are multiples of 128 -> aligned lane/sublane slices; each loaded
    operand value stays small, so register/spill pressure is bounded."""
    K = a_ref.shape[1]
    acc = None
    for k0 in range(0, K, k_chunk):
        k1 = min(k0 + k_chunk, K)
        part = jnp.dot(a_ref[:, k0:k1], b_ref[k0:k1, :],
                       preferred_element_type=jnp.float32)
        acc = part if acc is None else acc + part
    return acc


# --------------------------------------------------------------------- fused kernels
def _conv1_pool_kernel(slab_rows):
    s = slab_rows

    def kernel(cols_ref, w_ref, b_ref, o_ref):
        # cols: (4*s, 128) bf16 pool-ordered conv patches; w: (128, 64); b: (1, 64)
        y = _dot_k_chunked(cols_ref, w_ref, k_chunk=128)               # (4*s, 64) f32
        m = jnp.maximum(jnp.maximum(y[0:s], y[s:2 * s]),
                        jnp.maximum(y[2 * s:3 * s], y[3 * s:4 * s]))   # 2x2 max pool
        z = m + b_ref[...]                                             # bias commutes with max
        o_ref[...] = _lrelu(z).astype(o_ref.dtype)                     # LeakyReLU(0.2)

    return kernel


def _conv2_bn_pool_kernel(slab_rows_padded, n_valid):
    sp = slab_rows_padded
    inv_n = 1.0 / float(n_valid)

    def kernel(cols_ref, w_ref, g_ref, beta_ref, o_ref):
        # cols: (4*sp, 1600) bf16 pool-ordered patches; per-slab pad rows are all-zero,
        # so they contribute nothing to sum(y) / sum(y*y) -> stats are over n_valid rows.
        y = _dot_k_chunked(cols_ref, w_ref, k_chunk=512)               # (4*sp, 128) f32
        mean = jnp.sum(y, axis=0, keepdims=True) * inv_n
        meansq = jnp.sum(y * y, axis=0, keepdims=True) * inv_n
        var = meansq - mean * mean                                     # biased (training BN)
        scale = jax.lax.rsqrt(var + 1e-5) * g_ref[...]
        z = _lrelu((y - mean) * scale + beta_ref[...])                 # BN -> LeakyReLU
        p = jnp.maximum(jnp.maximum(z[0:sp], z[sp:2 * sp]),            # 2x2 max pool
                        jnp.maximum(z[2 * sp:3 * sp], z[3 * sp:4 * sp]))
        o_ref[...] = p.astype(o_ref.dtype)                             # rows >= real count dropped outside

    return kernel


def _tail_kernel(n_real):
    inv_n = 1.0 / float(n_real)

    def kernel(a_ref, w1_ref, g_ref, beta_ref, w2_ref, b2_ref, o_ref):
        # a: (8, 6272) bf16 with zero pad rows; w1: (6272, 512) bf16; w2: (512, 128) bf16
        h = _dot_k_chunked(a_ref, w1_ref, k_chunk=896)                 # (8, 512) f32
        mean = jnp.sum(h, axis=0, keepdims=True) * inv_n               # zero pad rows drop out
        meansq = jnp.sum(h * h, axis=0, keepdims=True) * inv_n
        var = meansq - mean * mean
        scale = jax.lax.rsqrt(var + 1e-5) * g_ref[...]
        z = _lrelu((h - mean) * scale + beta_ref[...])
        logits = jnp.dot(z.astype(w2_ref.dtype), w2_ref[...],
                         preferred_element_type=jnp.float32) + b2_ref[...]
        o_ref[...] = 1.0 / (1.0 + jnp.exp(-logits))                    # exact sigmoid

    return kernel


def _fused_call(kernel, out_shape, *args):
    return pl.pallas_call(
        kernel,
        out_shape=out_shape,
        in_specs=[_VMEM] * len(args),
        out_specs=_VMEM,
        compiler_params=pltpu.CompilerParams(vmem_limit_bytes=32 * 1024 * 1024),
    )(*args)


# ------------------------------------------------------------------------ XLA glue
def _im2col(x, k=5, pad=2):
    """(N,H,W,C) -> (N,H,W,k*k*C) patches, feature order (dy, dx, cin)."""
    N, H, W, C = x.shape
    xp = jnp.pad(x, ((0, 0), (pad, pad), (pad, pad), (0, 0)))
    cols = [xp[:, dy:dy + H, dx:dx + W, :] for dy in range(k) for dx in range(k)]
    return jnp.concatenate(cols, axis=-1)


def _pool_ordered(patches, pad_rows_to=None):
    """(N,H,W,F) -> (4*S, F): the four 2x2-pool window slabs stacked contiguously,
    each slab row-ordered (n, h_out, w_out); optionally zero-pad each slab's rows."""
    N, H, W, F = patches.shape
    S = N * (H // 2) * (W // 2)
    slabs = [patches[:, dy::2, dx::2, :].reshape(S, F)
             for dy in (0, 1) for dx in (0, 1)]
    if pad_rows_to is not None and pad_rows_to > S:
        slabs = [jnp.pad(s, ((0, pad_rows_to - S), (0, 0))) for s in slabs]
    return jnp.concatenate(slabs, axis=0)


# --------------------------------------------------------------------------- params
def init_params(key):
    """Raw parameters in PyTorch layouts/dtypes (what the nn.Module would hold)."""
    ks = jax.random.split(key, 8)
    s = 0.05
    return dict(
        conv1_w=s * jax.random.normal(ks[0], (64, 1, 5, 5), jnp.float32),
        conv1_b=s * jax.random.normal(ks[1], (64,), jnp.float32),
        conv2_w=s * jax.random.normal(ks[2], (128, 64, 5, 5), jnp.float32),
        conv2_b=s * jax.random.normal(ks[3], (128,), jnp.float32),    # cancelled by train-mode BN
        bn2_g=jnp.ones((128,), jnp.float32), bn2_b=jnp.zeros((128,), jnp.float32),
        lin1_w=s * jax.random.normal(ks[4], (512, 128 * 7 * 7), jnp.float32),
        lin1_b=s * jax.random.normal(ks[5], (512,), jnp.float32),     # cancelled by train-mode BN
        bn1d_g=jnp.ones((512,), jnp.float32), bn1d_b=jnp.zeros((512,), jnp.float32),
        lin2_w=s * jax.random.normal(ks[6], (10, 512), jnp.float32),
        lin2_b=s * jax.random.normal(ks[7], (10,), jnp.float32),
    )


def prepare_params(p):
    """One-time prep (outside the jitted forward): transpose to matmul layout, cast
    MXU operands to bf16 and pad to tile-aligned shapes, so the forward pass never
    re-reads or re-writes a weight."""
    def conv_w_mat(w):  # torch (cout, cin, kh, kw) -> (kh*kw*cin, cout)
        return jnp.transpose(w, (2, 3, 1, 0)).reshape(-1, w.shape[0])

    conv1_w = jnp.pad(conv_w_mat(p["conv1_w"]).astype(jnp.bfloat16),
                      ((0, 128 - 25), (0, 0)))                          # (128, 64)
    conv2_w = conv_w_mat(p["conv2_w"]).astype(jnp.bfloat16)             # (1600, 128)
    lin1_w = p["lin1_w"].T.astype(jnp.bfloat16)                         # (6272, 512)
    lin2_w = jnp.pad(p["lin2_w"].T.astype(jnp.bfloat16),
                     ((0, 0), (0, 128 - 10)))                           # (512, 128)
    lin2_b = jnp.pad(p["lin2_b"], (0, 128 - 10)).reshape(1, 128).astype(jnp.float32)

    prep = dict(
        conv1_w=conv1_w, conv1_b=p["conv1_b"].reshape(1, 64).astype(jnp.float32),
        conv2_w=conv2_w,                 # conv2_b dropped (train-mode BN cancels it)
        bn2_g=p["bn2_g"].reshape(1, 128), bn2_b=p["bn2_b"].reshape(1, 128),
        lin1_w=lin1_w,                   # lin1_b dropped (train-mode BN cancels it)
        bn1d_g=p["bn1d_g"].reshape(1, 512), bn1d_b=p["bn1d_b"].reshape(1, 512),
        lin2_w=lin2_w, lin2_b=lin2_b,
    )
    return jax.tree_util.tree_map(jax.block_until_ready, prep)


# -------------------------------------------------------------------------- forward
@jax.jit
def d_net_forward(prep, x):
    """x: (N, 1, 28, 28) float32 NCHW -> (N, 10) sigmoid probabilities."""
    N = x.shape[0]
    x = jnp.transpose(x, (0, 2, 3, 1)).astype(jnp.bfloat16)             # NHWC, bf16

    # ---- conv1 (5x5, pad 2) + LeakyReLU + MaxPool2x2  (one fused kernel) ----
    s1 = N * 14 * 14                                                     # pooled positions
    cols1 = _pool_ordered(_im2col(x))                                    # (4*s1, 25) bf16
    cols1 = jnp.pad(cols1, ((0, 0), (0, 128 - 25)))                      # K -> 128 (lane aligned)
    y = _fused_call(_conv1_pool_kernel(s1),
                    jax.ShapeDtypeStruct((s1, 64), jnp.bfloat16),
                    cols1, prep["conv1_w"], prep["conv1_b"])
    y = y.reshape(N, 14, 14, 64)

    # ---- conv2 (5x5, pad 2) + BatchNorm2d(train) + LeakyReLU + MaxPool2x2 ----
    s2 = N * 7 * 7
    s2p = _round_up(s2, 8)                                               # 8-aligned slab rows
    cols2 = _pool_ordered(_im2col(y), pad_rows_to=s2p)                   # (4*s2p, 1600) bf16
    y = _fused_call(_conv2_bn_pool_kernel(s2p, n_valid=N * 14 * 14),
                    jax.ShapeDtypeStruct((s2p, 128), jnp.bfloat16),
                    cols2, prep["conv2_w"], prep["bn2_g"], prep["bn2_b"])
    y = y[:s2].reshape(N, 7, 7, 128)

    # ---- flatten in torch NCHW order: (N, C, H, W) -> (N, 6272) ----
    y = jnp.transpose(y, (0, 3, 1, 2)).reshape(N, 128 * 7 * 7)

    # ---- linear1 + BatchNorm1d(train) + LeakyReLU + linear2 + Sigmoid (fused) ----
    mp = max(8, _round_up(N, 8))
    a = jnp.pad(y.astype(jnp.bfloat16), ((0, mp - N), (0, 0)))           # zero pad rows (BN-safe)
    out = _fused_call(_tail_kernel(N),
                      jax.ShapeDtypeStruct((mp, 128), jnp.float32),
                      a, prep["lin1_w"], prep["bn1d_g"], prep["bn1d_b"],
                      prep["lin2_w"], prep["lin2_b"])
    return out[:N, :10]


# ----------------------------------------------------------------------------- main
if __name__ == "__main__":
    key = jax.random.PRNGKey(0)
    k_param, k_x = jax.random.split(key)
    params = init_params(k_param)
    prep = prepare_params(params)                        # one-time weight layout prep
    x = jax.random.normal(k_x, (2, 1, 28, 28), jnp.float32)   # MNIST-sized input, batch=2

    out = jax.block_until_ready(d_net_forward(prep, x))
    assert out.shape == (2, 10), out.shape
    assert bool(jnp.all(jnp.isfinite(out)))
    assert bool(jnp.all((out >= 0.0) & (out <= 1.0)))    # sigmoid output range
    print("KERNEL_OK")
</pallas_src>

<mosaic_0001>
module attributes {stable_mosaic.version = 11 : i64} {
  func.func @kernel(%arg0: memref<1568x128xbf16, #tpu.memory_space<vmem>>, %arg1: memref<128x64xbf16, #tpu.memory_space<vmem>>, %arg2: memref<1x64xf32, #tpu.memory_space<vmem>>, %arg3: memref<392x64xbf16, #tpu.memory_space<vmem>>) attributes {dimension_semantics = [], scalar_prefetch = 0 : i64, scratch_operands = 0 : i64, tpu.core_type = #tpu.core_type<tc>} {
    %c0 = arith.constant 0 : index
    %c0_0 = arith.constant 0 : index
    %0 = vector.load %arg0[%c0, %c0_0] : memref<1568x128xbf16, #tpu.memory_space<vmem>>, vector<1568x128xbf16>
    %c0_1 = arith.constant 0 : index
    %c0_2 = arith.constant 0 : index
    %1 = vector.load %arg1[%c0_1, %c0_2] : memref<128x64xbf16, #tpu.memory_space<vmem>>, vector<128x64xbf16>
    %cst = arith.constant dense<0.000000e+00> : vector<1568x64xf32>
    %2 = tpu.matmul %0, %1, %cst {dimension_numbers = #tpu.dot_dimension_numbers<[1], [0], [0], [1], [0, 0, 1, 1], [], []>} : vector<1568x128xbf16>, vector<128x64xbf16>, vector<1568x64xf32> -> vector<1568x64xf32>
    %3 = vector.extract_strided_slice %2 {offsets = [0, 0], sizes = [392, 64], strides = [1, 1]} : vector<1568x64xf32> to vector<392x64xf32>
    %4 = vector.extract_strided_slice %2 {offsets = [392, 0], sizes = [392, 64], strides = [1, 1]} : vector<1568x64xf32> to vector<392x64xf32>
    %5 = arith.maximumf %3, %4 : vector<392x64xf32>
    %6 = vector.extract_strided_slice %2 {offsets = [784, 0], sizes = [392, 64], strides = [1, 1]} : vector<1568x64xf32> to vector<392x64xf32>
    %7 = vector.extract_strided_slice %2 {offsets = [1176, 0], sizes = [392, 64], strides = [1, 1]} : vector<1568x64xf32> to vector<392x64xf32>
    %8 = arith.maximumf %6, %7 : vector<392x64xf32>
    %9 = arith.maximumf %5, %8 : vector<392x64xf32>
    %c0_3 = arith.constant 0 : index
    %c0_4 = arith.constant 0 : index
    %10 = vector.load %arg2[%c0_3, %c0_4] : memref<1x64xf32, #tpu.memory_space<vmem>>, vector<1x64xf32>
    %11 = vector.broadcast %10 : vector<1x64xf32> to vector<392x64xf32>
    %12 = arith.addf %9, %11 : vector<392x64xf32>
    %cst_5 = arith.constant 0.000000e+00 : f32
    %13 = vector.broadcast %cst_5 : f32 to vector<392x64xf32>
    %14 = arith.cmpf oge, %12, %13 : vector<392x64xf32>
    %cst_6 = arith.constant 2.000000e-01 : f32
    %15 = vector.broadcast %cst_6 : f32 to vector<392x64xf32>
    %16 = arith.mulf %15, %12 : vector<392x64xf32>
    %17 = arith.select %14, %12, %16 : vector<392x64xi1>, vector<392x64xf32>
    %18 = arith.truncf %17 : vector<392x64xf32> to vector<392x64xbf16>
    %c0_7 = arith.constant 0 : index
    %c0_8 = arith.constant 0 : index
    %19 = vector.load %arg3[%c0_7, %c0_8] : memref<392x64xbf16, #tpu.memory_space<vmem>>, vector<392x64xbf16>
    tpu.vector_store %arg3[%c0_7, %c0_8], %18 {strides = array<i32>} : memref<392x64xbf16, #tpu.memory_space<vmem>>, vector<392x64xbf16>,
    return
  }
}

module attributes {stable_mosaic.version = 11 : i64} {
  func.func @kernel(%arg0: memref<416x1600xbf16, #tpu.memory_space<vmem>>, %arg1: memref<1600x128xbf16, #tpu.memory_space<vmem>>, %arg2: memref<1x128xf32, #tpu.memory_space<vmem>>, %arg3: memref<1x128xf32, #tpu.memory_space<vmem>>, %arg4: memref<104x128xbf16, #tpu.memory_space<vmem>>) attributes {dimension_semantics = [], scalar_prefetch = 0 : i64, scratch_operands = 0 : i64, tpu.core_type = #tpu.core_type<tc>} {
    %c0 = arith.constant 0 : index
    %c0_0 = arith.constant 0 : index
    %0 = vector.load %arg0[%c0, %c0_0] : memref<416x1600xbf16, #tpu.memory_space<vmem>>, vector<416x512xbf16>
    %c0_1 = arith.constant 0 : index
    %c0_2 = arith.constant 0 : index
    %1 = vector.load %arg1[%c0_1, %c0_2] : memref<1600x128xbf16, #tpu.memory_space<vmem>>, vector<512x128xbf16>
    %cst = arith.constant dense<0.000000e+00> : vector<416x128xf32>
    %2 = tpu.matmul %0, %1, %cst {dimension_numbers = #tpu.dot_dimension_numbers<[1], [0], [0], [1], [0, 0, 1, 1], [], []>} : vector<416x512xbf16>, vector<512x128xbf16>, vector<416x128xf32> -> vector<416x128xf32>
    %c0_3 = arith.constant 0 : index
    %c512 = arith.constant 512 : index
    %3 = vector.load %arg0[%c0_3, %c512] : memref<416x1600xbf16, #tpu.memory_space<vmem>>, vector<416x512xbf16>
    %c512_4 = arith.constant 512 : index
    %c0_5 = arith.constant 0 : index
    %4 = vector.load %arg1[%c512_4, %c0_5] : memref<1600x128xbf16, #tpu.memory_space<vmem>>, vector<512x128xbf16>
    %cst_6 = arith.constant dense<0.000000e+00> : vector<416x128xf32>
    %5 = tpu.matmul %3, %4, %cst_6 {dimension_numbers = #tpu.dot_dimension_numbers<[1], [0], [0], [1], [0, 0, 1, 1], [], []>} : vector<416x512xbf16>, vector<512x128xbf16>, vector<416x128xf32> -> vector<416x128xf32>
    %6 = arith.addf %2, %5 : vector<416x128xf32>
    %c0_7 = arith.constant 0 : index
    %c1024 = arith.constant 1024 : index
    %7 = vector.load %arg0[%c0_7, %c1024] : memref<416x1600xbf16, #tpu.memory_space<vmem>>, vector<416x512xbf16>
    %c1024_8 = arith.constant 1024 : index
    %c0_9 = arith.constant 0 : index
    %8 = vector.load %arg1[%c1024_8, %c0_9] : memref<1600x128xbf16, #tpu.memory_space<vmem>>, vector<512x128xbf16>
    %cst_10 = arith.constant dense<0.000000e+00> : vector<416x128xf32>
    %9 = tpu.matmul %7, %8, %cst_10 {dimension_numbers = #tpu.dot_dimension_numbers<[1], [0], [0], [1], [0, 0, 1, 1], [], []>} : vector<416x512xbf16>, vector<512x128xbf16>, vector<416x128xf32> -> vector<416x128xf32>
    %10 = arith.addf %6, %9 : vector<416x128xf32>
    %c0_11 = arith.constant 0 : index
    %c1536 = arith.constant 1536 : index
    %11 = vector.load %arg0[%c0_11, %c1536] : memref<416x1600xbf16, #tpu.memory_space<vmem>>, vector<416x64xbf16>
    %c1536_12 = arith.constant 1536 : index
    %c0_13 = arith.constant 0 : index
    %12 = vector.load %arg1[%c1536_12, %c0_13] : memref<1600x128xbf16, #tpu.memory_space<vmem>>, vector<64x128xbf16>
    %cst_14 = arith.constant dense<0.000000e+00> : vector<416x128xf32>
    %13 = tpu.matmul %11, %12, %cst_14 {dimension_numbers = #tpu.dot_dimension_numbers<[1], [0], [0], [1], [0, 0, 1, 1], [], []>} : vector<416x64xbf16>, vector<64x128xbf16>, vector<416x128xf32> -> vector<416x128xf32>
    %14 = arith.addf %10, %13 : vector<416x128xf32>
    %cst_15 = arith.constant dense<0.000000e+00> : vector<128xf32>
    %15 = vector.multi_reduction <add>, %14, %cst_15 [0] : vector<416x128xf32> to vector<128xf32>
    %16 = vector.shape_cast %15 : vector<128xf32> to vector<1x128xf32>
    %cst_16 = arith.constant 0.00255102036 : f32
    %17 = vector.broadcast %cst_16 : f32 to vector<1x128xf32>
    %18 = arith.mulf %16, %17 : vector<1x128xf32>
    %19 = arith.mulf %14, %14 : vector<416x128xf32>
    %cst_17 = arith.constant dense<0.000000e+00> : vector<128xf32>
    %20 = vector.multi_reduction <add>, %19, %cst_17 [0] : vector<416x128xf32> to vector<128xf32>
    %21 = vector.shape_cast %20 : vector<128xf32> to vector<1x128xf32>
    %cst_18 = arith.constant 0.00255102036 : f32
    %22 = vector.broadcast %cst_18 : f32 to vector<1x128xf32>
    %23 = arith.mulf %21, %22 : vector<1x128xf32>
    %24 = arith.mulf %18, %18 : vector<1x128xf32>
    %25 = arith.subf %23, %24 : vector<1x128xf32>
    %cst_19 = arith.constant 9.99999974E-6 : f32
    %26 = vector.broadcast %cst_19 : f32 to vector<1x128xf32>
    %27 = arith.addf %25, %26 : vector<1x128xf32>
    %28 = math.rsqrt %27 : vector<1x128xf32>
    %c0_20 = arith.constant 0 : index
    %c0_21 = arith.constant 0 : index
    %29 = vector.load %arg2[%c0_20, %c0_21] : memref<1x128xf32, #tpu.memory_space<vmem>>, vector<1x128xf32>
    %30 = arith.mulf %28, %29 : vector<1x128xf32>
    %31 = vector.broadcast %18 : vector<1x128xf32> to vector<416x128xf32>
    %32 = arith.subf %14, %31 : vector<416x128xf32>
    %33 = vector.broadcast %30 : vector<1x128xf32> to vector<416x128xf32>
    %34 = arith.mulf %32, %33 : vector<416x128xf32>
    %c0_22 = arith.constant 0 : index
    %c0_23 = arith.constant 0 : index
    %35 = vector.load %arg3[%c0_22, %c0_23] : memref<1x128xf32, #tpu.memory_space<vmem>>, vector<1x128xf32>
    %36 = vector.broadcast %35 : vector<1x128xf32> to vector<416x128xf32>
    %37 = arith.addf %34, %36 : vector<416x128xf32>
    %cst_24 = arith.constant 0.000000e+00 : f32
    %38 = vector.broadcast %cst_24 : f32 to vector<416x128xf32>
    %39 = arith.cmpf oge, %37, %38 : vector<416x128xf32>
    %cst_25 = arith.constant 2.000000e-01 : f32
    %40 = vector.broadcast %cst_25 : f32 to vector<416x128xf32>
    %41 = arith.mulf %40, %37 : vector<416x128xf32>
    %42 = arith.select %39, %37, %41 : vector<416x128xi1>, vector<416x128xf32>
    %43 = vector.extract_strided_slice %42 {offsets = [0, 0], sizes = [104, 128], strides = [1, 1]} : vector<416x128xf32> to vector<104x128xf32>
    %44 = vector.extract_strided_slice %42 {offsets = [104, 0], sizes = [104, 128], strides = [1, 1]} : vector<416x128xf32> to vector<104x128xf32>
    %45 = arith.maximumf %43, %44 : vector<104x128xf32>
    %46 = vector.extract_strided_slice %42 {offsets = [208, 0], sizes = [104, 128], strides = [1, 1]} : vector<416x128xf32> to vector<104x128xf32>
    %47 = vector.extract_strided_slice %42 {offsets = [312, 0], sizes = [104, 128], strides = [1, 1]} : vector<416x128xf32> to vector<104x128xf32>
    %48 = arith.maximumf %46, %47 : vector<104x128xf32>
    %49 = arith.maximumf %45, %48 : vector<104x128xf32>
    %50 = arith.truncf %49 : vector<104x128xf32> to vector<104x128xbf16>
    %c0_26 = arith.constant 0 : index
    %c0_27 = arith.constant 0 : index
    %51 = vector.load %arg4[%c0_26, %c0_27] : memref<104x128xbf16, #tpu.memory_space<vmem>>, vector<104x128xbf16>
    tpu.vector_store %arg4[%c0_26, %c0_27], %50 {strides = array<i32>} : memref<104x128xbf16, #tpu.memory_space<vmem>>, vector<104x128xbf16>,
    return
  }
}

module attributes {stable_mosaic.version = 11 : i64} {
  func.func @kernel(%arg0: memref<8x6272xbf16, #tpu.memory_space<vmem>>, %arg1: memref<6272x512xbf16, #tpu.memory_space<vmem>>, %arg2: memref<1x512xf32, #tpu.memory_space<vmem>>, %arg3: memref<1x512xf32, #tpu.memory_space<vmem>>, %arg4: memref<512x128xbf16, #tpu.memory_space<vmem>>, %arg5: memref<1x128xf32, #tpu.memory_space<vmem>>, %arg6: memref<8x128xf32, #tpu.memory_space<vmem>>) attributes {dimension_semantics = [], scalar_prefetch = 0 : i64, scratch_operands = 0 : i64, tpu.core_type = #tpu.core_type<tc>} {
    %c0 = arith.constant 0 : index
    %c0_0 = arith.constant 0 : index
    %0 = vector.load %arg0[%c0, %c0_0] : memref<8x6272xbf16, #tpu.memory_space<vmem>>, vector<8x896xbf16>
    %c0_1 = arith.constant 0 : index
    %c0_2 = arith.constant 0 : index
    %1 = vector.load %arg1[%c0_1, %c0_2] : memref<6272x512xbf16, #tpu.memory_space<vmem>>, vector<896x512xbf16>
    %cst = arith.constant dense<0.000000e+00> : vector<8x512xf32>
    %2 = tpu.matmul %0, %1, %cst {dimension_numbers = #tpu.dot_dimension_numbers<[1], [0], [0], [1], [0, 0, 1, 1], [], []>} : vector<8x896xbf16>, vector<896x512xbf16>, vector<8x512xf32> -> vector<8x512xf32>
    %c0_3 = arith.constant 0 : index
    %c896 = arith.constant 896 : index
    %3 = vector.load %arg0[%c0_3, %c896] : memref<8x6272xbf16, #tpu.memory_space<vmem>>, vector<8x896xbf16>
    %c896_4 = arith.constant 896 : index
    %c0_5 = arith.constant 0 : index
    %4 = vector.load %arg1[%c896_4, %c0_5] : memref<6272x512xbf16, #tpu.memory_space<vmem>>, vector<896x512xbf16>
    %cst_6 = arith.constant dense<0.000000e+00> : vector<8x512xf32>
    %5 = tpu.matmul %3, %4, %cst_6 {dimension_numbers = #tpu.dot_dimension_numbers<[1], [0], [0], [1], [0, 0, 1, 1], [], []>} : vector<8x896xbf16>, vector<896x512xbf16>, vector<8x512xf32> -> vector<8x512xf32>
    %6 = arith.addf %2, %5 : vector<8x512xf32>
    %c0_7 = arith.constant 0 : index
    %c1792 = arith.constant 1792 : index
    %7 = vector.load %arg0[%c0_7, %c1792] : memref<8x6272xbf16, #tpu.memory_space<vmem>>, vector<8x896xbf16>
    %c1792_8 = arith.constant 1792 : index
    %c0_9 = arith.constant 0 : index
    %8 = vector.load %arg1[%c1792_8, %c0_9] : memref<6272x512xbf16, #tpu.memory_space<vmem>>, vector<896x512xbf16>
    %cst_10 = arith.constant dense<0.000000e+00> : vector<8x512xf32>
    %9 = tpu.matmul %7, %8, %cst_10 {dimension_numbers = #tpu.dot_dimension_numbers<[1], [0], [0], [1], [0, 0, 1, 1], [], []>} : vector<8x896xbf16>, vector<896x512xbf16>, vector<8x512xf32> -> vector<8x512xf32>
    %10 = arith.addf %6, %9 : vector<8x512xf32>
    %c0_11 = arith.constant 0 : index
    %c2688 = arith.constant 2688 : index
    %11 = vector.load %arg0[%c0_11, %c2688] : memref<8x6272xbf16, #tpu.memory_space<vmem>>, vector<8x896xbf16>
    %c2688_12 = arith.constant 2688 : index
    %c0_13 = arith.constant 0 : index
    %12 = vector.load %arg1[%c2688_12, %c0_13] : memref<6272x512xbf16, #tpu.memory_space<vmem>>, vector<896x512xbf16>
    %cst_14 = arith.constant dense<0.000000e+00> : vector<8x512xf32>
    %13 = tpu.matmul %11, %12, %cst_14 {dimension_numbers = #tpu.dot_dimension_numbers<[1], [0], [0], [1], [0, 0, 1, 1], [], []>} : vector<8x896xbf16>, vector<896x512xbf16>, vector<8x512xf32> -> vector<8x512xf32>
    %14 = arith.addf %10, %13 : vector<8x512xf32>
    %c0_15 = arith.constant 0 : index
    %c3584 = arith.constant 3584 : index
    %15 = vector.load %arg0[%c0_15, %c3584] : memref<8x6272xbf16, #tpu.memory_space<vmem>>, vector<8x896xbf16>
    %c3584_16 = arith.constant 3584 : index
    %c0_17 = arith.constant 0 : index
    %16 = vector.load %arg1[%c3584_16, %c0_17] : memref<6272x512xbf16, #tpu.memory_space<vmem>>, vector<896x512xbf16>
    %cst_18 = arith.constant dense<0.000000e+00> : vector<8x512xf32>
    %17 = tpu.matmul %15, %16, %cst_18 {dimension_numbers = #tpu.dot_dimension_numbers<[1], [0], [0], [1], [0, 0, 1, 1], [], []>} : vector<8x896xbf16>, vector<896x512xbf16>, vector<8x512xf32> -> vector<8x512xf32>
    %18 = arith.addf %14, %17 : vector<8x512xf32>
    %c0_19 = arith.constant 0 : index
    %c4480 = arith.constant 4480 : index
    %19 = vector.load %arg0[%c0_19, %c4480] : memref<8x6272xbf16, #tpu.memory_space<vmem>>, vector<8x896xbf16>
    %c4480_20 = arith.constant 4480 : index
    %c0_21 = arith.constant 0 : index
    %20 = vector.load %arg1[%c4480_20, %c0_21] : memref<6272x512xbf16, #tpu.memory_space<vmem>>, vector<896x512xbf16>
    %cst_22 = arith.constant dense<0.000000e+00> : vector<8x512xf32>
    %21 = tpu.matmul %19, %20, %cst_22 {dimension_numbers = #tpu.dot_dimension_numbers<[1], [0], [0], [1], [0, 0, 1, 1], [], []>} : vector<8x896xbf16>, vector<896x512xbf16>, vector<8x512xf32> -> vector<8x512xf32>
    %22 = arith.addf %18, %21 : vector<8x512xf32>
    %c0_23 = arith.constant 0 : index
    %c5376 = arith.constant 5376 : index
    %23 = vector.load %arg0[%c0_23, %c5376] : memref<8x6272xbf16, #tpu.memory_space<vmem>>, vector<8x896xbf16>
    %c5376_24 = arith.constant 5376 : index
    %c0_25 = arith.constant 0 : index
    %24 = vector.load %arg1[%c5376_24, %c0_25] : memref<6272x512xbf16, #tpu.memory_space<vmem>>, vector<896x512xbf16>
    %cst_26 = arith.constant dense<0.000000e+00> : vector<8x512xf32>
    %25 = tpu.matmul %23, %24, %cst_26 {dimension_numbers = #tpu.dot_dimension_numbers<[1], [0], [0], [1], [0, 0, 1, 1], [], []>} : vector<8x896xbf16>, vector<896x512xbf16>, vector<8x512xf32> -> vector<8x512xf32>
    %26 = arith.addf %22, %25 : vector<8x512xf32>
    %cst_27 = arith.constant dense<0.000000e+00> : vector<512xf32>
    %27 = vector.multi_reduction <add>, %26, %cst_27 [0] : vector<8x512xf32> to vector<512xf32>
    %28 = vector.shape_cast %27 : vector<512xf32> to vector<1x512xf32>
    %cst_28 = arith.constant 5.000000e-01 : f32
    %29 = vector.broadcast %cst_28 : f32 to vector<1x512xf32>
    %30 = arith.mulf %28, %29 : vector<1x512xf32>
    %31 = arith.mulf %26, %26 : vector<8x512xf32>
    %cst_29 = arith.constant dense<0.000000e+00> : vector<512xf32>
    %32 = vector.multi_reduction <add>, %31, %cst_29 [0] : vector<8x512xf32> to vector<512xf32>
    %33 = vector.shape_cast %32 : vector<512xf32> to vector<1x512xf32>
    %cst_30 = arith.constant 5.000000e-01 : f32
    %34 = vector.broadcast %cst_30 : f32 to vector<1x512xf32>
    %35 = arith.mulf %33, %34 : vector<1x512xf32>
    %36 = arith.mulf %30, %30 : vector<1x512xf32>
    %37 = arith.subf %35, %36 : vector<1x512xf32>
    %cst_31 = arith.constant 9.99999974E-6 : f32
    %38 = vector.broadcast %cst_31 : f32 to vector<1x512xf32>
    %39 = arith.addf %37, %38 : vector<1x512xf32>
    %40 = math.rsqrt %39 : vector<1x512xf32>
    %c0_32 = arith.constant 0 : index
    %c0_33 = arith.constant 0 : index
    %41 = vector.load %arg2[%c0_32, %c0_33] : memref<1x512xf32, #tpu.memory_space<vmem>>, vector<1x512xf32>
    %42 = arith.mulf %40, %41 : vector<1x512xf32>
    %43 = vector.broadcast %30 : vector<1x512xf32> to vector<8x512xf32>
    %44 = arith.subf %26, %43 : vector<8x512xf32>
    %45 = vector.broadcast %42 : vector<1x512xf32> to vector<8x512xf32>
    %46 = arith.mulf %44, %45 : vector<8x512xf32>
    %c0_34 = arith.constant 0 : index
    %c0_35 = arith.constant 0 : index
    %47 = vector.load %arg3[%c0_34, %c0_35] : memref<1x512xf32, #tpu.memory_space<vmem>>, vector<1x512xf32>
    %48 = vector.broadcast %47 : vector<1x512xf32> to vector<8x512xf32>
    %49 = arith.addf %46, %48 : vector<8x512xf32>
    %cst_36 = arith.constant 0.000000e+00 : f32
    %50 = vector.broadcast %cst_36 : f32 to vector<8x512xf32>
    %51 = arith.cmpf oge, %49, %50 : vector<8x512xf32>
    %cst_37 = arith.constant 2.000000e-01 : f32
    %52 = vector.broadcast %cst_37 : f32 to vector<8x512xf32>
    %53 = arith.mulf %52, %49 : vector<8x512xf32>
    %54 = arith.select %51, %49, %53 : vector<8x512xi1>, vector<8x512xf32>
    %55 = arith.truncf %54 : vector<8x512xf32> to vector<8x512xbf16>
    %c0_38 = arith.constant 0 : index
    %c0_39 = arith.constant 0 : index
    %56 = vector.load %arg4[%c0_38, %c0_39] : memref<512x128xbf16, #tpu.memory_space<vmem>>, vector<512x128xbf16>
    %cst_40 = arith.constant dense<0.000000e+00> : vector<8x128xf32>
    %57 = tpu.matmul %55, %56, %cst_40 {dimension_numbers = #tpu.dot_dimension_numbers<[1], [0], [0], [1], [0, 0, 1, 1], [], []>} : vector<8x512xbf16>, vector<512x128xbf16>, vector<8x128xf32> -> vector<8x128xf32>
    %c0_41 = arith.constant 0 : index
    %c0_42 = arith.constant 0 : index
    %58 = vector.load %arg5[%c0_41, %c0_42] : memref<1x128xf32, #tpu.memory_space<vmem>>, vector<1x128xf32>
    %59 = vector.broadcast %58 : vector<1x128xf32> to vector<8x128xf32>
    %60 = arith.addf %57, %59 : vector<8x128xf32>
    %cst_43 = arith.constant 0.000000e+00 : f32
    %61 = vector.broadcast %cst_43 : f32 to vector<8x128xf32>
    %62 = arith.subf %61, %60 : vector<8x128xf32>
    %63 = math.exp %62 : vector<8x128xf32>
    %cst_44 = arith.constant 1.000000e+00 : f32
    %64 = vector.broadcast %cst_44 : f32 to vector<8x128xf32>
    %65 = arith.addf %64, %63 : vector<8x128xf32>
    %cst_45 = arith.constant 1.000000e+00 : f32
    %66 = vector.broadcast %cst_45 : f32 to vector<8x128xf32>
    %67 = arith.divf %66, %65 : vector<8x128xf32>
    %c0_46 = arith.constant 0 : index
    %c0_47 = arith.constant 0 : index
    %68 = vector.load %arg6[%c0_46, %c0_47] : memref<8x128xf32, #tpu.memory_space<vmem>>, vector<8x128xf32>
    tpu.vector_store %arg6[%c0_46, %c0_47], %67 {strides = array<i32>} : memref<8x128xf32, #tpu.memory_space<vmem>>, vector<8x128xf32>,
    return
  }
}

</mosaic_0001>

<bundles_post_ra>
// kernel: d_net_forward.3
= control target key start
LH: loop header
LB: loop body
LE: loop exit
PB: predicated region body
PF: predicated region fallthrough
CT: control target
= control target key end

     0   :  { %vm2227_vm1 = vcmask 519168   ;;  %s3889_s1 = inlined_call_operand.vmem [shape: bf16[128,64], index: 1, kind: input, shape index: {}]   ;;  %s3890_s0 = inlined_call_operand.vmem [shape: bf16[1568,128], index: 0, kind: input, shape index: {}]   ;;  %s3891_s2 = inlined_call_operand.vmem [shape: f32[1,64], index: 2, kind: input, shape index: {}]   ;;  %s3892_s3 = inlined_call_operand.vmem [shape: bf16[392,64], index: 3, kind: output, shape index: {}]  }
   0x1   :  { %v2820_v0 = vld [vmem:[%s3889_s1] sm:$0xff]   ;;  %v2821_v1 = vld [vmem:[%s3889_s1 + $0x8] sm:$0xff]   ;;  %v2822_v2 = vld [vmem:[%s3889_s1 + $0x10] sm:$0xff]  }
   0x2   :  { %2592 = vmatprep.subr.bf16.mxu0 %v2820_v0  ;;  %2804 = vmatprep.subr.bf16.mxu1 %v2820_v0  ;;  %v2823_v3 = vld [vmem:[%s3889_s1 + $0x18] sm:$0xff]   ;;  %v2828_v4 = vld [vmem:[%s3890_s0] sm:$0xff]   ;;  %v2829_v5 = vld [vmem:[%s3890_s0 + $0x190] sm:$0xff]  }
   0x3   :  { %2593 = vmatpush3.bf16.msra.mxu0 %v2820_v0  ;;  %2812 = vmatpush3.bf16.msra.mxu1 %v2820_v0  ;;  %v2824_v6 = vld [vmem:[%s3889_s1 + $0x20] sm:$0xff]   ;;  %v2825_v7 = vld [vmem:[%s3889_s1 + $0x28] sm:$0xff]   ;;  %v2826_v8 = vld [vmem:[%s3889_s1 + $0x30] sm:$0xff]  }
   0x4   :  { %2594 = vmatprep.subr.bf16.mxu0 %v2821_v1  ;;  %2805 = vmatprep.subr.bf16.mxu1 %v2821_v1  ;;  %v2827_v9 = vld [vmem:[%s3889_s1 + $0x38] sm:$0xff]   ;;  %v2830_v10 = vld [vmem:[%s3890_s0 + $0x8] sm:$0xff]   ;;  %v2832_v12 = vld [vmem:[%s3890_s0 + $0x10] sm:$0xff]  }
   0x5   :  { %2608 = vmatprep.mubr.bf16.mxu0 %v2828_v4  ;;  %2708 = vmatprep.mubr.bf16.mxu1 %v2829_v5  ;;  %v2831_v11 = vld [vmem:[%s3890_s0 + $0x198] sm:$0xff]   ;;  %v2833_v13 = vld [vmem:[%s3890_s0 + $0x1a0] sm:$0xff]   ;;  %v2835_v15 = vld [vmem:[%s3890_s0 + $0x1a8] sm:$0xff]  }
   0x6   :  { %v2834_v14 = vld [vmem:[%s3890_s0 + $0x18] sm:$0xff]   ;;  %v2836_v16 = vld [vmem:[%s3890_s0 + $0x20] sm:$0xff]   ;;  %v2837_v17 = vld [vmem:[%s3890_s0 + $0x1b0] sm:$0xff]  }
   0x7   :  { %2595 = vmatpush3.bf16.msra.mxu0 %v2821_v1  ;;  %2813 = vmatpush3.bf16.msra.mxu1 %v2821_v1  ;;  %v2838_v18 = vld [vmem:[%s3890_s0 + $0x28] sm:$0xff]   ;;  %v2839_v19 = vld [vmem:[%s3890_s0 + $0x1b8] sm:$0xff]   ;;  %v2840_v20 = vld [vmem:[%s3890_s0 + $0x30] sm:$0xff]  }
   0x8   :  { %2596 = vmatprep.subr.bf16.mxu0 %v2822_v2  ;;  %2806 = vmatprep.subr.bf16.mxu1 %v2822_v2  ;;  %v2841_v21 = vld [vmem:[%s3890_s0 + $0x1c0] sm:$0xff]   ;;  %v2842_v22 = vld [vmem:[%s3890_s0 + $0x38] sm:$0xff]   ;;  %v2843_v23 = vld [vmem:[%s3890_s0 + $0x1c8] sm:$0xff]  }
   0x9   :  { %v2844_v24 = vld [vmem:[%s3890_s0 + $0x40] sm:$0xff]   ;;  %v2845_v25 = vld [vmem:[%s3890_s0 + $0x1d0] sm:$0xff]   ;;  %v2846_v26 = vld [vmem:[%s3890_s0 + $0x48] sm:$0xff]  }
   0xa   :  { %v2847_v27 = vld [vmem:[%s3890_s0 + $0x1d8] sm:$0xff]   ;;  %v2848_v28 = vld [vmem:[%s3890_s0 + $0x50] sm:$0xff]   ;;  %v2849_v29 = vld [vmem:[%s3890_s0 + $0x1e0] sm:$0xff]  }
   0xb   :  { %2597 = vmatpush3.bf16.msra.mxu0 %v2822_v2  ;;  %2814 = vmatpush3.bf16.msra.mxu1 %v2822_v2  ;;  %v2850_v30 = vld [vmem:[%s3890_s0 + $0x58] sm:$0xff]   ;;  %v2851_v31 = vld [vmem:[%s3890_s0 + $0x1e8] sm:$0xff]   ;;  %v2852_v32 = vld [vmem:[%s3890_s0 + $0x60] sm:$0xff]  }
   0xc   :  { %2598 = vmatprep.subr.bf16.mxu0 %v2823_v3  ;;  %2807 = vmatprep.subr.bf16.mxu1 %v2823_v3  ;;  %v2853_v33 = vld [vmem:[%s3890_s0 + $0x1f0] sm:$0xff]   ;;  %v2854_v34 = vld [vmem:[%s3890_s0 + $0x68] sm:$0xff]   ;;  %v2855_v35 = vld [vmem:[%s3890_s0 + $0x1f8] sm:$0xff]  }
   0xd   :  { %v2856_v36 = vld [vmem:[%s3890_s0 + $0x70] sm:$0xff]   ;;  %v2857_v37 = vld [vmem:[%s3890_s0 + $0x200] sm:$0xff]   ;;  %v2858_v38 = vld [vmem:[%s3890_s0 + $0x78] sm:$0xff]  }
   0xe   :  { %v2859_v39 = vld [vmem:[%s3890_s0 + $0x208] sm:$0xff]   ;;  %v2860_v40 = vld [vmem:[%s3890_s0 + $0x80] sm:$0xff]   ;;  %v2861_v41 = vld [vmem:[%s3890_s0 + $0x210] sm:$0xff]  }
   0xf   :  { %2599 = vmatpush3.bf16.msra.mxu0 %v2823_v3  ;;  %2815 = vmatpush3.bf16.msra.mxu1 %v2823_v3  ;;  %v2862_v42 = vld [vmem:[%s3890_s0 + $0x88] sm:$0xff]   ;;  %v2863_v43 = vld [vmem:[%s3890_s0 + $0x218] sm:$0xff]   ;;  %v2864_v44 = vld [vmem:[%s3890_s0 + $0x90] sm:$0xff]  }
  0x10   :  { %2600 = vmatprep.subr.bf16.mxu0 %v2824_v6  ;;  %2808 = vmatprep.subr.bf16.mxu1 %v2824_v6  ;;  %v2865_v45 = vld [vmem:[%s3890_s0 + $0x220] sm:$0xff]   ;;  %v2866_v46 = vld [vmem:[%s3890_s0 + $0x98] sm:$0xff]   ;;  %v2867_v47 = vld [vmem:[%s3890_s0 + $0x228] sm:$0xff]  }
  0x11   :  { %v2868_v48 = vld [vmem:[%s3890_s0 + $0xa0] sm:$0xff]   ;;  %v2869_v49 = vld [vmem:[%s3890_s0 + $0x230] sm:$0xff]   ;;  %v2870_v50 = vld [vmem:[%s3890_s0 + $0xa8] sm:$0xff]  }
  0x12   :  { %v2871_v51 = vld [vmem:[%s3890_s0 + $0x238] sm:$0xff]   ;;  %v2872_v52 = vld [vmem:[%s3890_s0 + $0xb0] sm:$0xff]   ;;  %v2873_v53 = vld [vmem:[%s3890_s0 + $0x240] sm:$0xff]  }
  0x13   :  { %2601 = vmatpush3.bf16.msra.mxu0 %v2824_v6  ;;  %2816 = vmatpush3.bf16.msra.mxu1 %v2824_v6  ;;  %v2874_v54 = vld [vmem:[%s3890_s0 + $0xb8] sm:$0xff]   ;;  %v2875_v55 = vld [vmem:[%s3890_s0 + $0x248] sm:$0xff]   ;;  %v2876_v56 = vld [vmem:[%s3890_s0 + $0xc0] sm:$0xff]  }
  0x14   :  { %2602 = vmatprep.subr.bf16.mxu0 %v2825_v7  ;;  %2809 = vmatprep.subr.bf16.mxu1 %v2825_v7  ;;  %v2877_v57 = vld [vmem:[%s3890_s0 + $0x250] sm:$0xff]   ;;  %v2878_v58 = vld [vmem:[%s3890_s0 + $0xc8] sm:$0xff]   ;;  %v2879_v59 = vld [vmem:[%s3890_s0 + $0x258] sm:$0xff]  }
  0x15   :  { %v2880_v60 = vld [vmem:[%s3890_s0 + $0xd0] sm:$0xff]   ;;  %v2881_v61 = vld [vmem:[%s3890_s0 + $0x260] sm:$0xff]   ;;  %v2882_v62 = vld [vmem:[%s3890_s0 + $0xd8] sm:$0xff]  }
  0x16   :  { %v2883_v63 = vld [vmem:[%s3890_s0 + $0x268] sm:$0xff]   ;;  %v2884_v0 = vld [vmem:[%s3890_s0 + $0xe0] sm:$0xff]   ;;  %v2885_v1 = vld [vmem:[%s3890_s0 + $0x270] sm:$0xff]  }
  0x17   :  { %2603 = vmatpush3.bf16.msra.mxu0 %v2825_v7  ;;  %2817 = vmatpush3.bf16.msra.mxu1 %v2825_v7  ;;  %v2886_v2 = vld [vmem:[%s3890_s0 + $0xe8] sm:$0xff]   ;;  %v2887_v3 = vld [vmem:[%s3890_s0 + $0x278] sm:$0xff]   ;;  %v2888_v4 = vld [vmem:[%s3890_s0 + $0xf0] sm:$0xff]  }
  0x18   :  { %2604 = vmatprep.subr.bf16.mxu0 %v2826_v8  ;;  %2810 = vmatprep.subr.bf16.mxu1 %v2826_v8  ;;  %v2889_v5 = vld [vmem:[%s3890_s0 + $0x280] sm:$0xff]   ;;  %v2890_v6 = vld [vmem:[%s3890_s0 + $0xf8] sm:$0xff]   ;;  %v2891_v7 = vld [vmem:[%s3890_s0 + $0x288] sm:$0xff]  }
  0x1b   :  { %2605 = vmatpush3.bf16.msra.mxu0 %v2826_v8  ;;  %2818 = vmatpush3.bf16.msra.mxu1 %v2826_v8  ;;  %v2892_v8 = vld [vmem:[%s3890_s0 + $0x100] sm:$0xff]  }
  0x1c   :  { %2606 = vmatprep.subr.bf16.mxu0 %v2827_v9  ;;  %2811 = vmatprep.subr.bf16.mxu1 %v2827_v9 }
  0x1f   :  { %2607 = vmatpush3.bf16.msra.mxu0 %v2827_v9  ;;  %2819 = vmatpush3.bf16.msra.mxu1 %v2827_v9  ;;  %v2893_v9 = vld [vmem:[%s3890_s0 + $0x290] sm:$0xff]  }
  0x22   :  { %2609 = vmatmul.mubr.bf16.vlgmr.msra.gmra.mrb[0].mxu0 %v2830_v10  ;;  %2709 = vmatmul.mubr.bf16.vlgmr.msra.gmra.mrb[0].mxu1 %v2831_v11  ;;  %v2894_v10 = vld [vmem:[%s3890_s0 + $0x108] sm:$0xff]   ;;  %v2895_v11 = vld [vmem:[%s3890_s0 + $0x298] sm:$0xff]  }
  0x23   :  { %2612 = vmatprep.mubr.bf16.mxu0 %v2832_v12  ;;  %2712 = vmatprep.mubr.bf16.mxu1 %v2833_v13  ;;  %v2896_v12 = vld [vmem:[%s3890_s0 + $0x110] sm:$0xff]   ;;  %v2897_v13 = vld [vmem:[%s3890_s0 + $0x2a0] sm:$0xff]  }
  0x2a   :  { %2613 = vmatmul.mubr.bf16.gmra.mrb[4].mxu0 %v2834_v14  ;;  %2713 = vmatmul.mubr.bf16.gmra.mrb[4].mxu1 %v2835_v15  ;;  %v2898_v14 = vld [vmem:[%s3890_s0 + $0x118] sm:$0xff]   ;;  %v2899_v15 = vld [vmem:[%s3890_s0 + $0x2a8] sm:$0xff]  }
  0x2b   :  { %2616 = vmatprep.mubr.bf16.mxu0 %v2836_v16  ;;  %2716 = vmatprep.mubr.bf16.mxu1 %v2837_v17  ;;  %v2900_v16 = vld [vmem:[%s3890_s0 + $0x120] sm:$0xff]   ;;  %v2901_v17 = vld [vmem:[%s3890_s0 + $0x2b0] sm:$0xff]  }
  0x32   :  { %2617 = vmatmul.mubr.bf16.gmra.mrb[8].mxu0 %v2838_v18  ;;  %2717 = vmatmul.mubr.bf16.gmra.mrb[8].mxu1 %v2839_v19  ;;  %v2902_v18 = vld [vmem:[%s3890_s0 + $0x128] sm:$0xff]   ;;  %v2903_v19 = vld [vmem:[%s3890_s0 + $0x2b8] sm:$0xff]  }
  0x33   :  { %2620 = vmatprep.mubr.bf16.mxu0 %v2840_v20  ;;  %2720 = vmatprep.mubr.bf16.mxu1 %v2841_v21  ;;  %v2904_v20 = vld [vmem:[%s3890_s0 + $0x130] sm:$0xff]   ;;  %v2905_v21 = vld [vmem:[%s3890_s0 + $0x2c0] sm:$0xff]  }
  0x3a   :  { %2621 = vmatmul.mubr.bf16.gmra.mrb[12].mxu0 %v2842_v22  ;;  %2721 = vmatmul.mubr.bf16.gmra.mrb[12].mxu1 %v2843_v23  ;;  %v2906_v22 = vld [vmem:[%s3890_s0 + $0x138] sm:$0xff]   ;;  %v2907_v23 = vld [vmem:[%s3890_s0 + $0x2c8] sm:$0xff]  }
  0x3b   :  { %2624 = vmatprep.mubr.bf16.mxu0 %v2844_v24  ;;  %2724 = vmatprep.mubr.bf16.mxu1 %v2845_v25  ;;  %v2908_v24 = vld [vmem:[%s3890_s0 + $0x140] sm:$0xff]   ;;  %v2909_v25 = vld [vmem:[%s3890_s0 + $0x2d0] sm:$0xff]  }
  0x42   :  { %2625 = vmatmul.mubr.bf16.gmra.mrb[16].mxu0 %v2846_v26  ;;  %2725 = vmatmul.mubr.bf16.gmra.mrb[16].mxu1 %v2847_v27  ;;  %v2910_v26 = vld [vmem:[%s3890_s0 + $0x148] sm:$0xff]   ;;  %v2911_v27 = vld [vmem:[%s3890_s0 + $0x2d8] sm:$0xff]  }
  0x43   :  { %2628 = vmatprep.mubr.bf16.mxu0 %v2848_v28  ;;  %2728 = vmatprep.mubr.bf16.mxu1 %v2849_v29  ;;  %v2912_v28 = vld [vmem:[%s3890_s0 + $0x150] sm:$0xff]   ;;  %v2913_v29 = vld [vmem:[%s3890_s0 + $0x2e0] sm:$0xff]  }
  0x4a   :  { %2629 = vmatmul.mubr.bf16.gmra.mrb[20].mxu0 %v2850_v30  ;;  %2729 = vmatmul.mubr.bf16.gmra.mrb[20].mxu1 %v2851_v31  ;;  %v2914_v30 = vld [vmem:[%s3890_s0 + $0x158] sm:$0xff]   ;;  %v2915_v31 = vld [vmem:[%s3890_s0 + $0x2e8] sm:$0xff]  }
  0x4b   :  { %2632 = vmatprep.mubr.bf16.mxu0 %v2852_v32  ;;  %2732 = vmatprep.mubr.bf16.mxu1 %v2853_v33  ;;  %v2916_v32 = vld [vmem:[%s3890_s0 + $0x160] sm:$0xff]   ;;  %v2917_v33 = vld [vmem:[%s3890_s0 + $0x2f0] sm:$0xff]  }
  0x52   :  { %2633 = vmatmul.mubr.bf16.gmra.mrb[24].mxu0 %v2854_v34  ;;  %2733 = vmatmul.mubr.bf16.gmra.mrb[24].mxu1 %v2855_v35  ;;  %v2918_v34 = vld [vmem:[%s3890_s0 + $0x168] sm:$0xff]   ;;  %v2919_v35 = vld [vmem:[%s3890_s0 + $0x2f8] sm:$0xff]  }
  0x53   :  { %2636 = vmatprep.mubr.bf16.mxu0 %v2856_v36  ;;  %2736 = vmatprep.mubr.bf16.mxu1 %v2857_v37  ;;  %v2920_v36 = vld [vmem:[%s3890_s0 + $0x170] sm:$0xff]   ;;  %v2921_v37 = vld [vmem:[%s3890_s0 + $0x300] sm:$0xff]  }
  0x5a   :  { %2637 = vmatmul.mubr.bf16.gmra.mrb[28].mxu0 %v2858_v38  ;;  %2737 = vmatmul.mubr.bf16.gmra.mrb[28].mxu1 %v2859_v39  ;;  %v2922_v38 = vld [vmem:[%s3890_s0 + $0x178] sm:$0xff]   ;;  %v2923_v39 = vld [vmem:[%s3890_s0 + $0x308] sm:$0xff]  }
  0x5b   :  { %2640 = vmatprep.mubr.bf16.mxu0 %v2860_v40  ;;  %2740 = vmatprep.mubr.bf16.mxu1 %v2861_v41  ;;  %v2924_v40 = vld [vmem:[%s3890_s0 + $0x180] sm:$0xff]   ;;  %v2925_v41 = vld [vmem:[%s3890_s0 + $0x188] sm:$0xff]  }
  0x62   :  { %2641 = vmatmul.mubr.bf16.gmra.mrb[32].mxu0 %v2862_v42  ;;  %2741 = vmatmul.mubr.bf16.gmra.mrb[32].mxu1 %v2863_v43 }
  0x63   :  { %2644 = vmatprep.mubr.bf16.mxu0 %v2864_v44  ;;  %2744 = vmatprep.mubr.bf16.mxu1 %v2865_v45 }
  0x6a   :  { %2645 = vmatmul.mubr.bf16.gmra.mrb[36].mxu0 %v2866_v46  ;;  %2745 = vmatmul.mubr.bf16.gmra.mrb[36].mxu1 %v2867_v47 }
  0x6b   :  { %2648 = vmatprep.mubr.bf16.mxu0 %v2868_v48  ;;  %2748 = vmatprep.mubr.bf16.mxu1 %v2869_v49 }
  0x72   :  { %2649 = vmatmul.mubr.bf16.gmra.mrb[40].mxu0 %v2870_v50  ;;  %2749 = vmatmul.mubr.bf16.gmra.mrb[40].mxu1 %v2871_v51 }
  0x73   :  { %2652 = vmatprep.mubr.bf16.mxu0 %v2872_v52  ;;  %2752 = vmatprep.mubr.bf16.mxu1 %v2873_v53 }
  0x7a   :  { %2653 = vmatmul.mubr.bf16.gmra.mrb[44].mxu0 %v2874_v54  ;;  %2753 = vmatmul.mubr.bf16.gmra.mrb[44].mxu1 %v2875_v55 }
  0x7b   :  { %2656 = vmatprep.mubr.bf16.mxu0 %v2876_v56  ;;  %2756 = vmatprep.mubr.bf16.mxu1 %v2877_v57 }
  0x82   :  { %2657 = vmatmul.mubr.bf16.gmra.mrb[48].mxu0 %v2878_v58  ;;  %2757 = vmatmul.mubr.bf16.gmra.mrb[48].mxu1 %v2879_v59 }
  0x83   :  { %2660 = vmatprep.mubr.bf16.mxu0 %v2880_v60  ;;  %2760 = vmatprep.mubr.bf16.mxu1 %v2881_v61 }
  0x8a   :  { %2661 = vmatmul.mubr.bf16.gmra.mrb[52].mxu0 %v2882_v62  ;;  %2761 = vmatmul.mubr.bf16.gmra.mrb[52].mxu1 %v2883_v63 }
  0x8b   :  { %2664 = vmatprep.mubr.bf16.mxu0 %v2884_v0  ;;  %2764 = vmatprep.mubr.bf16.mxu1 %v2885_v1 }
  0x92   :  { %2665 = vmatmul.mubr.bf16.gmra.mrb[56].mxu0 %v2886_v2  ;;  %2765 = vmatmul.mubr.bf16.gmra.mrb[56].mxu1 %v2887_v3 }
  0x93   :  { %2668 = vmatprep.mubr.bf16.mxu0 %v2888_v4  ;;  %2768 = vmatprep.mubr.bf16.mxu1 %v2889_v5 }
  0x9a   :  { %2669 = vmatmul.mubr.bf16.gmra.mrb[60].mxu0 %v2890_v6  ;;  %2769 = vmatmul.mubr.bf16.gmra.mrb[60].mxu1 %v2891_v7 }
  0x9b   :  { %2672 = vmatprep.mubr.bf16.mxu0 %v2892_v8  ;;  %2772 = vmatprep.mubr.bf16.mxu1 %v2893_v9 }
  0xa2   :  { %2673 = vmatmul.mubr.bf16.gmra.mrb[64].mxu0 %v2894_v10  ;;  %2773 = vmatmul.mubr.bf16.gmra.mrb[64].mxu1 %v2895_v11 }
  0xa3   :  { %2676 = vmatprep.mubr.bf16.mxu0 %v2896_v12  ;;  %2776 = vmatprep.mubr.bf16.mxu1 %v2897_v13 }
  0xaa   :  { %2677 = vmatmul.mubr.bf16.gmra.mrb[68].mxu0 %v2898_v14  ;;  %2777 = vmatmul.mubr.bf16.gmra.mrb[68].mxu1 %v2899_v15 }
  0xab   :  { %2680 = vmatprep.mubr.bf16.mxu0 %v2900_v16  ;;  %2780 = vmatprep.mubr.bf16.mxu1 %v2901_v17 }
  0xb2   :  { %2681 = vmatmul.mubr.bf16.gmra.mrb[72].mxu0 %v2902_v18  ;;  %2781 = vmatmul.mubr.bf16.gmra.mrb[72].mxu1 %v2903_v19 }
  0xb3   :  { %2684 = vmatprep.mubr.bf16.mxu0 %v2904_v20  ;;  %2784 = vmatprep.mubr.bf16.mxu1 %v2905_v21 }
  0xba   :  { %2685 = vmatmul.mubr.bf16.gmra.mrb[76].mxu0 %v2906_v22  ;;  %2785 = vmatmul.mubr.bf16.gmra.mrb[76].mxu1 %v2907_v23 }
  0xbb   :  { %2688 = vmatprep.mubr.bf16.mxu0 %v2908_v24  ;;  %2788 = vmatprep.mubr.bf16.mxu1 %v2909_v25 }
  0xc2   :  { %2689 = vmatmul.mubr.bf16.gmra.mrb[80].mxu0 %v2910_v26  ;;  %2789 = vmatmul.mubr.bf16.gmra.mrb[80].mxu1 %v2911_v27 }
  0xc3   :  { %2692 = vmatprep.mubr.bf16.mxu0 %v2912_v28  ;;  %2792 = vmatprep.mubr.bf16.mxu1 %v2913_v29 }
  0xca   :  { %2693 = vmatmul.mubr.bf16.gmra.mrb[84].mxu0 %v2914_v30  ;;  %2793 = vmatmul.mubr.bf16.gmra.mrb[84].mxu1 %v2915_v31 }
  0xcb   :  { %2696 = vmatprep.mubr.bf16.mxu0 %v2916_v32  ;;  %2796 = vmatprep.mubr.bf16.mxu1 %v2917_v33 }
  0xd2   :  { %2697 = vmatmul.mubr.bf16.gmra.mrb[88].mxu0 %v2918_v34  ;;  %2797 = vmatmul.mubr.bf16.gmra.mrb[88].mxu1 %v2919_v35 }
  0xd3   :  { %2700 = vmatprep.mubr.bf16.mxu0 %v2920_v36  ;;  %2800 = vmatprep.mubr.bf16.mxu1 %v2921_v37 }
  0xda   :  { %2701 = vmatmul.mubr.bf16.gmra.mrb[92].mxu0 %v2922_v38  ;;  %2801 = vmatmul.mubr.bf16.gmra.mrb[92].mxu1 %v2923_v39 }
  0xdb   :  { %2704 = vmatprep.mubr.bf16.mxu0 %v2924_v40 }
  0xe2   :  { %2705 = vmatmul.mubr.bf16.gmra.mrb[96].mxu0 %v2925_v41 }
  0xf5   :  { %v3265_v42 = vpop.f32.mrb[0].mxu0  ;;  %v3267_v43 = vpop.f32.mrb[0].mxu1 }
  0xf6   :  { %v3269_v44 = vpop.f32.mrb[1].mxu0  ;;  %v3271_v45 = vpop.f32.mrb[1].mxu1 }
  0xf7   :  { %3897 = vst [vmem:[#allocation2_spill] sm:$0xff] %v3269_v44  ;;  %v3273_v46 = vpop.f32.mrb[2].mxu0  ;;  %v3275_v47 = vpop.f32.mrb[2].mxu1 }
  0xf8   :  { %v3277_v48 = vpop.f32.mrb[3].mxu0  ;;  %v3279_v49 = vpop.f32.mrb[3].mxu1 }
  0xf9   :  { %3898 = vst [vmem:[#allocation3_spill] sm:$0xff] %v3277_v48 }
  0xfd   :  { %v3281_v50 = vpop.f32.mrb[4].mxu0  ;;  %v3283_v51 = vpop.f32.mrb[4].mxu1 }
  0xfe   :  { %v3285_v52 = vpop.f32.mrb[5].mxu0  ;;  %v3287_v53 = vpop.f32.mrb[5].mxu1 }
  0xff   :  { %v3289_v54 = vpop.f32.mrb[6].mxu0  ;;  %v3291_v55 = vpop.f32.mrb[6].mxu1 }
 0x100   :  { %v3293_v56 = vpop.f32.mrb[7].mxu0  ;;  %v3295_v57 = vpop.f32.mrb[7].mxu1 }
 0x105   :  { %v3297_v58 = vpop.f32.mrb[8].mxu0  ;;  %v3299_v59 = vpop.f32.mrb[8].mxu1 }
 0x106   :  { %v3301_v60 = vpop.f32.mrb[9].mxu0  ;;  %v3303_v61 = vpop.f32.mrb[9].mxu1 }
 0x107   :  { %v3305_v62 = vpop.f32.mrb[10].mxu0  ;;  %v3307_v63 = vpop.f32.mrb[10].mxu1 }
 0x108   :  { %v3309_v0 = vpop.f32.mrb[11].mxu0  ;;  %v3311_v1 = vpop.f32.mrb[11].mxu1 }
 0x10d   :  { %v3313_v2 = vpop.f32.mrb[12].mxu0  ;;  %v3315_v3 = vpop.f32.mrb[12].mxu1 }
 0x10e   :  { %v3317_v4 = vpop.f32.mrb[13].mxu0  ;;  %v3319_v5 = vpop.f32.mrb[13].mxu1 }
 0x10f   :  { %v3321_v6 = vpop.f32.mrb[14].mxu0  ;;  %v3323_v7 = vpop.f32.mrb[14].mxu1 }
 0x110   :  { %v3325_v8 = vpop.f32.mrb[15].mxu0  ;;  %v3327_v9 = vpop.f32.mrb[15].mxu1 }
 0x115   :  { %v3329_v10 = vpop.f32.mrb[16].mxu0  ;;  %v3331_v11 = vpop.f32.mrb[16].mxu1 }
 0x116   :  { %v3333_v12 = vpop.f32.mrb[17].mxu0  ;;  %v3335_v13 = vpop.f32.mrb[17].mxu1 }
 0x117   :  { %v3337_v14 = vpop.f32.mrb[18].mxu0  ;;  %v3339_v15 = vpop.f32.mrb[18].mxu1 }
 0x118   :  { %v3341_v16 = vpop.f32.mrb[19].mxu0  ;;  %v3343_v17 = vpop.f32.mrb[19].mxu1 }
 0x11d   :  { %v3345_v18 = vpop.f32.mrb[20].mxu0  ;;  %v3347_v19 = vpop.f32.mrb[20].mxu1 }
 0x11e   :  { %v3349_v20 = vpop.f32.mrb[21].mxu0  ;;  %v3351_v21 = vpop.f32.mrb[21].mxu1 }
 0x11f   :  { %v3353_v22 = vpop.f32.mrb[22].mxu0  ;;  %v3355_v23 = vpop.f32.mrb[22].mxu1 }
 0x120   :  { %3899 = vst [vmem:[#allocation4_spill] sm:$0xff] %v3355_v23  ;;  %v3357_v24 = vpop.f32.mrb[23].mxu0  ;;  %v3359_v25 = vpop.f32.mrb[23].mxu1 }
 0x125   :  { %v3361_v26 = vpop.f32.mrb[24].mxu0  ;;  %v3363_v27 = vpop.f32.mrb[24].mxu1 }
 0x126   :  { %3900 = vst [vmem:[#allocation5_spill] sm:$0xff] %v3361_v26  ;;  %3901 = vst [vmem:[#allocation6_spill] sm:$0xff] %v3363_v27  ;;  %v3365_v28 = vpop.f32.mrb[25].mxu0  ;;  %v3367_v29 = vpop.f32.mrb[25].mxu1 }
 0x127   :  { %3902 = vst [vmem:[#allocation7_spill] sm:$0xff] %v3365_v28  ;;  %3903 = vst [vmem:[#allocation8_spill] sm:$0xff] %v3367_v29  ;;  %v3369_v30 = vpop.f32.mrb[26].mxu0  ;;  %v3371_v31 = vpop.f32.mrb[26].mxu1 }
 0x128   :  { %3904 = vst [vmem:[#allocation9_spill] sm:$0xff] %v3369_v30  ;;  %3905 = vst [vmem:[#allocation10_spill] sm:$0xff] %v3371_v31  ;;  %v3373_v32 = vpop.f32.mrb[27].mxu0  ;;  %v3375_v33 = vpop.f32.mrb[27].mxu1 }
 0x12d   :  { %v3377_v34 = vpop.f32.mrb[28].mxu0  ;;  %v3379_v35 = vpop.f32.mrb[28].mxu1 }
 0x12e   :  { %3906 = vst [vmem:[#allocation11_spill] sm:$0xff] %v3377_v34  ;;  %3907 = vst [vmem:[#allocation12_spill] sm:$0xff] %v3379_v35  ;;  %v3381_v36 = vpop.f32.mrb[29].mxu0  ;;  %v3383_v37 = vpop.f32.mrb[29].mxu1 }
 0x12f   :  { %3908 = vst [vmem:[#allocation13_spill] sm:$0xff] %v3381_v36  ;;  %3909 = vst [vmem:[#allocation14_spill] sm:$0xff] %v3383_v37  ;;  %v3385_v38 = vpop.f32.mrb[30].mxu0  ;;  %v3387_v39 = vpop.f32.mrb[30].mxu1 }
 0x130   :  { %3910 = vst [vmem:[#allocation15_spill] sm:$0xff] %v3385_v38  ;;  %3911 = vst [vmem:[#allocation16_spill] sm:$0xff] %v3387_v39  ;;  %v3389_v40 = vpop.f32.mrb[31].mxu0  ;;  %v3391_v41 = vpop.f32.mrb[31].mxu1 }
 0x131   :  { %3912 = vst [vmem:[#allocation17_spill] sm:$0xff] %v3389_v40  ;;  %3913 = vst [vmem:[#allocation18_spill] sm:$0xff] %v3391_v41 }
 0x135   :  { %v3393_v31 = vpop.f32.mrb[32].mxu0  ;;  %v3395_v30 = vpop.f32.mrb[32].mxu1 }
 0x136   :  { %3914 = vst [vmem:[#allocation19_spill] sm:$0xff] %v3393_v31  ;;  %3915 = vst [vmem:[#allocation20_spill] sm:$0xff] %v3395_v30  ;;  %v3397_v29 = vpop.f32.mrb[33].mxu0  ;;  %v3399_v34 = vpop.f32.mrb[33].mxu1 }
 0x137   :  { %3916 = vst [vmem:[#allocation21_spill] sm:$0xff] %v3397_v29  ;;  %3917 = vst [vmem:[#allocation22_spill] sm:$0xff] %v3399_v34  ;;  %v3401_v35 = vpop.f32.mrb[34].mxu0  ;;  %v3403_v36 = vpop.f32.mrb[34].mxu1 }
 0x138   :  { %3918 = vst [vmem:[#allocation23_spill] sm:$0xff] %v3401_v35  ;;  %3919 = vst [vmem:[#allocation24_spill] sm:$0xff] %v3403_v36  ;;  %v3405_v37 = vpop.f32.mrb[35].mxu0  ;;  %v3407_v38 = vpop.f32.mrb[35].mxu1 }
 0x139   :  { %3920 = vst [vmem:[#allocation25_spill] sm:$0xff] %v3405_v37  ;;  %3921 = vst [vmem:[#allocation26_spill] sm:$0xff] %v3407_v38 }
 0x13d   :  { %v3409_v39 = vpop.f32.mrb[36].mxu0  ;;  %v3411_v40 = vpop.f32.mrb[36].mxu1 }
 0x13e   :  { %3922 = vst [vmem:[#allocation27_spill] sm:$0xff] %v3409_v39  ;;  %3923 = vst [vmem:[#allocation28_spill] sm:$0xff] %v3411_v40  ;;  %v3413_v41 = vpop.f32.mrb[37].mxu0  ;;  %v3415_v31 = vpop.f32.mrb[37].mxu1 }
 0x13f   :  { %3924 = vst [vmem:[#allocation29_spill] sm:$0xff] %v3413_v41  ;;  %3925 = vst [vmem:[#allocation30_spill] sm:$0xff] %v3415_v31  ;;  %v3417_v30 = vpop.f32.mrb[38].mxu0  ;;  %v3419_v29 = vpop.f32.mrb[38].mxu1 }
 0x140   :  { %3926 = vst [vmem:[#allocation31_spill] sm:$0xff] %v3417_v30  ;;  %3927 = vst [vmem:[#allocation32_spill] sm:$0xff] %v3419_v29  ;;  %v3421_v34 = vpop.f32.mrb[39].mxu0  ;;  %v3423_v35 = vpop.f32.mrb[39].mxu1 }
 0x141   :  { %3928 = vst [vmem:[#allocation33_spill] sm:$0xff] %v3421_v34  ;;  %3929 = vst [vmem:[#allocation34_spill] sm:$0xff] %v3423_v35 }
 0x145   :  { %v3425_v36 = vpop.f32.mrb[40].mxu0  ;;  %v3427_v37 = vpop.f32.mrb[40].mxu1 }
 0x146   :  { %3930 = vst [vmem:[#allocation35_spill] sm:$0xff] %v3425_v36  ;;  %3931 = vst [vmem:[#allocation36_spill] sm:$0xff] %v3427_v37  ;;  %v3429_v38 = vpop.f32.mrb[41].mxu0  ;;  %v3431_v39 = vpop.f32.mrb[41].mxu1 }
 0x147   :  { %3932 = vst [vmem:[#allocation37_spill] sm:$0xff] %v3429_v38  ;;  %3933 = vst [vmem:[#allocation38_spill] sm:$0xff] %v3431_v39  ;;  %v3433_v40 = vpop.f32.mrb[42].mxu0  ;;  %v3435_v41 = vpop.f32.mrb[42].mxu1 }
 0x148   :  { %3934 = vst [vmem:[#allocation39_spill] sm:$0xff] %v3433_v40  ;;  %3935 = vst [vmem:[#allocation40_spill] sm:$0xff] %v3435_v41  ;;  %v3437_v31 = vpop.f32.mrb[43].mxu0  ;;  %v3439_v30 = vpop.f32.mrb[43].mxu1 }
 0x149   :  { %3936 = vst [vmem:[#allocation41_spill] sm:$0xff] %v3437_v31  ;;  %3937 = vst [vmem:[#allocation42_spill] sm:$0xff] %v3439_v30 }
 0x14d   :  { %v3441_v29 = vpop.f32.mrb[44].mxu0  ;;  %v3443_v34 = vpop.f32.mrb[44].mxu1 }
 0x14e   :  { %3938 = vst [vmem:[#allocation43_spill] sm:$0xff] %v3441_v29  ;;  %3939 = vst [vmem:[#allocation44_spill] sm:$0xff] %v3443_v34  ;;  %v3445_v35 = vpop.f32.mrb[45].mxu0  ;;  %v3447_v36 = vpop.f32.mrb[45].mxu1 }
 0x14f   :  { %3940 = vst [vmem:[#allocation45_spill] sm:$0xff] %v3445_v35  ;;  %3941 = vst [vmem:[#allocation46_spill] sm:$0xff] %v3447_v36  ;;  %v3449_v37 = vpop.f32.mrb[46].mxu0  ;;  %v3451_v38 = vpop.f32.mrb[46].mxu1 }
 0x150   :  { %3942 = vst [vmem:[#allocation47_spill] sm:$0xff] %v3449_v37  ;;  %3943 = vst [vmem:[#allocation48_spill] sm:$0xff] %v3451_v38  ;;  %v3453_v39 = vpop.f32.mrb[47].mxu0  ;;  %v3455_v40 = vpop.f32.mrb[47].mxu1 }
 0x151   :  { %3944 = vst [vmem:[#allocation49_spill] sm:$0xff] %v3453_v39  ;;  %3945 = vst [vmem:[#allocation50_spill] sm:$0xff] %v3455_v40 }
 0x155   :  { %v3457_v41 = vpop.f32.mrb[48].mxu0  ;;  %v2758_v31 = vpop.f32.mrb[48].mxu1 }
 0x156   :  { %3946 = vst [vmem:[#allocation51_spill] sm:$0xff] %v3457_v41  ;;  %v1732_v34 = vmax.f32 %v3279_v49, %v2758_v31  ;;  %v3462_v30 = vpop.f32.mrb[49].mxu0  ;;  %v3464_v35 = vpop.f32.mrb[49].mxu1  ;;  %v3476_v49 = vld [vmem:[%s3891_s2] ss:$0 sm:$0xff] }
 0x157   :  { %3947 = vst [vmem:[#allocation52_spill] sm:$0xff] %v3462_v30  ;;  %3948 = vst [vmem:[#allocation53_spill] sm:$0xff] %v3464_v35  ;;  %v2659_v36 = vpop.f32.mrb[50].mxu0  ;;  %v2759_v37 = vpop.f32.mrb[50].mxu1 }
 0x158   :  { %v1682_v38 = vmax.f32 %v3265_v42, %v2659_v36  ;;  %v1733_v39 = vmax.f32 %v3267_v43, %v2759_v37  ;;  %v3468_v28 = vpop.f32.mrb[51].mxu0  ;;  %v1492_v40 = vpop.f32.mrb[51].mxu1 }
 0x159   :  { %3949 = vst [vmem:[#allocation54_spill] sm:$0xff] %v3468_v28  ;;  %v1731_v29 = vmax.f32 %v3271_v45, %v1492_v40 }
 0x15b   :  { %v1780_v31 = vmax.f32 %v1682_v38, %v1731_v29 }
 0x15d   :  { %v1836_v30 = vadd.f32 %v3476_v49, %v1780_v31  ;;  %v2662_v41 = vpop.f32.mrb[52].mxu0  ;;  %v3479_v42 = vpop.f32.mrb[52].mxu1 }
 0x15e   :  { %v1685_v43 = vmax.f32 %v3293_v56, %v2662_v41  ;;  %v1736_v36 = vmax.f32 %v3295_v57, %v3479_v42  ;;  %v1105_v37 = vpop.f32.mrb[53].mxu0  ;;  %v1505_v27 = vpop.f32.mrb[53].mxu1 }
 0x15f   :  { %vm1885_vm0 = vcmp.ge.f32.partialorder %v1836_v30, 0.0  ;;  %v1934_v45 = vmul.f32 0.2, %v1836_v30  ;;  %v1683_v40 = vmax.f32 %v3273_v46, %v1105_v37  ;;  %v1734_v48 = vmax.f32 %v3275_v47, %v1505_v27  ;;  %v2663_v35 = vpop.f32.mrb[54].mxu0  ;;  %v2763_v29 = vpop.f32.mrb[54].mxu1 }
 0x160   :  { %v1686_v38 = vmax.f32 %v3281_v50, %v2663_v35  ;;  %v1737_v31 = vmax.f32 %v3283_v51, %v2763_v29  ;;  %v1108_v28 = vpop.f32.mrb[55].mxu0  ;;  %v1508_v56 = vpop.f32.mrb[55].mxu1 }
 0x161   :  { %v1983_v41 = vsel %vm1885_vm0, %v1836_v30, %v1934_v45  ;;  %v1781_v44 = vmax.f32 %v1683_v40, %v1732_v34  ;;  %v1783_v57 = vmax.f32 %v1685_v43, %v1734_v48  ;;  %v1684_v42 = vmax.f32 %v3285_v52, %v1108_v28 }
 0x162   :  { %v2439_v26 = vpack.c.bf16 %v1983_v41, %v1983_v41  ;;  %v1735_v23 = vmax.f32 %v3287_v53, %v1508_v56 }
 0x163   :  { %v1837_v46 = vadd.f32 %v3476_v49, %v1781_v44  ;;  %v1839_v47 = vadd.f32 %v3476_v49, %v1783_v57  ;;  %v1782_v27 = vmax.f32 %v1684_v42, %v1733_v39 }
 0x164   :  { %2230 = vst.msk [vmem:[%s3892_s3 + $0x8] sm:$0xf] %vm2227_vm1, %v2439_v26  ;;  %v1784_v50 = vmax.f32 %v1686_v38, %v1735_v23 }
 0x165   :  { %vm1886_vm2 = vcmp.ge.f32.partialorder %v1837_v46, 0.0  ;;  %v1935_v51 = vmul.f32 0.2, %v1837_v46  ;;  %vm1888_vm3 = vcmp.ge.f32.partialorder %v1839_v47, 0.0  ;;  %v1937_v48 = vmul.f32 0.2, %v1839_v47 }
 0x166   :  { %v1838_v52 = vadd.f32 %v3476_v49, %v1782_v27  ;;  %v1840_v28 = vadd.f32 %v3476_v49, %v1784_v50  ;;  %v2666_v53 = vpop.f32.mrb[56].mxu0  ;;  %v3498_v30 = vpop.f32.mrb[56].mxu1 }
 0x167   :  { %v1984_v44 = vsel %vm1886_vm2, %v1837_v46, %v1935_v51  ;;  %v1986_v34 = vsel %vm1888_vm3, %v1839_v47, %v1937_v48  ;;  %v1689_v35 = vmax.f32 %v3309_v0, %v2666_v53  ;;  %v1740_v39 = vmax.f32 %v3311_v1, %v3498_v30  ;;  %v1121_v26 = vpop.f32.mrb[57].mxu0  ;;  %v1521_v23 = vpop.f32.mrb[57].mxu1 }
 0x168   :  { %v2440_v43 = vpack.c.bf16 %v1984_v44, %v1984_v44  ;;  %v2442_v37 = vpack.c.bf16 %v1986_v34, %v1986_v34  ;;  %vm1887_vm4 = vcmp.ge.f32.partialorder %v1838_v52, 0.0  ;;  %v1936_v45 = vmul.f32 0.2, %v1838_v52  ;;  %v2667_v40 = vpop.f32.mrb[58].mxu0  ;;  %v3503_v29 = vpop.f32.mrb[58].mxu1 }
 0x169   :  { %vm1889_vm5 = vcmp.ge.f32.partialorder %v1840_v28, 0.0  ;;  %v1938_v38 = vmul.f32 0.2, %v1840_v28  ;;  %v1687_v56 = vmax.f32 %v3289_v54, %v1121_v26  ;;  %v1738_v41 = vmax.f32 %v3291_v55, %v1521_v23  ;;  %v1124_v57 = vpop.f32.mrb[59].mxu0  ;;  %v1524_v0 = vpop.f32.mrb[59].mxu1 }
 0x16a   :  { %2231 = vst.msk [vmem:[%s3892_s3 + $0xc] sm:$0xf] %vm2227_vm1, %v2440_v43  ;;  %2233 = vst.msk [vmem:[%s3892_s3 + $0x14] sm:$0xf] %vm2227_vm1, %v2442_v37  ;;  %v1985_v1 = vsel %vm1887_vm4, %v1838_v52, %v1936_v45  ;;  %v1690_v42 = vmax.f32 %v3297_v58, %v2667_v40  ;;  %v1741_v54 = vmax.f32 %v3299_v59, %v3503_v29 }
 0x16b   :  { %v1688_v55 = vmax.f32 %v3301_v60, %v1124_v57  ;;  %v2441_v46 = vpack.c.bf16 %v1985_v1, %v1985_v1  ;;  %v1987_v47 = vsel %vm1889_vm5, %v1840_v28, %v1938_v38  ;;  %v1785_v27 = vmax.f32 %v1687_v56, %v1736_v36 }
 0x16c   :  { %v1787_v50 = vmax.f32 %v1689_v35, %v1738_v41  ;;  %v2443_v51 = vpack.c.bf16 %v1987_v47, %v1987_v47  ;;  %v1739_v53 = vmax.f32 %v3303_v61, %v1524_v0 }
 0x16d   :  { %v1786_v48 = vmax.f32 %v1688_v55, %v1737_v31  ;;  %2232 = vst.msk [vmem:[%s3892_s3 + $0x10] sm:$0xf] %vm2227_vm1, %v2441_v46  ;;  %v1841_v58 = vadd.f32 %v3476_v49, %v1785_v27  ;;  %v2670_v59 = vpop.f32.mrb[60].mxu0  ;;  %v3526_v30 = vpop.f32.mrb[60].mxu1 }
 0x16e   :  { %v1843_v52 = vadd.f32 %v3476_v49, %v1787_v50  ;;  %2234 = vst.msk [vmem:[%s3892_s3 + $0x18] sm:$0xf] %vm2227_vm1, %v2443_v51  ;;  %v1788_v61 = vmax.f32 %v1690_v42, %v1739_v53  ;;  %v1693_v36 = vmax.f32 %v3325_v8, %v2670_v59  ;;  %v1744_v31 = vmax.f32 %v3327_v9, %v3526_v30  ;;  %v1137_v28 = vpop.f32.mrb[61].mxu0  ;;  %v1537_v44 = vpop.f32.mrb[61].mxu1 }
 0x16f   :  { %v1842_v60 = vadd.f32 %v3476_v49, %v1786_v48  ;;  %vm1890_vm6 = vcmp.ge.f32.partialorder %v1841_v58, 0.0  ;;  %v1939_v34 = vmul.f32 0.2, %v1841_v58  ;;  %v1691_v43 = vmax.f32 %v3305_v62, %v1137_v28  ;;  %v2671_v37 = vpop.f32.mrb[62].mxu0  ;;  %v3538_v45 = vpop.f32.mrb[62].mxu1 }
 0x170   :  { %vm1892_vm7 = vcmp.ge.f32.partialorder %v1843_v52, 0.0  ;;  %v1941_v35 = vmul.f32 0.2, %v1843_v52  ;;  %v1844_v23 = vadd.f32 %v3476_v49, %v1788_v61  ;;  %v1742_v29 = vmax.f32 %v3307_v63, %v1537_v44  ;;  %v1140_v56 = vpop.f32.mrb[63].mxu0  ;;  %v1540_v41 = vpop.f32.mrb[63].mxu1 }
 0x171   :  { %vm1891_vm8 = vcmp.ge.f32.partialorder %v1842_v60, 0.0  ;;  %v1940_v26 = vmul.f32 0.2, %v1842_v60  ;;  %v1988_v40 = vsel %vm1890_vm6, %v1841_v58, %v1939_v34  ;;  %v1694_v38 = vmax.f32 %v3313_v2, %v2671_v37 }
 0x172   :  { %v1990_v8 = vsel %vm1892_vm7, %v1843_v52, %v1941_v35  ;;  %v2444_v57 = vpack.c.bf16 %v1988_v40, %v1988_v40  ;;  %vm1893_vm9 = vcmp.ge.f32.partialorder %v1844_v23, 0.0  ;;  %v1942_v55 = vmul.f32 0.2, %v1844_v23 }
 0x173   :  { %v2446_v0 = vpack.c.bf16 %v1990_v8, %v1990_v8  ;;  %v1989_v1 = vsel %vm1891_vm8, %v1842_v60, %v1940_v26  ;;  %v1789_v46 = vmax.f32 %v1691_v43, %v1740_v39  ;;  %v1791_v47 = vmax.f32 %v1693_v36, %v1742_v29 }
 0x174   :  { %v2445_v42 = vpack.c.bf16 %v1989_v1, %v1989_v1  ;;  %2235 = vst.msk [vmem:[%s3892_s3 + $0x1c] sm:$0xf] %vm2227_vm1, %v2444_v57  ;;  %v1745_v62 = vmax.f32 %v3315_v3, %v3538_v45  ;;  %v1692_v63 = vmax.f32 %v3317_v4, %v1140_v56  ;;  %v1743_v2 = vmax.f32 %v3319_v5, %v1540_v41 }
 0x175   :  { %2237 = vst.msk [vmem:[%s3892_s3 + $0x24] sm:$0xf] %vm2227_vm1, %v2446_v0  ;;  %v1991_v39 = vsel %vm1893_vm9, %v1844_v23, %v1942_v55  ;;  %v1845_v27 = vadd.f32 %v3476_v49, %v1789_v46  ;;  %v1847_v50 = vadd.f32 %v3476_v49, %v1791_v47  ;;  %v2674_v51 = vpop.f32.mrb[64].mxu0  ;;  %v3560_v48 = vpop.f32.mrb[64].mxu1 }
 0x176   :  { %2236 = vst.msk [vmem:[%s3892_s3 + $0x20] sm:$0xf] %vm2227_vm1, %v2445_v42  ;;  %v2447_v53 = vpack.c.bf16 %v1991_v39, %v1991_v39  ;;  %v1790_v58 = vmax.f32 %v1692_v63, %v1741_v54  ;;  %v1792_v3 = vmax.f32 %v1694_v38, %v1743_v2  ;;  %v1697_v4 = vmax.f32 %v3341_v16, %v2674_v51  ;;  %v1153_v52 = vpop.f32.mrb[65].mxu0  ;;  %v1553_v5 = vpop.f32.mrb[65].mxu1 }
 0x177   :  { %vm1894_vm10 = vcmp.ge.f32.partialorder %v1845_v27, 0.0  ;;  %v1943_v59 = vmul.f32 0.2, %v1845_v27  ;;  %vm1896_vm11 = vcmp.ge.f32.partialorder %v1847_v50, 0.0  ;;  %v1945_v60 = vmul.f32 0.2, %v1847_v50 }
 0x178   :  { %2238 = vst.msk [vmem:[%s3892_s3 + $0x28] sm:$0xf] %vm2227_vm1, %v2447_v53  ;;  %v1846_v61 = vadd.f32 %v3476_v49, %v1790_v58  ;;  %v1848_v36 = vadd.f32 %v3476_v49, %v1792_v3  ;;  %v1748_v54 = vmax.f32 %v3343_v17, %v3560_v48  ;;  %v1695_v16 = vmax.f32 %v3321_v6, %v1153_v52  ;;  %v2675_v28 = vpop.f32.mrb[66].mxu0  ;;  %v3572_v44 = vpop.f32.mrb[66].mxu1 }
 0x179   :  { %v1992_v34 = vsel %vm1894_vm10, %v1845_v27, %v1943_v59  ;;  %v1994_v35 = vsel %vm1896_vm11, %v1847_v50, %v1945_v60  ;;  %v1746_v26 = vmax.f32 %v3323_v7, %v1553_v5  ;;  %v1698_v23 = vmax.f32 %v3329_v10, %v2675_v28  ;;  %v1156_v43 = vpop.f32.mrb[67].mxu0  ;;  %v1556_v37 = vpop.f32.mrb[67].mxu1 }
 0x17a   :  { %v2448_v45 = vpack.c.bf16 %v1992_v34, %v1992_v34  ;;  %v2450_v40 = vpack.c.bf16 %v1994_v35, %v1994_v35  ;;  %vm1895_vm12 = vcmp.ge.f32.partialorder %v1846_v61, 0.0  ;;  %v1944_v8 = vmul.f32 0.2, %v1846_v61 }
 0x17b   :  { %vm1897_vm13 = vcmp.ge.f32.partialorder %v1848_v36, 0.0  ;;  %v1946_v29 = vmul.f32 0.2, %v1848_v36  ;;  %v1793_v6 = vmax.f32 %v1695_v16, %v1744_v31  ;;  %v1795_v17 = vmax.f32 %v1697_v4, %v1746_v26 }
 0x17c   :  { %2239 = vst.msk [vmem:[%s3892_s3 + $0x2c] sm:$0xf] %vm2227_vm1, %v2448_v45  ;;  %2241 = vst.msk [vmem:[%s3892_s3 + $0x34] sm:$0xf] %vm2227_vm1, %v2450_v40  ;;  %v1993_v7 = vsel %vm1895_vm12, %v1846_v61, %v1944_v8  ;;  %v1749_v10 = vmax.f32 %v3331_v11, %v3572_v44  ;;  %v1696_v38 = vmax.f32 %v3333_v12, %v1156_v43 }
 0x17d   :  { %v1747_v9 = vmax.f32 %v3335_v13, %v1556_v37  ;;  %v2449_v30 = vpack.c.bf16 %v1993_v7, %v1993_v7  ;;  %v1995_v31 = vsel %vm1897_vm13, %v1848_v36, %v1946_v29  ;;  %v1849_v56 = vadd.f32 %v3476_v49, %v1793_v6  ;;  %v2678_v57 = vpop.f32.mrb[68].mxu0  ;;  %v3593_v0 = vpop.f32.mrb[68].mxu1 }
 0x17e   :  { %v1851_v41 = vadd.f32 %v3476_v49, %v1795_v17  ;;  %v2451_v1 = vpack.c.bf16 %v1995_v31, %v1995_v31  ;;  %v1794_v42 = vmax.f32 %v1696_v38, %v1745_v62  ;;  %v1701_v46 = vmax.f32 %v3357_v24, %v2678_v57  ;;  %v1169_v47 = vpop.f32.mrb[69].mxu0  ;;  %v1569_v11 = vpop.f32.mrb[69].mxu1 }
 0x17f   :  { %v1796_v55 = vmax.f32 %v1698_v23, %v1747_v9  ;;  %2240 = vst.msk [vmem:[%s3892_s3 + $0x30] sm:$0xf] %vm2227_vm1, %v2449_v30  ;;  %vm1898_vm14 = vcmp.ge.f32.partialorder %v1849_v56, 0.0  ;;  %v1947_v12 = vmul.f32 0.2, %v1849_v56  ;;  %v1752_v63 = vmax.f32 %v3359_v25, %v3593_v0  ;;  %v2679_v39 = vpop.f32.mrb[70].mxu0 }
 0x180   :  { %vm1900_vm15 = vcmp.ge.f32.partialorder %v1851_v41, 0.0  ;;  %v1949_v13 = vmul.f32 0.2, %v1851_v41  ;;  %2242 = vst.msk [vmem:[%s3892_s3 + $0x38] sm:$0xf] %vm2227_vm1, %v2451_v1  ;;  %v1850_v62 = vadd.f32 %v3476_v49, %v1794_v42  ;;  %v1699_v2 = vmax.f32 %v3337_v14, %v1169_v47  ;;  %v3609_v27 = vpop.f32.mrb[70].mxu1 }
 0x181   :  { %v1852_v24 = vadd.f32 %v3476_v49, %v1796_v55  ;;  %v1996_v50 = vsel %vm1898_vm14, %v1849_v56, %v1947_v12  ;;  %v1750_v48 = vmax.f32 %v3339_v15, %v1569_v11  ;;  %v1702_v53 = vmax.f32 %v3345_v18, %v2679_v39  ;;  %v1172_v58 = vpop.f32.mrb[71].mxu0  ;;  %v1572_v3 = vpop.f32.mrb[71].mxu1  ;;  %v3951_v9 = vld [vmem:[#allocation5_spill] sm:$0xff]  ;;  %v3952_v55 = vld [vmem:[#allocation6_spill] sm:$0xff]  ;;  %v3953_v47 = vld [vmem:[#allocation7_spill] sm:$0xff] }
 0x182   :  { %v1998_v51 = vsel %vm1900_vm15, %v1851_v41, %v1949_v13  ;;  %v2452_v4 = vpack.c.bf16 %v1996_v50, %v1996_v50  ;;  %vm1899_vm0 = vcmp.ge.f32.partialorder %v1850_v62, 0.0  ;;  %v1948_v5 = vmul.f32 0.2, %v1850_v62  ;;  %v3954_v12 = vld [vmem:[#allocation8_spill] sm:$0xff] }
 0x183   :  { %v2454_v52 = vpack.c.bf16 %v1998_v51, %v1998_v51  ;;  %vm1901_vm2 = vcmp.ge.f32.partialorder %v1852_v24, 0.0  ;;  %v1950_v59 = vmul.f32 0.2, %v1852_v24  ;;  %v1797_v25 = vmax.f32 %v1699_v2, %v1748_v54 }
 0x184   :  { %v1799_v60 = vmax.f32 %v1701_v46, %v1750_v48  ;;  %2243 = vst.msk [vmem:[%s3892_s3 + $0x3c] sm:$0xf] %vm2227_vm1, %v2452_v4  ;;  %v1997_v14 = vsel %vm1899_vm0, %v1850_v62, %v1948_v5  ;;  %v1753_v15 = vmax.f32 %v3347_v19, %v3609_v27  ;;  %v1700_v18 = vmax.f32 %v3349_v20, %v1172_v58 }
 0x185   :  { %2245 = vst.msk [vmem:[%s3892_s3 + $0x44] sm:$0xf] %vm2227_vm1, %v2454_v52  ;;  %v1751_v61 = vmax.f32 %v3351_v21, %v1572_v3  ;;  %v2453_v36 = vpack.c.bf16 %v1997_v14, %v1997_v14  ;;  %v1999_v54 = vsel %vm1901_vm2, %v1852_v24, %v1950_v59  ;;  %v1853_v16 = vadd.f32 %v3476_v49, %v1797_v25  ;;  %v2682_v44 = vpop.f32.mrb[72].mxu0  ;;  %v3627_v34 = vpop.f32.mrb[72].mxu1 }
 0x186   :  { %v1855_v28 = vadd.f32 %v3476_v49, %v1799_v60  ;;  %v2455_v35 = vpack.c.bf16 %v1999_v54, %v1999_v54  ;;  %v1798_v26 = vmax.f32 %v1700_v18, %v1749_v10  ;;  %v1705_v43 = vmax.f32 %v3373_v32, %v2682_v44  ;;  %v1185_v37 = vpop.f32.mrb[73].mxu0  ;;  %v1585_v19 = vpop.f32.mrb[73].mxu1  ;;  %v3950_v10 = vld [vmem:[#allocation4_spill] sm:$0xff]  ;;  %v3956_v60 = vld [vmem:[#allocation18_spill] sm:$0xff] }
 0x187   :  { %v1800_v23 = vmax.f32 %v1702_v53, %v1751_v61  ;;  %2244 = vst.msk [vmem:[%s3892_s3 + $0x40] sm:$0xf] %vm2227_vm1, %v2453_v36  ;;  %vm1902_vm3 = vcmp.ge.f32.partialorder %v1853_v16, 0.0  ;;  %v1951_v20 = vmul.f32 0.2, %v1853_v16  ;;  %v1756_v40 = vmax.f32 %v3375_v33, %v3627_v34  ;;  %v2683_v29 = vpop.f32.mrb[74].mxu0 }
 0x188   :  { %vm1904_vm4 = vcmp.ge.f32.partialorder %v1855_v28, 0.0  ;;  %v1953_v21 = vmul.f32 0.2, %v1855_v28  ;;  %2246 = vst.msk [vmem:[%s3892_s3 + $0x48] sm:$0xf] %vm2227_vm1, %v2455_v35  ;;  %v1854_v45 = vadd.f32 %v3476_v49, %v1798_v26  ;;  %v1703_v8 = vmax.f32 %v3353_v22, %v1185_v37  ;;  %v3643_v6 = vpop.f32.mrb[74].mxu1 }
 0x189   :  { %v1856_v32 = vadd.f32 %v3476_v49, %v1800_v23  ;;  %v2000_v17 = vsel %vm1902_vm3, %v1853_v16, %v1951_v20  ;;  %v1754_v38 = vmax.f32 %v3950_v10, %v1585_v19  ;;  %v1706_v30 = vmax.f32 %v3951_v9, %v2683_v29  ;;  %v1188_v31 = vpop.f32.mrb[75].mxu0  ;;  %v1588_v56 = vpop.f32.mrb[75].mxu1  ;;  %v3955_v53 = vld [vmem:[#allocation17_spill] sm:$0xff]  ;;  %v3959_v34 = vld [vmem:[#allocation11_spill] sm:$0xff] }
 0x18a   :  { %v2002_v7 = vsel %vm1904_vm4, %v1855_v28, %v1953_v21  ;;  %v2456_v41 = vpack.c.bf16 %v2000_v17, %v2000_v17  ;;  %vm1903_vm5 = vcmp.ge.f32.partialorder %v1854_v45, 0.0  ;;  %v1952_v0 = vmul.f32 0.2, %v1854_v45  ;;  %v3958_v28 = vld [vmem:[#allocation10_spill] sm:$0xff] }
 0x18b   :  { %v2458_v57 = vpack.c.bf16 %v2002_v7, %v2002_v7  ;;  %vm1905_vm6 = vcmp.ge.f32.partialorder %v1856_v32, 0.0  ;;  %v1954_v1 = vmul.f32 0.2, %v1856_v32  ;;  %v1801_v33 = vmax.f32 %v1703_v8, %v1752_v63  ;;  %v3960_v8 = vld [vmem:[#allocation12_spill] sm:$0xff]  ;;  %v3962_v7 = vld [vmem:[#allocation14_spill] sm:$0xff] }
 0x18c   :  { %v1803_v42 = vmax.f32 %v1705_v43, %v1754_v38  ;;  %2247 = vst.msk [vmem:[%s3892_s3 + $0x4c] sm:$0xf] %vm2227_vm1, %v2456_v41  ;;  %v2001_v22 = vsel %vm1903_vm5, %v1854_v45, %v1952_v0  ;;  %v1757_v46 = vmax.f32 %v3952_v55, %v3643_v6  ;;  %v1704_v11 = vmax.f32 %v3953_v47, %v1188_v31  ;;  %v3961_v6 = vld [vmem:[#allocation13_spill] sm:$0xff] }
 0x18d   :  { %2249 = vst.msk [vmem:[%s3892_s3 + $0x54] sm:$0xf] %vm2227_vm1, %v2458_v57  ;;  %v1755_v13 = vmax.f32 %v3954_v12, %v1588_v56  ;;  %v2457_v62 = vpack.c.bf16 %v2001_v22, %v2001_v22  ;;  %v2003_v24 = vsel %vm1905_vm6, %v1856_v32, %v1954_v1  ;;  %v1857_v63 = vadd.f32 %v3476_v49, %v1801_v33  ;;  %v2686_v39 = vpop.f32.mrb[76].mxu0  ;;  %v3661_v27 = vpop.f32.mrb[76].mxu1  ;;  %v3963_v1 = vld [vmem:[#allocation25_spill] sm:$0xff]  ;;  %v3964_v12 = vld [vmem:[#allocation26_spill] sm:$0xff] }
 0x18e   :  { %v1859_v2 = vadd.f32 %v3476_v49, %v1803_v42  ;;  %v2459_v50 = vpack.c.bf16 %v2003_v24, %v2003_v24  ;;  %v1802_v51 = vmax.f32 %v1704_v11, %v1753_v15  ;;  %v1709_v58 = vmax.f32 %v3955_v53, %v2686_v39  ;;  %v1201_v3 = vpop.f32.mrb[77].mxu0  ;;  %v1601_v4 = vpop.f32.mrb[77].mxu1  ;;  %v3957_v15 = vld [vmem:[#allocation9_spill] sm:$0xff] }
 0x18f   :  { %v1804_v48 = vmax.f32 %v1706_v30, %v1755_v13  ;;  %2248 = vst.msk [vmem:[%s3892_s3 + $0x50] sm:$0xf] %vm2227_vm1, %v2457_v62  ;;  %vm1906_vm7 = vcmp.ge.f32.partialorder %v1857_v63, 0.0  ;;  %v1955_v52 = vmul.f32 0.2, %v1857_v63  ;;  %v1760_v14 = vmax.f32 %v3956_v60, %v3661_v27  ;;  %v2687_v61 = vpop.f32.mrb[78].mxu0 }
 0x190   :  { %vm1908_vm8 = vcmp.ge.f32.partialorder %v1859_v2, 0.0  ;;  %v1957_v5 = vmul.f32 0.2, %v1859_v2  ;;  %2250 = vst.msk [vmem:[%s3892_s3 + $0x58] sm:$0xf] %vm2227_vm1, %v2459_v50  ;;  %v1858_v59 = vadd.f32 %v3476_v49, %v1802_v51  ;;  %v1707_v18 = vmax.f32 %v3957_v15, %v1201_v3  ;;  %v3677_v36 = vpop.f32.mrb[78].mxu1 }
 0x191   :  { %v1860_v25 = vadd.f32 %v3476_v49, %v1804_v48  ;;  %v2004_v54 = vsel %vm1906_vm7, %v1857_v63, %v1955_v52  ;;  %v1758_v44 = vmax.f32 %v3958_v28, %v1601_v4  ;;  %v1710_v35 = vmax.f32 %v3959_v34, %v2687_v61  ;;  %v1204_v26 = vpop.f32.mrb[79].mxu0  ;;  %v1604_v23 = vpop.f32.mrb[79].mxu1  ;;  %v3965_v62 = vld [vmem:[#allocation15_spill] sm:$0xff]  ;;  %v3966_v50 = vld [vmem:[#allocation16_spill] sm:$0xff] }
 0x192   :  { %v2006_v16 = vsel %vm1908_vm8, %v1859_v2, %v1957_v5  ;;  %v2460_v43 = vpack.c.bf16 %v2004_v54, %v2004_v54  ;;  %vm1907_vm9 = vcmp.ge.f32.partialorder %v1858_v59, 0.0  ;;  %v1956_v19 = vmul.f32 0.2, %v1858_v59  ;;  %v3967_v48 = vld [vmem:[#allocation19_spill] sm:$0xff] }
 0x193   :  { %v2462_v37 = vpack.c.bf16 %v2006_v16, %v2006_v16  ;;  %vm1909_vm10 = vcmp.ge.f32.partialorder %v1860_v25, 0.0  ;;  %v1958_v20 = vmul.f32 0.2, %v1860_v25  ;;  %v1805_v21 = vmax.f32 %v1707_v18, %v1756_v40  ;;  %v3968_v18 = vld [vmem:[#allocation20_spill] sm:$0xff]  ;;  %v3970_v16 = vld [vmem:[#allocation22_spill] sm:$0xff] }
 0x194   :  { %v1807_v45 = vmax.f32 %v1709_v58, %v1758_v44  ;;  %2251 = vst.msk [vmem:[%s3892_s3 + $0x5c] sm:$0xf] %vm2227_vm1, %v2460_v43  ;;  %v2005_v32 = vsel %vm1907_vm9, %v1858_v59, %v1956_v19  ;;  %v1761_v29 = vmax.f32 %v3960_v8, %v3677_v36  ;;  %v1708_v17 = vmax.f32 %v3961_v6, %v1204_v26  ;;  %v3969_v36 = vld [vmem:[#allocation21_spill] sm:$0xff] }
 0x195   :  { %2253 = vst.msk [vmem:[%s3892_s3 + $0x64] sm:$0xf] %vm2227_vm1, %v2462_v37  ;;  %v1759_v10 = vmax.f32 %v3962_v7, %v1604_v23  ;;  %v2461_v40 = vpack.c.bf16 %v2005_v32, %v2005_v32  ;;  %v2007_v38 = vsel %vm1909_vm10, %v1860_v25, %v1958_v20  ;;  %v1861_v9 = vadd.f32 %v3476_v49, %v1805_v21  ;;  %v2690_v31 = vpop.f32.mrb[80].mxu0  ;;  %v3695_v56 = vpop.f32.mrb[80].mxu1  ;;  %v3971_v20 = vld [vmem:[#allocation33_spill] sm:$0xff]  ;;  %v3972_v7 = vld [vmem:[#allocation34_spill] sm:$0xff] }
 0x196   :  { %v1863_v30 = vadd.f32 %v3476_v49, %v1807_v45  ;;  %v2463_v41 = vpack.c.bf16 %v2007_v38, %v2007_v38  ;;  %v1806_v57 = vmax.f32 %v1708_v17, %v1757_v46  ;;  %v1713_v33 = vmax.f32 %v3963_v1, %v2690_v31  ;;  %v1217_v42 = vpop.f32.mrb[81].mxu0  ;;  %v1617_v22 = vpop.f32.mrb[81].mxu1 }
 0x197   :  { %v1808_v0 = vmax.f32 %v1710_v35, %v1759_v10  ;;  %2252 = vst.msk [vmem:[%s3892_s3 + $0x60] sm:$0xf] %vm2227_vm1, %v2461_v40  ;;  %vm1910_vm11 = vcmp.ge.f32.partialorder %v1861_v9, 0.0  ;;  %v1959_v55 = vmul.f32 0.2, %v1861_v9  ;;  %v1764_v13 = vmax.f32 %v3964_v12, %v3695_v56  ;;  %v2691_v63 = vpop.f32.mrb[82].mxu0 }
 0x198   :  { %vm1912_vm12 = vcmp.ge.f32.partialorder %v1863_v30, 0.0  ;;  %v1961_v47 = vmul.f32 0.2, %v1863_v30  ;;  %2254 = vst.msk [vmem:[%s3892_s3 + $0x68] sm:$0xf] %vm2227_vm1, %v2463_v41  ;;  %v1862_v46 = vadd.f32 %v3476_v49, %v1806_v57  ;;  %v1711_v24 = vmax.f32 %v3965_v62, %v1217_v42  ;;  %v3711_v2 = vpop.f32.mrb[82].mxu1 }
 0x199   :  { %v1864_v11 = vadd.f32 %v3476_v49, %v1808_v0  ;;  %v2008_v39 = vsel %vm1910_vm11, %v1861_v9, %v1959_v55  ;;  %v1762_v51 = vmax.f32 %v3966_v50, %v1617_v22  ;;  %v1714_v53 = vmax.f32 %v3967_v48, %v2691_v63  ;;  %v1220_v58 = vpop.f32.mrb[83].mxu0  ;;  %v1620_v3 = vpop.f32.mrb[83].mxu1  ;;  %v3973_v40 = vld [vmem:[#allocation23_spill] sm:$0xff]  ;;  %v3974_v41 = vld [vmem:[#allocation24_spill] sm:$0xff] }
 0x19a   :  { %v2010_v27 = vsel %vm1912_vm12, %v1863_v30, %v1961_v47  ;;  %v2464_v4 = vpack.c.bf16 %v2008_v39, %v2008_v39  ;;  %vm1911_vm13 = vcmp.ge.f32.partialorder %v1862_v46, 0.0  ;;  %v1960_v5 = vmul.f32 0.2, %v1862_v46  ;;  %v3975_v0 = vld [vmem:[#allocation27_spill] sm:$0xff] }
 0x19b   :  { %v2466_v52 = vpack.c.bf16 %v2010_v27, %v2010_v27  ;;  %vm1913_vm14 = vcmp.ge.f32.partialorder %v1864_v11, 0.0  ;;  %v1962_v59 = vmul.f32 0.2, %v1864_v11  ;;  %v1809_v25 = vmax.f32 %v1711_v24, %v1760_v14  ;;  %v3976_v24 = vld [vmem:[#allocation28_spill] sm:$0xff]  ;;  %v3978_v27 = vld [vmem:[#allocation30_spill] sm:$0xff] }
 0x19c   :  { %v1811_v60 = vmax.f32 %v1713_v33, %v1762_v51  ;;  %2255 = vst.msk [vmem:[%s3892_s3 + $0x6c] sm:$0xf] %vm2227_vm1, %v2464_v4  ;;  %v2009_v15 = vsel %vm1911_vm13, %v1862_v46, %v1960_v5  ;;  %v1765_v61 = vmax.f32 %v3968_v18, %v3711_v2  ;;  %v1712_v54 = vmax.f32 %v3969_v36, %v1220_v58  ;;  %v3977_v2 = vld [vmem:[#allocation29_spill] sm:$0xff] }
 0x19d   :  { %2257 = vst.msk [vmem:[%s3892_s3 + $0x74] sm:$0xf] %vm2227_vm1, %v2466_v52  ;;  %v1763_v28 = vmax.f32 %v3970_v16, %v1620_v3  ;;  %v2465_v14 = vpack.c.bf16 %v2009_v15, %v2009_v15  ;;  %v2011_v44 = vsel %vm1913_vm14, %v1864_v11, %v1962_v59  ;;  %v1865_v34 = vadd.f32 %v3476_v49, %v1809_v25  ;;  %v2694_v26 = vpop.f32.mrb[84].mxu0  ;;  %v3729_v23 = vpop.f32.mrb[84].mxu1  ;;  %v3979_v59 = vld [vmem:[#allocation41_spill] sm:$0xff]  ;;  %v3980_v16 = vld [vmem:[#allocation42_spill] sm:$0xff] }
 0x19e   :  { %v1867_v35 = vadd.f32 %v3476_v49, %v1811_v60  ;;  %v2467_v43 = vpack.c.bf16 %v2011_v44, %v2011_v44  ;;  %v1810_v37 = vmax.f32 %v1712_v54, %v1761_v29  ;;  %v1717_v21 = vmax.f32 %v3971_v20, %v2694_v26  ;;  %v1233_v45 = vpop.f32.mrb[85].mxu0  ;;  %v1633_v32 = vpop.f32.mrb[85].mxu1 }
 0x19f   :  { %v1812_v19 = vmax.f32 %v1714_v53, %v1763_v28  ;;  %2256 = vst.msk [vmem:[%s3892_s3 + $0x70] sm:$0xf] %vm2227_vm1, %v2465_v14  ;;  %vm1914_vm15 = vcmp.ge.f32.partialorder %v1865_v34, 0.0  ;;  %v1963_v8 = vmul.f32 0.2, %v1865_v34  ;;  %v1768_v10 = vmax.f32 %v3972_v7, %v3729_v23  ;;  %v2695_v9 = vpop.f32.mrb[86].mxu0 }
 0x1a0   :  { %vm1916_vm0 = vcmp.ge.f32.partialorder %v1867_v35, 0.0  ;;  %v1965_v6 = vmul.f32 0.2, %v1867_v35  ;;  %2258 = vst.msk [vmem:[%s3892_s3 + $0x78] sm:$0xf] %vm2227_vm1, %v2467_v43  ;;  %v1866_v29 = vadd.f32 %v3476_v49, %v1810_v37  ;;  %v1715_v38 = vmax.f32 %v3973_v40, %v1233_v45  ;;  %v3745_v30 = vpop.f32.mrb[86].mxu1 }
 0x1a1   :  { %v1868_v17 = vadd.f32 %v3476_v49, %v1812_v19  ;;  %v2012_v31 = vsel %vm1914_vm15, %v1865_v34, %v1963_v8  ;;  %v1766_v57 = vmax.f32 %v3974_v41, %v1633_v32  ;;  %v1718_v1 = vmax.f32 %v3975_v0, %v2695_v9  ;;  %v1236_v33 = vpop.f32.mrb[87].mxu0  ;;  %v1636_v42 = vpop.f32.mrb[87].mxu1  ;;  %v3981_v14 = vld [vmem:[#allocation31_spill] sm:$0xff]  ;;  %v3982_v43 = vld [vmem:[#allocation32_spill] sm:$0xff] }
 0x1a2   :  { %v2014_v56 = vsel %vm1916_vm0, %v1867_v35, %v1965_v6  ;;  %v2468_v22 = vpack.c.bf16 %v2012_v31, %v2012_v31  ;;  %vm1915_vm2 = vcmp.ge.f32.partialorder %v1866_v29, 0.0  ;;  %v1964_v47 = vmul.f32 0.2, %v1866_v29  ;;  %v3983_v19 = vld [vmem:[#allocation35_spill] sm:$0xff] }
 0x1a3   :  { %v2470_v55 = vpack.c.bf16 %v2014_v56, %v2014_v56  ;;  %vm1917_vm3 = vcmp.ge.f32.partialorder %v1868_v17, 0.0  ;;  %v1966_v46 = vmul.f32 0.2, %v1868_v17  ;;  %v1813_v11 = vmax.f32 %v1715_v38, %v1764_v13  ;;  %v3984_v38 = vld [vmem:[#allocation36_spill] sm:$0xff]  ;;  %v3986_v56 = vld [vmem:[#allocation38_spill] sm:$0xff] }
 0x1a4   :  { %v1815_v12 = vmax.f32 %v1717_v21, %v1766_v57  ;;  %2259 = vst.msk [vmem:[%s3892_s3 + $0x7c] sm:$0xf] %vm2227_vm1, %v2468_v22  ;;  %v2013_v62 = vsel %vm1915_vm2, %v1866_v29, %v1964_v47  ;;  %v1769_v63 = vmax.f32 %v3976_v24, %v3745_v30  ;;  %v1716_v39 = vmax.f32 %v3977_v2, %v1236_v33  ;;  %v3985_v30 = vld [vmem:[#allocation37_spill] sm:$0xff] }
 0x1a5   :  { %2261 = vst.msk [vmem:[%s3892_s3 + $0x84] sm:$0xf] %vm2227_vm1, %v2470_v55  ;;  %v1767_v50 = vmax.f32 %v3978_v27, %v1636_v42  ;;  %v2469_v13 = vpack.c.bf16 %v2013_v62, %v2013_v62  ;;  %v2015_v51 = vsel %vm1917_vm3, %v1868_v17, %v1966_v46  ;;  %v1869_v48 = vadd.f32 %v3476_v49, %v1813_v11  ;;  %v2698_v58 = vpop.f32.mrb[88].mxu0  ;;  %v3763_v3 = vpop.f32.mrb[88].mxu1  ;;  %v3987_v46 = vld [vmem:[#allocation49_spill] sm:$0xff]  ;;  %v3988_v27 = vld [vmem:[#allocation50_spill] sm:$0xff] }
 0x1a6   :  { %v1871_v53 = vadd.f32 %v3476_v49, %v1815_v12  ;;  %v2471_v4 = vpack.c.bf16 %v2015_v51, %v2015_v51  ;;  %v1814_v52 = vmax.f32 %v1716_v39, %v1765_v61  ;;  %v1721_v25 = vmax.f32 %v3979_v59, %v2698_v58  ;;  %v1249_v60 = vpop.f32.mrb[89].mxu0  ;;  %v1649_v15 = vpop.f32.mrb[89].mxu1 }
 0x1a7   :  { %v1816_v5 = vmax.f32 %v1718_v1, %v1767_v50  ;;  %2260 = vst.msk [vmem:[%s3892_s3 + $0x80] sm:$0xf] %vm2227_vm1, %v2469_v13  ;;  %vm1918_vm4 = vcmp.ge.f32.partialorder %v1869_v48, 0.0  ;;  %v1967_v18 = vmul.f32 0.2, %v1869_v48  ;;  %v1772_v28 = vmax.f32 %v3980_v16, %v3763_v3  ;;  %v2699_v34 = vpop.f32.mrb[90].mxu0 }
 0x1a8   :  { %vm1920_vm5 = vcmp.ge.f32.partialorder %v1871_v53, 0.0  ;;  %v1969_v36 = vmul.f32 0.2, %v1871_v53  ;;  %2262 = vst.msk [vmem:[%s3892_s3 + $0x88] sm:$0xf] %vm2227_vm1, %v2471_v4  ;;  %v1870_v61 = vadd.f32 %v3476_v49, %v1814_v52  ;;  %v1719_v44 = vmax.f32 %v3981_v14, %v1249_v60  ;;  %v3779_v35 = vpop.f32.mrb[90].mxu1 }
 0x1a9   :  { %v1872_v54 = vadd.f32 %v3476_v49, %v1816_v5  ;;  %v2016_v26 = vsel %vm1918_vm4, %v1869_v48, %v1967_v18  ;;  %v1770_v37 = vmax.f32 %v3982_v43, %v1649_v15  ;;  %v1722_v20 = vmax.f32 %v3983_v19, %v2699_v34  ;;  %v1252_v21 = vpop.f32.mrb[91].mxu0  ;;  %v1652_v45 = vpop.f32.mrb[91].mxu1  ;;  %v3989_v13 = vld [vmem:[#allocation39_spill] sm:$0xff]  ;;  %v3990_v4 = vld [vmem:[#allocation40_spill] sm:$0xff] }
 0x1aa   :  { %v2018_v23 = vsel %vm1920_vm5, %v1871_v53, %v1969_v36  ;;  %v2472_v32 = vpack.c.bf16 %v2016_v26, %v2016_v26  ;;  %vm1919_vm6 = vcmp.ge.f32.partialorder %v1870_v61, 0.0  ;;  %v1968_v6 = vmul.f32 0.2, %v1870_v61  ;;  %v3991_v5 = vld [vmem:[#allocation43_spill] sm:$0xff] }
 0x1ab   :  { %v2474_v8 = vpack.c.bf16 %v2018_v23, %v2018_v23  ;;  %vm1921_vm7 = vcmp.ge.f32.partialorder %v1872_v54, 0.0  ;;  %v1970_v29 = vmul.f32 0.2, %v1872_v54  ;;  %v1817_v17 = vmax.f32 %v1719_v44, %v1768_v10  ;;  %v3992_v44 = vld [vmem:[#allocation44_spill] sm:$0xff]  ;;  %v3994_v23 = vld [vmem:[#allocation46_spill] sm:$0xff] }
 0x1ac   :  { %v1819_v7 = vmax.f32 %v1721_v25, %v1770_v37  ;;  %2263 = vst.msk [vmem:[%s3892_s3 + $0x8c] sm:$0xf] %vm2227_vm1, %v2472_v32  ;;  %v2017_v40 = vsel %vm1919_vm6, %v1870_v61, %v1968_v6  ;;  %v1773_v9 = vmax.f32 %v3984_v38, %v3779_v35  ;;  %v1720_v31 = vmax.f32 %v3985_v30, %v1252_v21  ;;  %v3993_v35 = vld [vmem:[#allocation45_spill] sm:$0xff]  ;;  %v3995_v6 = vld [vmem:[#allocation48_spill] sm:$0xff]  ;;  %v3996_v30 = vld [vmem:[#allocation2_spill] sm:$0xff] }
 0x1ad   :  { %2265 = vst.msk [vmem:[%s3892_s3 + $0x94] sm:$0xf] %vm2227_vm1, %v2474_v8  ;;  %v1771_v41 = vmax.f32 %v3986_v56, %v1652_v45  ;;  %v2473_v10 = vpack.c.bf16 %v2017_v40, %v2017_v40  ;;  %v2019_v57 = vsel %vm1921_vm7, %v1872_v54, %v1970_v29  ;;  %v1873_v0 = vadd.f32 %v3476_v49, %v1817_v17  ;;  %v2702_v33 = vpop.f32.mrb[92].mxu0  ;;  %v3797_v42 = vpop.f32.mrb[92].mxu1 }
 0x1ae   :  { %v1875_v1 = vadd.f32 %v3476_v49, %v1819_v7  ;;  %v2475_v22 = vpack.c.bf16 %v2019_v57, %v2019_v57  ;;  %v1818_v55 = vmax.f32 %v1720_v31, %v1769_v63  ;;  %v1725_v11 = vmax.f32 %v3987_v46, %v2702_v33  ;;  %v1265_v12 = vpop.f32.mrb[93].mxu0  ;;  %v1665_v62 = vpop.f32.mrb[93].mxu1  ;;  %v3997_v31 = vld [vmem:[#allocation54_spill] sm:$0xff] }
 0x1af   :  { %v1820_v47 = vmax.f32 %v1722_v20, %v1771_v41  ;;  %2264 = vst.msk [vmem:[%s3892_s3 + $0x90] sm:$0xf] %vm2227_vm1, %v2473_v10  ;;  %vm1922_vm8 = vcmp.ge.f32.partialorder %v1873_v0, 0.0  ;;  %v1971_v24 = vmul.f32 0.2, %v1873_v0  ;;  %v1776_v50 = vmax.f32 %v3988_v27, %v3797_v42  ;;  %v2703_v48 = vpop.f32.mrb[94].mxu0 }
 0x1b0   :  { %vm1924_vm9 = vcmp.ge.f32.partialorder %v1875_v1, 0.0  ;;  %v1973_v2 = vmul.f32 0.2, %v1875_v1  ;;  %2266 = vst.msk [vmem:[%s3892_s3 + $0x98] sm:$0xf] %vm2227_vm1, %v2475_v22  ;;  %v1874_v63 = vadd.f32 %v3476_v49, %v1818_v55  ;;  %v1723_v51 = vmax.f32 %v3989_v13, %v1265_v12  ;;  %v3813_v53 = vpop.f32.mrb[94].mxu1 }
 0x1b1   :  { %v1876_v39 = vadd.f32 %v3476_v49, %v1820_v47  ;;  %v2020_v58 = vsel %vm1922_vm8, %v1873_v0, %v1971_v24  ;;  %v1774_v52 = vmax.f32 %v3990_v4, %v1665_v62  ;;  %v1726_v59 = vmax.f32 %v3991_v5, %v2703_v48  ;;  %v1268_v25 = vpop.f32.mrb[95].mxu0  ;;  %v1668_v60 = vpop.f32.mrb[95].mxu1  ;;  %v3999_v10 = vld [vmem:[#allocation47_spill] sm:$0xff]  ;;  %v4000_v42 = vld [vmem:[#allocation53_spill] sm:$0xff] }
 0x1b2   :  { %v2022_v3 = vsel %vm1924_vm9, %v1875_v1, %v1973_v2  ;;  %v2476_v15 = vpack.c.bf16 %v2020_v58, %v2020_v58  ;;  %vm1923_vm10 = vcmp.ge.f32.partialorder %v1874_v63, 0.0  ;;  %v1972_v36 = vmul.f32 0.2, %v1874_v63 }
 0x1b3   :  { %v2478_v18 = vpack.c.bf16 %v2022_v3, %v2022_v3  ;;  %vm1925_vm11 = vcmp.ge.f32.partialorder %v1876_v39, 0.0  ;;  %v1974_v61 = vmul.f32 0.2, %v1876_v39  ;;  %v1821_v54 = vmax.f32 %v1723_v51, %v1772_v28  ;;  %v4004_v51 = vld [vmem:[#allocation52_spill] sm:$0xff] }
 0x1b4   :  { %v1823_v16 = vmax.f32 %v1725_v11, %v1774_v52  ;;  %2267 = vst.msk [vmem:[%s3892_s3 + $0x9c] sm:$0xf] %vm2227_vm1, %v2476_v15  ;;  %v2021_v14 = vsel %vm1923_vm10, %v1874_v63, %v1972_v36  ;;  %v1777_v34 = vmax.f32 %v3992_v44, %v3813_v53  ;;  %v1724_v26 = vmax.f32 %v3993_v35, %v1268_v25  ;;  %v4001_v63 = vld [vmem:[#allocation3_spill] sm:$0xff] }
 0x1b5   :  { %2269 = vst.msk [vmem:[%s3892_s3 + $0xa4] sm:$0xf] %vm2227_vm1, %v2478_v18  ;;  %v1775_v43 = vmax.f32 %v3994_v23, %v1668_v60  ;;  %v2477_v28 = vpack.c.bf16 %v2021_v14, %v2021_v14  ;;  %v2023_v37 = vsel %vm1925_vm11, %v1876_v39, %v1974_v61  ;;  %v1877_v19 = vadd.f32 %v3476_v49, %v1821_v54  ;;  %v2706_v21 = vpop.f32.mrb[96].mxu0  ;;  %v4002_v39 = vld [vmem:[#allocation51_spill] sm:$0xff] }
 0x1b6   :  { %v1879_v20 = vadd.f32 %v3476_v49, %v1823_v16  ;;  %v2479_v45 = vpack.c.bf16 %v2023_v37, %v2023_v37  ;;  %v1822_v32 = vmax.f32 %v1724_v26, %v1773_v9  ;;  %v1729_v29 = vmax.f32 %v2706_v21, %v3995_v6  ;;  %v1281_v17 = vpop.f32.mrb[97].mxu0 }
 0x1b7   :  { %v1824_v8 = vmax.f32 %v1726_v59, %v1775_v43  ;;  %2268 = vst.msk [vmem:[%s3892_s3 + $0xa0] sm:$0xf] %vm2227_vm1, %v2477_v28  ;;  %vm1926_vm12 = vcmp.ge.f32.partialorder %v1877_v19, 0.0  ;;  %v1975_v7 = vmul.f32 0.2, %v1877_v19  ;;  %v3998_v56 = vmax.f32 %v3996_v30, %v3997_v31  ;;  %v2707_v0 = vpop.f32.mrb[98].mxu0 }
 0x1b8   :  { %vm1928_vm13 = vcmp.ge.f32.partialorder %v1879_v20, 0.0  ;;  %v1977_v40 = vmul.f32 0.2, %v1879_v20  ;;  %2270 = vst.msk [vmem:[%s3892_s3 + $0xa8] sm:$0xf] %vm2227_vm1, %v2479_v45  ;;  %v1878_v38 = vadd.f32 %v3476_v49, %v1822_v32  ;;  %v1727_v57 = vmax.f32 %v3999_v10, %v1281_v17  ;;  %v1284_v55 = vpop.f32.mrb[99].mxu0 }
 0x1b9   :  { %v1880_v9 = vadd.f32 %v3476_v49, %v1824_v8  ;;  %v1778_v41 = vmax.f32 %v3998_v56, %v1729_v29  ;;  %v2024_v1 = vsel %vm1926_vm12, %v1877_v19, %v1975_v7  ;;  %v1730_v22 = vmax.f32 %v2707_v0, %v4000_v42 }
 0x1ba   :  { %v2026_v33 = vsel %vm1928_vm13, %v1879_v20, %v1977_v40  ;;  %v2480_v47 = vpack.c.bf16 %v2024_v1, %v2024_v1  ;;  %vm1927_vm14 = vcmp.ge.f32.partialorder %v1878_v38, 0.0  ;;  %v1976_v11 = vmul.f32 0.2, %v1878_v38 }
 0x1bb   :  { %v2482_v46 = vpack.c.bf16 %v2026_v33, %v2026_v33  ;;  %vm1929_vm15 = vcmp.ge.f32.partialorder %v1880_v9, 0.0  ;;  %v1978_v12 = vmul.f32 0.2, %v1880_v9  ;;  %v1834_v62 = vadd.f32 %v3476_v49, %v1778_v41 }
 0x1bc   :  { %v1825_v24 = vmax.f32 %v1727_v57, %v1776_v50  ;;  %2271 = vst.msk [vmem:[%s3892_s3 + $0xac] sm:$0xf] %vm2227_vm1, %v2480_v47  ;;  %v2025_v2 = vsel %vm1927_vm14, %v1878_v38, %v1976_v11  ;;  %v4003_v27 = vmax.f32 %v4001_v63, %v4002_v39  ;;  %v1728_v48 = vmax.f32 %v4004_v51, %v1284_v55 }
 0x1bd   :  { %2273 = vst.msk [vmem:[%s3892_s3 + $0xb4] sm:$0xf] %vm2227_vm1, %v2482_v46  ;;  %v2481_v53 = vpack.c.bf16 %v2025_v2, %v2025_v2  ;;  %v2027_v58 = vsel %vm1929_vm15, %v1880_v9, %v1978_v12  ;;  %vm1883_vm0 = vcmp.ge.f32.partialorder %v1834_v62, 0.0  ;;  %v1932_v50 = vmul.f32 0.2, %v1834_v62 }
 0x1be   :  { %v1779_v13 = vmax.f32 %v4003_v27, %v1730_v22  ;;  %v2483_v3 = vpack.c.bf16 %v2027_v58, %v2027_v58  ;;  %v1881_v4 = vadd.f32 %v3476_v49, %v1825_v24  ;;  %v1826_v5 = vmax.f32 %v1728_v48, %v1777_v34 }
 0x1bf   :  { %2272 = vst.msk [vmem:[%s3892_s3 + $0xb0] sm:$0xf] %vm2227_vm1, %v2481_v53  ;;  %v1981_v59 = vsel %vm1883_vm0, %v1834_v62, %v1932_v50 }
 0x1c0   :  { %v1835_v52 = vadd.f32 %v3476_v49, %v1779_v13  ;;  %2274 = vst.msk [vmem:[%s3892_s3 + $0xb8] sm:$0xf] %vm2227_vm1, %v2483_v3  ;;  %v2437_v25 = vpack.c.bf16 %v1981_v59, %v1981_v59  ;;  %vm1930_vm2 = vcmp.ge.f32.partialorder %v1881_v4, 0.0  ;;  %v1979_v60 = vmul.f32 0.2, %v1881_v4 }
 0x1c1   :  { %v2926_v49 = vld [vmem:[%s3891_s2] ss:$0 sm:$0xff] }
 0x1c2   :  { %vm1884_vm3 = vcmp.ge.f32.partialorder %v1835_v52, 0.0  ;;  %v1933_v15 = vmul.f32 0.2, %v1835_v52  ;;  %v1882_v18 = vadd.f32 %v2926_v49, %v1826_v5  ;;  %2228 = vst.msk [vmem:[%s3892_s3] sm:$0xf] %vm2227_vm1, %v2437_v25  ;;  %v2028_v36 = vsel %vm1930_vm2, %v1881_v4, %v1979_v60 }
 0x1c3   :  { %v2484_v61 = vpack.c.bf16 %v2028_v36, %v2028_v36 }
 0x1c4   :  { %v1982_v54 = vsel %vm1884_vm3, %v1835_v52, %v1933_v15  ;;  %vm1931_vm4 = vcmp.ge.f32.partialorder %v1882_v18, 0.0  ;;  %v1980_v16 = vmul.f32 0.2, %v1882_v18 }
 0x1c5   :  { %v2438_v14 = vpack.c.bf16 %v1982_v54, %v1982_v54  ;;  %2275 = vst.msk [vmem:[%s3892_s3 + $0xbc] sm:$0xf] %vm2227_vm1, %v2484_v61 }
 0x1c6   :  { %v2029_v44 = vsel %vm1931_vm4, %v1882_v18, %v1980_v16 }
 0x1c7   :  { %2229 = vst.msk [vmem:[%s3892_s3 + $0x4] sm:$0xf] %vm2227_vm1, %v2438_v14  ;;  %v2485_v34 = vpack.c.bf16 %v2029_v44, %v2029_v44 }
 0x1c9   :  { %2276 = vst.msk [vmem:[%s3892_s3 + $0xc0] sm:$0xf] %vm2227_vm1, %v2485_v34 }

// kernel: d_net_forward.4
= control target key start
LH: loop header
LB: loop body
LE: loop exit
PB: predicated region body
PF: predicated region fallthrough
CT: control target
= control target key end

     0   :  { %v7023_v0 = vmov 0   ;;  %vm4370_vm0 = vcmask 523264   ;;  %s10002_s1 = inlined_call_operand.vmem [shape: bf16[1600,128], index: 1, kind: input, shape index: {}]   ;;  %s10003_s0 = inlined_call_operand.vmem [shape: bf16[416,1600], index: 0, kind: input, shape index: {}]   ;;  %s10004_s2 = inlined_call_operand.vmem [shape: f32[1,128], index: 2, kind: input, shape index: {}]   ;;  %s10005_s3 = inlined_call_operand.vmem [shape: f32[1,128], index: 3, kind: input, shape index: {}]   ;;  %s10006_s4 = inlined_call_operand.vmem [shape: bf16[104,128], index: 4, kind: output, shape index: {}]  }
   0x1   :  { %1066 = vmatprep.subr.bf16.mxu1 %v7023_v0  ;;  %2260 = vmatprep.subr.bf16.mxu0 %v7023_v0  ;;  %v6427_v1 = vld [vmem:[%s10002_s1 + $0x100] sm:$0xff]   ;;  %v6429_v3 = vld [vmem:[%s10002_s1 + $0x108] sm:$0xff]   ;;  %v6431_v5 = vld [vmem:[%s10002_s1 + $0x110] sm:$0xff]  }
   0x2   :  { %v6428_v2 = vld [vmem:[%s10002_s1] sm:$0xff]   ;;  %1067 = vmatpush1.bf16.msra.mxu1 %v6427_v1  ;;  %v6430_v4 = vld [vmem:[%s10002_s1 + $0x8] sm:$0xff]   ;;  %v6432_v6 = vld [vmem:[%s10002_s1 + $0x10] sm:$0xff]  }
   0x3   :  { %2261 = vmatpush1.bf16.msra.mxu0 %v6428_v2  ;;  %1068 = vmatprep.subr.bf16.mxu1 %v7023_v0  ;;  %v6433_v7 = vld [vmem:[%s10002_s1 + $0x118] sm:$0xff]   ;;  %v6435_v9 = vld [vmem:[%s10002_s1 + $0x120] sm:$0xff]   ;;  %v6437_v11 = vld [vmem:[%s10002_s1 + $0x128] sm:$0xff]  }
   0x4   :  { %2262 = vmatprep.subr.bf16.mxu0 %v7023_v0  ;;  %v6434_v8 = vld [vmem:[%s10002_s1 + $0x18] sm:$0xff]   ;;  %v6436_v10 = vld [vmem:[%s10002_s1 + $0x20] sm:$0xff]   ;;  %v6438_v12 = vld [vmem:[%s10002_s1 + $0x28] sm:$0xff]  }
   0x5   :  { %v6439_v13 = vld [vmem:[%s10002_s1 + $0x130] sm:$0xff]   ;;  %v6441_v15 = vld [vmem:[%s10002_s1 + $0x138] sm:$0xff]   ;;  %v6443_v17 = vld [vmem:[%s10002_s1 + $0x140] sm:$0xff]  }
   0x6   :  { %1069 = vmatpush1.bf16.msra.mxu1 %v6429_v3  ;;  %v6440_v14 = vld [vmem:[%s10002_s1 + $0x30] sm:$0xff]   ;;  %v6442_v16 = vld [vmem:[%s10002_s1 + $0x38] sm:$0xff]   ;;  %v6444_v18 = vld [vmem:[%s10002_s1 + $0x40] sm:$0xff]  }
   0x7   :  { %2263 = vmatpush1.bf16.msra.mxu0 %v6430_v4  ;;  %1070 = vmatprep.subr.bf16.mxu1 %v7023_v0  ;;  %v6461_v19 = vld [vmem:[%s10003_s0 + $0x14] ss:$52 sps:$4 sm:$0xff]   ;;  %v6464_v21 = vld [vmem:[%s10003_s0 + $0x4] ss:$52 sps:$4 sm:$0xff]   ;;  %v6466_v38 = vld [vmem:[%s10003_s0 + $0x7c] ss:$52 sps:$4 sm:$0xff]  }
   0x8   :  { %2264 = vmatprep.subr.bf16.mxu0 %v7023_v0  ;;  %v6445_v20 = vld [vmem:[%s10002_s1 + $0x148] sm:$0xff]   ;;  %1098 = vmatprep.mubr.bf16.mxu1 %v6461_v19  ;;  %v6447_v23 = vld [vmem:[%s10002_s1 + $0x150] sm:$0xff]   ;;  %v6449_v25 = vld [vmem:[%s10002_s1 + $0x158] sm:$0xff]  }
   0x9   :  { %v6446_v22 = vld [vmem:[%s10002_s1 + $0x48] sm:$0xff]   ;;  %2292 = vmatprep.mubr.bf16.mxu0 %v6464_v21  ;;  %v6448_v24 = vld [vmem:[%s10002_s1 + $0x50] sm:$0xff]   ;;  %v6450_v26 = vld [vmem:[%s10002_s1 + $0x58] sm:$0xff]  }
   0xa   :  { %1071 = vmatpush1.bf16.msra.mxu1 %v6431_v5  ;;  %v6451_v27 = vld [vmem:[%s10002_s1 + $0x160] sm:$0xff]   ;;  %v6453_v29 = vld [vmem:[%s10002_s1 + $0x168] sm:$0xff]   ;;  %v6455_v31 = vld [vmem:[%s10002_s1 + $0x170] sm:$0xff]  }
   0xb   :  { %2265 = vmatpush1.bf16.msra.mxu0 %v6432_v6  ;;  %1072 = vmatprep.subr.bf16.mxu1 %v7023_v0  ;;  %v6452_v28 = vld [vmem:[%s10002_s1 + $0x60] sm:$0xff]   ;;  %v6454_v30 = vld [vmem:[%s10002_s1 + $0x68] sm:$0xff]   ;;  %v6456_v32 = vld [vmem:[%s10002_s1 + $0x70] sm:$0xff]  }
   0xc   :  { %2266 = vmatprep.subr.bf16.mxu0 %v7023_v0  ;;  %v6457_v33 = vld [vmem:[%s10002_s1 + $0x178] sm:$0xff]   ;;  %v6459_v35 = vld [vmem:[%s10003_s0 + $0x10] ss:$52 sps:$4 sm:$0xff]   ;;  %v6462_v36 = vld [vmem:[%s10003_s0] ss:$52 sps:$4 sm:$0xff]  }
   0xd   :  { %v6458_v34 = vld [vmem:[%s10002_s1 + $0x78] sm:$0xff]   ;;  %v6465_v37 = vld [vmem:[%s10002_s1 + $0x80] sm:$0xff]   ;;  %v6472_v41 = vld [vmem:[%s10002_s1 + $0x88] sm:$0xff]  }
   0xe   :  { %1073 = vmatpush1.bf16.msra.mxu1 %v6433_v7  ;;  %v6468_v39 = vld [vmem:[%s10003_s0 + $0x6c] ss:$52 sps:$4 sm:$0xff]   ;;  %v6471_v42 = vld [vmem:[%s10003_s0 + $0x68] ss:$52 sps:$4 sm:$0xff]   ;;  %v6473_v44 = vld [vmem:[%s10003_s0 + $0xe4] ss:$52 sps:$4 sm:$0xff]  }
   0xf   :  { %2267 = vmatpush1.bf16.msra.mxu0 %v6434_v8  ;;  %1074 = vmatprep.subr.bf16.mxu1 %v7023_v0  ;;  %v6470_v40 = vld [vmem:[%s10003_s0 + $0x78] ss:$52 sps:$4 sm:$0xff]   ;;  %v6532_v43 = vld [vmem:[%s10002_s1 + $0x180] sm:$0xff]   ;;  %v6475_v45 = vld [vmem:[%s10003_s0 + $0xd4] ss:$52 sps:$4 sm:$0xff]  }
  0x10   :  { %2268 = vmatprep.subr.bf16.mxu0 %v7023_v0  ;;  %v6485_v46 = vld [vmem:[%s10002_s1 + $0x90] sm:$0xff]   ;;  %v6542_v47 = vld [vmem:[%s10002_s1 + $0x188] sm:$0xff]   ;;  %v6498_v48 = vld [vmem:[%s10002_s1 + $0x98] sm:$0xff]  }
  0x11   :  { %v6477_v49 = vld [vmem:[%s10003_s0 + $0xe0] ss:$52 sps:$4 sm:$0xff]   ;;  %v6478_v50 = vld [vmem:[%s10003_s0 + $0xd0] ss:$52 sps:$4 sm:$0xff]   ;;  %v6518_v55 = vld [vmem:[%s10002_s1 + $0xa8] sm:$0xff]  }
  0x12   :  { %1075 = vmatpush1.bf16.msra.mxu1 %v6435_v9  ;;  %v6479_v51 = vld [vmem:[%s10003_s0 + $0x14c] ss:$52 sps:$4 sm:$0xff]   ;;  %v6481_v52 = vld [vmem:[%s10003_s0 + $0x13c] ss:$52 sps:$4 sm:$0xff]   ;;  %v6486_v58 = vld [vmem:[%s10003_s0 + $0x1b4] ss:$52 sps:$4 sm:$0xff]  }
  0x13   :  { %2269 = vmatpush1.bf16.msra.mxu0 %v6436_v10  ;;  %1076 = vmatprep.subr.bf16.mxu1 %v7023_v0  ;;  %v6505_v53 = vld [vmem:[%s10002_s1 + $0xa0] sm:$0xff]   ;;  %v6554_v54 = vld [vmem:[%s10002_s1 + $0x190] sm:$0xff]   ;;  %v6483_v56 = vld [vmem:[%s10003_s0 + $0x148] ss:$52 sps:$4 sm:$0xff]  }
  0x14   :  { %2270 = vmatprep.subr.bf16.mxu0 %v7023_v0  ;;  %v6484_v57 = vld [vmem:[%s10003_s0 + $0x138] ss:$52 sps:$4 sm:$0xff]   ;;  %v6529_v60 = vld [vmem:[%s10002_s1 + $0xb0] sm:$0xff]   ;;  %v6576_v2 = vld [vmem:[%s10002_s1 + $0x1a0] sm:$0xff]  }
  0x15   :  { %v6488_v59 = vld [vmem:[%s10003_s0 + $0x1a4] ss:$52 sps:$4 sm:$0xff]   ;;  %v6491_v1 = vld [vmem:[%s10003_s0 + $0x1a0] ss:$52 sps:$4 sm:$0xff]   ;;  %v6492_v3 = vld [vmem:[%s10003_s0 + $0x21c] ss:$52 sps:$4 sm:$0xff]  }
  0x16   :  { %1077 = vmatpush1.bf16.msra.mxu1 %v6437_v11  ;;  %v6568_v61 = vld [vmem:[%s10002_s1 + $0x198] sm:$0xff]   ;;  %v6490_v62 = vld [vmem:[%s10003_s0 + $0x1b0] ss:$52 sps:$4 sm:$0xff]   ;;  %v6494_v4 = vld [vmem:[%s10003_s0 + $0x20c] ss:$52 sps:$4 sm:$0xff]  }
  0x17   :  { %2271 = vmatpush1.bf16.msra.mxu0 %v6438_v12  ;;  %1078 = vmatprep.subr.bf16.mxu1 %v7023_v0  ;;  %v6539_v63 = vld [vmem:[%s10002_s1 + $0xb8] sm:$0xff]   ;;  %v6553_v5 = vld [vmem:[%s10002_s1 + $0xc0] sm:$0xff]   ;;  %v6561_v7 = vld [vmem:[%s10002_s1 + $0xc8] sm:$0xff]  }
  0x18   :  { %2272 = vmatprep.subr.bf16.mxu0 %v7023_v0  ;;  %v6496_v6 = vld [vmem:[%s10003_s0 + $0x218] ss:$52 sps:$4 sm:$0xff]   ;;  %v6497_v9 = vld [vmem:[%s10003_s0 + $0x208] ss:$52 sps:$4 sm:$0xff]   ;;  %v6575_v12 = vld [vmem:[%s10002_s1 + $0xd0] sm:$0xff]  }
  0x19   :  { %v6590_v8 = vld [vmem:[%s10002_s1 + $0x1a8] sm:$0xff]   ;;  %v6499_v10 = vld [vmem:[%s10003_s0 + $0x284] ss:$52 sps:$4 sm:$0xff]  }
  0x1a   :  { %1079 = vmatpush1.bf16.msra.mxu1 %v6439_v13  ;;  %v6501_v11 = vld [vmem:[%s10003_s0 + $0x274] ss:$52 sps:$4 sm:$0xff]   ;;  %v6589_v13 = vld [vmem:[%s10002_s1 + $0xd8] sm:$0xff]   ;;  %v6597_v19 = vld [vmem:[%s10002_s1 + $0xe0] sm:$0xff]  }
  0x1b   :  { %2273 = vmatpush1.bf16.msra.mxu0 %v6440_v14  ;;  %1080 = vmatprep.subr.bf16.mxu1 %v7023_v0  ;;  %v6603_v14 = vld [vmem:[%s10002_s1 + $0x1b0] sm:$0xff]   ;;  %v6510_v21 = vld [vmem:[%s10003_s0 + $0x2e8] ss:$52 sps:$4 sm:$0xff]  }
  0x1c   :  { %2274 = vmatprep.subr.bf16.mxu0 %v7023_v0 }
  0x1e   :  { %1081 = vmatpush1.bf16.msra.mxu1 %v6441_v15  ;;  %v6503_v15 = vld [vmem:[%s10003_s0 + $0x280] ss:$52 sps:$4 sm:$0xff]  }
  0x1f   :  { %2275 = vmatpush1.bf16.msra.mxu0 %v6442_v16  ;;  %1082 = vmatprep.subr.bf16.mxu1 %v7023_v0  ;;  %v6504_v16 = vld [vmem:[%s10003_s0 + $0x270] ss:$52 sps:$4 sm:$0xff]  }
  0x20   :  { %2276 = vmatprep.subr.bf16.mxu0 %v7023_v0 }
  0x22   :  { %1083 = vmatpush1.bf16.msra.mxu1 %v6443_v17  ;;  %v6506_v17 = vld [vmem:[%s10003_s0 + $0x2ec] ss:$52 sps:$4 sm:$0xff]  }
  0x23   :  { %2277 = vmatpush1.bf16.msra.mxu0 %v6444_v18  ;;  %1084 = vmatprep.subr.bf16.mxu1 %v7023_v0  ;;  %v6508_v18 = vld [vmem:[%s10003_s0 + $0x2dc] ss:$52 sps:$4 sm:$0xff]  }
  0x24   :  { %2278 = vmatprep.subr.bf16.mxu0 %v7023_v0 }
  0x26   :  { %1085 = vmatpush1.bf16.msra.mxu1 %v6445_v20  ;;  %v6612_v20 = vld [vmem:[%s10002_s1 + $0x1b8] sm:$0xff]  }
  0x27   :  { %2279 = vmatpush1.bf16.msra.mxu0 %v6446_v22  ;;  %1086 = vmatprep.subr.bf16.mxu1 %v7023_v0  ;;  %v6611_v22 = vld [vmem:[%s10002_s1 + $0xe8] sm:$0xff]  }
  0x28   :  { %2280 = vmatprep.subr.bf16.mxu0 %v7023_v0 }
  0x2a   :  { %1087 = vmatpush1.bf16.msra.mxu1 %v6447_v23  ;;  %v6619_v23 = vld [vmem:[%s10002_s1 + $0x1c0] sm:$0xff]  }
  0x2b   :  { %2281 = vmatpush1.bf16.msra.mxu0 %v6448_v24  ;;  %1088 = vmatprep.subr.bf16.mxu1 %v7023_v0  ;;  %v6511_v24 = vld [vmem:[%s10003_s0 + $0x2d8] ss:$52 sps:$4 sm:$0xff]  }
  0x2c   :  { %2282 = vmatprep.subr.bf16.mxu0 %v7023_v0 }
  0x2e   :  { %1089 = vmatpush1.bf16.msra.mxu1 %v6449_v25  ;;  %v6512_v25 = vld [vmem:[%s10003_s0 + $0x354] ss:$52 sps:$4 sm:$0xff]  }
  0x2f   :  { %2283 = vmatpush1.bf16.msra.mxu0 %v6450_v26  ;;  %1090 = vmatprep.subr.bf16.mxu1 %v7023_v0  ;;  %v6514_v26 = vld [vmem:[%s10003_s0 + $0x344] ss:$52 sps:$4 sm:$0xff]  }
  0x30   :  { %2284 = vmatprep.subr.bf16.mxu0 %v7023_v0 }
  0x32   :  { %1091 = vmatpush1.bf16.msra.mxu1 %v6451_v27  ;;  %v6620_v27 = vld [vmem:[%s10002_s1 + $0x1c8] sm:$0xff]  }
  0x33   :  { %2285 = vmatpush1.bf16.msra.mxu0 %v6452_v28  ;;  %1092 = vmatprep.subr.bf16.mxu1 %v7023_v0  ;;  %v6625_v28 = vld [vmem:[%s10002_s1 + $0xf0] sm:$0xff]  }
  0x34   :  { %2286 = vmatprep.subr.bf16.mxu0 %v7023_v0 }
  0x36   :  { %1093 = vmatpush1.bf16.msra.mxu1 %v6453_v29  ;;  %v6516_v29 = vld [vmem:[%s10003_s0 + $0x350] ss:$52 sps:$4 sm:$0xff]  }
  0x37   :  { %2287 = vmatpush1.bf16.msra.mxu0 %v6454_v30  ;;  %1094 = vmatprep.subr.bf16.mxu1 %v7023_v0  ;;  %v6517_v30 = vld [vmem:[%s10003_s0 + $0x340] ss:$52 sps:$4 sm:$0xff]  }
  0x38   :  { %2288 = vmatprep.subr.bf16.mxu0 %v7023_v0 }
  0x3a   :  { %1095 = vmatpush1.bf16.msra.mxu1 %v6455_v31  ;;  %v6519_v31 = vld [vmem:[%s10003_s0 + $0x3bc] ss:$52 sps:$4 sm:$0xff]  }
  0x3b   :  { %2289 = vmatpush1.bf16.msra.mxu0 %v6456_v32  ;;  %1096 = vmatprep.subr.bf16.mxu1 %v7023_v0  ;;  %v6628_v32 = vld [vmem:[%s10002_s1 + $0x1d0] sm:$0xff]  }
  0x3c   :  { %2290 = vmatprep.subr.bf16.mxu0 %v7023_v0 }
  0x3e   :  { %1097 = vmatpush1.bf16.msra.mxu1 %v6457_v33  ;;  %v6521_v33 = vld [vmem:[%s10003_s0 + $0x3ac] ss:$52 sps:$4 sm:$0xff]  }
  0x3f   :  { %2291 = vmatpush1.bf16.msra.mxu0 %v6458_v34  ;;  %1307 = vmatprep.subr.bf16.mxu1 %v7023_v0  ;;  %v6629_v34 = vld [vmem:[%s10002_s1 + $0x1d8] sm:$0xff]  }
  0x40   :  { %2501 = vmatprep.subr.bf16.mxu0 %v7023_v0 }
  0x41   :  { %1099 = vmatmul.mubr.bf16.vlgmr.msra.gmra.mrb[0].mxu1 %v6459_v35  ;;  %v6637_v35 = vld [vmem:[%s10002_s1 + $0xf8] sm:$0xff]  }
  0x42   :  { %2293 = vmatmul.mubr.bf16.vlgmr.msra.gmra.mrb[0].mxu0 %v6462_v36  ;;  %1106 = vmatprep.mubr.bf16.mxu1 %v6466_v38  ;;  %v6523_v36 = vld [vmem:[%s10003_s0 + $0x3b8] ss:$52 sps:$4 sm:$0xff]   ;;  %v6524_v38 = vld [vmem:[%s10003_s0 + $0x3a8] ss:$52 sps:$4 sm:$0xff]  }
  0x43   :  { %2502 = vmatpush1.bf16.msra.mxu0 %v6465_v37  ;;  %2300 = vmatprep.mubr.bf16.mxu0 %v6468_v39  ;;  %v6636_v37 = vld [vmem:[%s10002_s1 + $0x1e0] sm:$0xff]  }
  0x44   :  { %2503 = vmatprep.subr.bf16.mxu0 %v7023_v0  ;;  %1308 = vmatpush1.bf16.msra.mxu1 %v6532_v43  ;;  %v6525_v39 = vld [vmem:[%s10003_s0 + $0x424] ss:$52 sps:$4 sm:$0xff]   ;;  %v6645_v43 = vld [vmem:[%s10002_s1 + $0x1f0] sm:$0xff]  }
  0x45   :  { %1309 = vmatprep.subr.bf16.mxu1 %v7023_v0 }
  0x47   :  { %2504 = vmatpush1.bf16.msra.mxu0 %v6472_v41  ;;  %v6638_v41 = vld [vmem:[%s10002_s1 + $0x1e8] sm:$0xff]  }
  0x48   :  { %2505 = vmatprep.subr.bf16.mxu0 %v7023_v0  ;;  %1310 = vmatpush1.bf16.msra.mxu1 %v6542_v47  ;;  %v6646_v47 = vld [vmem:[%s10002_s1 + $0x1f8] sm:$0xff]  }
  0x49   :  { %1107 = vmatmul.mubr.bf16.gmra.mrb[4].mxu1 %v6470_v40  ;;  %1311 = vmatprep.subr.bf16.mxu1 %v7023_v0  ;;  %v6527_v40 = vld [vmem:[%s10003_s0 + $0x414] ss:$52 sps:$4 sm:$0xff]  }
  0x4a   :  { %2301 = vmatmul.mubr.bf16.gmra.mrb[4].mxu0 %v6471_v42  ;;  %1114 = vmatprep.mubr.bf16.mxu1 %v6473_v44  ;;  %v6530_v42 = vld [vmem:[%s10003_s0 + $0x420] ss:$52 sps:$4 sm:$0xff]   ;;  %v6531_v44 = vld [vmem:[%s10003_s0 + $0x410] ss:$52 sps:$4 sm:$0xff]  }
  0x4b   :  { %2308 = vmatprep.mubr.bf16.mxu0 %v6475_v45  ;;  %2506 = vmatpush1.bf16.msra.mxu0 %v6485_v46  ;;  %v6533_v45 = vld [vmem:[%s10003_s0 + $0x48c] ss:$52 sps:$4 sm:$0xff]   ;;  %v6535_v46 = vld [vmem:[%s10003_s0 + $0x47c] ss:$52 sps:$4 sm:$0xff]  }
  0x4c   :  { %2507 = vmatprep.subr.bf16.mxu0 %v7023_v0  ;;  %1312 = vmatpush1.bf16.msra.mxu1 %v6554_v54  ;;  %v6547_v54 = vld [vmem:[%s10003_s0 + $0x55c] ss:$52 sps:$4 sm:$0xff]  }
  0x4d   :  { %1313 = vmatprep.subr.bf16.mxu1 %v7023_v0 }
  0x4f   :  { %2508 = vmatpush1.bf16.msra.mxu0 %v6498_v48  ;;  %v6537_v48 = vld [vmem:[%s10003_s0 + $0x488] ss:$52 sps:$4 sm:$0xff]  }
  0x50   :  { %2509 = vmatprep.subr.bf16.mxu0 %v7023_v0  ;;  %1314 = vmatpush1.bf16.msra.mxu1 %v6568_v61  ;;  %v6560_v61 = vld [vmem:[%s10003_s0 + $0x5b0] ss:$52 sps:$4 sm:$0xff]  }
  0x51   :  { %1115 = vmatmul.mubr.bf16.gmra.mrb[8].mxu1 %v6477_v49  ;;  %1315 = vmatprep.subr.bf16.mxu1 %v7023_v0  ;;  %v6538_v49 = vld [vmem:[%s10003_s0 + $0x478] ss:$52 sps:$4 sm:$0xff]  }
  0x52   :  { %2309 = vmatmul.mubr.bf16.gmra.mrb[8].mxu0 %v6478_v50  ;;  %1122 = vmatprep.mubr.bf16.mxu1 %v6479_v51  ;;  %v6540_v50 = vld [vmem:[%s10003_s0 + $0x4f4] ss:$52 sps:$4 sm:$0xff]   ;;  %v6543_v51 = vld [vmem:[%s10003_s0 + $0x4e4] ss:$52 sps:$4 sm:$0xff]  }
  0x53   :  { %2316 = vmatprep.mubr.bf16.mxu0 %v6481_v52  ;;  %2510 = vmatpush1.bf16.msra.mxu0 %v6505_v53  ;;  %v6545_v52 = vld [vmem:[%s10003_s0 + $0x4f0] ss:$52 sps:$4 sm:$0xff]   ;;  %v6546_v53 = vld [vmem:[%s10003_s0 + $0x4e0] ss:$52 sps:$4 sm:$0xff]  }
  0x54   :  { %2511 = vmatprep.subr.bf16.mxu0 %v7023_v0  ;;  %1316 = vmatpush1.bf16.msra.mxu1 %v6576_v2  ;;  %v6567_v2 = vld [vmem:[%s10003_s0 + $0x618] ss:$52 sps:$4 sm:$0xff]  }
  0x55   :  { %1317 = vmatprep.subr.bf16.mxu1 %v7023_v0 }
  0x57   :  { %2512 = vmatpush1.bf16.msra.mxu0 %v6518_v55  ;;  %v6549_v55 = vld [vmem:[%s10003_s0 + $0x54c] ss:$52 sps:$4 sm:$0xff]  }
  0x58   :  { %2513 = vmatprep.subr.bf16.mxu0 %v7023_v0  ;;  %1318 = vmatpush1.bf16.msra.mxu1 %v6590_v8  ;;  %v6579_v8 = vld [vmem:[%s10003_s0 + $0x6ec] ss:$52 sps:$4 sm:$0xff]  }
  0x59   :  { %1123 = vmatmul.mubr.bf16.gmra.mrb[12].mxu1 %v6483_v56  ;;  %1319 = vmatprep.subr.bf16.mxu1 %v7023_v0  ;;  %v6551_v56 = vld [vmem:[%s10003_s0 + $0x558] ss:$52 sps:$4 sm:$0xff]  }
  0x5a   :  { %2317 = vmatmul.mubr.bf16.gmra.mrb[12].mxu0 %v6484_v57  ;;  %1130 = vmatprep.mubr.bf16.mxu1 %v6486_v58  ;;  %v6552_v57 = vld [vmem:[%s10003_s0 + $0x548] ss:$52 sps:$4 sm:$0xff]   ;;  %v6555_v58 = vld [vmem:[%s10003_s0 + $0x5c4] ss:$52 sps:$4 sm:$0xff]  }
  0x5b   :  { %2324 = vmatprep.mubr.bf16.mxu0 %v6488_v59  ;;  %2514 = vmatpush1.bf16.msra.mxu0 %v6529_v60  ;;  %v6557_v59 = vld [vmem:[%s10003_s0 + $0x5b4] ss:$52 sps:$4 sm:$0xff]  }
  0x5c   :  { %2515 = vmatprep.subr.bf16.mxu0 %v7023_v0  ;;  %1320 = vmatpush1.bf16.msra.mxu1 %v6603_v14  ;;  %v6559_v60 = vld [vmem:[%s10003_s0 + $0x5c0] ss:$52 sps:$4 sm:$0xff]   ;;  %v6588_v14 = vld [vmem:[%s10003_s0 + $0x750] ss:$52 sps:$4 sm:$0xff]  }
  0x5d   :  { %1321 = vmatprep.subr.bf16.mxu1 %v7023_v0 }
  0x5f   :  { %2516 = vmatpush1.bf16.msra.mxu0 %v6539_v63  ;;  %v6564_v63 = vld [vmem:[%s10003_s0 + $0x61c] ss:$52 sps:$4 sm:$0xff]  }
  0x60   :  { %2517 = vmatprep.subr.bf16.mxu0 %v7023_v0  ;;  %1322 = vmatpush1.bf16.msra.mxu1 %v6612_v20  ;;  %v6600_v20 = vld [vmem:[%s10003_s0 + $0x824] ss:$52 sps:$4 sm:$0xff]  }
  0x61   :  { %1131 = vmatmul.mubr.bf16.gmra.mrb[16].mxu1 %v6490_v62  ;;  %1323 = vmatprep.subr.bf16.mxu1 %v7023_v0  ;;  %v6562_v62 = vld [vmem:[%s10003_s0 + $0x62c] ss:$52 sps:$4 sm:$0xff]  }
  0x62   :  { %2325 = vmatmul.mubr.bf16.gmra.mrb[16].mxu0 %v6491_v1  ;;  %1138 = vmatprep.mubr.bf16.mxu1 %v6492_v3  ;;  %v6566_v1 = vld [vmem:[%s10003_s0 + $0x628] ss:$52 sps:$4 sm:$0xff]  }
  0x63   :  { %2332 = vmatprep.mubr.bf16.mxu0 %v6494_v4  ;;  %2518 = vmatpush1.bf16.msra.mxu0 %v6553_v5  ;;  %v6569_v3 = vld [vmem:[%s10003_s0 + $0x694] ss:$52 sps:$4 sm:$0xff]   ;;  %v6571_v4 = vld [vmem:[%s10003_s0 + $0x684] ss:$52 sps:$4 sm:$0xff]  }
  0x64   :  { %2519 = vmatprep.subr.bf16.mxu0 %v7023_v0  ;;  %1324 = vmatpush1.bf16.msra.mxu1 %v6619_v23  ;;  %v6573_v5 = vld [vmem:[%s10003_s0 + $0x690] ss:$52 sps:$4 sm:$0xff]  }
  0x65   :  { %1325 = vmatprep.subr.bf16.mxu1 %v7023_v0  ;;  %v6605_v23 = vld [vmem:[%s10003_s0 + $0x89c] ss:$52 sps:$4 sm:$0xff]  }
  0x67   :  { %2520 = vmatpush1.bf16.msra.mxu0 %v6561_v7  ;;  %v6577_v7 = vld [vmem:[%s10003_s0 + $0x6fc] ss:$52 sps:$4 sm:$0xff]  }
  0x68   :  { %2521 = vmatprep.subr.bf16.mxu0 %v7023_v0  ;;  %1326 = vmatpush1.bf16.msra.mxu1 %v6620_v27  ;;  %v6613_v27 = vld [vmem:[%s10003_s0 + $0x904] ss:$52 sps:$4 sm:$0xff]  }
  0x69   :  { %1139 = vmatmul.mubr.bf16.gmra.mrb[20].mxu1 %v6496_v6  ;;  %1327 = vmatprep.subr.bf16.mxu1 %v7023_v0  ;;  %v6574_v6 = vld [vmem:[%s10003_s0 + $0x680] ss:$52 sps:$4 sm:$0xff]  }
  0x6a   :  { %2333 = vmatmul.mubr.bf16.gmra.mrb[20].mxu0 %v6497_v9  ;;  %1146 = vmatprep.mubr.bf16.mxu1 %v6499_v10  ;;  %v6581_v9 = vld [vmem:[%s10003_s0 + $0x6f8] ss:$52 sps:$4 sm:$0xff]   ;;  %v6582_v10 = vld [vmem:[%s10003_s0 + $0x6e8] ss:$52 sps:$4 sm:$0xff]  }
  0x6b   :  { %2340 = vmatprep.mubr.bf16.mxu0 %v6501_v11  ;;  %2522 = vmatpush1.bf16.msra.mxu0 %v6575_v12  ;;  %v6583_v11 = vld [vmem:[%s10003_s0 + $0x764] ss:$52 sps:$4 sm:$0xff]   ;;  %v6585_v12 = vld [vmem:[%s10003_s0 + $0x754] ss:$52 sps:$4 sm:$0xff]  }
  0x6c   :  { %2523 = vmatprep.subr.bf16.mxu0 %v7023_v0  ;;  %1328 = vmatpush1.bf16.msra.mxu1 %v6628_v32  ;;  %v6623_v32 = vld [vmem:[%s10003_s0 + $0x95c] ss:$52 sps:$4 sm:$0xff]  }
  0x6d   :  { %1329 = vmatprep.subr.bf16.mxu1 %v7023_v0 }
  0x6f   :  { %2524 = vmatpush1.bf16.msra.mxu0 %v6589_v13  ;;  %v6587_v13 = vld [vmem:[%s10003_s0 + $0x760] ss:$52 sps:$4 sm:$0xff]  }
  0x70   :  { %2525 = vmatprep.subr.bf16.mxu0 %v7023_v0  ;;  %1330 = vmatpush1.bf16.msra.mxu1 %v6629_v34  ;;  %v6627_v34 = vld [vmem:[%s10003_s0 + $0x958] ss:$52 sps:$4 sm:$0xff]  }
  0x71   :  { %1147 = vmatmul.mubr.bf16.gmra.mrb[24].mxu1 %v6503_v15  ;;  %1331 = vmatprep.subr.bf16.mxu1 %v7023_v0  ;;  %v6591_v15 = vld [vmem:[%s10003_s0 + $0x7cc] ss:$52 sps:$4 sm:$0xff]  }
  0x72   :  { %2341 = vmatmul.mubr.bf16.gmra.mrb[24].mxu0 %v6504_v16  ;;  %1154 = vmatprep.mubr.bf16.mxu1 %v6506_v17  ;;  %v6593_v16 = vld [vmem:[%s10003_s0 + $0x7bc] ss:$52 sps:$4 sm:$0xff]  }
  0x73   :  { %2348 = vmatprep.mubr.bf16.mxu0 %v6508_v18  ;;  %2526 = vmatpush1.bf16.msra.mxu0 %v6597_v19  ;;  %v6595_v17 = vld [vmem:[%s10003_s0 + $0x7c8] ss:$52 sps:$4 sm:$0xff]   ;;  %v6596_v18 = vld [vmem:[%s10003_s0 + $0x7b8] ss:$52 sps:$4 sm:$0xff]  }
  0x74   :  { %2527 = vmatprep.subr.bf16.mxu0 %v7023_v0  ;;  %1332 = vmatpush1.bf16.msra.mxu1 %v6636_v37  ;;  %v6598_v19 = vld [vmem:[%s10003_s0 + $0x834] ss:$52 sps:$4 sm:$0xff]   ;;  %v6634_v37 = vld [vmem:[%s10003_s0 + $0x9d0] ss:$52 sps:$4 sm:$0xff]  }
  0x75   :  { %1333 = vmatprep.subr.bf16.mxu1 %v7023_v0 }
  0x77   :  { %2528 = vmatpush1.bf16.msra.mxu0 %v6611_v22  ;;  %v6604_v22 = vld [vmem:[%s10003_s0 + $0x820] ss:$52 sps:$4 sm:$0xff]  }
  0x78   :  { %2529 = vmatprep.subr.bf16.mxu0 %v7023_v0  ;;  %1334 = vmatpush1.bf16.msra.mxu1 %v6638_v41  ;;  %v6643_v41 = vld [vmem:[%s10003_s0 + $0xa38] ss:$52 sps:$4 sm:$0xff]  }
  0x79   :  { %1155 = vmatmul.mubr.bf16.gmra.mrb[28].mxu1 %v6510_v21  ;;  %1335 = vmatprep.subr.bf16.mxu1 %v7023_v0  ;;  %v6602_v21 = vld [vmem:[%s10003_s0 + $0x830] ss:$52 sps:$4 sm:$0xff]  }
  0x7a   :  { %2349 = vmatmul.mubr.bf16.gmra.mrb[28].mxu0 %v6511_v24  ;;  %1162 = vmatprep.mubr.bf16.mxu1 %v6512_v25  ;;  %v6607_v24 = vld [vmem:[%s10003_s0 + $0x88c] ss:$52 sps:$4 sm:$0xff]  }
  0x7b   :  { %2356 = vmatprep.mubr.bf16.mxu0 %v6514_v26  ;;  %2530 = vmatpush1.bf16.msra.mxu0 %v6625_v28  ;;  %v6609_v25 = vld [vmem:[%s10003_s0 + $0x898] ss:$52 sps:$4 sm:$0xff]   ;;  %v6610_v26 = vld [vmem:[%s10003_s0 + $0x888] ss:$52 sps:$4 sm:$0xff]  }
  0x7c   :  { %2531 = vmatprep.subr.bf16.mxu0 %v7023_v0  ;;  %1336 = vmatpush1.bf16.msra.mxu1 %v6645_v43  ;;  %v6615_v28 = vld [vmem:[%s10003_s0 + $0x8f4] ss:$52 sps:$4 sm:$0xff]   ;;  %v6649_v43 = vld [vmem:[%s10003_s0 + $0x1c] ss:$52 sps:$4 sm:$0xff]  }
  0x7d   :  { %1337 = vmatprep.subr.bf16.mxu1 %v7023_v0 }
  0x7f   :  { %2532 = vmatpush1.bf16.msra.mxu0 %v6637_v35  ;;  %v6630_v35 = vld [vmem:[%s10003_s0 + $0x9d4] ss:$52 sps:$4 sm:$0xff]  }
  0x80   :  { %3622 = vmatprep.subr.bf16.mxu0 %v7023_v0  ;;  %1338 = vmatpush1.bf16.msra.mxu1 %v6646_v47  ;;  %v6654_v47 = vld [vmem:[%s10003_s0 + $0x84] ss:$52 sps:$4 sm:$0xff]  }
  0x81   :  { %1163 = vmatmul.mubr.bf16.gmra.mrb[32].mxu1 %v6516_v29  ;;  %5964 = vmatprep.subr.bf16.mxu1 %v7023_v0  ;;  %v6617_v29 = vld [vmem:[%s10003_s0 + $0x900] ss:$52 sps:$4 sm:$0xff]  }
  0x82   :  { %2357 = vmatmul.mubr.bf16.gmra.mrb[32].mxu0 %v6517_v30  ;;  %1170 = vmatprep.mubr.bf16.mxu1 %v6519_v31  ;;  %v6618_v30 = vld [vmem:[%s10003_s0 + $0x8f0] ss:$52 sps:$4 sm:$0xff]   ;;  %v6621_v31 = vld [vmem:[%s10003_s0 + $0x96c] ss:$52 sps:$4 sm:$0xff]  }
  0x83   :  { %2364 = vmatprep.mubr.bf16.mxu0 %v6521_v33  ;;  %v6626_v33 = vld [vmem:[%s10003_s0 + $0x968] ss:$52 sps:$4 sm:$0xff]  }
  0x89   :  { %1171 = vmatmul.mubr.bf16.gmra.mrb[36].mxu1 %v6523_v36  ;;  %v6632_v36 = vld [vmem:[%s10003_s0 + $0x9c4] ss:$52 sps:$4 sm:$0xff]  }
  0x8a   :  { %2365 = vmatmul.mubr.bf16.gmra.mrb[36].mxu0 %v6524_v38  ;;  %1178 = vmatprep.mubr.bf16.mxu1 %v6525_v39  ;;  %v6635_v38 = vld [vmem:[%s10003_s0 + $0x9c0] ss:$52 sps:$4 sm:$0xff]   ;;  %v6639_v39 = vld [vmem:[%s10003_s0 + $0xa3c] ss:$52 sps:$4 sm:$0xff]  }
  0x8b   :  { %2372 = vmatprep.mubr.bf16.mxu0 %v6527_v40  ;;  %v6641_v40 = vld [vmem:[%s10003_s0 + $0xa2c] ss:$52 sps:$4 sm:$0xff]  }
  0x91   :  { %1179 = vmatmul.mubr.bf16.gmra.mrb[40].mxu1 %v6530_v42  ;;  %v6644_v42 = vld [vmem:[%s10003_s0 + $0xa28] ss:$52 sps:$4 sm:$0xff]  }
  0x92   :  { %2373 = vmatmul.mubr.bf16.gmra.mrb[40].mxu0 %v6531_v44  ;;  %1186 = vmatprep.mubr.bf16.mxu1 %v6533_v45  ;;  %v6652_v44 = vld [vmem:[%s10003_s0 + $0xc] ss:$52 sps:$4 sm:$0xff]  }
  0x93   :  { %2380 = vmatprep.mubr.bf16.mxu0 %v6535_v46  ;;  %v6647_v45 = vld [vmem:[%s10003_s0 + $0x18] ss:$52 sps:$4 sm:$0xff]   ;;  %v6650_v46 = vld [vmem:[%s10003_s0 + $0x8] ss:$52 sps:$4 sm:$0xff]  }
  0x99   :  { %1187 = vmatmul.mubr.bf16.gmra.mrb[44].mxu1 %v6537_v48  ;;  %v6653_v48 = vld [vmem:[%s10002_s1 + $0x200] sm:$0xff]  }
  0x9a   :  { %2381 = vmatmul.mubr.bf16.gmra.mrb[44].mxu0 %v6538_v49  ;;  %1194 = vmatprep.mubr.bf16.mxu1 %v6540_v50  ;;  %v6656_v49 = vld [vmem:[%s10003_s0 + $0x74] ss:$52 sps:$4 sm:$0xff]   ;;  %v7643_v50 = vld [vmem:[%s10002_s1 + $0x280] sm:$0xff]  }
  0x9b   :  { %2388 = vmatprep.mubr.bf16.mxu0 %v6543_v51  ;;  %v6660_v51 = vld [vmem:[%s10002_s1 + $0x208] sm:$0xff]  }
  0xa1   :  { %1195 = vmatmul.mubr.bf16.gmra.mrb[48].mxu1 %v6545_v52  ;;  %v7653_v52 = vld [vmem:[%s10002_s1 + $0x288] sm:$0xff]  }
  0xa2   :  { %2389 = vmatmul.mubr.bf16.gmra.mrb[48].mxu0 %v6546_v53  ;;  %1202 = vmatprep.mubr.bf16.mxu1 %v6547_v54  ;;  %v6658_v53 = vld [vmem:[%s10003_s0 + $0x80] ss:$52 sps:$4 sm:$0xff]   ;;  %v6659_v54 = vld [vmem:[%s10003_s0 + $0x70] ss:$52 sps:$4 sm:$0xff]  }
  0xa3   :  { %2396 = vmatprep.mubr.bf16.mxu0 %v6549_v55  ;;  %v6661_v55 = vld [vmem:[%s10003_s0 + $0xec] ss:$52 sps:$4 sm:$0xff]  }
  0xa9   :  { %1203 = vmatmul.mubr.bf16.gmra.mrb[52].mxu1 %v6551_v56  ;;  %v6663_v56 = vld [vmem:[%s10003_s0 + $0xdc] ss:$52 sps:$4 sm:$0xff]  }
  0xaa   :  { %2397 = vmatmul.mubr.bf16.gmra.mrb[52].mxu0 %v6552_v57  ;;  %1210 = vmatprep.mubr.bf16.mxu1 %v6555_v58  ;;  %v6673_v57 = vld [vmem:[%s10002_s1 + $0x210] sm:$0xff]  }
  0xab   :  { %2404 = vmatprep.mubr.bf16.mxu0 %v6557_v59  ;;  %v7676_v58 = vld [vmem:[%s10002_s1 + $0x290] sm:$0xff]   ;;  %v6686_v59 = vld [vmem:[%s10002_s1 + $0x218] sm:$0xff]  }
  0xb1   :  { %1211 = vmatmul.mubr.bf16.gmra.mrb[56].mxu1 %v6559_v60  ;;  %v7687_v60 = vld [vmem:[%s10002_s1 + $0x298] sm:$0xff]  }
  0xb2   :  { %2405 = vmatmul.mubr.bf16.gmra.mrb[56].mxu0 %v6560_v61  ;;  %1218 = vmatprep.mubr.bf16.mxu1 %v6562_v62  ;;  %v6665_v61 = vld [vmem:[%s10003_s0 + $0xe8] ss:$52 sps:$4 sm:$0xff]   ;;  %v6666_v62 = vld [vmem:[%s10003_s0 + $0xd8] ss:$52 sps:$4 sm:$0xff]  }
  0xb3   :  { %2412 = vmatprep.mubr.bf16.mxu0 %v6564_v63  ;;  %v6667_v63 = vld [vmem:[%s10003_s0 + $0x154] ss:$52 sps:$4 sm:$0xff]  }
  0xb9   :  { %1219 = vmatmul.mubr.bf16.gmra.mrb[60].mxu1 %v6566_v1  ;;  %v6669_v1 = vld [vmem:[%s10003_s0 + $0x144] ss:$52 sps:$4 sm:$0xff]  }
  0xba   :  { %2413 = vmatmul.mubr.bf16.gmra.mrb[60].mxu0 %v6567_v2  ;;  %1226 = vmatprep.mubr.bf16.mxu1 %v6569_v3  ;;  %v6693_v2 = vld [vmem:[%s10002_s1 + $0x220] sm:$0xff]  }
  0xbb   :  { %2420 = vmatprep.mubr.bf16.mxu0 %v6571_v4  ;;  %v7710_v3 = vld [vmem:[%s10002_s1 + $0x2a0] sm:$0xff]   ;;  %v6706_v4 = vld [vmem:[%s10002_s1 + $0x228] sm:$0xff]  }
  0xc1   :  { %1227 = vmatmul.mubr.bf16.gmra.mrb[64].mxu1 %v6573_v5  ;;  %v7721_v5 = vld [vmem:[%s10002_s1 + $0x2a8] sm:$0xff]  }
  0xc2   :  { %2421 = vmatmul.mubr.bf16.gmra.mrb[64].mxu0 %v6574_v6  ;;  %1234 = vmatprep.mubr.bf16.mxu1 %v6577_v7  ;;  %v6671_v6 = vld [vmem:[%s10003_s0 + $0x150] ss:$52 sps:$4 sm:$0xff]   ;;  %v6672_v7 = vld [vmem:[%s10003_s0 + $0x140] ss:$52 sps:$4 sm:$0xff]  }
  0xc3   :  { %2428 = vmatprep.mubr.bf16.mxu0 %v6579_v8  ;;  %v6674_v8 = vld [vmem:[%s10003_s0 + $0x1bc] ss:$52 sps:$4 sm:$0xff]  }
  0xc9   :  { %1235 = vmatmul.mubr.bf16.gmra.mrb[68].mxu1 %v6581_v9  ;;  %v6676_v9 = vld [vmem:[%s10003_s0 + $0x1ac] ss:$52 sps:$4 sm:$0xff]  }
  0xca   :  { %2429 = vmatmul.mubr.bf16.gmra.mrb[68].mxu0 %v6582_v10  ;;  %1242 = vmatprep.mubr.bf16.mxu1 %v6583_v11  ;;  %v6717_v10 = vld [vmem:[%s10002_s1 + $0x230] sm:$0xff]   ;;  %v6727_v11 = vld [vmem:[%s10002_s1 + $0x238] sm:$0xff]  }
  0xcb   :  { %2436 = vmatprep.mubr.bf16.mxu0 %v6585_v12  ;;  %v6678_v12 = vld [vmem:[%s10003_s0 + $0x1b8] ss:$52 sps:$4 sm:$0xff]  }
  0xd1   :  { %1243 = vmatmul.mubr.bf16.gmra.mrb[72].mxu1 %v6587_v13  ;;  %v6679_v13 = vld [vmem:[%s10003_s0 + $0x1a8] ss:$52 sps:$4 sm:$0xff]  }
  0xd2   :  { %2437 = vmatmul.mubr.bf16.gmra.mrb[72].mxu0 %v6588_v14  ;;  %1250 = vmatprep.mubr.bf16.mxu1 %v6591_v15  ;;  %v6680_v14 = vld [vmem:[%s10003_s0 + $0x224] ss:$52 sps:$4 sm:$0xff]   ;;  %v6682_v15 = vld [vmem:[%s10003_s0 + $0x214] ss:$52 sps:$4 sm:$0xff]  }
  0xd3   :  { %2444 = vmatprep.mubr.bf16.mxu0 %v6593_v16  ;;  %v6741_v16 = vld [vmem:[%s10002_s1 + $0x240] sm:$0xff]  }
  0xd9   :  { %1251 = vmatmul.mubr.bf16.gmra.mrb[76].mxu1 %v6595_v17  ;;  %v7765_v17 = vld [vmem:[%s10002_s1 + $0x2b0] sm:$0xff]  }
  0xda   :  { %2445 = vmatmul.mubr.bf16.gmra.mrb[76].mxu0 %v6596_v18  ;;  %1258 = vmatprep.mubr.bf16.mxu1 %v6598_v19  ;;  %v6749_v18 = vld [vmem:[%s10002_s1 + $0x248] sm:$0xff]   ;;  %v6684_v19 = vld [vmem:[%s10003_s0 + $0x220] ss:$52 sps:$4 sm:$0xff]  }
  0xdb   :  { %2452 = vmatprep.mubr.bf16.mxu0 %v6600_v20  ;;  %v6685_v20 = vld [vmem:[%s10003_s0 + $0x210] ss:$52 sps:$4 sm:$0xff]  }
  0xe1   :  { %1259 = vmatmul.mubr.bf16.gmra.mrb[80].mxu1 %v6602_v21  ;;  %v6687_v21 = vld [vmem:[%s10003_s0 + $0x28c] ss:$52 sps:$4 sm:$0xff]  }
  0xe2   :  { %2453 = vmatmul.mubr.bf16.gmra.mrb[80].mxu0 %v6604_v22  ;;  %1266 = vmatprep.mubr.bf16.mxu1 %v6605_v23  ;;  %v6689_v22 = vld [vmem:[%s10003_s0 + $0x27c] ss:$52 sps:$4 sm:$0xff]  }
  0xe3   :  { %2460 = vmatprep.mubr.bf16.mxu0 %v6607_v24  ;;  %v6763_v23 = vld [vmem:[%s10002_s1 + $0x250] sm:$0xff]   ;;  %v7792_v24 = vld [vmem:[%s10002_s1 + $0x2b8] sm:$0xff]  }
  0xe9   :  { %1267 = vmatmul.mubr.bf16.gmra.mrb[84].mxu1 %v6609_v25  ;;  %v6777_v25 = vld [vmem:[%s10002_s1 + $0x258] sm:$0xff]  }
  0xea   :  { %2461 = vmatmul.mubr.bf16.gmra.mrb[84].mxu0 %v6610_v26  ;;  %1274 = vmatprep.mubr.bf16.mxu1 %v6613_v27  ;;  %v6691_v26 = vld [vmem:[%s10003_s0 + $0x288] ss:$52 sps:$4 sm:$0xff]   ;;  %v6692_v27 = vld [vmem:[%s10003_s0 + $0x278] ss:$52 sps:$4 sm:$0xff]  }
  0xeb   :  { %2468 = vmatprep.mubr.bf16.mxu0 %v6615_v28  ;;  %v6694_v28 = vld [vmem:[%s10003_s0 + $0x2f4] ss:$52 sps:$4 sm:$0xff]  }
  0xf1   :  { %1275 = vmatmul.mubr.bf16.gmra.mrb[88].mxu1 %v6617_v29  ;;  %v6696_v29 = vld [vmem:[%s10003_s0 + $0x2e4] ss:$52 sps:$4 sm:$0xff]  }
  0xf2   :  { %2469 = vmatmul.mubr.bf16.gmra.mrb[88].mxu0 %v6618_v30  ;;  %1282 = vmatprep.mubr.bf16.mxu1 %v6621_v31  ;;  %v6785_v30 = vld [vmem:[%s10002_s1 + $0x260] sm:$0xff]  }
  0xf3   :  { %2476 = vmatprep.mubr.bf16.mxu0 %v6623_v32  ;;  %v7819_v31 = vld [vmem:[%s10002_s1 + $0x2c0] sm:$0xff]   ;;  %v6799_v32 = vld [vmem:[%s10002_s1 + $0x268] sm:$0xff]  }
  0xf9   :  { %1283 = vmatmul.mubr.bf16.gmra.mrb[92].mxu1 %v6626_v33  ;;  %v7829_v33 = vld [vmem:[%s10002_s1 + $0x2c8] sm:$0xff]  }
  0xfa   :  { %2477 = vmatmul.mubr.bf16.gmra.mrb[92].mxu0 %v6627_v34  ;;  %1290 = vmatprep.mubr.bf16.mxu1 %v6630_v35  ;;  %v6698_v34 = vld [vmem:[%s10003_s0 + $0x2f0] ss:$52 sps:$4 sm:$0xff]   ;;  %v6699_v35 = vld [vmem:[%s10003_s0 + $0x2e0] ss:$52 sps:$4 sm:$0xff]  }
  0xfb   :  { %2484 = vmatprep.mubr.bf16.mxu0 %v6632_v36  ;;  %v6700_v36 = vld [vmem:[%s10003_s0 + $0x35c] ss:$52 sps:$4 sm:$0xff]  }
 0x101   :  { %1291 = vmatmul.mubr.bf16.gmra.mrb[96].mxu1 %v6634_v37  ;;  %v6702_v37 = vld [vmem:[%s10003_s0 + $0x34c] ss:$52 sps:$4 sm:$0xff]  }
 0x102   :  { %2485 = vmatmul.mubr.bf16.gmra.mrb[96].mxu0 %v6635_v38  ;;  %1298 = vmatprep.mubr.bf16.mxu1 %v6639_v39  ;;  %v6813_v38 = vld [vmem:[%s10002_s1 + $0x270] sm:$0xff]  }
 0x103   :  { %2492 = vmatprep.mubr.bf16.mxu0 %v6641_v40  ;;  %v7853_v39 = vld [vmem:[%s10002_s1 + $0x2d0] sm:$0xff]   ;;  %v7859_v40 = vld [vmem:[%s10002_s1 + $0x2d8] sm:$0xff]  }
 0x109   :  { %1299 = vmatmul.mubr.bf16.gmra.mrb[100].mxu1 %v6643_v41  ;;  %v6704_v41 = vld [vmem:[%s10003_s0 + $0x358] ss:$52 sps:$4 sm:$0xff]  }
 0x10a   :  { %2493 = vmatmul.mubr.bf16.gmra.mrb[100].mxu0 %v6644_v42  ;;  %1339 = vmatprep.mubr.bf16.mxu1 %v6649_v43  ;;  %v6705_v42 = vld [vmem:[%s10003_s0 + $0x348] ss:$52 sps:$4 sm:$0xff]   ;;  %v6707_v43 = vld [vmem:[%s10003_s0 + $0x3c4] ss:$52 sps:$4 sm:$0xff]  }
 0x10b   :  { %2533 = vmatprep.mubr.bf16.mxu0 %v6652_v44  ;;  %v6709_v44 = vld [vmem:[%s10003_s0 + $0x3b4] ss:$52 sps:$4 sm:$0xff]  }
 0x111   :  { %1340 = vmatmul.mubr.bf16.vlgmr.msra.gmra.mrb[0].mxu1 %v6647_v45  ;;  %v7880_v45 = vld [vmem:[%s10002_s1 + $0x2e0] sm:$0xff]  }
 0x112   :  { %2534 = vmatmul.mubr.bf16.vlgmr.msra.gmra.mrb[0].mxu0 %v6650_v46  ;;  %1347 = vmatprep.mubr.bf16.mxu1 %v6654_v47  ;;  %v6825_v46 = vld [vmem:[%s10002_s1 + $0x278] sm:$0xff]   ;;  %v7889_v47 = vld [vmem:[%s10002_s1 + $0x2e8] sm:$0xff]  }
 0x113   :  { %3623 = vmatpush1.bf16.msra.mxu0 %v6653_v48  ;;  %2541 = vmatprep.mubr.bf16.mxu0 %v6656_v49  ;;  %v6711_v48 = vld [vmem:[%s10003_s0 + $0x3c0] ss:$52 sps:$4 sm:$0xff]   ;;  %v6712_v49 = vld [vmem:[%s10003_s0 + $0x3b0] ss:$52 sps:$4 sm:$0xff]  }
 0x114   :  { %3624 = vmatprep.subr.bf16.mxu0 %v7023_v0  ;;  %5980 = vmatpush1.bf16.msra.mxu1 %v7643_v50 }
 0x115   :  { %5965 = vmatprep.subr.bf16.mxu1 %v7023_v0 }
 0x117   :  { %3625 = vmatpush1.bf16.msra.mxu0 %v6660_v51  ;;  %v6713_v51 = vld [vmem:[%s10003_s0 + $0x42c] ss:$52 sps:$4 sm:$0xff]  }
 0x118   :  { %3626 = vmatprep.subr.bf16.mxu0 %v7023_v0  ;;  %5981 = vmatpush1.bf16.msra.mxu1 %v7653_v52 }
 0x119   :  { %1348 = vmatmul.mubr.bf16.gmra.mrb[4].mxu1 %v6658_v53  ;;  %5966 = vmatprep.subr.bf16.mxu1 %v7023_v0  ;;  %v6715_v53 = vld [vmem:[%s10003_s0 + $0x41c] ss:$52 sps:$4 sm:$0xff]  }
 0x11a   :  { %2542 = vmatmul.mubr.bf16.gmra.mrb[4].mxu0 %v6659_v54  ;;  %1355 = vmatprep.mubr.bf16.mxu1 %v6661_v55  ;;  %v7910_v54 = vld [vmem:[%s10002_s1 + $0x2f0] sm:$0xff]   ;;  %v7916_v55 = vld [vmem:[%s10002_s1 + $0x2f8] sm:$0xff]  }
 0x11b   :  { %2549 = vmatprep.mubr.bf16.mxu0 %v6663_v56  ;;  %3627 = vmatpush1.bf16.msra.mxu0 %v6673_v57  ;;  %v6718_v56 = vld [vmem:[%s10003_s0 + $0x428] ss:$52 sps:$4 sm:$0xff]   ;;  %v6719_v57 = vld [vmem:[%s10003_s0 + $0x418] ss:$52 sps:$4 sm:$0xff]  }
 0x11c   :  { %3628 = vmatprep.subr.bf16.mxu0 %v7023_v0  ;;  %5982 = vmatpush1.bf16.msra.mxu1 %v7676_v58 }
 0x11d   :  { %5967 = vmatprep.subr.bf16.mxu1 %v7023_v0 }
 0x11f   :  { %3629 = vmatpush1.bf16.msra.mxu0 %v6686_v59  ;;  %v6721_v59 = vld [vmem:[%s10003_s0 + $0x494] ss:$52 sps:$4 sm:$0xff]  }
 0x120   :  { %3630 = vmatprep.subr.bf16.mxu0 %v7023_v0  ;;  %5983 = vmatpush1.bf16.msra.mxu1 %v7687_v60 }
 0x121   :  { %1356 = vmatmul.mubr.bf16.gmra.mrb[8].mxu1 %v6665_v61  ;;  %5968 = vmatprep.subr.bf16.mxu1 %v7023_v0  ;;  %v6723_v61 = vld [vmem:[%s10003_s0 + $0x484] ss:$52 sps:$4 sm:$0xff]  }
 0x122   :  { %2550 = vmatmul.mubr.bf16.gmra.mrb[8].mxu0 %v6666_v62  ;;  %1363 = vmatprep.mubr.bf16.mxu1 %v6667_v63  ;;  %v6725_v62 = vld [vmem:[%s10003_s0 + $0x490] ss:$52 sps:$4 sm:$0xff]   ;;  %v6726_v63 = vld [vmem:[%s10003_s0 + $0x480] ss:$52 sps:$4 sm:$0xff]  }
 0x123   :  { %2557 = vmatprep.mubr.bf16.mxu0 %v6669_v1  ;;  %3631 = vmatpush1.bf16.msra.mxu0 %v6693_v2  ;;  %v6728_v1 = vld [vmem:[%s10003_s0 + $0x4fc] ss:$52 sps:$4 sm:$0xff]   ;;  %v6730_v2 = vld [vmem:[%s10003_s0 + $0x4ec] ss:$52 sps:$4 sm:$0xff]  }
 0x124   :  { %3632 = vmatprep.subr.bf16.mxu0 %v7023_v0  ;;  %5984 = vmatpush1.bf16.msra.mxu1 %v7710_v3 }
 0x125   :  { %5969 = vmatprep.subr.bf16.mxu1 %v7023_v0 }
 0x127   :  { %3633 = vmatpush1.bf16.msra.mxu0 %v6706_v4  ;;  %v6733_v4 = vld [vmem:[%s10003_s0 + $0x4f8] ss:$52 sps:$4 sm:$0xff]  }
 0x128   :  { %3634 = vmatprep.subr.bf16.mxu0 %v7023_v0  ;;  %5985 = vmatpush1.bf16.msra.mxu1 %v7721_v5 }
 0x129   :  { %1364 = vmatmul.mubr.bf16.gmra.mrb[12].mxu1 %v6671_v6  ;;  %5970 = vmatprep.subr.bf16.mxu1 %v7023_v0  ;;  %v6734_v6 = vld [vmem:[%s10003_s0 + $0x4e8] ss:$52 sps:$4 sm:$0xff]  }
 0x12a   :  { %2558 = vmatmul.mubr.bf16.gmra.mrb[12].mxu0 %v6672_v7  ;;  %1371 = vmatprep.mubr.bf16.mxu1 %v6674_v8  ;;  %v6735_v7 = vld [vmem:[%s10003_s0 + $0x564] ss:$52 sps:$4 sm:$0xff]   ;;  %v6737_v8 = vld [vmem:[%s10003_s0 + $0x554] ss:$52 sps:$4 sm:$0xff]  }
 0x12b   :  { %2565 = vmatprep.mubr.bf16.mxu0 %v6676_v9  ;;  %3635 = vmatpush1.bf16.msra.mxu0 %v6717_v10  ;;  %v6739_v9 = vld [vmem:[%s10003_s0 + $0x560] ss:$52 sps:$4 sm:$0xff]   ;;  %v6740_v10 = vld [vmem:[%s10003_s0 + $0x550] ss:$52 sps:$4 sm:$0xff]  }
 0x12c   :  { %3636 = vmatprep.subr.bf16.mxu0 %v7023_v0  ;;  %5986 = vmatpush1.bf16.msra.mxu1 %v7765_v17 }
 0x12d   :  { %5971 = vmatprep.subr.bf16.mxu1 %v7023_v0 }
 0x12f   :  { %3637 = vmatpush1.bf16.msra.mxu0 %v6727_v11  ;;  %v6743_v11 = vld [vmem:[%s10003_s0 + $0x5cc] ss:$52 sps:$4 sm:$0xff]  }
 0x130   :  { %3638 = vmatprep.subr.bf16.mxu0 %v7023_v0  ;;  %5987 = vmatpush1.bf16.msra.mxu1 %v7792_v24 }
 0x131   :  { %1372 = vmatmul.mubr.bf16.gmra.mrb[16].mxu1 %v6678_v12  ;;  %5972 = vmatprep.subr.bf16.mxu1 %v7023_v0  ;;  %v6745_v12 = vld [vmem:[%s10003_s0 + $0x5bc] ss:$52 sps:$4 sm:$0xff]  }
 0x132   :  { %2566 = vmatmul.mubr.bf16.gmra.mrb[16].mxu0 %v6679_v13  ;;  %1379 = vmatprep.mubr.bf16.mxu1 %v6680_v14  ;;  %v6747_v13 = vld [vmem:[%s10003_s0 + $0x5c8] ss:$52 sps:$4 sm:$0xff]   ;;  %v6748_v14 = vld [vmem:[%s10003_s0 + $0x5b8] ss:$52 sps:$4 sm:$0xff]  }
 0x133   :  { %2573 = vmatprep.mubr.bf16.mxu0 %v6682_v15  ;;  %3639 = vmatpush1.bf16.msra.mxu0 %v6741_v16  ;;  %v6750_v15 = vld [vmem:[%s10003_s0 + $0x634] ss:$52 sps:$4 sm:$0xff]   ;;  %v6752_v16 = vld [vmem:[%s10003_s0 + $0x624] ss:$52 sps:$4 sm:$0xff]  }
 0x134   :  { %3640 = vmatprep.subr.bf16.mxu0 %v7023_v0  ;;  %5988 = vmatpush1.bf16.msra.mxu1 %v7819_v31 }
 0x135   :  { %5973 = vmatprep.subr.bf16.mxu1 %v7023_v0 }
 0x137   :  { %3641 = vmatpush1.bf16.msra.mxu0 %v6749_v18  ;;  %v6754_v18 = vld [vmem:[%s10003_s0 + $0x630] ss:$52 sps:$4 sm:$0xff]  }
 0x138   :  { %3642 = vmatprep.subr.bf16.mxu0 %v7023_v0  ;;  %5989 = vmatpush1.bf16.msra.mxu1 %v7829_v33 }
 0x139   :  { %1380 = vmatmul.mubr.bf16.gmra.mrb[20].mxu1 %v6684_v19  ;;  %5974 = vmatprep.subr.bf16.mxu1 %v7023_v0  ;;  %v6755_v19 = vld [vmem:[%s10003_s0 + $0x620] ss:$52 sps:$4 sm:$0xff]  }
 0x13a   :  { %2574 = vmatmul.mubr.bf16.gmra.mrb[20].mxu0 %v6685_v20  ;;  %1387 = vmatprep.mubr.bf16.mxu1 %v6687_v21  ;;  %v6757_v20 = vld [vmem:[%s10003_s0 + $0x69c] ss:$52 sps:$4 sm:$0xff]   ;;  %v6759_v21 = vld [vmem:[%s10003_s0 + $0x68c] ss:$52 sps:$4 sm:$0xff]  }
 0x13b   :  { %2581 = vmatprep.mubr.bf16.mxu0 %v6689_v22  ;;  %3643 = vmatpush1.bf16.msra.mxu0 %v6763_v23  ;;  %v6761_v22 = vld [vmem:[%s10003_s0 + $0x698] ss:$52 sps:$4 sm:$0xff]   ;;  %v6762_v23 = vld [vmem:[%s10003_s0 + $0x688] ss:$52 sps:$4 sm:$0xff]  }
 0x13c   :  { %3644 = vmatprep.subr.bf16.mxu0 %v7023_v0  ;;  %5990 = vmatpush1.bf16.msra.mxu1 %v7853_v39 }
 0x13d   :  { %5975 = vmatprep.subr.bf16.mxu1 %v7023_v0 }
 0x13f   :  { %3645 = vmatpush1.bf16.msra.mxu0 %v6777_v25  ;;  %v6765_v25 = vld [vmem:[%s10003_s0 + $0x704] ss:$52 sps:$4 sm:$0xff]  }
 0x140   :  { %3646 = vmatprep.subr.bf16.mxu0 %v7023_v0  ;;  %5991 = vmatpush1.bf16.msra.mxu1 %v7859_v40 }
 0x141   :  { %1388 = vmatmul.mubr.bf16.gmra.mrb[24].mxu1 %v6691_v26  ;;  %5976 = vmatprep.subr.bf16.mxu1 %v7023_v0  ;;  %v6767_v26 = vld [vmem:[%s10003_s0 + $0x6f4] ss:$52 sps:$4 sm:$0xff]  }
 0x142   :  { %2582 = vmatmul.mubr.bf16.gmra.mrb[24].mxu0 %v6692_v27  ;;  %1395 = vmatprep.mubr.bf16.mxu1 %v6694_v28  ;;  %v6769_v27 = vld [vmem:[%s10003_s0 + $0x700] ss:$52 sps:$4 sm:$0xff]   ;;  %v6770_v28 = vld [vmem:[%s10003_s0 + $0x6f0] ss:$52 sps:$4 sm:$0xff]  }
 0x143   :  { %2589 = vmatprep.mubr.bf16.mxu0 %v6696_v29  ;;  %3647 = vmatpush1.bf16.msra.mxu0 %v6785_v30  ;;  %v6771_v29 = vld [vmem:[%s10003_s0 + $0x76c] ss:$52 sps:$4 sm:$0xff]   ;;  %v6773_v30 = vld [vmem:[%s10003_s0 + $0x75c] ss:$52 sps:$4 sm:$0xff]  }
 0x144   :  { %3648 = vmatprep.subr.bf16.mxu0 %v7023_v0  ;;  %5992 = vmatpush1.bf16.msra.mxu1 %v7880_v45 }
 0x145   :  { %5977 = vmatprep.subr.bf16.mxu1 %v7023_v0 }
 0x147   :  { %3649 = vmatpush1.bf16.msra.mxu0 %v6799_v32  ;;  %v6775_v32 = vld [vmem:[%s10003_s0 + $0x768] ss:$52 sps:$4 sm:$0xff]  }
 0x148   :  { %3650 = vmatprep.subr.bf16.mxu0 %v7023_v0  ;;  %5993 = vmatpush1.bf16.msra.mxu1 %v7889_v47 }
 0x149   :  { %1396 = vmatmul.mubr.bf16.gmra.mrb[28].mxu1 %v6698_v34  ;;  %5978 = vmatprep.subr.bf16.mxu1 %v7023_v0  ;;  %v6776_v34 = vld [vmem:[%s10003_s0 + $0x758] ss:$52 sps:$4 sm:$0xff]  }
 0x14a   :  { %2590 = vmatmul.mubr.bf16.gmra.mrb[28].mxu0 %v6699_v35  ;;  %1403 = vmatprep.mubr.bf16.mxu1 %v6700_v36  ;;  %v6779_v35 = vld [vmem:[%s10003_s0 + $0x7d4] ss:$52 sps:$4 sm:$0xff]   ;;  %v6781_v36 = vld [vmem:[%s10003_s0 + $0x7c4] ss:$52 sps:$4 sm:$0xff]  }
 0x14b   :  { %2597 = vmatprep.mubr.bf16.mxu0 %v6702_v37  ;;  %3651 = vmatpush1.bf16.msra.mxu0 %v6813_v38  ;;  %v6783_v37 = vld [vmem:[%s10003_s0 + $0x7d0] ss:$52 sps:$4 sm:$0xff]   ;;  %v6784_v38 = vld [vmem:[%s10003_s0 + $0x7c0] ss:$52 sps:$4 sm:$0xff]  }
 0x14c   :  { %3652 = vmatprep.subr.bf16.mxu0 %v7023_v0  ;;  %5994 = vmatpush1.bf16.msra.mxu1 %v7910_v54 }
 0x14d   :  { %5979 = vmatprep.subr.bf16.mxu1 %v7023_v0 }
 0x14f   :  { %3653 = vmatpush1.bf16.msra.mxu0 %v6825_v46  ;;  %v6793_v46 = vld [vmem:[%s10003_s0 + $0x8a4] ss:$52 sps:$4 sm:$0xff]  }
 0x150   :  { %3863 = vmatprep.subr.bf16.mxu0 %v7023_v0  ;;  %5995 = vmatpush1.bf16.msra.mxu1 %v7916_v55 }
 0x151   :  { %1404 = vmatmul.mubr.bf16.gmra.mrb[32].mxu1 %v6704_v41  ;;  %v6786_v41 = vld [vmem:[%s10003_s0 + $0x83c] ss:$52 sps:$4 sm:$0xff]  }
 0x152   :  { %2598 = vmatmul.mubr.bf16.gmra.mrb[32].mxu0 %v6705_v42  ;;  %1411 = vmatprep.mubr.bf16.mxu1 %v6707_v43  ;;  %v6788_v42 = vld [vmem:[%s10003_s0 + $0x82c] ss:$52 sps:$4 sm:$0xff]  }
 0x153   :  { %2605 = vmatprep.mubr.bf16.mxu0 %v6709_v44  ;;  %v6790_v43 = vld [vmem:[%s10003_s0 + $0x838] ss:$52 sps:$4 sm:$0xff]   ;;  %v6791_v44 = vld [vmem:[%s10003_s0 + $0x828] ss:$52 sps:$4 sm:$0xff]  }
 0x159   :  { %1412 = vmatmul.mubr.bf16.gmra.mrb[36].mxu1 %v6711_v48  ;;  %v6795_v48 = vld [vmem:[%s10003_s0 + $0x894] ss:$52 sps:$4 sm:$0xff]  }
 0x15a   :  { %2606 = vmatmul.mubr.bf16.gmra.mrb[36].mxu0 %v6712_v49  ;;  %1419 = vmatprep.mubr.bf16.mxu1 %v6713_v51  ;;  %v6901_v49 = vld [vmem:[%s10002_s1 + $0x300] sm:$0xff]  }
 0x15b   :  { %2613 = vmatprep.mubr.bf16.mxu0 %v6715_v53  ;;  %5904 = vmatprep.subr.bf16.mxu1 %v6901_v49  ;;  %v6797_v51 = vld [vmem:[%s10003_s0 + $0x8a0] ss:$52 sps:$4 sm:$0xff]   ;;  %v6798_v53 = vld [vmem:[%s10003_s0 + $0x890] ss:$52 sps:$4 sm:$0xff]  }
 0x161   :  { %1420 = vmatmul.mubr.bf16.gmra.mrb[40].mxu1 %v6718_v56  ;;  %v6801_v56 = vld [vmem:[%s10003_s0 + $0x90c] ss:$52 sps:$4 sm:$0xff]  }
 0x162   :  { %2614 = vmatmul.mubr.bf16.gmra.mrb[40].mxu0 %v6719_v57  ;;  %1427 = vmatprep.mubr.bf16.mxu1 %v6721_v59  ;;  %v6803_v57 = vld [vmem:[%s10003_s0 + $0x8fc] ss:$52 sps:$4 sm:$0xff]  }
 0x163   :  { %2621 = vmatprep.mubr.bf16.mxu0 %v6723_v61  ;;  %v6805_v59 = vld [vmem:[%s10003_s0 + $0x908] ss:$52 sps:$4 sm:$0xff]   ;;  %v6806_v61 = vld [vmem:[%s10003_s0 + $0x8f8] ss:$52 sps:$4 sm:$0xff]  }
 0x169   :  { %1428 = vmatmul.mubr.bf16.gmra.mrb[44].mxu1 %v6725_v62  ;;  %v6809_v62 = vld [vmem:[%s10003_s0 + $0x974] ss:$52 sps:$4 sm:$0xff]  }
 0x16a   :  { %2622 = vmatmul.mubr.bf16.gmra.mrb[44].mxu0 %v6726_v63  ;;  %1435 = vmatprep.mubr.bf16.mxu1 %v6728_v1  ;;  %v6811_v63 = vld [vmem:[%s10003_s0 + $0x964] ss:$52 sps:$4 sm:$0xff]  }
 0x16b   :  { %2629 = vmatprep.mubr.bf16.mxu0 %v6730_v2  ;;  %v6814_v1 = vld [vmem:[%s10003_s0 + $0x970] ss:$52 sps:$4 sm:$0xff]   ;;  %v6815_v2 = vld [vmem:[%s10003_s0 + $0x960] ss:$52 sps:$4 sm:$0xff]  }
 0x171   :  { %1436 = vmatmul.mubr.bf16.gmra.mrb[48].mxu1 %v6733_v4  ;;  %v6818_v4 = vld [vmem:[%s10003_s0 + $0x9dc] ss:$52 sps:$4 sm:$0xff]  }
 0x172   :  { %2630 = vmatmul.mubr.bf16.gmra.mrb[48].mxu0 %v6734_v6  ;;  %1443 = vmatprep.mubr.bf16.mxu1 %v6735_v7  ;;  %v6820_v6 = vld [vmem:[%s10003_s0 + $0x9cc] ss:$52 sps:$4 sm:$0xff]  }
 0x173   :  { %2637 = vmatprep.mubr.bf16.mxu0 %v6737_v8  ;;  %v6822_v7 = vld [vmem:[%s10003_s0 + $0x9d8] ss:$52 sps:$4 sm:$0xff]   ;;  %v6823_v8 = vld [vmem:[%s10003_s0 + $0x9c8] ss:$52 sps:$4 sm:$0xff]  }
 0x179   :  { %1444 = vmatmul.mubr.bf16.gmra.mrb[52].mxu1 %v6739_v9  ;;  %v6827_v9 = vld [vmem:[%s10003_s0 + $0xa44] ss:$52 sps:$4 sm:$0xff]  }
 0x17a   :  { %2638 = vmatmul.mubr.bf16.gmra.mrb[52].mxu0 %v6740_v10  ;;  %1451 = vmatprep.mubr.bf16.mxu1 %v6743_v11  ;;  %v6829_v10 = vld [vmem:[%s10003_s0 + $0xa34] ss:$52 sps:$4 sm:$0xff]  }
 0x17b   :  { %2645 = vmatprep.mubr.bf16.mxu0 %v6745_v12  ;;  %v6831_v11 = vld [vmem:[%s10003_s0 + $0xa40] ss:$52 sps:$4 sm:$0xff]   ;;  %v6832_v12 = vld [vmem:[%s10003_s0 + $0xa30] ss:$52 sps:$4 sm:$0xff]  }
 0x181   :  { %1452 = vmatmul.mubr.bf16.gmra.mrb[56].mxu1 %v6747_v13  ;;  %v6840_v13 = vld [vmem:[%s10003_s0 + $0x304] ss:$52 sps:$4 sm:$0xff]  }
 0x182   :  { %2646 = vmatmul.mubr.bf16.gmra.mrb[56].mxu0 %v6748_v14  ;;  %1459 = vmatprep.mubr.bf16.mxu1 %v6750_v15  ;;  %v6837_v14 = vld [vmem:[%s10003_s0 + $0x24] ss:$52 sps:$4 sm:$0xff]   ;;  %v6838_v15 = vld [vmem:[%s10003_s0 + $0x300] ss:$52 sps:$4 sm:$0xff]  }
 0x183   :  { %2653 = vmatprep.mubr.bf16.mxu0 %v6752_v16  ;;  %v6835_v16 = vld [vmem:[%s10003_s0 + $0x20] ss:$52 sps:$4 sm:$0xff]  }
 0x189   :  { %1460 = vmatmul.mubr.bf16.gmra.mrb[60].mxu1 %v6754_v18  ;;  %v6843_v18 = vld [vmem:[%s10003_s0 + $0x36c] ss:$52 sps:$4 sm:$0xff]  }
 0x18a   :  { %2654 = vmatmul.mubr.bf16.gmra.mrb[60].mxu0 %v6755_v19  ;;  %1467 = vmatprep.mubr.bf16.mxu1 %v6757_v20  ;;  %v6841_v19 = vld [vmem:[%s10003_s0 + $0x8c] ss:$52 sps:$4 sm:$0xff]  }
 0x18b   :  { %2661 = vmatprep.mubr.bf16.mxu0 %v6759_v21  ;;  %v6930_v20 = vld [vmem:[%s10002_s1 + $0x308] sm:$0xff]  }
 0x191   :  { %1468 = vmatmul.mubr.bf16.gmra.mrb[64].mxu1 %v6761_v22 }
 0x192   :  { %2662 = vmatmul.mubr.bf16.gmra.mrb[64].mxu0 %v6762_v23  ;;  %1475 = vmatprep.mubr.bf16.mxu1 %v6765_v25  ;;  %v6846_v23 = vld [vmem:[%s10003_s0 + $0x368] ss:$52 sps:$4 sm:$0xff]  }
 0x193   :  { %2669 = vmatprep.mubr.bf16.mxu0 %v6767_v26  ;;  %v6845_v26 = vld [vmem:[%s10003_s0 + $0x88] ss:$52 sps:$4 sm:$0xff]  }
 0x199   :  { %1476 = vmatmul.mubr.bf16.gmra.mrb[68].mxu1 %v6769_v27 }
 0x19a   :  { %2670 = vmatmul.mubr.bf16.gmra.mrb[68].mxu0 %v6770_v28  ;;  %1483 = vmatprep.mubr.bf16.mxu1 %v6771_v29  ;;  %v6847_v28 = vld [vmem:[%s10003_s0 + $0xf4] ss:$52 sps:$4 sm:$0xff]  }
 0x19b   :  { %2677 = vmatprep.mubr.bf16.mxu0 %v6773_v30 }
 0x1a1   :  { %1484 = vmatmul.mubr.bf16.gmra.mrb[72].mxu1 %v6775_v32 }
 0x1a2   :  { %2678 = vmatmul.mubr.bf16.gmra.mrb[72].mxu0 %v6776_v34  ;;  %1491 = vmatprep.mubr.bf16.mxu1 %v6779_v35  ;;  %v6851_v34 = vld [vmem:[%s10003_s0 + $0xf0] ss:$52 sps:$4 sm:$0xff]  }
 0x1a3   :  { %2685 = vmatprep.mubr.bf16.mxu0 %v6781_v36  ;;  %v6855_v35 = vld [vmem:[%s10003_s0 + $0x43c] ss:$52 sps:$4 sm:$0xff]  }
 0x1a4   :  { %v6853_v36 = vld [vmem:[%s10003_s0 + $0x15c] ss:$52 sps:$4 sm:$0xff]  }
 0x1a9   :  { %1492 = vmatmul.mubr.bf16.gmra.mrb[76].mxu1 %v6783_v37  ;;  %v6951_v37 = vld [vmem:[%s10002_s1 + $0x310] sm:$0xff]  }
 0x1aa   :  { %2686 = vmatmul.mubr.bf16.gmra.mrb[76].mxu0 %v6784_v38  ;;  %1499 = vmatprep.mubr.bf16.mxu1 %v6786_v41 }
 0x1ab   :  { %2693 = vmatprep.mubr.bf16.mxu0 %v6788_v42  ;;  %v6858_v42 = vld [vmem:[%s10003_s0 + $0x438] ss:$52 sps:$4 sm:$0xff]  }
 0x1b1   :  { %1500 = vmatmul.mubr.bf16.gmra.mrb[80].mxu1 %v6790_v43 }
 0x1b2   :  { %2694 = vmatmul.mubr.bf16.gmra.mrb[80].mxu0 %v6791_v44  ;;  %1507 = vmatprep.mubr.bf16.mxu1 %v6793_v46  ;;  %v6861_v44 = vld [vmem:[%s10003_s0 + $0x4a4] ss:$52 sps:$4 sm:$0xff]  }
 0x1b3   :  { %2701 = vmatprep.mubr.bf16.mxu0 %v6795_v48  ;;  %v6859_v48 = vld [vmem:[%s10003_s0 + $0x1c4] ss:$52 sps:$4 sm:$0xff]  }
 0x1b9   :  { %1508 = vmatmul.mubr.bf16.gmra.mrb[84].mxu1 %v6797_v51 }
 0x1ba   :  { %2702 = vmatmul.mubr.bf16.gmra.mrb[84].mxu0 %v6798_v53  ;;  %1515 = vmatprep.mubr.bf16.mxu1 %v6801_v56  ;;  %v6864_v53 = vld [vmem:[%s10003_s0 + $0x4a0] ss:$52 sps:$4 sm:$0xff]  }
 0x1bb   :  { %2709 = vmatprep.mubr.bf16.mxu0 %v6803_v57 }
 0x1c1   :  { %1516 = vmatmul.mubr.bf16.gmra.mrb[88].mxu1 %v6805_v59  ;;  %v6865_v59 = vld [vmem:[%s10003_s0 + $0x22c] ss:$52 sps:$4 sm:$0xff]  }
 0x1c2   :  { %2710 = vmatmul.mubr.bf16.gmra.mrb[88].mxu0 %v6806_v61  ;;  %1523 = vmatprep.mubr.bf16.mxu1 %v6809_v62 }
 0x1c3   :  { %2717 = vmatprep.mubr.bf16.mxu0 %v6811_v63  ;;  %v6870_v63 = vld [vmem:[%s10003_s0 + $0x508] ss:$52 sps:$4 sm:$0xff]  }
 0x1c9   :  { %1524 = vmatmul.mubr.bf16.gmra.mrb[92].mxu1 %v6814_v1 }
 0x1ca   :  { %2718 = vmatmul.mubr.bf16.gmra.mrb[92].mxu0 %v6815_v2  ;;  %1531 = vmatprep.mubr.bf16.mxu1 %v6818_v4  ;;  %v6873_v2 = vld [vmem:[%s10003_s0 + $0x574] ss:$52 sps:$4 sm:$0xff]  }
 0x1cb   :  { %2725 = vmatprep.mubr.bf16.mxu0 %v6820_v6  ;;  %v6871_v4 = vld [vmem:[%s10003_s0 + $0x294] ss:$52 sps:$4 sm:$0xff]  }
 0x1d1   :  { %1532 = vmatmul.mubr.bf16.gmra.mrb[96].mxu1 %v6822_v7 }
 0x1d2   :  { %2726 = vmatmul.mubr.bf16.gmra.mrb[96].mxu0 %v6823_v8  ;;  %1539 = vmatprep.mubr.bf16.mxu1 %v6827_v9  ;;  %v6876_v8 = vld [vmem:[%s10003_s0 + $0x570] ss:$52 sps:$4 sm:$0xff]  }
 0x1d3   :  { %2733 = vmatprep.mubr.bf16.mxu0 %v6829_v10  ;;  %v6879_v10 = vld [vmem:[%s10003_s0 + $0x5dc] ss:$52 sps:$4 sm:$0xff]  }
 0x1d9   :  { %1540 = vmatmul.mubr.bf16.gmra.mrb[100].mxu1 %v6831_v11  ;;  %v6877_v11 = vld [vmem:[%s10003_s0 + $0x2fc] ss:$52 sps:$4 sm:$0xff]  }
 0x1da   :  { %2734 = vmatmul.mubr.bf16.gmra.mrb[100].mxu0 %v6832_v12  ;;  %3951 = vmatprep.mubr.bf16.mxu1 %v6840_v13 }
 0x1db   :  { %3654 = vmatprep.mubr.bf16.mxu0 %v6837_v14  ;;  %v6882_v14 = vld [vmem:[%s10003_s0 + $0x5d8] ss:$52 sps:$4 sm:$0xff]  }
 0x1e1   :  { %3952 = vmatmul.mubr.bf16.vlgmr.msra.gmra.mrb[104].mxu1 %v6838_v15 }
 0x1e2   :  { %3655 = vmatmul.mubr.bf16.vlgmr.msra.gmra.mrb[0].mxu0 %v6835_v16  ;;  %3959 = vmatprep.mubr.bf16.mxu1 %v6843_v18  ;;  %v6885_v16 = vld [vmem:[%s10003_s0 + $0x644] ss:$52 sps:$4 sm:$0xff]  }
 0x1e3   :  { %3864 = vmatpush1.bf16.msra.mxu0 %v7643_v50  ;;  %3662 = vmatprep.mubr.bf16.mxu0 %v6841_v19  ;;  %v6849_v50 = vld [vmem:[%s10003_s0 + $0x3d4] ss:$52 sps:$4 sm:$0xff]   ;;  %v6883_v18 = vld [vmem:[%s10003_s0 + $0x364] ss:$52 sps:$4 sm:$0xff]  }
 0x1e4   :  { %v8131_v21 = vpop.f32.mrb[0].mxu1  ;;  %3865 = vmatprep.subr.bf16.mxu0 %v7023_v0  ;;  %5905 = vmatpush3.bf16.msra.mxu1 %v6901_v49 }
 0x1e5   :  { %10055 = vst [vmem:[#allocation2_spill] sm:$0xff] %v8131_v21  ;;  %v1343_v22 = vpop.f32.mrb[1].mxu1  ;;  %5906 = vmatprep.subr.bf16.mxu1 %v6930_v20 }
 0x1e6   :  { %v8137_v25 = vpop.f32.mrb[2].mxu1  ;;  %v6888_v22 = vld [vmem:[%s10003_s0 + $0x640] ss:$52 sps:$4 sm:$0xff]  }
 0x1e7   :  { %10056 = vst [vmem:[#allocation3_spill] sm:$0xff] %v8137_v25  ;;  %v1346_v27 = vpop.f32.mrb[3].mxu1  ;;  %3866 = vmatpush1.bf16.msra.mxu0 %v7653_v52  ;;  %v6852_v52 = vld [vmem:[%s10003_s0 + $0x3d0] ss:$52 sps:$4 sm:$0xff]  }
 0x1e8   :  { %3867 = vmatprep.subr.bf16.mxu0 %v7023_v0  ;;  %5907 = vmatpush3.bf16.msra.mxu1 %v6930_v20 }
 0x1e9   :  { %3960 = vmatmul.mubr.bf16.gmra.mrb[108].mxu1 %v6846_v23  ;;  %5908 = vmatprep.subr.bf16.mxu1 %v6951_v37 }
 0x1ea   :  { %3663 = vmatmul.mubr.bf16.gmra.mrb[4].mxu0 %v6845_v26  ;;  %3967 = vmatprep.mubr.bf16.mxu1 %v6849_v50  ;;  %v6891_v26 = vld [vmem:[%s10003_s0 + $0x6ac] ss:$52 sps:$4 sm:$0xff]  }
 0x1eb   :  { %3670 = vmatprep.mubr.bf16.mxu0 %v6847_v28  ;;  %3868 = vmatpush1.bf16.msra.mxu0 %v7676_v58  ;;  %v6894_v28 = vld [vmem:[%s10003_s0 + $0x6a8] ss:$52 sps:$4 sm:$0xff]  }
 0x1ec   :  { %v8151_v29 = vpop.f32.mrb[4].mxu1  ;;  %3869 = vmatprep.subr.bf16.mxu0 %v7023_v0  ;;  %5909 = vmatpush3.bf16.msra.mxu1 %v6951_v37  ;;  %v6900_v37 = vld [vmem:[%s10003_s0 + $0x710] ss:$52 sps:$4 sm:$0xff]  }
 0x1ed   :  { %10057 = vst [vmem:[#allocation4_spill] sm:$0xff] %v8151_v29  ;;  %v1351_v30 = vpop.f32.mrb[5].mxu1 }
 0x1ee   :  { %v8157_v32 = vpop.f32.mrb[6].mxu1 }
 0x1ef   :  { %10058 = vst [vmem:[#allocation5_spill] sm:$0xff] %v8157_v32  ;;  %v1354_v58 = vpop.f32.mrb[7].mxu1  ;;  %3870 = vmatpush1.bf16.msra.mxu0 %v7687_v60  ;;  %v6952_v60 = vld [vmem:[%s10002_s1 + $0x318] sm:$0xff]  }
 0x1f0   :  { %3871 = vmatprep.subr.bf16.mxu0 %v7023_v0  ;;  %5910 = vmatprep.subr.bf16.mxu1 %v6952_v60 }
 0x1f1   :  { %3968 = vmatmul.mubr.bf16.gmra.mrb[112].mxu1 %v6852_v52  ;;  %v6893_v52 = vld [vmem:[%s10003_s0 + $0x3c8] ss:$52 sps:$4 sm:$0xff]  }
 0x1f2   :  { %3671 = vmatmul.mubr.bf16.gmra.mrb[8].mxu0 %v6851_v34  ;;  %3975 = vmatprep.mubr.bf16.mxu1 %v6855_v35  ;;  %v6895_v35 = vld [vmem:[%s10003_s0 + $0x434] ss:$52 sps:$4 sm:$0xff]  }
 0x1f3   :  { %3678 = vmatprep.mubr.bf16.mxu0 %v6853_v36  ;;  %3872 = vmatpush1.bf16.msra.mxu0 %v7710_v3  ;;  %v6857_v3 = vld [vmem:[%s10003_s0 + $0x158] ss:$52 sps:$4 sm:$0xff]  }
 0x1f4   :  { %v8174_v38 = vpop.f32.mrb[8].mxu1  ;;  %3873 = vmatprep.subr.bf16.mxu0 %v7023_v0  ;;  %5911 = vmatpush3.bf16.msra.mxu1 %v6952_v60 }
 0x1f5   :  { %10059 = vst [vmem:[#allocation6_spill] sm:$0xff] %v8174_v38  ;;  %v1359_v41 = vpop.f32.mrb[9].mxu1 }
 0x1f6   :  { %v8183_v43 = vpop.f32.mrb[10].mxu1  ;;  %v6899_v41 = vld [vmem:[%s10003_s0 + $0x430] ss:$52 sps:$4 sm:$0xff]  }
 0x1f7   :  { %10060 = vst [vmem:[#allocation7_spill] sm:$0xff] %v8183_v43  ;;  %v1362_v46 = vpop.f32.mrb[11].mxu1  ;;  %3874 = vmatpush1.bf16.msra.mxu0 %v7721_v5  ;;  %v6863_v5 = vld [vmem:[%s10003_s0 + $0x1c0] ss:$52 sps:$4 sm:$0xff]  }
 0x1f8   :  { %3875 = vmatprep.subr.bf16.mxu0 %v7023_v0 }
 0x1f9   :  { %3976 = vmatmul.mubr.bf16.gmra.mrb[116].mxu1 %v6858_v42  ;;  %v6904_v42 = vld [vmem:[%s10003_s0 + $0x77c] ss:$52 sps:$4 sm:$0xff]  }
 0x1fa   :  { %3679 = vmatmul.mubr.bf16.gmra.mrb[12].mxu0 %v6857_v3  ;;  %3983 = vmatprep.mubr.bf16.mxu1 %v6861_v44  ;;  %v6902_v44 = vld [vmem:[%s10003_s0 + $0x49c] ss:$52 sps:$4 sm:$0xff]  }
 0x1fb   :  { %3686 = vmatprep.mubr.bf16.mxu0 %v6859_v48  ;;  %3876 = vmatpush1.bf16.msra.mxu0 %v7765_v17  ;;  %v6867_v17 = vld [vmem:[%s10003_s0 + $0x50c] ss:$52 sps:$4 sm:$0xff]  }
 0x1fc   :  { %v8197_v49 = vpop.f32.mrb[12].mxu1  ;;  %3877 = vmatprep.subr.bf16.mxu0 %v7023_v0 }
 0x1fd   :  { %10061 = vst [vmem:[#allocation8_spill] sm:$0xff] %v8197_v49  ;;  %v1367_v51 = vpop.f32.mrb[13].mxu1 }
 0x1fe   :  { %v8203_v56 = vpop.f32.mrb[14].mxu1  ;;  %v6907_v51 = vld [vmem:[%s10003_s0 + $0x778] ss:$52 sps:$4 sm:$0xff]  }
 0x1ff   :  { %10062 = vst [vmem:[#allocation9_spill] sm:$0xff] %v8203_v56  ;;  %v1370_v57 = vpop.f32.mrb[15].mxu1  ;;  %3878 = vmatpush1.bf16.msra.mxu0 %v7792_v24  ;;  %v6869_v24 = vld [vmem:[%s10003_s0 + $0x228] ss:$52 sps:$4 sm:$0xff]  }
 0x200   :  { %3879 = vmatprep.subr.bf16.mxu0 %v7023_v0 }
 0x201   :  { %3984 = vmatmul.mubr.bf16.gmra.mrb[120].mxu1 %v6864_v53 }
 0x202   :  { %3687 = vmatmul.mubr.bf16.gmra.mrb[16].mxu0 %v6863_v5  ;;  %3991 = vmatprep.mubr.bf16.mxu1 %v6867_v17  ;;  %v6906_v5 = vld [vmem:[%s10003_s0 + $0x498] ss:$52 sps:$4 sm:$0xff]  }
 0x203   :  { %3694 = vmatprep.mubr.bf16.mxu0 %v6865_v59  ;;  %3880 = vmatpush1.bf16.msra.mxu0 %v7819_v31  ;;  %v6910_v17 = vld [vmem:[%s10003_s0 + $0x7e4] ss:$52 sps:$4 sm:$0xff]  }
 0x204   :  { %v8217_v61 = vpop.f32.mrb[16].mxu1  ;;  %3881 = vmatprep.subr.bf16.mxu0 %v7023_v0  ;;  %v6908_v59 = vld [vmem:[%s10003_s0 + $0x504] ss:$52 sps:$4 sm:$0xff]  }
 0x205   :  { %10063 = vst [vmem:[#allocation10_spill] sm:$0xff] %v8217_v61  ;;  %v1375_v62 = vpop.f32.mrb[17].mxu1 }
 0x206   :  { %v8223_v1 = vpop.f32.mrb[18].mxu1 }
 0x207   :  { %10064 = vst [vmem:[#allocation11_spill] sm:$0xff] %v8223_v1  ;;  %v1378_v31 = vpop.f32.mrb[19].mxu1  ;;  %3882 = vmatpush1.bf16.msra.mxu0 %v7829_v33  ;;  %v6875_v33 = vld [vmem:[%s10003_s0 + $0x290] ss:$52 sps:$4 sm:$0xff]  }
 0x208   :  { %3883 = vmatprep.subr.bf16.mxu0 %v7023_v0  ;;  %v6912_v31 = vld [vmem:[%s10003_s0 + $0x500] ss:$52 sps:$4 sm:$0xff]   ;;  %v7016_v1 = vld [vmem:[%s10003_s0 + $0x230] ss:$52 sps:$4 sm:$0xff]  }
 0x209   :  { %3992 = vmatmul.mubr.bf16.gmra.mrb[124].mxu1 %v6870_v63 }
 0x20a   :  { %3695 = vmatmul.mubr.bf16.gmra.mrb[20].mxu0 %v6869_v24  ;;  %3999 = vmatprep.mubr.bf16.mxu1 %v6873_v2  ;;  %v6913_v24 = vld [vmem:[%s10003_s0 + $0x7e0] ss:$52 sps:$4 sm:$0xff]  }
 0x20b   :  { %3702 = vmatprep.mubr.bf16.mxu0 %v6871_v4  ;;  %3884 = vmatpush1.bf16.msra.mxu0 %v7853_v39  ;;  %v6916_v4 = vld [vmem:[%s10003_s0 + $0x84c] ss:$52 sps:$4 sm:$0xff]  }
 0x20c   :  { %v8237_v6 = vpop.f32.mrb[20].mxu1  ;;  %3885 = vmatprep.subr.bf16.mxu0 %v7023_v0 }
 0x20d   :  { %10065 = vst [vmem:[#allocation12_spill] sm:$0xff] %v8237_v6  ;;  %v1383_v7 = vpop.f32.mrb[21].mxu1 }
 0x20e   :  { %v8243_v9 = vpop.f32.mrb[22].mxu1 }
 0x20f   :  { %10066 = vst [vmem:[#allocation13_spill] sm:$0xff] %v8243_v9  ;;  %v1386_v39 = vpop.f32.mrb[23].mxu1  ;;  %3886 = vmatpush1.bf16.msra.mxu0 %v7859_v40  ;;  %v6881_v40 = vld [vmem:[%s10003_s0 + $0x2f8] ss:$52 sps:$4 sm:$0xff]   ;;  %v7011_v9 = vld [vmem:[%s10003_s0 + $0x1c8] ss:$52 sps:$4 sm:$0xff]  }
 0x210   :  { %3887 = vmatprep.subr.bf16.mxu0 %v7023_v0  ;;  %v6919_v39 = vld [vmem:[%s10003_s0 + $0x848] ss:$52 sps:$4 sm:$0xff]  }
 0x211   :  { %4000 = vmatmul.mubr.bf16.gmra.mrb[128].mxu1 %v6876_v8  ;;  %v6914_v8 = vld [vmem:[%s10003_s0 + $0x56c] ss:$52 sps:$4 sm:$0xff]  }
 0x212   :  { %3703 = vmatmul.mubr.bf16.gmra.mrb[24].mxu0 %v6875_v33  ;;  %4007 = vmatprep.mubr.bf16.mxu1 %v6879_v10 }
 0x213   :  { %3710 = vmatprep.mubr.bf16.mxu0 %v6877_v11  ;;  %3888 = vmatpush1.bf16.msra.mxu0 %v7880_v45 }
 0x214   :  { %v8257_v12 = vpop.f32.mrb[24].mxu1  ;;  %3889 = vmatprep.subr.bf16.mxu0 %v7023_v0 }
 0x215   :  { %10067 = vst [vmem:[#allocation14_spill] sm:$0xff] %v8257_v12  ;;  %v1391_v13 = vpop.f32.mrb[25].mxu1 }
 0x216   :  { %v8263_v15 = vpop.f32.mrb[26].mxu1  ;;  %v6918_v13 = vld [vmem:[%s10003_s0 + $0x568] ss:$52 sps:$4 sm:$0xff]  }
 0x217   :  { %10068 = vst [vmem:[#allocation15_spill] sm:$0xff] %v8263_v15  ;;  %v1394_v45 = vpop.f32.mrb[27].mxu1  ;;  %3890 = vmatpush1.bf16.msra.mxu0 %v7889_v47  ;;  %v6887_v47 = vld [vmem:[%s10003_s0 + $0x360] ss:$52 sps:$4 sm:$0xff]  }
 0x218   :  { %3891 = vmatprep.subr.bf16.mxu0 %v7023_v0  ;;  %v7006_v15 = vld [vmem:[%s10003_s0 + $0x160] ss:$52 sps:$4 sm:$0xff]  }
 0x219   :  { %4008 = vmatmul.mubr.bf16.gmra.mrb[132].mxu1 %v6882_v14  ;;  %v6922_v14 = vld [vmem:[%s10003_s0 + $0x8b4] ss:$52 sps:$4 sm:$0xff]  }
 0x21a   :  { %3711 = vmatmul.mubr.bf16.gmra.mrb[28].mxu0 %v6881_v40  ;;  %4015 = vmatprep.mubr.bf16.mxu1 %v6885_v16  ;;  %v6920_v16 = vld [vmem:[%s10003_s0 + $0x5d4] ss:$52 sps:$4 sm:$0xff]  }
 0x21b   :  { %3718 = vmatprep.mubr.bf16.mxu0 %v6883_v18  ;;  %3892 = vmatpush1.bf16.msra.mxu0 %v7910_v54 }
 0x21c   :  { %v8277_v19 = vpop.f32.mrb[28].mxu1  ;;  %3893 = vmatprep.subr.bf16.mxu0 %v7023_v0  ;;  %v6889_v0 = vld [vmem:[%s10003_s0 + $0x3cc] ss:$52 sps:$4 sm:$0xff]  }
 0x21d   :  { %v1399_v20 = vpop.f32.mrb[29].mxu1 }
 0x21e   :  { %v8283_v23 = vpop.f32.mrb[30].mxu1  ;;  %v6925_v20 = vld [vmem:[%s10003_s0 + $0x8b0] ss:$52 sps:$4 sm:$0xff]  }
 0x21f   :  { %v1402_v54 = vpop.f32.mrb[31].mxu1  ;;  %3894 = vmatpush1.bf16.msra.mxu0 %v7916_v55  ;;  %v6897_v55 = vld [vmem:[%s10003_s0 + $0x714] ss:$52 sps:$4 sm:$0xff]  }
 0x221   :  { %4016 = vmatmul.mubr.bf16.gmra.mrb[136].mxu1 %v6888_v22 }
 0x222   :  { %3719 = vmatmul.mubr.bf16.gmra.mrb[32].mxu0 %v6887_v47  ;;  %4023 = vmatprep.mubr.bf16.mxu1 %v6891_v26  ;;  %v6924_v47 = vld [vmem:[%s10003_s0 + $0x5d0] ss:$52 sps:$4 sm:$0xff]  }
 0x223   :  { %3726 = vmatprep.mubr.bf16.mxu0 %v6889_v0  ;;  %v6928_v26 = vld [vmem:[%s10003_s0 + $0x91c] ss:$52 sps:$4 sm:$0xff]  }
 0x224   :  { %v8295_v50 = vpop.f32.mrb[32].mxu1  ;;  %v6926_v0 = vld [vmem:[%s10003_s0 + $0x63c] ss:$52 sps:$4 sm:$0xff]  }
 0x225   :  { %v1407_v27 = vpop.f32.mrb[33].mxu1 }
 0x226   :  { %v8300_v30 = vpop.f32.mrb[34].mxu1 }
 0x227   :  { %v1410_v34 = vpop.f32.mrb[35].mxu1 }
 0x228   :  { %v6931_v34 = vld [vmem:[%s10003_s0 + $0x638] ss:$52 sps:$4 sm:$0xff]  }
 0x229   :  { %4024 = vmatmul.mubr.bf16.gmra.mrb[140].mxu1 %v6894_v28 }
 0x22a   :  { %3727 = vmatmul.mubr.bf16.gmra.mrb[36].mxu0 %v6893_v52  ;;  %4031 = vmatprep.mubr.bf16.mxu1 %v6897_v55  ;;  %v6932_v52 = vld [vmem:[%s10003_s0 + $0x918] ss:$52 sps:$4 sm:$0xff]  }
 0x22b   :  { %3734 = vmatprep.mubr.bf16.mxu0 %v6895_v35  ;;  %v6935_v35 = vld [vmem:[%s10003_s0 + $0x984] ss:$52 sps:$4 sm:$0xff]  }
 0x22c   :  { %v8311_v58 = vpop.f32.mrb[36].mxu1 }
 0x22d   :  { %v1415_v36 = vpop.f32.mrb[37].mxu1 }
 0x22e   :  { %v8316_v60 = vpop.f32.mrb[38].mxu1 }
 0x22f   :  { %v1418_v3 = vpop.f32.mrb[39].mxu1 }
 0x230   :  { %v6938_v3 = vld [vmem:[%s10003_s0 + $0x980] ss:$52 sps:$4 sm:$0xff]  }
 0x231   :  { %4032 = vmatmul.mubr.bf16.gmra.mrb[144].mxu1 %v6900_v37  ;;  %v6933_v37 = vld [vmem:[%s10003_s0 + $0x6a4] ss:$52 sps:$4 sm:$0xff]  }
 0x232   :  { %3735 = vmatmul.mubr.bf16.gmra.mrb[40].mxu0 %v6899_v41  ;;  %4039 = vmatprep.mubr.bf16.mxu1 %v6904_v42 }
 0x233   :  { %3742 = vmatprep.mubr.bf16.mxu0 %v6902_v44 }
 0x234   :  { %v8327_v46 = vpop.f32.mrb[40].mxu1 }
 0x235   :  { %v1423_v48 = vpop.f32.mrb[41].mxu1 }
 0x236   :  { %v8332_v53 = vpop.f32.mrb[42].mxu1  ;;  %v6937_v48 = vld [vmem:[%s10003_s0 + $0x6a0] ss:$52 sps:$4 sm:$0xff]  }
 0x237   :  { %v1426_v57 = vpop.f32.mrb[43].mxu1 }
 0x239   :  { %4040 = vmatmul.mubr.bf16.gmra.mrb[148].mxu1 %v6907_v51  ;;  %v6941_v51 = vld [vmem:[%s10003_s0 + $0x9ec] ss:$52 sps:$4 sm:$0xff]  }
 0x23a   :  { %3743 = vmatmul.mubr.bf16.gmra.mrb[44].mxu0 %v6906_v5  ;;  %4047 = vmatprep.mubr.bf16.mxu1 %v6910_v17  ;;  %v6939_v17 = vld [vmem:[%s10003_s0 + $0x70c] ss:$52 sps:$4 sm:$0xff]  }
 0x23b   :  { %3750 = vmatprep.mubr.bf16.mxu0 %v6908_v59 }
 0x23c   :  { %v8343_v62 = vpop.f32.mrb[44].mxu1 }
 0x23d   :  { %v1431_v63 = vpop.f32.mrb[45].mxu1 }
 0x23e   :  { %v8348_v2 = vpop.f32.mrb[46].mxu1  ;;  %v6944_v63 = vld [vmem:[%s10003_s0 + $0x9e8] ss:$52 sps:$4 sm:$0xff]  }
 0x23f   :  { %v1434_v7 = vpop.f32.mrb[47].mxu1 }
 0x241   :  { %4048 = vmatmul.mubr.bf16.gmra.mrb[152].mxu1 %v6913_v24 }
 0x242   :  { %3751 = vmatmul.mubr.bf16.gmra.mrb[48].mxu0 %v6912_v31  ;;  %4055 = vmatprep.mubr.bf16.mxu1 %v6916_v4  ;;  %v6943_v31 = vld [vmem:[%s10003_s0 + $0x708] ss:$52 sps:$4 sm:$0xff]  }
 0x243   :  { %3758 = vmatprep.mubr.bf16.mxu0 %v6914_v8  ;;  %v6947_v4 = vld [vmem:[%s10003_s0 + $0xa54] ss:$52 sps:$4 sm:$0xff]  }
 0x244   :  { %v8359_v33 = vpop.f32.mrb[48].mxu1  ;;  %v6945_v8 = vld [vmem:[%s10003_s0 + $0x774] ss:$52 sps:$4 sm:$0xff]  }
 0x245   :  { %v1439_v10 = vpop.f32.mrb[49].mxu1 }
 0x246   :  { %v8364_v11 = vpop.f32.mrb[50].mxu1 }
 0x247   :  { %v1442_v40 = vpop.f32.mrb[51].mxu1 }
 0x248   :  { %v6949_v40 = vld [vmem:[%s10003_s0 + $0x770] ss:$52 sps:$4 sm:$0xff]  }
 0x249   :  { %4056 = vmatmul.mubr.bf16.gmra.mrb[156].mxu1 %v6919_v39 }
 0x24a   :  { %3759 = vmatmul.mubr.bf16.gmra.mrb[52].mxu0 %v6918_v13  ;;  %4063 = vmatprep.mubr.bf16.mxu1 %v6922_v14  ;;  %v6950_v13 = vld [vmem:[%s10003_s0 + $0xa50] ss:$52 sps:$4 sm:$0xff]  }
 0x24b   :  { %3766 = vmatprep.mubr.bf16.mxu0 %v6920_v16  ;;  %v6955_v16 = vld [vmem:[%s10003_s0 + $0x30] ss:$52 sps:$4 sm:$0xff]  }
 0x24c   :  { %v8375_v45 = vpop.f32.mrb[52].mxu1 }
 0x24d   :  { %v1447_v18 = vpop.f32.mrb[53].mxu1 }
 0x24e   :  { %v8380_v22 = vpop.f32.mrb[54].mxu1 }
 0x24f   :  { %v1450_v54 = vpop.f32.mrb[55].mxu1 }
 0x250   :  { %v6957_v54 = vld [vmem:[%s10003_s0 + $0x98] ss:$52 sps:$4 sm:$0xff]  }
 0x251   :  { %4064 = vmatmul.mubr.bf16.gmra.mrb[160].mxu1 %v6925_v20  ;;  %v6953_v20 = vld [vmem:[%s10003_s0 + $0x7dc] ss:$52 sps:$4 sm:$0xff]  }
 0x252   :  { %3767 = vmatmul.mubr.bf16.gmra.mrb[56].mxu0 %v6924_v47  ;;  %4071 = vmatprep.mubr.bf16.mxu1 %v6928_v26 }
 0x253   :  { %3774 = vmatprep.mubr.bf16.mxu0 %v6926_v0 }
 0x254   :  { %v8391_v27 = vpop.f32.mrb[56].mxu1 }
 0x255   :  { %v1455_v28 = vpop.f32.mrb[57].mxu1 }
 0x256   :  { %v8396_v55 = vpop.f32.mrb[58].mxu1  ;;  %v6956_v28 = vld [vmem:[%s10003_s0 + $0x7d8] ss:$52 sps:$4 sm:$0xff]  }
 0x257   :  { %v1458_v36 = vpop.f32.mrb[59].mxu1 }
 0x259   :  { %4072 = vmatmul.mubr.bf16.gmra.mrb[164].mxu1 %v6932_v52  ;;  %v6960_v52 = vld [vmem:[%s10003_s0 + $0x100] ss:$52 sps:$4 sm:$0xff]  }
 0x25a   :  { %3775 = vmatmul.mubr.bf16.gmra.mrb[60].mxu0 %v6931_v34  ;;  %4079 = vmatprep.mubr.bf16.mxu1 %v6935_v35  ;;  %v6958_v35 = vld [vmem:[%s10003_s0 + $0x844] ss:$52 sps:$4 sm:$0xff]  }
 0x25b   :  { %3782 = vmatprep.mubr.bf16.mxu0 %v6933_v37 }
 0x25c   :  { %v8407_v41 = vpop.f32.mrb[60].mxu1 }
 0x25d   :  { %v1463_v42 = vpop.f32.mrb[61].mxu1 }
 0x25e   :  { %v8412_v44 = vpop.f32.mrb[62].mxu1  ;;  %v6962_v42 = vld [vmem:[%s10003_s0 + $0x168] ss:$52 sps:$4 sm:$0xff]  }
 0x25f   :  { %v1466_v5 = vpop.f32.mrb[63].mxu1 }
 0x261   :  { %4080 = vmatmul.mubr.bf16.gmra.mrb[168].mxu1 %v6938_v3 }
 0x262   :  { %3783 = vmatmul.mubr.bf16.gmra.mrb[64].mxu0 %v6937_v48  ;;  %4087 = vmatprep.mubr.bf16.mxu1 %v6941_v51  ;;  %v6961_v48 = vld [vmem:[%s10003_s0 + $0x840] ss:$52 sps:$4 sm:$0xff]   ;;  %v6965_v51 = vld [vmem:[%s10003_s0 + $0x1d0] ss:$52 sps:$4 sm:$0xff]  }
 0x263   :  { %3790 = vmatprep.mubr.bf16.mxu0 %v6939_v17  ;;  %v6963_v17 = vld [vmem:[%s10003_s0 + $0x8ac] ss:$52 sps:$4 sm:$0xff]  }
 0x264   :  { %v8423_v57 = vpop.f32.mrb[64].mxu1 }
 0x265   :  { %v1471_v59 = vpop.f32.mrb[65].mxu1 }
 0x266   :  { %v8428_v24 = vpop.f32.mrb[66].mxu1 }
 0x267   :  { %v1474_v7 = vpop.f32.mrb[67].mxu1 }
 0x268   :  { %v6966_v7 = vld [vmem:[%s10003_s0 + $0x8a8] ss:$52 sps:$4 sm:$0xff]  }
 0x269   :  { %4088 = vmatmul.mubr.bf16.gmra.mrb[172].mxu1 %v6944_v63 }
 0x26a   :  { %3791 = vmatmul.mubr.bf16.gmra.mrb[68].mxu0 %v6943_v31  ;;  %4095 = vmatprep.mubr.bf16.mxu1 %v6947_v4  ;;  %v6967_v31 = vld [vmem:[%s10003_s0 + $0x238] ss:$52 sps:$4 sm:$0xff]  }
 0x26b   :  { %3798 = vmatprep.mubr.bf16.mxu0 %v6945_v8  ;;  %v6970_v8 = vld [vmem:[%s10003_s0 + $0x2a0] ss:$52 sps:$4 sm:$0xff]  }
 0x26c   :  { %v8439_v10 = vpop.f32.mrb[68].mxu1 }
 0x26d   :  { %v1479_v39 = vpop.f32.mrb[69].mxu1 }
 0x26e   :  { %v8444_v14 = vpop.f32.mrb[70].mxu1 }
 0x26f   :  { %v1482_v18 = vpop.f32.mrb[71].mxu1 }
 0x270   :  { %v6972_v18 = vld [vmem:[%s10003_s0 + $0x308] ss:$52 sps:$4 sm:$0xff]  }
 0x271   :  { %4096 = vmatmul.mubr.bf16.gmra.mrb[176].mxu1 %v6950_v13  ;;  %v6968_v13 = vld [vmem:[%s10003_s0 + $0x914] ss:$52 sps:$4 sm:$0xff]  }
 0x272   :  { %3799 = vmatmul.mubr.bf16.gmra.mrb[72].mxu0 %v6949_v40  ;;  %5912 = vmatprep.mubr.msk.bf16.mxu1 %vm4370_vm0, %v6955_v16 }
 0x273   :  { %3806 = vmatprep.mubr.bf16.mxu0 %v6953_v20 }
 0x274   :  { %v8456_v47 = vpop.f32.mrb[72].mxu1 }
 0x275   :  { %v1487_v26 = vpop.f32.mrb[73].mxu1 }
 0x276   :  { %v8461_v0 = vpop.f32.mrb[74].mxu1  ;;  %v6971_v26 = vld [vmem:[%s10003_s0 + $0x910] ss:$52 sps:$4 sm:$0xff]  }
 0x277   :  { %v1490_v34 = vpop.f32.mrb[75].mxu1 }
 0x279   :  { %5913 = vmatmul.mubr.msk.bf16.vlgmr.msra.gmra.mrb[180].mxu1 %vm4370_vm0, %v6957_v54  ;;  %v6975_v54 = vld [vmem:[%s10003_s0 + $0x370] ss:$52 sps:$4 sm:$0xff]  }
 0x27a   :  { %3807 = vmatmul.mubr.bf16.gmra.mrb[76].mxu0 %v6956_v28  ;;  %5916 = vmatprep.mubr.msk.bf16.mxu1 %vm4370_vm0, %v6960_v52  ;;  %v6973_v52 = vld [vmem:[%s10003_s0 + $0x97c] ss:$52 sps:$4 sm:$0xff]  }
 0x27b   :  { %3814 = vmatprep.mubr.bf16.mxu0 %v6958_v35 }
 0x27c   :  { %v8474_v36 = vpop.f32.mrb[76].mxu1 }
 0x27d   :  { %v1495_v37 = vpop.f32.mrb[77].mxu1 }
 0x27e   :  { %v8479_v3 = vpop.f32.mrb[78].mxu1  ;;  %v6977_v37 = vld [vmem:[%s10003_s0 + $0x3d8] ss:$52 sps:$4 sm:$0xff]  }
 0x27f   :  { %v1498_v5 = vpop.f32.mrb[79].mxu1 }
 0x281   :  { %5917 = vmatmul.mubr.msk.bf16.gmra.mrb[184].mxu1 %vm4370_vm0, %v6962_v42 }
 0x282   :  { %3815 = vmatmul.mubr.bf16.gmra.mrb[80].mxu0 %v6961_v48  ;;  %5920 = vmatprep.mubr.msk.bf16.mxu1 %vm4370_vm0, %v6965_v51  ;;  %v6976_v48 = vld [vmem:[%s10003_s0 + $0x978] ss:$52 sps:$4 sm:$0xff]   ;;  %v6980_v51 = vld [vmem:[%s10003_s0 + $0x440] ss:$52 sps:$4 sm:$0xff]  }
 0x283   :  { %3822 = vmatprep.mubr.bf16.mxu0 %v6963_v17  ;;  %v6978_v17 = vld [vmem:[%s10003_s0 + $0x9e4] ss:$52 sps:$4 sm:$0xff]  }
 0x284   :  { %v8492_v59 = vpop.f32.mrb[80].mxu1 }
 0x285   :  { %v1503_v63 = vpop.f32.mrb[81].mxu1 }
 0x286   :  { %v8497_v4 = vpop.f32.mrb[82].mxu1 }
 0x287   :  { %v1506_v39 = vpop.f32.mrb[83].mxu1 }
 0x288   :  { %v6981_v39 = vld [vmem:[%s10003_s0 + $0x9e0] ss:$52 sps:$4 sm:$0xff]  }
 0x289   :  { %5921 = vmatmul.mubr.msk.bf16.gmra.mrb[188].mxu1 %vm4370_vm0, %v6967_v31 }
 0x28a   :  { %3823 = vmatmul.mubr.bf16.gmra.mrb[84].mxu0 %v6966_v7  ;;  %5924 = vmatprep.mubr.msk.bf16.mxu1 %vm4370_vm0, %v6970_v8  ;;  %v6982_v7 = vld [vmem:[%s10003_s0 + $0x4a8] ss:$52 sps:$4 sm:$0xff]  }
 0x28b   :  { %3830 = vmatprep.mubr.bf16.mxu0 %v6968_v13  ;;  %v6985_v13 = vld [vmem:[%s10003_s0 + $0x510] ss:$52 sps:$4 sm:$0xff]  }
 0x28c   :  { %v8510_v40 = vpop.f32.mrb[84].mxu1 }
 0x28d   :  { %v1511_v16 = vpop.f32.mrb[85].mxu1 }
 0x28e   :  { %v8515_v20 = vpop.f32.mrb[86].mxu1 }
 0x28f   :  { %v1514_v28 = vpop.f32.mrb[87].mxu1 }
 0x290   :  { %v6987_v28 = vld [vmem:[%s10003_s0 + $0x578] ss:$52 sps:$4 sm:$0xff]  }
 0x291   :  { %5925 = vmatmul.mubr.msk.bf16.gmra.mrb[192].mxu1 %vm4370_vm0, %v6972_v18  ;;  %v6983_v18 = vld [vmem:[%s10003_s0 + $0xa4c] ss:$52 sps:$4 sm:$0xff]  }
 0x292   :  { %3831 = vmatmul.mubr.bf16.gmra.mrb[88].mxu0 %v6971_v26  ;;  %5928 = vmatprep.mubr.msk.bf16.mxu1 %vm4370_vm0, %v6975_v54 }
 0x293   :  { %3838 = vmatprep.mubr.bf16.mxu0 %v6973_v52 }
 0x294   :  { %v8528_v34 = vpop.f32.mrb[88].mxu1 }
 0x295   :  { %v1519_v35 = vpop.f32.mrb[89].mxu1 }
 0x296   :  { %v8533_v42 = vpop.f32.mrb[90].mxu1  ;;  %v6986_v35 = vld [vmem:[%s10003_s0 + $0xa48] ss:$52 sps:$4 sm:$0xff]  }
 0x297   :  { %v1522_v5 = vpop.f32.mrb[91].mxu1 }
 0x299   :  { %5929 = vmatmul.mubr.msk.bf16.gmra.mrb[196].mxu1 %vm4370_vm0, %v6977_v37  ;;  %v6991_v37 = vld [vmem:[%s10003_s0 + $0x5e0] ss:$52 sps:$4 sm:$0xff]  }
 0x29a   :  { %3839 = vmatmul.mubr.bf16.gmra.mrb[92].mxu0 %v6976_v48  ;;  %5932 = vmatprep.mubr.msk.bf16.mxu1 %vm4370_vm0, %v6980_v51  ;;  %v6990_v51 = vld [vmem:[%s10003_s0 + $0x2c] ss:$52 sps:$4 sm:$0xff]  }
 0x29b   :  { %3846 = vmatprep.mubr.bf16.mxu0 %v6978_v17 }
 0x29c   :  { %v8546_v63 = vpop.f32.mrb[92].mxu1 }
 0x29d   :  { %v1527_v31 = vpop.f32.mrb[93].mxu1 }
 0x29e   :  { %v8551_v8 = vpop.f32.mrb[94].mxu1  ;;  %v6992_v31 = vld [vmem:[%s10003_s0 + $0x648] ss:$52 sps:$4 sm:$0xff]  }
 0x29f   :  { %v1530_v16 = vpop.f32.mrb[95].mxu1 }
 0x2a1   :  { %5933 = vmatmul.mubr.msk.bf16.gmra.mrb[200].mxu1 %vm4370_vm0, %v6982_v7 }
 0x2a2   :  { %3847 = vmatmul.mubr.bf16.gmra.mrb[96].mxu0 %v6981_v39  ;;  %5936 = vmatprep.mubr.msk.bf16.mxu1 %vm4370_vm0, %v6985_v13  ;;  %v6988_v39 = vld [vmem:[%s10003_s0 + $0x28] ss:$52 sps:$4 sm:$0xff]   ;;  %v6995_v13 = vld [vmem:[%s10003_s0 + $0x6b0] ss:$52 sps:$4 sm:$0xff]  }
 0x2a3   :  { %3854 = vmatprep.mubr.bf16.mxu0 %v6983_v18  ;;  %v6993_v18 = vld [vmem:[%s10003_s0 + $0x94] ss:$52 sps:$4 sm:$0xff]  }
 0x2a4   :  { %v8564_v26 = vpop.f32.mrb[96].mxu1 }
 0x2a5   :  { %v1535_v54 = vpop.f32.mrb[97].mxu1 }
 0x2a6   :  { %v8569_v52 = vpop.f32.mrb[98].mxu1 }
 0x2a7   :  { %10069 = vst [vmem:[#allocation16_spill] sm:$0xff] %v8569_v52  ;;  %v1538_v48 = vpop.f32.mrb[99].mxu1 }
 0x2a8   :  { %v7000_v48 = vld [vmem:[%s10003_s0 + $0x780] ss:$52 sps:$4 sm:$0xff]  }
 0x2a9   :  { %5937 = vmatmul.mubr.msk.bf16.gmra.mrb[204].mxu1 %vm4370_vm0, %v6987_v28  ;;  %v6997_v28 = vld [vmem:[%s10003_s0 + $0x718] ss:$52 sps:$4 sm:$0xff]  }
 0x2aa   :  { %3855 = vmatmul.mubr.bf16.gmra.mrb[100].mxu0 %v6986_v35  ;;  %5940 = vmatprep.mubr.msk.bf16.mxu1 %vm4370_vm0, %v6991_v37  ;;  %v6996_v37 = vld [vmem:[%s10003_s0 + $0x90] ss:$52 sps:$4 sm:$0xff]  }
 0x2ab   :  { %3895 = vmatprep.mubr.bf16.mxu0 %v6990_v51 }
 0x2ac   :  { %v8582_v5 = vpop.f32.mrb[100].mxu1 }
 0x2ad   :  { %10070 = vst [vmem:[#allocation17_spill] sm:$0xff] %v8582_v5  ;;  %v1543_v17 = vpop.f32.mrb[101].mxu1 }
 0x2ae   :  { %v8587_v7 = vpop.f32.mrb[102].mxu1  ;;  %v6998_v17 = vld [vmem:[%s10003_s0 + $0xfc] ss:$52 sps:$4 sm:$0xff]  }
 0x2af   :  { %10071 = vst [vmem:[#allocation18_spill] sm:$0xff] %v8587_v7  ;;  %v1546_v16 = vpop.f32.mrb[103].mxu1 }
 0x2b1   :  { %5941 = vmatmul.mubr.msk.bf16.gmra.mrb[208].mxu1 %vm4370_vm0, %v6992_v31 }
 0x2b2   :  { %3896 = vmatmul.mubr.bf16.vlgmr.msra.gmra.mrb[0].mxu0 %v6988_v39  ;;  %5944 = vmatprep.mubr.msk.bf16.mxu1 %vm4370_vm0, %v6995_v13  ;;  %v7002_v13 = vld [vmem:[%s10003_s0 + $0x7e8] ss:$52 sps:$4 sm:$0xff]  }
 0x2b3   :  { %3903 = vmatprep.mubr.bf16.mxu0 %v6993_v18  ;;  %v7001_v18 = vld [vmem:[%s10003_s0 + $0xf8] ss:$52 sps:$4 sm:$0xff]  }
 0x2b4   :  { %v8600_v54 = vpop.f32.mrb[104].mxu1 }
 0x2b5   :  { %v3955_v35 = vpop.f32.mrb[105].mxu1 }
 0x2b6   :  { %v8611_v51 = vpop.f32.mrb[106].mxu1  ;;  %v7005_v35 = vld [vmem:[%s10003_s0 + $0x850] ss:$52 sps:$4 sm:$0xff]  }
 0x2b7   :  { %v3958_v31 = vpop.f32.mrb[107].mxu1 }
 0x2b8   :  { %v7007_v31 = vld [vmem:[%s10003_s0 + $0x8b8] ss:$52 sps:$4 sm:$0xff]  }
 0x2b9   :  { %5945 = vmatmul.mubr.msk.bf16.gmra.mrb[212].mxu1 %vm4370_vm0, %v6997_v28 }
 0x2ba   :  { %3904 = vmatmul.mubr.bf16.gmra.mrb[4].mxu0 %v6996_v37  ;;  %5948 = vmatprep.mubr.msk.bf16.mxu1 %vm4370_vm0, %v7000_v48  ;;  %v7003_v37 = vld [vmem:[%s10003_s0 + $0x164] ss:$52 sps:$4 sm:$0xff]  }
 0x2bb   :  { %3911 = vmatprep.mubr.bf16.mxu0 %v6998_v17 }
 0x2bc   :  { %v8618_v39 = vpop.f32.mrb[108].mxu1 }
 0x2bd   :  { %v3963_v16 = vpop.f32.mrb[109].mxu1 }
 0x2be   :  { %v8629_v28 = vpop.f32.mrb[110].mxu1 }
 0x2bf   :  { %v3966_v48 = vpop.f32.mrb[111].mxu1 }
 0x2c0   :  { %v7010_v48 = vld [vmem:[%s10003_s0 + $0x920] ss:$52 sps:$4 sm:$0xff]  }
 0x2c1   :  { %5949 = vmatmul.mubr.msk.bf16.gmra.mrb[216].mxu1 %vm4370_vm0, %v7002_v13 }
 0x2c2   :  { %3912 = vmatmul.mubr.bf16.gmra.mrb[8].mxu0 %v7001_v18  ;;  %5952 = vmatprep.mubr.msk.bf16.mxu1 %vm4370_vm0, %v7005_v35  ;;  %v7008_v18 = vld [vmem:[%s10003_s0 + $0x1cc] ss:$52 sps:$4 sm:$0xff]  }
 0x2c3   :  { %3919 = vmatprep.mubr.bf16.mxu0 %v7003_v37 }
 0x2c4   :  { %v8636_v17 = vpop.f32.mrb[112].mxu1 }
 0x2c5   :  { %v3971_v16 = vpop.f32.mrb[113].mxu1 }
 0x2c6   :  { %v8647_v13 = vpop.f32.mrb[114].mxu1  ;;  %v7012_v16 = vld [vmem:[%s10003_s0 + $0x988] ss:$52 sps:$4 sm:$0xff]  }
 0x2c7   :  { %v3974_v35 = vpop.f32.mrb[115].mxu1 }
 0x2c8   :  { %v7015_v35 = vld [vmem:[%s10003_s0 + $0x9f0] ss:$52 sps:$4 sm:$0xff]  }
 0x2c9   :  { %5953 = vmatmul.mubr.msk.bf16.gmra.mrb[220].mxu1 %vm4370_vm0, %v7007_v31 }
 0x2ca   :  { %3920 = vmatmul.mubr.bf16.gmra.mrb[12].mxu0 %v7006_v15  ;;  %5956 = vmatprep.mubr.msk.bf16.mxu1 %vm4370_vm0, %v7010_v48  ;;  %v7013_v15 = vld [vmem:[%s10003_s0 + $0x234] ss:$52 sps:$4 sm:$0xff]  }
 0x2cb   :  { %3927 = vmatprep.mubr.bf16.mxu0 %v7008_v18  ;;  %v7017_v18 = vld [vmem:[%s10003_s0 + $0xa58] ss:$52 sps:$4 sm:$0xff]  }
 0x2cc   :  { %v8654_v37 = vpop.f32.mrb[116].mxu1 }
 0x2cd   :  { %v3979_v12 = vpop.f32.mrb[117].mxu1 }
 0x2ce   :  { %v8665_v31 = vpop.f32.mrb[118].mxu1 }
 0x2cf   :  { %v3982_v48 = vpop.f32.mrb[119].mxu1 }
 0x2d1   :  { %5957 = vmatmul.mubr.msk.bf16.gmra.mrb[224].mxu1 %vm4370_vm0, %v7012_v16 }
 0x2d2   :  { %3928 = vmatmul.mubr.bf16.gmra.mrb[16].mxu0 %v7011_v9  ;;  %5960 = vmatprep.mubr.msk.bf16.mxu1 %vm4370_vm0, %v7015_v35  ;;  %v7018_v9 = vld [vmem:[%s10003_s0 + $0x29c] ss:$52 sps:$4 sm:$0xff]  }
 0x2d3   :  { %3935 = vmatprep.mubr.bf16.mxu0 %v7013_v15 }
 0x2d4   :  { %v8672_v12 = vpop.f32.mrb[120].mxu1 }
 0x2d5   :  { %v3987_v6 = vpop.f32.mrb[121].mxu1 }
 0x2d6   :  { %v8680_v61 = vpop.f32.mrb[122].mxu1  ;;  %v7020_v6 = vld [vmem:[%s10003_s0 + $0x298] ss:$52 sps:$4 sm:$0xff]  }
 0x2d7   :  { %v3990_v16 = vpop.f32.mrb[123].mxu1 }
 0x2d9   :  { %5961 = vmatmul.mubr.msk.bf16.gmra.mrb[228].mxu1 %vm4370_vm0, %v7017_v18 }
 0x2da   :  { %3936 = vmatmul.mubr.bf16.gmra.mrb[20].mxu0 %v7016_v1 }
 0x2db   :  { %3943 = vmatprep.mubr.bf16.mxu0 %v7018_v9 }
 0x2dc   :  { %v8686_v35 = vpop.f32.mrb[124].mxu1 }
 0x2dd   :  { %v3995_v15 = vpop.f32.mrb[125].mxu1 }
 0x2de   :  { %v8691_v48 = vpop.f32.mrb[126].mxu1 }
 0x2df   :  { %v3998_v56 = vpop.f32.mrb[127].mxu1 }
 0x2e2   :  { %3944 = vmatmul.mubr.bf16.gmra.mrb[24].mxu0 %v7020_v6 }
 0x2e4   :  { %v8693_v49 = vpop.f32.mrb[128].mxu1 }
 0x2e5   :  { %v4003_v43 = vpop.f32.mrb[129].mxu1 }
 0x2e6   :  { %v8695_v38 = vpop.f32.mrb[130].mxu1 }
 0x2e7   :  { %v4006_v16 = vpop.f32.mrb[131].mxu1 }
 0x2ec   :  { %v8697_v18 = vpop.f32.mrb[132].mxu1 }
 0x2ed   :  { %v3712_v1 = vpop.f32.mrb[28].mxu0  ;;  %v4011_v9 = vpop.f32.mrb[133].mxu1 }
 0x2ee   :  { %v6010_v15 = vadd.f32 %v3712_v1, %v8277_v19  ;;  %v3714_v32 = vpop.f32.mrb[29].mxu0  ;;  %v8700_v29 = vpop.f32.mrb[134].mxu1 }
 0x2ef   :  { %v3715_v25 = vpop.f32.mrb[30].mxu0  ;;  %v4014_v21 = vpop.f32.mrb[135].mxu1 }
 0x2f0   :  { %v6012_v56 = vadd.f32 %v3715_v25, %v8283_v23  ;;  %v8704_v6 = vadd.f32 %v6010_v15, %v8600_v54  ;;  %v3717_v43 = vpop.f32.mrb[31].mxu0 }
 0x2f2   :  { %v8707_v7 = vadd.f32 %v6012_v56, %v8611_v51 }
 0x2f4   :  { %v8709_v16 = vpop.f32.mrb[136].mxu1 }
 0x2f5   :  { %v3720_v5 = vpop.f32.mrb[32].mxu0  ;;  %v4019_v9 = vpop.f32.mrb[137].mxu1 }
 0x2f6   :  { %v6014_v19 = vadd.f32 %v3720_v5, %v8295_v50  ;;  %v3722_v32 = vpop.f32.mrb[33].mxu0  ;;  %v8712_v1 = vpop.f32.mrb[138].mxu1 }
 0x2f7   :  { %v3723_v52 = vpop.f32.mrb[34].mxu0  ;;  %v4022_v21 = vpop.f32.mrb[139].mxu1 }
 0x2f8   :  { %v6016_v25 = vadd.f32 %v3723_v52, %v8300_v30  ;;  %v8716_v23 = vadd.f32 %v6014_v19, %v8618_v39  ;;  %v3725_v54 = vpop.f32.mrb[35].mxu0 }
 0x2fa   :  { %v8719_v51 = vadd.f32 %v6016_v25, %v8629_v28 }
 0x2fc   :  { %v8721_v15 = vpop.f32.mrb[140].mxu1 }
 0x2fd   :  { %v3728_v56 = vpop.f32.mrb[36].mxu0  ;;  %v4027_v43 = vpop.f32.mrb[141].mxu1 }
 0x2fe   :  { %v6018_v50 = vadd.f32 %v3728_v56, %v8311_v58  ;;  %v3730_v5 = vpop.f32.mrb[37].mxu0  ;;  %v8724_v9 = vpop.f32.mrb[142].mxu1 }
 0x2ff   :  { %v3731_v32 = vpop.f32.mrb[38].mxu0  ;;  %v4030_v21 = vpop.f32.mrb[143].mxu1 }
 0x300   :  { %v6020_v30 = vadd.f32 %v3731_v32, %v8316_v60  ;;  %v8728_v52 = vadd.f32 %v6018_v50, %v8636_v17  ;;  %v3733_v39 = vpop.f32.mrb[39].mxu0 }
 0x302   :  { %v8731_v28 = vadd.f32 %v6020_v30, %v8647_v13 }
 0x304   :  { %v8733_v19 = vpop.f32.mrb[144].mxu1 }
 0x305   :  { %v3736_v25 = vpop.f32.mrb[40].mxu0  ;;  %v4035_v54 = vpop.f32.mrb[145].mxu1 }
 0x306   :  { %v6022_v58 = vadd.f32 %v3736_v25, %v8327_v46  ;;  %v3738_v56 = vpop.f32.mrb[41].mxu0  ;;  %v8736_v43 = vpop.f32.mrb[146].mxu1 }
 0x307   :  { %v3739_v5 = vpop.f32.mrb[42].mxu0  ;;  %v4038_v21 = vpop.f32.mrb[147].mxu1 }
 0x308   :  { %v6024_v60 = vadd.f32 %v3739_v5, %v8332_v53  ;;  %v8740_v17 = vadd.f32 %v6022_v58, %v8654_v37  ;;  %v3741_v50 = vpop.f32.mrb[43].mxu0 }
 0x30a   :  { %v8743_v13 = vadd.f32 %v6024_v60, %v8665_v31 }
 0x30c   :  { %v8745_v32 = vpop.f32.mrb[148].mxu1 }
 0x30d   :  { %v3744_v30 = vpop.f32.mrb[44].mxu0  ;;  %v4043_v39 = vpop.f32.mrb[149].mxu1 }
 0x30e   :  { %v6026_v46 = vadd.f32 %v3744_v30, %v8343_v62  ;;  %v3746_v25 = vpop.f32.mrb[45].mxu0  ;;  %v8748_v54 = vpop.f32.mrb[150].mxu1 }
 0x30f   :  { %v3747_v56 = vpop.f32.mrb[46].mxu0  ;;  %v4046_v21 = vpop.f32.mrb[151].mxu1 }
 0x310   :  { %v6028_v53 = vadd.f32 %v3747_v56, %v8348_v2  ;;  %v8752_v37 = vadd.f32 %v6026_v46, %v8672_v12  ;;  %v3749_v58 = vpop.f32.mrb[47].mxu0 }
 0x312   :  { %v8755_v31 = vadd.f32 %v6028_v53, %v8680_v61 }
 0x314   :  { %v8757_v5 = vpop.f32.mrb[152].mxu1 }
 0x315   :  { %v3752_v60 = vpop.f32.mrb[48].mxu0  ;;  %v4051_v50 = vpop.f32.mrb[153].mxu1 }
 0x316   :  { %v6030_v62 = vadd.f32 %v3752_v60, %v8359_v33  ;;  %v3754_v30 = vpop.f32.mrb[49].mxu0  ;;  %v8760_v39 = vpop.f32.mrb[154].mxu1 }
 0x317   :  { %v3755_v25 = vpop.f32.mrb[50].mxu0  ;;  %v4054_v21 = vpop.f32.mrb[155].mxu1 }
 0x318   :  { %v6032_v2 = vadd.f32 %v3755_v25, %v8364_v11  ;;  %v8764_v12 = vadd.f32 %v6030_v62, %v8686_v35  ;;  %v3757_v46 = vpop.f32.mrb[51].mxu0 }
 0x31a   :  { %v8767_v61 = vadd.f32 %v6032_v2, %v8691_v48 }
 0x31c   :  { %v8769_v56 = vpop.f32.mrb[156].mxu1 }
 0x31d   :  { %v3760_v53 = vpop.f32.mrb[52].mxu0  ;;  %v4059_v58 = vpop.f32.mrb[157].mxu1 }
 0x31e   :  { %v6034_v33 = vadd.f32 %v3760_v53, %v8375_v45  ;;  %v3762_v60 = vpop.f32.mrb[53].mxu0  ;;  %v8772_v50 = vpop.f32.mrb[158].mxu1 }
 0x31f   :  { %v3763_v30 = vpop.f32.mrb[54].mxu0  ;;  %v4062_v21 = vpop.f32.mrb[159].mxu1 }
 0x320   :  { %v6036_v11 = vadd.f32 %v3763_v30, %v8380_v22  ;;  %v8776_v35 = vadd.f32 %v6034_v33, %v8693_v49  ;;  %v3765_v62 = vpop.f32.mrb[55].mxu0 }
 0x322   :  { %v8779_v48 = vadd.f32 %v6036_v11, %v8695_v38 }
 0x324   :  { %v8781_v25 = vpop.f32.mrb[160].mxu1 }
 0x325   :  { %v3768_v2 = vpop.f32.mrb[56].mxu0  ;;  %v4067_v46 = vpop.f32.mrb[161].mxu1 }
 0x326   :  { %v6038_v45 = vadd.f32 %v3768_v2, %v8391_v27  ;;  %v3770_v53 = vpop.f32.mrb[57].mxu0  ;;  %v8784_v58 = vpop.f32.mrb[162].mxu1 }
 0x327   :  { %v3771_v60 = vpop.f32.mrb[58].mxu0  ;;  %v4070_v21 = vpop.f32.mrb[163].mxu1 }
 0x328   :  { %v6040_v22 = vadd.f32 %v3771_v60, %v8396_v55  ;;  %v8788_v49 = vadd.f32 %v6038_v45, %v8697_v18  ;;  %v3773_v33 = vpop.f32.mrb[59].mxu0 }
 0x32a   :  { %v8791_v38 = vadd.f32 %v6040_v22, %v8700_v29 }
 0x32c   :  { %v8793_v30 = vpop.f32.mrb[164].mxu1 }
 0x32d   :  { %v3776_v11 = vpop.f32.mrb[60].mxu0  ;;  %v4075_v62 = vpop.f32.mrb[165].mxu1 }
 0x32e   :  { %v6042_v27 = vadd.f32 %v3776_v11, %v8407_v41  ;;  %v3778_v2 = vpop.f32.mrb[61].mxu0  ;;  %v8796_v46 = vpop.f32.mrb[166].mxu1 }
 0x32f   :  { %v3779_v53 = vpop.f32.mrb[62].mxu0  ;;  %v4078_v21 = vpop.f32.mrb[167].mxu1 }
 0x330   :  { %v8799_v55 = vadd.f32 %v6042_v27, %v8709_v16  ;;  %v6044_v18 = vadd.f32 %v3779_v53, %v8412_v44  ;;  %v3781_v45 = vpop.f32.mrb[63].mxu0 }
 0x332   :  { %v8803_v29 = vadd.f32 %v6044_v18, %v8712_v1 }
 0x334   :  { %v8805_v60 = vpop.f32.mrb[168].mxu1 }
 0x335   :  { %v3784_v22 = vpop.f32.mrb[64].mxu0  ;;  %v4083_v33 = vpop.f32.mrb[169].mxu1 }
 0x336   :  { %v6046_v41 = vadd.f32 %v3784_v22, %v8423_v57  ;;  %v3786_v11 = vpop.f32.mrb[65].mxu0  ;;  %v8808_v62 = vpop.f32.mrb[170].mxu1 }
 0x337   :  { %v3787_v2 = vpop.f32.mrb[66].mxu0  ;;  %v4086_v21 = vpop.f32.mrb[171].mxu1 }
 0x338   :  { %v6048_v16 = vadd.f32 %v3787_v2, %v8428_v24  ;;  %v3789_v27 = vpop.f32.mrb[67].mxu0  ;;  %v8812_v44 = vadd.f32 %v6046_v41, %v8721_v15 }
 0x33a   :  { %v8815_v1 = vadd.f32 %v6048_v16, %v8724_v9 }
 0x33c   :  { %v8817_v53 = vpop.f32.mrb[172].mxu1 }
 0x33d   :  { %v3792_v18 = vpop.f32.mrb[68].mxu0  ;;  %v4091_v45 = vpop.f32.mrb[173].mxu1 }
 0x33e   :  { %v6050_v57 = vadd.f32 %v3792_v18, %v8439_v10  ;;  %v3794_v22 = vpop.f32.mrb[69].mxu0  ;;  %v8820_v33 = vpop.f32.mrb[174].mxu1 }
 0x33f   :  { %v3795_v11 = vpop.f32.mrb[70].mxu0  ;;  %v4094_v21 = vpop.f32.mrb[175].mxu1 }
 0x340   :  { %v6052_v24 = vadd.f32 %v3795_v11, %v8444_v14  ;;  %v3797_v2 = vpop.f32.mrb[71].mxu0  ;;  %v8824_v15 = vadd.f32 %v6050_v57, %v8733_v19 }
 0x342   :  { %v8827_v9 = vadd.f32 %v6052_v24, %v8736_v43 }
 0x344   :  { %v8829_v41 = vpop.f32.mrb[176].mxu1 }
 0x345   :  { %v3800_v16 = vpop.f32.mrb[72].mxu0  ;;  %v4099_v27 = vpop.f32.mrb[177].mxu1 }
 0x346   :  { %v6054_v10 = vadd.f32 %v3800_v16, %v8456_v47  ;;  %v3802_v18 = vpop.f32.mrb[73].mxu0  ;;  %v8832_v45 = vpop.f32.mrb[178].mxu1 }
 0x347   :  { %v3803_v22 = vpop.f32.mrb[74].mxu0  ;;  %v4102_v21 = vpop.f32.mrb[179].mxu1 }
 0x348   :  { %v6056_v14 = vadd.f32 %v3803_v22, %v8461_v0  ;;  %v3805_v11 = vpop.f32.mrb[75].mxu0  ;;  %v8836_v19 = vadd.f32 %v6054_v10, %v8745_v32 }
 0x34a   :  { %10072 = vst [vmem:[#allocation19_spill] sm:$0xff] %v8836_v19  ;;  %v8839_v43 = vadd.f32 %v6056_v14, %v8748_v54 }
 0x34c   :  { %10073 = vst [vmem:[#allocation20_spill] sm:$0xff] %v8839_v43  ;;  %v8841_v57 = vpop.f32.mrb[180].mxu1 }
 0x34d   :  { %v3808_v24 = vpop.f32.mrb[76].mxu0  ;;  %v8843_v2 = vpop.f32.mrb[181].mxu1 }
 0x34e   :  { %v6058_v47 = vadd.f32 %v3808_v24, %v8474_v36  ;;  %v3810_v16 = vpop.f32.mrb[77].mxu0  ;;  %v8846_v27 = vpop.f32.mrb[182].mxu1 }
 0x34f   :  { %v3811_v18 = vpop.f32.mrb[78].mxu0  ;;  %v8848_v21 = vpop.f32.mrb[183].mxu1 }
 0x350   :  { %v6060_v0 = vadd.f32 %v3811_v18, %v8479_v3  ;;  %v3813_v32 = vpop.f32.mrb[79].mxu0  ;;  %v8852_v10 = vadd.f32 %v6058_v47, %v8757_v5 }
 0x352   :  { %v8855_v54 = vadd.f32 %v6060_v0, %v8760_v39 }
 0x354   :  { %v8857_v22 = vpop.f32.mrb[184].mxu1 }
 0x355   :  { %10074 = vst [vmem:[#allocation21_spill] sm:$0xff] %v8857_v22  ;;  %v3816_v14 = vpop.f32.mrb[80].mxu0  ;;  %v8859_v11 = vpop.f32.mrb[185].mxu1 }
 0x356   :  { %v6062_v36 = vadd.f32 %v3816_v14, %v8492_v59  ;;  %v3818_v24 = vpop.f32.mrb[81].mxu0  ;;  %v8862_v16 = vpop.f32.mrb[186].mxu1 }
 0x357   :  { %10075 = vst [vmem:[#allocation22_spill] sm:$0xff] %v8862_v16  ;;  %v3819_v43 = vpop.f32.mrb[82].mxu0  ;;  %v8864_v19 = vpop.f32.mrb[187].mxu1 }
 0x358   :  { %v6064_v3 = vadd.f32 %v3819_v43, %v8497_v4  ;;  %v3821_v5 = vpop.f32.mrb[83].mxu0  ;;  %v8868_v47 = vadd.f32 %v6062_v36, %v8769_v56 }
 0x35a   :  { %v8871_v39 = vadd.f32 %v6064_v3, %v8772_v50 }
 0x35c   :  { %v8873_v18 = vpop.f32.mrb[188].mxu1 }
 0x35d   :  { %10076 = vst [vmem:[#allocation23_spill] sm:$0xff] %v8873_v18  ;;  %v3824_v0 = vpop.f32.mrb[84].mxu0  ;;  %v8875_v32 = vpop.f32.mrb[189].mxu1 }
 0x35e   :  { %v6066_v59 = vadd.f32 %v3824_v0, %v8510_v40  ;;  %v3826_v14 = vpop.f32.mrb[85].mxu0  ;;  %v8878_v24 = vpop.f32.mrb[190].mxu1 }
 0x35f   :  { %10077 = vst [vmem:[#allocation24_spill] sm:$0xff] %v8878_v24  ;;  %v3827_v16 = vpop.f32.mrb[86].mxu0  ;;  %v8880_v22 = vpop.f32.mrb[191].mxu1 }
 0x360   :  { %v6068_v4 = vadd.f32 %v3827_v16, %v8515_v20  ;;  %v3829_v56 = vpop.f32.mrb[87].mxu0  ;;  %v8884_v43 = vadd.f32 %v6066_v59, %v8781_v25 }
 0x362   :  { %v8887_v50 = vadd.f32 %v6068_v4, %v8784_v58 }
 0x364   :  { %v5926_v36 = vpop.f32.mrb[192].mxu1 }
 0x365   :  { %v3832_v3 = vpop.f32.mrb[88].mxu0  ;;  %v8890_v5 = vadd.f32 %v8704_v6, %v5926_v36  ;;  %v8892_v40 = vpop.f32.mrb[193].mxu1 }
 0x366   :  { %v6070_v0 = vadd.f32 %v3832_v3, %v8528_v34  ;;  %v3834_v14 = vpop.f32.mrb[89].mxu0  ;;  %v5927_v24 = vpop.f32.mrb[194].mxu1 }
 0x367   :  { %v3835_v18 = vpop.f32.mrb[90].mxu0  ;;  %v8896_v20 = vadd.f32 %v8707_v7, %v5927_v24  ;;  %v8898_v25 = vpop.f32.mrb[195].mxu1 }
 0x368   :  { %v6072_v58 = vadd.f32 %v3835_v18, %v8533_v42  ;;  %v3837_v16 = vpop.f32.mrb[91].mxu0  ;;  %v8902_v59 = vadd.f32 %v6070_v0, %v8793_v30 }
 0x36a   :  { %v8905_v6 = vadd.f32 %v6072_v58, %v8796_v46 }
 0x36c   :  { %v5930_v4 = vpop.f32.mrb[196].mxu1 }
 0x36d   :  { %v3840_v56 = vpop.f32.mrb[92].mxu0  ;;  %v8908_v34 = vadd.f32 %v8728_v52, %v5930_v4  ;;  %v4547_v36 = vpop.f32.mrb[197].mxu1 }
 0x36e   :  { %v6074_v7 = vadd.f32 %v3840_v56, %v8546_v63  ;;  %v3842_v24 = vpop.f32.mrb[93].mxu0  ;;  %v8912_v3 = vadd.f32 %v8716_v23, %v4547_v36  ;;  %v5931_v42 = vpop.f32.mrb[198].mxu1 }
 0x36f   :  { %v3843_v18 = vpop.f32.mrb[94].mxu0  ;;  %v8915_v30 = vadd.f32 %v8731_v28, %v5931_v42  ;;  %v4550_v0 = vpop.f32.mrb[199].mxu1 }
 0x370   :  { %v6076_v46 = vadd.f32 %v3843_v18, %v8551_v8  ;;  %v3845_v14 = vpop.f32.mrb[95].mxu0  ;;  %v8919_v58 = vadd.f32 %v8719_v51, %v4550_v0  ;;  %v8922_v52 = vadd.f32 %v6074_v7, %v8805_v60 }
 0x372   :  { %v8925_v63 = vadd.f32 %v6076_v46, %v8808_v62  ;;  %v10078_v62 = vld [vmem:[#allocation16_spill] sm:$0xff] }
 0x374   :  { %v5934_v23 = vpop.f32.mrb[200].mxu1 }
 0x375   :  { %v3848_v16 = vpop.f32.mrb[96].mxu0  ;;  %v8928_v4 = vadd.f32 %v8752_v37, %v5934_v23  ;;  %v4563_v28 = vpop.f32.mrb[201].mxu1  ;;  %v10079_v23 = vld [vmem:[#allocation17_spill] sm:$0xff] }
 0x376   :  { %v6078_v56 = vadd.f32 %v3848_v16, %v8564_v26  ;;  %v3850_v36 = vpop.f32.mrb[97].mxu0  ;;  %v8932_v8 = vadd.f32 %v8740_v17, %v4563_v28  ;;  %v5935_v51 = vpop.f32.mrb[202].mxu1 }
 0x377   :  { %v3851_v24 = vpop.f32.mrb[98].mxu0  ;;  %v8935_v60 = vadd.f32 %v8755_v31, %v5935_v51  ;;  %v4566_v7 = vpop.f32.mrb[203].mxu1 }
 0x378   :  { %v6080_v42 = vadd.f32 %v3851_v24, %v10078_v62  ;;  %v3853_v18 = vpop.f32.mrb[99].mxu0  ;;  %v8939_v0 = vadd.f32 %v8743_v13, %v4566_v7  ;;  %v8942_v37 = vadd.f32 %v6078_v56, %v8817_v53 }
 0x37a   :  { %v8945_v26 = vadd.f32 %v6080_v42, %v8820_v33  ;;  %v10080_v33 = vld [vmem:[#allocation18_spill] sm:$0xff] }
 0x37c   :  { %v5938_v17 = vpop.f32.mrb[204].mxu1 }
 0x37d   :  { %v3856_v46 = vpop.f32.mrb[100].mxu0  ;;  %v8948_v14 = vadd.f32 %v8776_v35, %v5938_v17  ;;  %v4579_v31 = vpop.f32.mrb[205].mxu1 }
 0x37e   :  { %v6082_v16 = vadd.f32 %v3856_v46, %v10079_v23  ;;  %v3858_v28 = vpop.f32.mrb[101].mxu0  ;;  %v8952_v36 = vadd.f32 %v8764_v12, %v4579_v31  ;;  %v5939_v13 = vpop.f32.mrb[206].mxu1  ;;  %v10081_v46 = vld [vmem:[#allocation2_spill] sm:$0xff] }
 0x37f   :  { %v3859_v51 = vpop.f32.mrb[102].mxu0  ;;  %v8955_v53 = vadd.f32 %v8779_v48, %v5939_v13  ;;  %v4582_v56 = vpop.f32.mrb[207].mxu1 }
 0x380   :  { %v6084_v24 = vadd.f32 %v3859_v51, %v10080_v33  ;;  %v3861_v7 = vpop.f32.mrb[103].mxu0  ;;  %v8959_v62 = vadd.f32 %v8767_v61, %v4582_v56  ;;  %v8962_v35 = vadd.f32 %v6082_v16, %v8829_v41  ;;  %v10083_v51 = vld [vmem:[#allocation3_spill] sm:$0xff] }
 0x382   :  { %v8965_v42 = vadd.f32 %v6084_v24, %v8832_v45 }
 0x384   :  { %v5942_v12 = vpop.f32.mrb[208].mxu1 }
 0x385   :  { %v3897_v18 = vpop.f32.mrb[0].mxu0  ;;  %v8968_v17 = vadd.f32 %v8799_v55, %v5942_v12  ;;  %v4595_v48 = vpop.f32.mrb[209].mxu1 }
 0x386   :  { %v5996_v31 = vadd.f32 %v3897_v18, %v10081_v46  ;;  %v3899_v23 = vpop.f32.mrb[1].mxu0  ;;  %v8972_v28 = vadd.f32 %v8788_v49, %v4595_v48  ;;  %v5943_v61 = vpop.f32.mrb[210].mxu1  ;;  %v10086_v18 = vld [vmem:[#allocation4_spill] sm:$0xff] }
 0x387   :  { %v3900_v13 = vpop.f32.mrb[2].mxu0  ;;  %v8975_v41 = vadd.f32 %v8803_v29, %v5943_v61  ;;  %v4598_v16 = vpop.f32.mrb[211].mxu1 }
 0x388   :  { %v8978_v45 = vadd.f32 %v5996_v31, %v8843_v2  ;;  %v5997_v56 = vadd.f32 %v3900_v13, %v10083_v51  ;;  %v3902_v55 = vpop.f32.mrb[3].mxu0  ;;  %v8982_v33 = vadd.f32 %v8791_v38, %v4598_v16  ;;  %v10090_v13 = vld [vmem:[#allocation5_spill] sm:$0xff] }
 0x38a   :  { %10082 = vst [vmem:[#allocation16_spill] sm:$0xff] %v8978_v45  ;;  %v8985_v24 = vadd.f32 %v5997_v56, %v8848_v21 }
 0x38c   :  { %10084 = vst [vmem:[#allocation17_spill] sm:$0xff] %v8985_v24  ;;  %v5946_v49 = vpop.f32.mrb[212].mxu1 }
 0x38d   :  { %v3905_v7 = vpop.f32.mrb[4].mxu0  ;;  %v8988_v12 = vadd.f32 %v8824_v15, %v5946_v49  ;;  %v4611_v29 = vpop.f32.mrb[213].mxu1 }
 0x38e   :  { %v5998_v48 = vadd.f32 %v3905_v7, %v10086_v18  ;;  %v3907_v46 = vpop.f32.mrb[5].mxu0  ;;  %v8992_v2 = vadd.f32 %v8812_v44, %v4611_v29  ;;  %v5947_v31 = vpop.f32.mrb[214].mxu1  ;;  %v10092_v7 = vld [vmem:[#allocation6_spill] sm:$0xff] }
 0x38f   :  { %10085 = vst [vmem:[#allocation18_spill] sm:$0xff] %v8988_v12  ;;  %v3908_v23 = vpop.f32.mrb[6].mxu0  ;;  %v8995_v38 = vadd.f32 %v8827_v9, %v5947_v31  ;;  %v4614_v61 = vpop.f32.mrb[215].mxu1 }
 0x390   :  { %10087 = vst [vmem:[#allocation2_spill] sm:$0xff] %v8992_v2  ;;  %v8998_v21 = vadd.f32 %v5998_v48, %v8841_v57  ;;  %v5999_v16 = vadd.f32 %v3908_v23, %v10090_v13  ;;  %v3910_v15 = vpop.f32.mrb[7].mxu0  ;;  %v9002_v51 = vadd.f32 %v8815_v1, %v4614_v61  ;;  %v10093_v57 = vld [vmem:[#allocation19_spill] sm:$0xff]  ;;  %v4801_v1 = vmul.f32 %v8985_v24, %v8985_v24 }
 0x391   :  { %10088 = vst [vmem:[#allocation3_spill] sm:$0xff] %v8995_v38  ;;  %v10098_v15 = vld [vmem:[#allocation20_spill] sm:$0xff] }
 0x392   :  { %10089 = vst [vmem:[#allocation4_spill] sm:$0xff] %v8998_v21  ;;  %10091 = vst [vmem:[#allocation5_spill] sm:$0xff] %v9002_v51  ;;  %v9005_v56 = vadd.f32 %v5999_v16, %v8846_v27 }
 0x394   :  { %v5950_v44 = vpop.f32.mrb[216].mxu1 }
 0x395   :  { %v3913_v55 = vpop.f32.mrb[8].mxu0  ;;  %v9008_v49 = vadd.f32 %v8852_v10, %v5950_v44  ;;  %v4627_v9 = vpop.f32.mrb[217].mxu1  ;;  %v10097_v10 = vld [vmem:[#allocation7_spill] sm:$0xff] }
 0x396   :  { %v6000_v29 = vadd.f32 %v3913_v55, %v10092_v7  ;;  %v3915_v18 = vpop.f32.mrb[9].mxu0  ;;  %v9012_v48 = vadd.f32 %v10093_v57, %v4627_v9  ;;  %v5951_v46 = vpop.f32.mrb[218].mxu1  ;;  %v4800_v55 = vmul.f32 %v8978_v45, %v8978_v45  ;;  %v4802_v9 = vmul.f32 %v8998_v21, %v8998_v21 }
 0x397   :  { %v3916_v31 = vpop.f32.mrb[10].mxu0  ;;  %v9017_v27 = vadd.f32 %v8855_v54, %v5951_v46  ;;  %v4630_v23 = vpop.f32.mrb[219].mxu1  ;;  %v4742_v54 = vadd.f32 %v8985_v24, %v8978_v45  ;;  %v4803_v46 = vmul.f32 %v9005_v56, %v9005_v56 }
 0x398   :  { %10094 = vst [vmem:[#allocation6_spill] sm:$0xff] %v9012_v48  ;;  %v9020_v61 = vadd.f32 %v6000_v29, %v8859_v11  ;;  %v6001_v13 = vadd.f32 %v3916_v31, %v10097_v10  ;;  %v3918_v16 = vpop.f32.mrb[11].mxu0  ;;  %v9024_v44 = vadd.f32 %v10098_v15, %v4630_v23  ;;  %v4852_v11 = vadd.f32 %v4801_v1, %v4800_v55 }
 0x399   :  { %10095 = vst [vmem:[#allocation19_spill] sm:$0xff] %v9017_v27  ;;  %v4743_v29 = vadd.f32 %v4742_v54, %v8998_v21  ;;  %v10101_v16 = vld [vmem:[#allocation8_spill] sm:$0xff]  ;;  %v10105_v21 = vld [vmem:[#allocation22_spill] sm:$0xff] }
 0x39a   :  { %10096 = vst [vmem:[#allocation25_spill] sm:$0xff] %v9020_v61  ;;  %v9033_v7 = vadd.f32 %v6001_v13, %v8864_v19  ;;  %v4853_v57 = vadd.f32 %v4852_v11, %v4802_v9  ;;  %v4804_v1 = vmul.f32 %v9020_v61, %v9020_v61 }
 0x39b   :  { %v4744_v54 = vadd.f32 %v4743_v29, %v9005_v56 }
 0x39c   :  { %10099 = vst [vmem:[#allocation7_spill] sm:$0xff] %v9033_v7  ;;  %v5954_v18 = vpop.f32.mrb[220].mxu1 }
 0x39d   :  { %v3921_v31 = vpop.f32.mrb[12].mxu0  ;;  %v9039_v23 = vadd.f32 %v8884_v43, %v5954_v18  ;;  %v4643_v10 = vpop.f32.mrb[221].mxu1  ;;  %v10103_v43 = vld [vmem:[#allocation21_spill] sm:$0xff] }
 0x39e   :  { %v6002_v15 = vadd.f32 %v3921_v31, %v10101_v16  ;;  %v3923_v27 = vpop.f32.mrb[13].mxu0  ;;  %v9043_v24 = vadd.f32 %v8868_v47, %v4643_v10  ;;  %v5955_v19 = vpop.f32.mrb[222].mxu1  ;;  %v10104_v18 = vld [vmem:[#allocation9_spill] sm:$0xff]  ;;  %v4854_v10 = vadd.f32 %v4853_v57, %v4803_v46  ;;  %v4745_v16 = vadd.f32 %v4744_v54, %v9020_v61  ;;  %v10107_v46 = vld [vmem:[#allocation10_spill] sm:$0xff] }
 0x39f   :  { %10100 = vst [vmem:[#allocation20_spill] sm:$0xff] %v9039_v23  ;;  %v3924_v13 = vpop.f32.mrb[14].mxu0  ;;  %v9048_v55 = vadd.f32 %v8887_v50, %v5955_v19  ;;  %v4646_v9 = vpop.f32.mrb[223].mxu1  ;;  %v4805_v19 = vmul.f32 %v9033_v7, %v9033_v7 }
 0x3a0   :  { %v9052_v11 = vadd.f32 %v6002_v15, %v10103_v43  ;;  %v6003_v31 = vadd.f32 %v3924_v13, %v10104_v18  ;;  %v3926_v27 = vpop.f32.mrb[15].mxu0  ;;  %v9056_v47 = vadd.f32 %v8871_v39, %v4646_v9  ;;  %v4855_v50 = vadd.f32 %v4854_v10, %v4804_v1 }
 0x3a1   :  { %10102 = vst [vmem:[#allocation8_spill] sm:$0xff] %v9048_v55  ;;  %v4746_v57 = vadd.f32 %v4745_v16, %v9033_v7 }
 0x3a2   :  { %v9060_v45 = vadd.f32 %v6003_v31, %v10105_v21  ;;  %v4806_v15 = vmul.f32 %v9052_v11, %v9052_v11  ;;  %v4856_v18 = vadd.f32 %v4855_v50, %v4805_v19 }
 0x3a3   :  { %v4747_v61 = vadd.f32 %v4746_v57, %v9052_v11 }
 0x3a4   :  { %v5958_v29 = vpop.f32.mrb[224].mxu1  ;;  %v4807_v50 = vmul.f32 %v9060_v45, %v9060_v45 }
 0x3a5   :  { %v3929_v43 = vpop.f32.mrb[16].mxu0  ;;  %v9067_v13 = vadd.f32 %v8922_v52, %v5958_v29  ;;  %v4659_v39 = vpop.f32.mrb[225].mxu1  ;;  %v10110_v29 = vld [vmem:[#allocation11_spill] sm:$0xff] }
 0x3a6   :  { %v6004_v9 = vadd.f32 %v3929_v43, %v10107_v46  ;;  %v3931_v54 = vpop.f32.mrb[17].mxu0  ;;  %v9072_v21 = vadd.f32 %v8902_v59, %v4659_v39  ;;  %v5959_v1 = vpop.f32.mrb[226].mxu1  ;;  %v4857_v59 = vadd.f32 %v4856_v18, %v4806_v15  ;;  %v4748_v39 = vadd.f32 %v4747_v61, %v9060_v45 }
 0x3a7   :  { %10106 = vst [vmem:[#allocation21_spill] sm:$0xff] %v9067_v13  ;;  %v3932_v31 = vpop.f32.mrb[18].mxu0  ;;  %v9075_v27 = vadd.f32 %v8925_v63, %v5959_v1  ;;  %v4662_v10 = vpop.f32.mrb[227].mxu1 }
 0x3a8   :  { %10108 = vst [vmem:[#allocation9_spill] sm:$0xff] %v9072_v21  ;;  %v9079_v52 = vadd.f32 %v6004_v9, %v8875_v32  ;;  %v6005_v16 = vadd.f32 %v3932_v31, %v10110_v29  ;;  %v3934_v7 = vpop.f32.mrb[19].mxu0  ;;  %v9083_v43 = vadd.f32 %v8905_v6, %v4662_v10  ;;  %v4858_v57 = vadd.f32 %v4857_v59, %v4807_v50  ;;  %v10113_v9 = vld [vmem:[#allocation12_spill] sm:$0xff]  ;;  %v10117_v50 = vld [vmem:[#allocation13_spill] sm:$0xff] }
 0x3a9   :  { %10109 = vst [vmem:[#allocation22_spill] sm:$0xff] %v9075_v27 }
 0x3aa   :  { %10111 = vst [vmem:[#allocation10_spill] sm:$0xff] %v9083_v43  ;;  %v9088_v19 = vadd.f32 %v6005_v16, %v8880_v22  ;;  %v4808_v63 = vmul.f32 %v9079_v52, %v9079_v52  ;;  %v4749_v15 = vadd.f32 %v4748_v39, %v9079_v52  ;;  %v10116_v16 = vld [vmem:[#allocation23_spill] sm:$0xff] }
 0x3ac   :  { %v5962_v32 = vpop.f32.mrb[228].mxu1  ;;  %v4859_v31 = vadd.f32 %v4858_v57, %v4808_v63 }
 0x3ad   :  { %v3937_v46 = vpop.f32.mrb[20].mxu0  ;;  %v9094_v7 = vadd.f32 %v8962_v35, %v5962_v32  ;;  %v4675_v6 = vpop.f32.mrb[229].mxu1  ;;  %v4809_v35 = vmul.f32 %v9088_v19, %v9088_v19 }
 0x3ae   :  { %v6006_v54 = vadd.f32 %v3937_v46, %v10113_v9  ;;  %v3939_v1 = vpop.f32.mrb[21].mxu0  ;;  %v9099_v22 = vadd.f32 %v8942_v37, %v4675_v6  ;;  %v5963_v18 = vpop.f32.mrb[230].mxu1  ;;  %v4750_v37 = vadd.f32 %v4749_v15, %v9088_v19 }
 0x3af   :  { %10112 = vst [vmem:[#allocation11_spill] sm:$0xff] %v9094_v7  ;;  %v3940_v10 = vpop.f32.mrb[22].mxu0  ;;  %v9102_v61 = vadd.f32 %v8965_v42, %v5963_v18  ;;  %v4678_v29 = vpop.f32.mrb[231].mxu1  ;;  %v10119_v42 = vld [vmem:[#allocation24_spill] sm:$0xff]  ;;  %v4860_v6 = vadd.f32 %v4859_v31, %v4809_v35 }
 0x3b0   :  { %10114 = vst [vmem:[#allocation12_spill] sm:$0xff] %v9099_v22  ;;  %v9107_v59 = vadd.f32 %v6006_v54, %v10116_v16  ;;  %v6007_v39 = vadd.f32 %v3940_v10, %v10117_v50  ;;  %v3942_v32 = vpop.f32.mrb[23].mxu0  ;;  %v9111_v46 = vadd.f32 %v8945_v26, %v4678_v29  ;;  %v10120_v10 = vld [vmem:[#allocation14_spill] sm:$0xff] }
 0x3b1   :  { %10115 = vst [vmem:[#allocation26_spill] sm:$0xff] %v9102_v61  ;;  %v10121_v32 = vld [vmem:[#allocation15_spill] sm:$0xff] }
 0x3b2   :  { %10118 = vst [vmem:[#allocation23_spill] sm:$0xff] %v9111_v46  ;;  %v4810_v63 = vmul.f32 %v9107_v59, %v9107_v59  ;;  %v9117_v57 = vadd.f32 %v6007_v39, %v10119_v42  ;;  %v4751_v9 = vadd.f32 %v4750_v37, %v9107_v59 }
 0x3b4   :  { %v4861_v54 = vadd.f32 %v4860_v6, %v4810_v63  ;;  %v4811_v18 = vmul.f32 %v9117_v57, %v9117_v57  ;;  %v4752_v15 = vadd.f32 %v4751_v9, %v9117_v57 }
 0x3b5   :  { %v3945_v1 = vpop.f32.mrb[24].mxu0 }
 0x3b6   :  { %v6008_v16 = vadd.f32 %v3945_v1, %v10120_v10  ;;  %v3947_v26 = vpop.f32.mrb[25].mxu0  ;;  %v4862_v31 = vadd.f32 %v4861_v54, %v4811_v18  ;;  %v4815_v18 = vmul.f32 %v8896_v20, %v8896_v20 }
 0x3b7   :  { %v3948_v29 = vpop.f32.mrb[26].mxu0 }
 0x3b8   :  { %v9125_v50 = vadd.f32 %v6008_v16, %v8892_v40  ;;  %v6009_v39 = vadd.f32 %v3948_v29, %v10121_v32  ;;  %v3950_v42 = vpop.f32.mrb[27].mxu0  ;;  %v4814_v40 = vmul.f32 %v8890_v5, %v8890_v5  ;;  %v4817_v32 = vmul.f32 %v8919_v58, %v8919_v58 }
 0x3ba   :  { %v4753_v35 = vadd.f32 %v4752_v15, %v9125_v50  ;;  %v4812_v37 = vmul.f32 %v9125_v50, %v9125_v50  ;;  %v9132_v63 = vadd.f32 %v6009_v39, %v8898_v25  ;;  %v4816_v25 = vmul.f32 %v8912_v3, %v8912_v3 }
 0x3bc   :  { %v4863_v6 = vadd.f32 %v4862_v31, %v4812_v37  ;;  %v4754_v1 = vadd.f32 %v4753_v35, %v9132_v63  ;;  %v4813_v9 = vmul.f32 %v9132_v63, %v9132_v63  ;;  %v4818_v31 = vmul.f32 %v8908_v34, %v8908_v34 }
 0x3be   :  { %v4755_v10 = vadd.f32 %v4754_v1, %v8890_v5  ;;  %v4864_v54 = vadd.f32 %v4863_v6, %v4813_v9  ;;  %v4819_v6 = vmul.f32 %v8915_v30, %v8915_v30 }
 0x3c0   :  { %v4756_v16 = vadd.f32 %v4755_v10, %v8896_v20  ;;  %v4865_v26 = vadd.f32 %v4864_v54, %v4814_v40  ;;  %v4820_v40 = vmul.f32 %v8932_v8, %v8932_v8 }
 0x3c2   :  { %v4757_v29 = vadd.f32 %v4756_v16, %v8912_v3  ;;  %v4866_v15 = vadd.f32 %v4865_v26, %v4815_v18  ;;  %v4821_v18 = vmul.f32 %v8939_v0, %v8939_v0 }
 0x3c4   :  { %v4758_v39 = vadd.f32 %v4757_v29, %v8919_v58  ;;  %v4867_v42 = vadd.f32 %v4866_v15, %v4816_v25  ;;  %v4822_v25 = vmul.f32 %v8928_v4, %v8928_v4 }
 0x3c6   :  { %v4759_v35 = vadd.f32 %v4758_v39, %v8908_v34  ;;  %v4868_v37 = vadd.f32 %v4867_v42, %v4817_v32  ;;  %v4823_v32 = vmul.f32 %v8935_v60, %v8935_v60 }
 0x3c8   :  { %v4760_v1 = vadd.f32 %v4759_v35, %v8915_v30  ;;  %v4869_v9 = vadd.f32 %v4868_v37, %v4818_v31  ;;  %v4824_v31 = vmul.f32 %v8952_v36, %v8952_v36 }
 0x3ca   :  { %v4761_v10 = vadd.f32 %v4760_v1, %v8932_v8  ;;  %v4870_v54 = vadd.f32 %v4869_v9, %v4819_v6  ;;  %v4825_v6 = vmul.f32 %v8959_v62, %v8959_v62 }
 0x3cc   :  { %v4762_v16 = vadd.f32 %v4761_v10, %v8939_v0  ;;  %v4871_v26 = vadd.f32 %v4870_v54, %v4820_v40  ;;  %v4826_v40 = vmul.f32 %v8948_v14, %v8948_v14 }
 0x3ce   :  { %v4763_v29 = vadd.f32 %v4762_v16, %v8928_v4  ;;  %v4872_v15 = vadd.f32 %v4871_v26, %v4821_v18  ;;  %v4827_v18 = vmul.f32 %v8955_v53, %v8955_v53 }
 0x3d0   :  { %v4764_v39 = vadd.f32 %v4763_v29, %v8935_v60  ;;  %v4873_v42 = vadd.f32 %v4872_v15, %v4822_v25  ;;  %v4828_v25 = vmul.f32 %v8972_v28, %v8972_v28 }
 0x3d2   :  { %v4765_v35 = vadd.f32 %v4764_v39, %v8952_v36  ;;  %v4874_v37 = vadd.f32 %v4873_v42, %v4823_v32  ;;  %v4829_v32 = vmul.f32 %v8982_v33, %v8982_v33 }
 0x3d4   :  { %v4766_v1 = vadd.f32 %v4765_v35, %v8959_v62  ;;  %v4875_v9 = vadd.f32 %v4874_v37, %v4824_v31  ;;  %v4830_v31 = vmul.f32 %v8968_v17, %v8968_v17 }
 0x3d6   :  { %v4767_v10 = vadd.f32 %v4766_v1, %v8948_v14  ;;  %v4876_v54 = vadd.f32 %v4875_v9, %v4825_v6  ;;  %v4831_v6 = vmul.f32 %v8975_v41, %v8975_v41 }
 0x3d8   :  { %v4768_v16 = vadd.f32 %v4767_v10, %v8955_v53  ;;  %v4877_v26 = vadd.f32 %v4876_v54, %v4826_v40  ;;  %v4832_v40 = vmul.f32 %v8992_v2, %v8992_v2 }
 0x3da   :  { %v4769_v29 = vadd.f32 %v4768_v16, %v8972_v28  ;;  %v4878_v15 = vadd.f32 %v4877_v26, %v4827_v18  ;;  %v4833_v18 = vmul.f32 %v9002_v51, %v9002_v51 }
 0x3dc   :  { %v4770_v39 = vadd.f32 %v4769_v29, %v8982_v33  ;;  %v4879_v42 = vadd.f32 %v4878_v15, %v4828_v25  ;;  %v4834_v25 = vmul.f32 %v8988_v12, %v8988_v12 }
 0x3de   :  { %v4771_v35 = vadd.f32 %v4770_v39, %v8968_v17  ;;  %v4880_v37 = vadd.f32 %v4879_v42, %v4829_v32  ;;  %v4835_v32 = vmul.f32 %v8995_v38, %v8995_v38 }
 0x3e0   :  { %v4772_v1 = vadd.f32 %v4771_v35, %v8975_v41  ;;  %v4881_v9 = vadd.f32 %v4880_v37, %v4830_v31  ;;  %v4836_v31 = vmul.f32 %v9012_v48, %v9012_v48 }
 0x3e2   :  { %v4773_v10 = vadd.f32 %v4772_v1, %v8992_v2  ;;  %v4882_v54 = vadd.f32 %v4881_v9, %v4831_v6  ;;  %v4837_v6 = vmul.f32 %v9024_v44, %v9024_v44 }
 0x3e4   :  { %v4774_v16 = vadd.f32 %v4773_v10, %v9002_v51  ;;  %v4883_v26 = vadd.f32 %v4882_v54, %v4832_v40  ;;  %v4838_v40 = vmul.f32 %v9008_v49, %v9008_v49 }
 0x3e6   :  { %v4775_v29 = vadd.f32 %v4774_v16, %v8988_v12  ;;  %v4884_v15 = vadd.f32 %v4883_v26, %v4833_v18  ;;  %v10122_v18 = vld [vmem:[#allocation19_spill] sm:$0xff] }
 0x3e7   :  { %v4839_v16 = vmul.f32 %v10122_v18, %v10122_v18 }
 0x3e8   :  { %v4776_v39 = vadd.f32 %v4775_v29, %v8995_v38  ;;  %v4885_v42 = vadd.f32 %v4884_v15, %v4834_v25  ;;  %v4840_v29 = vmul.f32 %v9043_v24, %v9043_v24 }
 0x3ea   :  { %v4777_v35 = vadd.f32 %v4776_v39, %v9012_v48  ;;  %v4886_v37 = vadd.f32 %v4885_v42, %v4835_v32  ;;  %v4841_v39 = vmul.f32 %v9056_v47, %v9056_v47 }
 0x3ec   :  { %v4778_v1 = vadd.f32 %v4777_v35, %v9024_v44  ;;  %v4887_v9 = vadd.f32 %v4886_v37, %v4836_v31  ;;  %v4842_v35 = vmul.f32 %v9039_v23, %v9039_v23 }
 0x3ee   :  { %v4779_v10 = vadd.f32 %v4778_v1, %v9008_v49  ;;  %v4888_v54 = vadd.f32 %v4887_v9, %v4837_v6  ;;  %v4843_v1 = vmul.f32 %v9048_v55, %v9048_v55 }
 0x3f0   :  { %v4780_v26 = vadd.f32 %v4779_v10, %v10122_v18  ;;  %v4889_v25 = vadd.f32 %v4888_v54, %v4838_v40  ;;  %v4844_v10 = vmul.f32 %v9072_v21, %v9072_v21 }
 0x3f2   :  { %v4781_v15 = vadd.f32 %v4780_v26, %v9043_v24  ;;  %v4890_v32 = vadd.f32 %v4889_v25, %v4839_v16  ;;  %v4845_v26 = vmul.f32 %v9083_v43, %v9083_v43 }
 0x3f4   :  { %v4782_v42 = vadd.f32 %v4781_v15, %v9056_v47  ;;  %v4891_v31 = vadd.f32 %v4890_v32, %v4840_v29  ;;  %v4846_v15 = vmul.f32 %v9067_v13, %v9067_v13 }
 0x3f6   :  { %v4783_v37 = vadd.f32 %v4782_v42, %v9039_v23  ;;  %v4892_v6 = vadd.f32 %v4891_v31, %v4841_v39  ;;  %v4847_v42 = vmul.f32 %v9075_v27, %v9075_v27 }
 0x3f8   :  { %v4784_v9 = vadd.f32 %v4783_v37, %v9048_v55  ;;  %v4893_v40 = vadd.f32 %v4892_v6, %v4842_v35  ;;  %v4848_v37 = vmul.f32 %v9099_v22, %v9099_v22 }
 0x3fa   :  { %v4785_v54 = vadd.f32 %v4784_v9, %v9072_v21  ;;  %v4894_v16 = vadd.f32 %v4893_v40, %v4843_v1  ;;  %v4849_v9 = vmul.f32 %v9111_v46, %v9111_v46 }
 0x3fc   :  { %v4786_v25 = vadd.f32 %v4785_v54, %v9083_v43  ;;  %v4895_v29 = vadd.f32 %v4894_v16, %v4844_v10  ;;  %v4850_v54 = vmul.f32 %v9094_v7, %v9094_v7 }
 0x3fe   :  { %v4787_v32 = vadd.f32 %v4786_v25, %v9067_v13  ;;  %v4896_v39 = vadd.f32 %v4895_v29, %v4845_v26  ;;  %v4851_v25 = vmul.f32 %v9102_v61, %v9102_v61 }
 0x400   :  { %v4788_v31 = vadd.f32 %v4787_v32, %v9075_v27  ;;  %v4897_v35 = vadd.f32 %v4896_v39, %v4846_v15 }
 0x402   :  { %v4789_v6 = vadd.f32 %v4788_v31, %v9099_v22  ;;  %v4898_v1 = vadd.f32 %v4897_v35, %v4847_v42 }
 0x404   :  { %v4790_v40 = vadd.f32 %v4789_v6, %v9111_v46  ;;  %v4899_v10 = vadd.f32 %v4898_v1, %v4848_v37 }
 0x406   :  { %v4791_v16 = vadd.f32 %v4790_v40, %v9094_v7  ;;  %v4900_v26 = vadd.f32 %v4899_v10, %v4849_v9  ;;  %v4968_v10 = vlaneseq }
 0x408   :  { %v4792_v29 = vadd.f32 %v4791_v16, %v9102_v61  ;;  %v4901_v15 = vadd.f32 %v4900_v26, %v4850_v54  ;;  %v4969_v26 = vshrl.u32 %v4968_v10, 7 }
 0x40a   :  { %v4793_v32 = vrot.slane %v4792_v29, 4  ;;  %v4902_v39 = vadd.f32 %v4901_v15, %v4851_v25 }
 0x40c   :  { %v4794_v42 = vadd.f32 %v4793_v32, %v4792_v29  ;;  %v4903_v31 = vrot.slane %v4902_v39, 4  ;;  %v10123_v29 = vld [vmem:[#allocation16_spill] sm:$0xff]  ;;  %v10124_v32 = vld [vmem:[#allocation17_spill] sm:$0xff] }
 0x40e   :  { %v4795_v35 = vrot.slane %v4794_v42, 2  ;;  %v4904_v48 = vadd.f32 %v4903_v31, %v4902_v39  ;;  %v4970_v39 = vsub.s32 0, %v4969_v26 }
 0x410   :  { %v4796_v6 = vadd.f32 %v4795_v35, %v4794_v42  ;;  %v4905_v37 = vrot.slane %v4904_v48, 2 }
 0x412   :  { %v4797_v1 = vrot.slane %v4796_v6, 1  ;;  %v4906_v38 = vadd.f32 %v4905_v37, %v4904_v48 }
 0x414   :  { %v4798_v12 = vadd.f32 %v4797_v1, %v4796_v6  ;;  %v4907_v51 = vrot.slane %v4906_v38, 1 }
 0x416   :  { %v9251_v40 = vmul.f32 0.0025510204, %v4798_v12  ;;  %v4908_v9 = vadd.f32 %v4907_v51, %v4906_v38  ;;  %v10125_v12 = vld [vmem:[#allocation4_spill] sm:$0xff]  ;;  %v10126_v51 = vld [vmem:[#allocation25_spill] sm:$0xff] }
 0x418   :  { %v4909_v2 = vmul.f32 0.0025510204, %v4908_v9  ;;  %v4910_v54 = vmul.f32 %v9251_v40, %v9251_v40  ;;  %v4916_v15 = vsub.f32 %v10123_v29, %v9251_v40  ;;  %v4917_v48 = vsub.f32 %v10124_v32, %v9251_v40 }
 0x419   :  { %v4918_v42 = vsub.f32 %v10125_v12, %v9251_v40  ;;  %v4919_v38 = vsub.f32 %v9005_v56, %v9251_v40  ;;  %v4920_v31 = vsub.f32 %v10126_v51, %v9251_v40  ;;  %v4922_v6 = vsub.f32 %v9052_v11, %v9251_v40 }
 0x41a   :  { %v4911_v16 = vsub.f32 %v4909_v2, %v4910_v54  ;;  %v10127_v2 = vld [vmem:[#allocation7_spill] sm:$0xff]  ;;  %v4923_v37 = vsub.f32 %v9060_v45, %v9251_v40  ;;  %v4924_v1 = vsub.f32 %v9079_v52, %v9251_v40  ;;  %v4925_v9 = vsub.f32 %v9088_v19, %v9251_v40 }
 0x41b   :  { %v4921_v35 = vsub.f32 %v10127_v2, %v9251_v40  ;;  %v4926_v56 = vsub.f32 %v9107_v59, %v9251_v40  ;;  %v4927_v10 = vsub.f32 %v9117_v57, %v9251_v40  ;;  %v4914_v2 = vld [vmem:[%s10004_s2] sm:$0x1]  ;;  %v4928_v26 = vsub.f32 %v9125_v50, %v9251_v40 }
 0x41c   :  { %v4912_v25 = vadd.f32 1e-05, %v4911_v16  ;;  %v4930_v29 = vsub.f32 %v8890_v5, %v9251_v40  ;;  %v4931_v12 = vsub.f32 %v8896_v20, %v9251_v40  ;;  %v4932_v51 = vsub.f32 %v8912_v3, %v9251_v40 }
 0x41d   :  { %v4933_v16 = vsub.f32 %v8919_v58, %v9251_v40  ;;  %v4934_v50 = vsub.f32 %v8908_v34, %v9251_v40  ;;  %v4936_v5 = vsub.f32 %v8932_v8, %v9251_v40  ;;  %v4937_v32 = vsub.f32 %v8939_v0, %v9251_v40 }
 0x41e   :  { %7021 = vrsqrt.f32 %v4912_v25  ;;  %v4929_v25 = vsub.f32 %v9132_v63, %v9251_v40  ;;  %v4935_v63 = vsub.f32 %v8915_v30, %v9251_v40  ;;  %v4938_v20 = vsub.f32 %v8928_v4, %v9251_v40 }
 0x41f   :  { %v4939_v58 = vsub.f32 %v8935_v60, %v9251_v40  ;;  %v4940_v34 = vsub.f32 %v8952_v36, %v9251_v40  ;;  %v4941_v59 = vsub.f32 %v8959_v62, %v9251_v40  ;;  %v4942_v30 = vsub.f32 %v8948_v14, %v9251_v40  ;;  %v10128_v62 = vld [vmem:[#allocation2_spill] sm:$0xff]  ;;  %v10129_v14 = vld [vmem:[#allocation5_spill] sm:$0xff] }
 0x420   :  { %v4943_v8 = vsub.f32 %v8955_v53, %v9251_v40  ;;  %v4944_v0 = vsub.f32 %v8972_v28, %v9251_v40  ;;  %v4945_v4 = vsub.f32 %v8982_v33, %v9251_v40  ;;  %v4946_v60 = vsub.f32 %v8968_v17, %v9251_v40  ;;  %v10130_v53 = vld [vmem:[#allocation18_spill] sm:$0xff]  ;;  %v10131_v28 = vld [vmem:[#allocation3_spill] sm:$0xff] }
 0x421   :  { %v4947_v36 = vsub.f32 %v8975_v41, %v9251_v40  ;;  %v4949_v19 = vsub.f32 %v10129_v14, %v9251_v40  ;;  %v4950_v52 = vsub.f32 %v10130_v53, %v9251_v40  ;;  %v4951_v45 = vsub.f32 %v10131_v28, %v9251_v40  ;;  %v10132_v33 = vld [vmem:[#allocation6_spill] sm:$0xff] }
 0x422   :  { %v4952_v11 = vsub.f32 %v10132_v33, %v9251_v40 }
 0x428   :  { %v7022_v57 = vpop.eup %7021 }
 0x429   :  { %v4915_v3 = vmul.f32 %v7022_v57, %v4914_v2  ;;  %v4948_v57 = vsub.f32 %v10128_v62, %v9251_v40 }
 0x42b   :  { %v4971_v2 = vrot.slane %v4915_v3, %v4970_v39 }
 0x42d   :  { %v4972_v17 = vmul.f32 %v4971_v2, %v4916_v15  ;;  %v4973_v54 = vmul.f32 %v4971_v2, %v4917_v48  ;;  %v4974_v61 = vmul.f32 %v4971_v2, %v4918_v42  ;;  %v4975_v41 = vmul.f32 %v4971_v2, %v4919_v38 }
 0x42e   :  { %v4976_v7 = vmul.f32 %v4971_v2, %v4920_v31  ;;  %v4977_v46 = vmul.f32 %v4971_v2, %v4921_v35  ;;  %v4978_v62 = vmul.f32 %v4971_v2, %v4922_v6  ;;  %v4979_v39 = vmul.f32 %v4971_v2, %v4923_v37 }
 0x42f   :  { %v4980_v3 = vmul.f32 %v4971_v2, %v4924_v1  ;;  %v4981_v22 = vmul.f32 %v4971_v2, %v4925_v9  ;;  %v4982_v14 = vmul.f32 %v4971_v2, %v4926_v56  ;;  %v4983_v27 = vmul.f32 %v4971_v2, %v4927_v10 }
 0x430   :  { %v4984_v13 = vmul.f32 %v4971_v2, %v4928_v26  ;;  %v4985_v53 = vmul.f32 %v4971_v2, %v4929_v25  ;;  %v4986_v43 = vmul.f32 %v4971_v2, %v4930_v29  ;;  %v4987_v21 = vmul.f32 %v4971_v2, %v4931_v12 }
 0x431   :  { %v4988_v28 = vmul.f32 %v4971_v2, %v4932_v51  ;;  %v4989_v55 = vmul.f32 %v4971_v2, %v4933_v16  ;;  %v4990_v23 = vmul.f32 %v4971_v2, %v4934_v50  ;;  %v4991_v33 = vmul.f32 %v4971_v2, %v4935_v63 }
 0x432   :  { %v4992_v15 = vmul.f32 %v4971_v2, %v4936_v5  ;;  %v4993_v48 = vmul.f32 %v4971_v2, %v4937_v32  ;;  %v4994_v42 = vmul.f32 %v4971_v2, %v4938_v20  ;;  %v4995_v38 = vmul.f32 %v4971_v2, %v4939_v58 }
 0x433   :  { %v4996_v31 = vmul.f32 %v4971_v2, %v4940_v34  ;;  %v4997_v35 = vmul.f32 %v4971_v2, %v4941_v59  ;;  %v4998_v6 = vmul.f32 %v4971_v2, %v4942_v30  ;;  %v4999_v37 = vmul.f32 %v4971_v2, %v4943_v8  ;;  %v10140_v34 = vld [vmem:[#allocation8_spill] sm:$0xff]  ;;  %v10142_v8 = vld [vmem:[#allocation9_spill] sm:$0xff] }
 0x434   :  { %v5000_v1 = vmul.f32 %v4971_v2, %v4944_v0  ;;  %v5001_v9 = vmul.f32 %v4971_v2, %v4945_v4  ;;  %v5002_v56 = vmul.f32 %v4971_v2, %v4946_v60  ;;  %v5003_v10 = vmul.f32 %v4971_v2, %v4947_v36  ;;  %v10144_v4 = vld [vmem:[#allocation10_spill] sm:$0xff]  ;;  %v10146_v36 = vld [vmem:[#allocation21_spill] sm:$0xff] }
 0x435   :  { %v5004_v26 = vmul.f32 %v4971_v2, %v4948_v57  ;;  %v5005_v25 = vmul.f32 %v4971_v2, %v4949_v19  ;;  %v5006_v29 = vmul.f32 %v4971_v2, %v4950_v52  ;;  %v5007_v12 = vmul.f32 %v4971_v2, %v4951_v45  ;;  %v10138_v52 = vld [vmem:[#allocation20_spill] sm:$0xff] }
 0x436   :  { %v5008_v51 = vmul.f32 %v4971_v2, %v4952_v11  ;;  %v10133_v16 = vsub.f32 %v9024_v44, %v9251_v40  ;;  %v10134_v32 = vsub.f32 %v9008_v49, %v9251_v40  ;;  %v10135_v59 = vsub.f32 %v10122_v18, %v9251_v40 }
 0x437   :  { %v10136_v20 = vsub.f32 %v9043_v24, %v9251_v40  ;;  %v10137_v45 = vsub.f32 %v9056_v47, %v9251_v40  ;;  %v10139_v44 = vsub.f32 %v10138_v52, %v9251_v40  ;;  %v10141_v49 = vsub.f32 %v10140_v34, %v9251_v40 }
 0x438   :  { %v5009_v50 = vmul.f32 %v4971_v2, %v10133_v16  ;;  %v5010_v63 = vmul.f32 %v4971_v2, %v10134_v32  ;;  %v5011_v5 = vmul.f32 %v4971_v2, %v10135_v59  ;;  %v10143_v18 = vsub.f32 %v10142_v8, %v9251_v40  ;;  %v10148_v16 = vld [vmem:[#allocation22_spill] sm:$0xff]  ;;  %v10154_v8 = vld [vmem:[#allocation11_spill] sm:$0xff] }
 0x439   :  { %v5012_v58 = vmul.f32 %v4971_v2, %v10136_v20  ;;  %v5013_v11 = vmul.f32 %v4971_v2, %v10137_v45  ;;  %v5014_v19 = vmul.f32 %v4971_v2, %v10139_v44  ;;  %v5015_v30 = vmul.f32 %v4971_v2, %v10141_v49  ;;  %v10150_v20 = vld [vmem:[#allocation12_spill] sm:$0xff]  ;;  %v10152_v44 = vld [vmem:[#allocation23_spill] sm:$0xff] }
 0x43a   :  { %v5016_v0 = vmul.f32 %v4971_v2, %v10143_v18  ;;  %v10145_v24 = vsub.f32 %v10144_v4, %v9251_v40  ;;  %v10147_v47 = vsub.f32 %v10146_v36, %v9251_v40  ;;  %v10149_v32 = vsub.f32 %v10148_v16, %v9251_v40  ;;  %v9414_v16 = vld [vmem:[%s10005_s3] ss:$0 sm:$0xff] }
 0x43b   :  { %v10151_v45 = vsub.f32 %v10150_v20, %v9251_v40  ;;  %v10153_v34 = vsub.f32 %v10152_v44, %v9251_v40  ;;  %v10155_v18 = vsub.f32 %v10154_v8, %v9251_v40  ;;  %v9420_v20 = vadd.f32 %v9414_v16, %v4973_v54 }
 0x43c   :  { %v5017_v60 = vmul.f32 %v4971_v2, %v10145_v24  ;;  %v5018_v57 = vmul.f32 %v4971_v2, %v10147_v47  ;;  %v5019_v59 = vmul.f32 %v4971_v2, %v10149_v32  ;;  %v10156_v24 = vld [vmem:[#allocation26_spill] sm:$0xff]  ;;  %v9417_v32 = vadd.f32 %v9414_v16, %v4972_v17 }
 0x43d   :  { %v5020_v52 = vmul.f32 %v4971_v2, %v10151_v45  ;;  %v5021_v49 = vmul.f32 %v4971_v2, %v10153_v34  ;;  %v9404_v4 = vmul.f32 %v4971_v2, %v10155_v18  ;;  %v10157_v36 = vsub.f32 %v10156_v24, %v9251_v40 }
 0x43e   :  { %v9423_v45 = vadd.f32 %v9414_v16, %v4974_v61  ;;  %v9426_v44 = vadd.f32 %v9414_v16, %v4975_v41  ;;  %v9429_v40 = vadd.f32 %v9414_v16, %v4976_v7  ;;  %v9435_v34 = vadd.f32 %v9414_v16, %v4978_v62 }
 0x43f   :  { %v9409_v47 = vmul.f32 %v4971_v2, %v10157_v36  ;;  %v9432_v2 = vadd.f32 %v9414_v16, %v4977_v46  ;;  %v9438_v17 = vadd.f32 %v9414_v16, %v4979_v39  ;;  %v9441_v54 = vadd.f32 %v9414_v16, %v4980_v3 }
 0x440   :  { %v9444_v61 = vadd.f32 %v9414_v16, %v4981_v22  ;;  %v9447_v41 = vadd.f32 %v9414_v16, %v4982_v14  ;;  %v9450_v7 = vadd.f32 %v9414_v16, %v4983_v27  ;;  %v9453_v46 = vadd.f32 %v9414_v16, %v4984_v13 }
 0x441   :  { %v9456_v62 = vadd.f32 %v9414_v16, %v4985_v53  ;;  %v9459_v39 = vadd.f32 %v9414_v16, %v4986_v43  ;;  %v9462_v3 = vadd.f32 %v9414_v16, %v4987_v21  ;;  %v9465_v22 = vadd.f32 %v9414_v16, %v4988_v28 }
 0x442   :  { %v9468_v14 = vadd.f32 %v9414_v16, %v4989_v55  ;;  %v9471_v27 = vadd.f32 %v9414_v16, %v4990_v23  ;;  %v9474_v13 = vadd.f32 %v9414_v16, %v4991_v33  ;;  %v9477_v53 = vadd.f32 %v9414_v16, %v4992_v15 }
 0x443   :  { %v9480_v43 = vadd.f32 %v9414_v16, %v4993_v48  ;;  %v9483_v21 = vadd.f32 %v9414_v16, %v4994_v42  ;;  %v9486_v28 = vadd.f32 %v9414_v16, %v4995_v38  ;;  %v9489_v55 = vadd.f32 %v9414_v16, %v4996_v31 }
 0x444   :  { %v9492_v23 = vadd.f32 %v9414_v16, %v4997_v35  ;;  %v9495_v33 = vadd.f32 %v9414_v16, %v4998_v6  ;;  %v9498_v15 = vadd.f32 %v9414_v16, %v4999_v37  ;;  %v9501_v48 = vadd.f32 %v9414_v16, %v5000_v1 }
 0x445   :  { %v9504_v42 = vadd.f32 %v9414_v16, %v5001_v9  ;;  %v9507_v38 = vadd.f32 %v9414_v16, %v5002_v56  ;;  %v9510_v31 = vadd.f32 %v9414_v16, %v5003_v10  ;;  %v9513_v35 = vadd.f32 %v9414_v16, %v5004_v26 }
 0x446   :  { %v9516_v6 = vadd.f32 %v9414_v16, %v5005_v25  ;;  %v9519_v37 = vadd.f32 %v9414_v16, %v5006_v29  ;;  %v9522_v1 = vadd.f32 %v9414_v16, %v5007_v12  ;;  %v9525_v9 = vadd.f32 %v9414_v16, %v5008_v51 }
 0x447   :  { %10158 = vst [vmem:[#allocation13_spill] sm:$0xff] %v9504_v42  ;;  %10159 = vst [vmem:[#allocation24_spill] sm:$0xff] %v9513_v35  ;;  %v9528_v56 = vadd.f32 %v9414_v16, %v5009_v50  ;;  %v9531_v10 = vadd.f32 %v9414_v16, %v5010_v63  ;;  %v9534_v26 = vadd.f32 %v9414_v16, %v5011_v5  ;;  %vm5083_vm1 = vcmp.ge.f32.partialorder %v9417_v32, 0.0 }
 0x448   :  { %v9537_v25 = vadd.f32 %v9414_v16, %v5012_v58  ;;  %v9540_v29 = vadd.f32 %v9414_v16, %v5013_v11  ;;  %v9543_v12 = vadd.f32 %v9414_v16, %v5014_v19  ;;  %v9546_v51 = vadd.f32 %v9414_v16, %v5015_v30 }
 0x449   :  { %10160 = vst [vmem:[#allocation14_spill] sm:$0xff] %v9528_v56  ;;  %10161 = vst [vmem:[#allocation15_spill] sm:$0xff] %v9531_v10  ;;  %v9549_v50 = vadd.f32 %v9414_v16, %v5016_v0  ;;  %v9552_v63 = vadd.f32 %v9414_v16, %v5017_v60  ;;  %v9555_v5 = vadd.f32 %v9414_v16, %v5018_v57  ;;  %vm5084_vm2 = vcmp.ge.f32.partialorder %v9420_v20, 0.0 }
 0x44a   :  { %10162 = vst [vmem:[#allocation19_spill] sm:$0xff] %v9534_v26  ;;  %10163 = vst [vmem:[#allocation16_spill] sm:$0xff] %v9537_v25  ;;  %v9558_v58 = vadd.f32 %v9414_v16, %v5019_v59  ;;  %v9561_v11 = vadd.f32 %v9414_v16, %v5020_v52  ;;  %v9564_v19 = vadd.f32 %v9414_v16, %v5021_v49  ;;  %vm5085_vm3 = vcmp.ge.f32.partialorder %v9423_v45, 0.0 }
 0x44b   :  { %10164 = vst [vmem:[#allocation17_spill] sm:$0xff] %v9540_v29  ;;  %10165 = vst [vmem:[#allocation4_spill] sm:$0xff] %v9543_v12  ;;  %vm5086_vm4 = vcmp.ge.f32.partialorder %v9426_v44, 0.0  ;;  %vm5087_vm5 = vcmp.ge.f32.partialorder %v9429_v40, 0.0  ;;  %vm5088_vm6 = vcmp.ge.f32.partialorder %v9432_v2, 0.0  ;;  %vm5089_vm7 = vcmp.ge.f32.partialorder %v9435_v34, 0.0 }
 0x44c   :  { %10166 = vst [vmem:[#allocation25_spill] sm:$0xff] %v9546_v51  ;;  %10167 = vst [vmem:[#allocation7_spill] sm:$0xff] %v9549_v50  ;;  %vm5090_vm8 = vcmp.ge.f32.partialorder %v9438_v17, 0.0  ;;  %vm5091_vm9 = vcmp.ge.f32.partialorder %v9441_v54, 0.0  ;;  %v9577_v30 = vadd.f32 %v9414_v16, %v9404_v4  ;;  %vm5092_vm10 = vcmp.ge.f32.partialorder %v9444_v61, 0.0 }
 0x44d   :  { %10168 = vst [vmem:[#allocation2_spill] sm:$0xff] %v9552_v63  ;;  %10169 = vst [vmem:[#allocation5_spill] sm:$0xff] %v9558_v58  ;;  %v5135_v0 = vmul.f32 0.2, %v9417_v32  ;;  %v5136_v60 = vmul.f32 0.2, %v9420_v20  ;;  %v9585_v59 = vadd.f32 %v9414_v16, %v9409_v47 }
 0x44e   :  { %10170 = vst [vmem:[#allocation18_spill] sm:$0xff] %v9564_v19  ;;  %10171 = vst [vmem:[#allocation3_spill] sm:$0xff] %v9577_v30  ;;  %v5137_v57 = vmul.f32 0.2, %v9423_v45  ;;  %vm5093_vm11 = vcmp.ge.f32.partialorder %v9447_v41, 0.0  ;;  %vm5094_vm12 = vcmp.ge.f32.partialorder %v9450_v7, 0.0 }
 0x44f   :  { %10172 = vst [vmem:[#allocation6_spill] sm:$0xff] %v9585_v59  ;;  %v5138_v52 = vmul.f32 0.2, %v9426_v44  ;;  %v5139_v49 = vmul.f32 0.2, %v9429_v40  ;;  %v9598_v36 = vsel %vm5083_vm1, %v9417_v32, %v5135_v0  ;;  %vm5095_vm13 = vcmp.ge.f32.partialorder %v9453_v46, 0.0 }
 0x450   :  { %v5140_v8 = vmul.f32 0.2, %v9432_v2  ;;  %v5141_v18 = vmul.f32 0.2, %v9435_v34  ;;  %v5142_v4 = vmul.f32 0.2, %v9438_v17  ;;  %v9611_v30 = vsel %vm5084_vm2, %v9420_v20, %v5136_v60 }
 0x451   :  { %v5143_v24 = vmul.f32 0.2, %v9441_v54  ;;  %10173 = vst [vmem:[#allocation20_spill] sm:$0xff] %v9598_v36  ;;  %v5144_v47 = vmul.f32 0.2, %v9444_v61  ;;  %10174 = vst [vmem:[#allocation8_spill] sm:$0xff] %v9611_v30  ;;  %v9626_v19 = vsel %vm5085_vm3, %v9423_v45, %v5137_v57 }
 0x452   :  { %v9603_v16 = vmul.f32 0.2, %v9447_v41  ;;  %v9606_v59 = vmul.f32 0.2, %v9450_v7  ;;  %vm5096_vm14 = vcmp.ge.f32.partialorder %v9456_v62, 0.0  ;;  %10176 = vst [vmem:[#allocation10_spill] sm:$0xff] %v9626_v19 }
 0x453   :  { %v9615_v32 = vmul.f32 0.2, %v9453_v46  ;;  %v9618_v0 = vmul.f32 0.2, %v9456_v62  ;;  %v9621_v36 = vmul.f32 0.2, %v9459_v39 }
 0x454   :  { %vm5097_vm15 = vcmp.ge.f32.partialorder %v9459_v39, 0.0  ;;  %v9630_v20 = vmul.f32 0.2, %v9462_v3  ;;  %v9633_v60 = vmul.f32 0.2, %v9465_v22  ;;  %vm5098_vm0 = vcmp.ge.f32.partialorder %v9462_v3, 0.0 }
 0x455   :  { %10175 = vst [vmem:[#allocation9_spill] sm:$0xff] %v9621_v36  ;;  %v9636_v30 = vmul.f32 0.2, %v9468_v14  ;;  %v9641_v36 = vsel %vm5086_vm4, %v9426_v44, %v5138_v52  ;;  %v9647_v45 = vmul.f32 0.2, %v9471_v27  ;;  %v9658_v44 = vsel %vm5087_vm5, %v9429_v40, %v5139_v49 }
 0x456   :  { %10177 = vst [vmem:[#allocation21_spill] sm:$0xff] %v9641_v36  ;;  %v9650_v57 = vmul.f32 0.2, %v9474_v13  ;;  %v9653_v19 = vmul.f32 0.2, %v9477_v53  ;;  %10179 = vst [vmem:[#allocation12_spill] sm:$0xff] %v9658_v44  ;;  %v9676_v40 = vsel %vm5088_vm6, %v9432_v2, %v5140_v8  ;;  %v9694_v2 = vsel %vm5089_vm7, %v9435_v34, %v5141_v18 }
 0x457   :  { %vm5101_vm3 = vcmp.ge.f32.partialorder %v9471_v27, 0.0  ;;  %v9665_v52 = vmul.f32 0.2, %v9480_v43  ;;  %v9668_v36 = vmul.f32 0.2, %v9483_v21  ;;  %10181 = vst [vmem:[#allocation11_spill] sm:$0xff] %v9676_v40  ;;  %v9712_v34 = vsel %vm5090_vm8, %v9438_v17, %v5142_v4 }
 0x458   :  { %10178 = vst [vmem:[#allocation22_spill] sm:$0xff] %v9653_v19  ;;  %v9671_v19 = vmul.f32 0.2, %v9486_v28  ;;  %vm5105_vm5 = vcmp.ge.f32.partialorder %v9483_v21, 0.0  ;;  %v9683_v49 = vmul.f32 0.2, %v9489_v55  ;;  %v9730_v17 = vsel %vm5091_vm9, %v9441_v54, %v5143_v24 }
 0x459   :  { %v9686_v44 = vmul.f32 0.2, %v9492_v23  ;;  %10183 = vst [vmem:[#allocation27_spill] sm:$0xff] %v9694_v2  ;;  %vm5109_vm6 = vcmp.ge.f32.partialorder %v9495_v33, 0.0  ;;  %v9701_v8 = vmul.f32 0.2, %v9498_v15 }
 0x45a   :  { %10180 = vst [vmem:[#allocation23_spill] sm:$0xff] %v9671_v19  ;;  %v9689_v19 = vmul.f32 0.2, %v9495_v33  ;;  %v9704_v40 = vmul.f32 0.2, %v9501_v48  ;;  %10184 = vst [vmem:[#allocation28_spill] sm:$0xff] %v9712_v34 }
 0x45b   :  { %vm5113_vm7 = vcmp.ge.f32.partialorder %v9507_v38, 0.0  ;;  %v9719_v18 = vmul.f32 0.2, %v9507_v38  ;;  %v9722_v2 = vmul.f32 0.2, %v9510_v31  ;;  %10186 = vst [vmem:[#allocation30_spill] sm:$0xff] %v9730_v17 }
 0x45c   :  { %10182 = vst [vmem:[#allocation26_spill] sm:$0xff] %v9689_v19  ;;  %v9707_v19 = vmul.f32 0.2, %v9504_v42  ;;  %v9725_v42 = vmul.f32 0.2, %v9513_v35  ;;  %vm5120_vm4 = vcmp.ge.f32.partialorder %v9528_v56, 0.0 }
 0x45d   :  { %v5168_v4 = vmul.f32 0.2, %v9516_v6  ;;  %v5169_v34 = vmul.f32 0.2, %v9519_v37  ;;  %v5170_v35 = vmul.f32 0.2, %v9522_v1 }
 0x45e   :  { %10185 = vst [vmem:[#allocation29_spill] sm:$0xff] %v9725_v42  ;;  %v9742_v42 = vsel %vm5092_vm10, %v9444_v61, %v5144_v47  ;;  %vm5121_vm9 = vcmp.ge.f32.partialorder %v9531_v10, 0.0  ;;  %v5171_v54 = vmul.f32 0.2, %v9525_v9  ;;  %v5172_v24 = vmul.f32 0.2, %v9528_v56 }
 0x45f   :  { %10187 = vst [vmem:[#allocation31_spill] sm:$0xff] %v9742_v42  ;;  %v5173_v17 = vmul.f32 0.2, %v9531_v10  ;;  %v9755_v61 = vsel %vm5093_vm11, %v9447_v41, %v9603_v16  ;;  %vm5125_vm10 = vcmp.ge.f32.partialorder %v9543_v12, 0.0  ;;  %v5174_v47 = vmul.f32 0.2, %v9534_v26 }
 0x460   :  { %10188 = vst [vmem:[#allocation32_spill] sm:$0xff] %v9755_v61  ;;  %v5175_v42 = vmul.f32 0.2, %v9537_v25  ;;  %v5176_v10 = vmul.f32 0.2, %v9540_v29  ;;  %v9768_v41 = vsel %vm5094_vm12, %v9450_v7, %v9606_v59  ;;  %vm5129_vm11 = vcmp.ge.f32.partialorder %v9555_v5, 0.0 }
 0x461   :  { %10189 = vst [vmem:[#allocation33_spill] sm:$0xff] %v9768_v41  ;;  %vm5131_vm2 = vcmp.ge.f32.partialorder %v9561_v11, 0.0  ;;  %v10190_v16 = vld [vmem:[#allocation18_spill] sm:$0xff]  ;;  %v5177_v61 = vmul.f32 0.2, %v9543_v12  ;;  %v9781_v7 = vsel %vm5095_vm13, %v9453_v46, %v9615_v32  ;;  %v10192_v59 = vld [vmem:[#allocation3_spill] sm:$0xff] }
 0x462   :  { %vm5132_vm1 = vcmp.ge.f32.partialorder %v10190_v16, 0.0  ;;  %v5178_v25 = vmul.f32 0.2, %v9546_v51  ;;  %v5179_v29 = vmul.f32 0.2, %v9549_v50  ;;  %10191 = vst [vmem:[#allocation18_spill] sm:$0xff] %v9781_v7  ;;  %v9792_v50 = vsel %vm5096_vm14, %v9456_v62, %v9618_v0 }
 0x463   :  { %vm5133_vm12 = vcmp.ge.f32.partialorder %v10192_v59, 0.0  ;;  %v10193_v41 = vld [vmem:[#allocation6_spill] sm:$0xff]  ;;  %v5180_v26 = vmul.f32 0.2, %v9552_v63  ;;  %v5181_v56 = vmul.f32 0.2, %v9555_v5  ;;  %v9808_v62 = vsel %vm5098_vm0, %v9462_v3, %v9630_v20 }
 0x464   :  { %vm5134_vm8 = vcmp.ge.f32.partialorder %v10193_v41, 0.0  ;;  %v5182_v12 = vmul.f32 0.2, %v9558_v58  ;;  %v5183_v51 = vmul.f32 0.2, %v9561_v11  ;;  %v10194_v7 = vld [vmem:[#allocation9_spill] sm:$0xff] }
 0x465   :  { %v5184_v46 = vmul.f32 0.2, %v10190_v16  ;;  %v5185_v32 = vmul.f32 0.2, %v10192_v59  ;;  %v9801_v63 = vsel %vm5097_vm15, %v9459_v39, %v10194_v7  ;;  %v5186_v58 = vmul.f32 0.2, %v10193_v41 }
 0x466   :  { %vm10195_vm13 = vcmp.ge.f32.partialorder %v9465_v22, 0.0  ;;  %vm10196_vm14 = vcmp.ge.f32.partialorder %v9468_v14, 0.0  ;;  %v9826_v7 = vsel %vm5101_vm3, %v9471_v27, %v9647_v45  ;;  %vm10197_vm15 = vcmp.ge.f32.partialorder %v9474_v13, 0.0  ;;  %v10211_v45 = vld [vmem:[#allocation29_spill] sm:$0xff] }
 0x467   :  { %v9814_v0 = vsel %vm10195_vm13, %v9465_v22, %v9633_v60  ;;  %v9820_v39 = vsel %vm10196_vm14, %v9468_v14, %v9636_v30  ;;  %v9832_v3 = vsel %vm10197_vm15, %v9474_v13, %v9650_v57  ;;  %v10198_v22 = vld [vmem:[#allocation22_spill] sm:$0xff]  ;;  %vm10199_vm0 = vcmp.ge.f32.partialorder %v9477_v53, 0.0  ;;  %v10201_v13 = vld [vmem:[#allocation23_spill] sm:$0xff]  ;;  %v10208_v60 = vld [vmem:[#allocation13_spill] sm:$0xff] }
 0x468   :  { %v9838_v20 = vsel %vm10199_vm0, %v9477_v53, %v10198_v22  ;;  %vm10200_vm13 = vcmp.ge.f32.partialorder %v9480_v43, 0.0  ;;  %v9850_v27 = vsel %vm5105_vm5, %v9483_v21, %v9668_v36  ;;  %vm10202_vm3 = vcmp.ge.f32.partialorder %v9486_v28, 0.0  ;;  %v10205_v21 = vld [vmem:[#allocation26_spill] sm:$0xff]  ;;  %v10212_v57 = vld [vmem:[#allocation24_spill] sm:$0xff]  ;;  %v10233_v22 = vld [vmem:[#allocation5_spill] sm:$0xff] }
 0x469   :  { %v9844_v14 = vsel %vm10200_vm13, %v9480_v43, %v9665_v52  ;;  %v9856_v30 = vsel %vm10202_vm3, %v9486_v28, %v10201_v13  ;;  %vm10203_vm14 = vcmp.ge.f32.partialorder %v9489_v55, 0.0  ;;  %vm10204_vm15 = vcmp.ge.f32.partialorder %v9492_v23, 0.0  ;;  %v10218_v52 = vld [vmem:[#allocation14_spill] sm:$0xff] }
 0x46a   :  { %v9862_v53 = vsel %vm10203_vm14, %v9489_v55, %v9683_v49  ;;  %v9868_v43 = vsel %vm10204_vm15, %v9492_v23, %v9686_v44  ;;  %v5213_v36 = vsel %vm5109_vm6, %v9495_v33, %v10205_v21  ;;  %vm10206_vm5 = vcmp.ge.f32.partialorder %v9498_v15, 0.0  ;;  %v10219_v49 = vld [vmem:[#allocation15_spill] sm:$0xff] }
 0x46b   :  { %v5214_v28 = vsel %vm10206_vm5, %v9498_v15, %v9701_v8  ;;  %vm10207_vm0 = vcmp.ge.f32.partialorder %v9501_v48, 0.0  ;;  %vm10209_vm13 = vcmp.ge.f32.partialorder %v10208_v60, 0.0  ;;  %v5217_v33 = vsel %vm5113_vm7, %v9507_v38, %v9719_v18  ;;  %v10222_v8 = vld [vmem:[#allocation16_spill] sm:$0xff] }
 0x46c   :  { %v5215_v55 = vsel %vm10207_vm0, %v9501_v48, %v9704_v40  ;;  %v5216_v23 = vsel %vm10209_vm13, %v10208_v60, %v9707_v19  ;;  %vm10210_vm6 = vcmp.ge.f32.partialorder %v9510_v31, 0.0  ;;  %vm10213_vm3 = vcmp.ge.f32.partialorder %v10212_v57, 0.0  ;;  %v10238_v60 = vld [vmem:[#allocation21_spill] sm:$0xff] }
 0x46d   :  { %v5218_v15 = vsel %vm10210_vm6, %v9510_v31, %v9722_v2  ;;  %v5219_v48 = vsel %vm10213_vm3, %v10212_v57, %v10211_v45  ;;  %vm10214_vm14 = vcmp.ge.f32.partialorder %v9516_v6, 0.0  ;;  %vm10215_vm15 = vcmp.ge.f32.partialorder %v9519_v37, 0.0  ;;  %v10220_v2 = vld [vmem:[#allocation19_spill] sm:$0xff] }
 0x46e   :  { %v5220_v44 = vsel %vm10214_vm14, %v9516_v6, %v5168_v4  ;;  %v5221_v19 = vsel %vm10215_vm15, %v9519_v37, %v5169_v34  ;;  %vm10216_vm7 = vcmp.ge.f32.partialorder %v9522_v1, 0.0  ;;  %vm10217_vm5 = vcmp.ge.f32.partialorder %v9525_v9, 0.0  ;;  %v10226_v34 = vld [vmem:[#allocation4_spill] sm:$0xff]  ;;  %v10227_v4 = vld [vmem:[#allocation25_spill] sm:$0xff] }
 0x46f   :  { %v5222_v38 = vsel %vm10216_vm7, %v9522_v1, %v5170_v35  ;;  %v5223_v31 = vsel %vm10217_vm5, %v9525_v9, %v5171_v54  ;;  %v5224_v40 = vsel %vm5120_vm4, %v10218_v52, %v5172_v24  ;;  %v5225_v6 = vsel %vm5121_vm9, %v10219_v49, %v5173_v17  ;;  %v10224_v1 = vld [vmem:[#allocation17_spill] sm:$0xff]  ;;  %v10229_v54 = vld [vmem:[#allocation7_spill] sm:$0xff] }
 0x470   :  { %vm10221_vm0 = vcmp.ge.f32.partialorder %v10220_v2, 0.0  ;;  %vm10223_vm13 = vcmp.ge.f32.partialorder %v10222_v8, 0.0  ;;  %vm10225_vm6 = vcmp.ge.f32.partialorder %v10224_v1, 0.0  ;;  %v5229_v18 = vsel %vm5125_vm10, %v10226_v34, %v5177_v61 }
 0x471   :  { %v5226_v37 = vsel %vm10221_vm0, %v10220_v2, %v5174_v47  ;;  %v5227_v35 = vsel %vm10223_vm13, %v10222_v8, %v5175_v42  ;;  %v5228_v9 = vsel %vm10225_vm6, %v10224_v1, %v5176_v10  ;;  %vm10228_vm4 = vcmp.ge.f32.partialorder %v10227_v4, 0.0  ;;  %v10231_v47 = vld [vmem:[#allocation2_spill] sm:$0xff] }
 0x472   :  { %v5230_v17 = vsel %vm10228_vm4, %v10227_v4, %v5178_v25  ;;  %vm10230_vm9 = vcmp.ge.f32.partialorder %v10229_v54, 0.0  ;;  %vm10232_vm3 = vcmp.ge.f32.partialorder %v10231_v47, 0.0  ;;  %v5233_v10 = vsel %vm5129_vm11, %v9555_v5, %v5181_v56  ;;  %v10235_v5 = vld [vmem:[#allocation20_spill] sm:$0xff] }
 0x473   :  { %v5231_v24 = vsel %vm10230_vm9, %v10229_v54, %v5179_v29  ;;  %v5232_v42 = vsel %vm10232_vm3, %v10231_v47, %v5180_v26  ;;  %vm10234_vm14 = vcmp.ge.f32.partialorder %v10233_v22, 0.0  ;;  %v5235_v25 = vsel %vm5131_vm2, %v9561_v11, %v5183_v51  ;;  %v10237_v51 = vld [vmem:[#allocation10_spill] sm:$0xff] }
 0x474   :  { %v5234_v61 = vsel %vm10234_vm14, %v10233_v22, %v5182_v12  ;;  %v5236_v29 = vsel %vm5132_vm1, %v10190_v16, %v5184_v46  ;;  %v5237_v26 = vsel %vm5133_vm12, %v10192_v59, %v5185_v32  ;;  %v5238_v56 = vsel %vm5134_vm8, %v10193_v41, %v5186_v58  ;;  %v10236_v12 = vld [vmem:[#allocation8_spill] sm:$0xff]  ;;  %v10240_v59 = vld [vmem:[#allocation11_spill] sm:$0xff] }
 0x475   :  { %v5239_v13 = vmax.f32 %v10235_v5, %v9792_v50  ;;  %v5240_v21 = vmax.f32 %v10236_v12, %v9801_v63  ;;  %v5241_v11 = vmax.f32 %v10237_v51, %v9808_v62  ;;  %v5242_v16 = vmax.f32 %v10238_v60, %v9814_v0  ;;  %v10239_v46 = vld [vmem:[#allocation12_spill] sm:$0xff]  ;;  %v10241_v58 = vld [vmem:[#allocation27_spill] sm:$0xff]  ;;  %v10243_v63 = vld [vmem:[#allocation30_spill] sm:$0xff] }
 0x476   :  { %v5243_v45 = vmax.f32 %v10239_v46, %v9820_v39  ;;  %v5244_v32 = vmax.f32 %v10240_v59, %v9826_v7  ;;  %v5245_v41 = vmax.f32 %v10241_v58, %v9832_v3  ;;  %v10242_v50 = vld [vmem:[#allocation28_spill] sm:$0xff]  ;;  %v5247_v52 = vmax.f32 %v10243_v63, %v9844_v14  ;;  %v10244_v62 = vld [vmem:[#allocation31_spill] sm:$0xff]  ;;  %v10246_v39 = vld [vmem:[#allocation33_spill] sm:$0xff] }
 0x477   :  { %v5246_v57 = vmax.f32 %v10242_v50, %v9838_v20  ;;  %v5248_v49 = vmax.f32 %v10244_v62, %v9850_v27  ;;  %v10245_v0 = vld [vmem:[#allocation32_spill] sm:$0xff]  ;;  %v5250_v8 = vmax.f32 %v10246_v39, %v9862_v53  ;;  %v10247_v7 = vld [vmem:[#allocation18_spill] sm:$0xff]  ;;  %v5252_v34 = vmax.f32 %v5213_v36, %v5226_v37 }
 0x478   :  { %v5249_v2 = vmax.f32 %v10245_v0, %v9856_v30  ;;  %v5251_v1 = vmax.f32 %v10247_v7, %v9868_v43  ;;  %v5253_v3 = vmax.f32 %v5214_v28, %v5227_v35  ;;  %v5254_v4 = vmax.f32 %v5215_v55, %v5228_v9 }
 0x479   :  { %v5255_v54 = vmax.f32 %v5216_v23, %v5229_v18  ;;  %v5256_v20 = vmax.f32 %v5217_v33, %v5230_v17  ;;  %v5257_v47 = vmax.f32 %v5218_v15, %v5231_v24  ;;  %v5258_v22 = vmax.f32 %v5219_v48, %v5232_v42 }
 0x47a   :  { %v5259_v14 = vmax.f32 %v5220_v44, %v5233_v10  ;;  %v5260_v5 = vmax.f32 %v5221_v19, %v5234_v61  ;;  %v5261_v12 = vmax.f32 %v5222_v38, %v5235_v25  ;;  %v5262_v27 = vmax.f32 %v5223_v31, %v5236_v29 }
 0x47b   :  { %v5263_v51 = vmax.f32 %v5224_v40, %v5237_v26  ;;  %v5264_v60 = vmax.f32 %v5225_v6, %v5238_v56  ;;  %v5265_v30 = vmax.f32 %v5239_v13, %v5252_v34  ;;  %v5266_v46 = vmax.f32 %v5240_v21, %v5253_v3 }
 0x47c   :  { %v5267_v59 = vmax.f32 %v5241_v11, %v5254_v4  ;;  %v5268_v53 = vmax.f32 %v5242_v16, %v5255_v54  ;;  %v5269_v58 = vmax.f32 %v5243_v45, %v5256_v20  ;;  %v5270_v50 = vmax.f32 %v5244_v32, %v5257_v47 }
 0x47d   :  { %v5271_v43 = vmax.f32 %v5245_v41, %v5258_v22  ;;  %v5272_v36 = vmax.f32 %v5246_v57, %v5259_v14  ;;  %v5273_v28 = vmax.f32 %v5247_v52, %v5260_v5  ;;  %v5274_v55 = vmax.f32 %v5248_v49, %v5261_v12 }
 0x47e   :  { %v5275_v23 = vmax.f32 %v5249_v2, %v5262_v27  ;;  %v5276_v33 = vmax.f32 %v5250_v8, %v5263_v51  ;;  %v5277_v15 = vmax.f32 %v5251_v1, %v5264_v60  ;;  %v5842_v48 = vpack.c.bf16 %v5266_v46, %v5265_v30 }
 0x47f   :  { %v5847_v44 = vpack.c.bf16 %v5268_v53, %v5267_v59  ;;  %v5852_v19 = vpack.c.bf16 %v5270_v50, %v5269_v58  ;;  %v5857_v38 = vpack.c.bf16 %v5272_v36, %v5271_v43  ;;  %v5862_v31 = vpack.c.bf16 %v5274_v55, %v5273_v28 }
 0x480   :  { %v5867_v40 = vpack.c.bf16 %v5276_v33, %v5275_v23  ;;  %v5838_v6 = vpack.c.bf16 %v5277_v15, %v5277_v15  ;;  %5843 = vst [vmem:[%s10006_s4] sm:$0xff] %v5842_v48  }
 0x481   :  { %5869 = vst [vmem:[%s10006_s4 + $0x8] sm:$0xff] %v5847_v44   ;;  %5870 = vst [vmem:[%s10006_s4 + $0x10] sm:$0xff] %v5852_v19  }
 0x482   :  { %5871 = vst [vmem:[%s10006_s4 + $0x18] sm:$0xff] %v5857_v38   ;;  %5872 = vst [vmem:[%s10006_s4 + $0x20] sm:$0xff] %v5862_v31  }
 0x483   :  { %5873 = vst [vmem:[%s10006_s4 + $0x28] sm:$0xff] %v5867_v40   ;;  %5343 = vst [vmem:[%s10006_s4 + $0x30] sm:$0xf] %v5838_v6 }

// kernel: d_net_forward.5
= control target key start
LH: loop header
LB: loop body
LE: loop exit
PB: predicated region body
PF: predicated region fallthrough
CT: control target
= control target key end

     0   :  { %s21923_s1 = inlined_call_operand.vmem [shape: bf16[6272,512], index: 1, kind: input, shape index: {}]   ;;  %s21924_s0 = inlined_call_operand.vmem [shape: bf16[8,6272], index: 0, kind: input, shape index: {}]   ;;  %s21925_s4 = inlined_call_operand.vmem [shape: bf16[512,128], index: 4, kind: input, shape index: {}]   ;;  %s21926_s2 = inlined_call_operand.vmem [shape: f32[1,512], index: 2, kind: input, shape index: {}]   ;;  %s21927_s3 = inlined_call_operand.vmem [shape: f32[1,512], index: 3, kind: input, shape index: {}]   ;;  %s21928_s5 = inlined_call_operand.vmem [shape: f32[1,128], index: 5, kind: input, shape index: {}]   ;;  %s21929_s6 = inlined_call_operand.vmem [shape: f32[8,128], index: 6, kind: output, shape index: {}]  }
   0x1   :  { %v14384_v0 = vld [vmem:[%s21923_s1 + $0x704] ss:$16 sps:$4 sm:$0xff]   ;;  %v14386_v1 = vld [vmem:[%s21923_s1 + $0x70c] ss:$16 sps:$4 sm:$0xff]   ;;  %v14388_v2 = vld [vmem:[%s21923_s1 + $0x700] ss:$16 sps:$4 sm:$0xff]  }
   0x2   :  { %1625 = vmatprep.subr.bf16.mxu0 %v14384_v0  ;;  %v14389_v3 = vld [vmem:[%s21923_s1 + $0x708] ss:$16 sps:$4 sm:$0xff]   ;;  %1789 = vmatprep.subr.bf16.mxu1 %v14386_v1  ;;  %v14390_v4 = vld [vmem:[%s21923_s1 + $0x724] ss:$16 sps:$4 sm:$0xff]   ;;  %v14392_v5 = vld [vmem:[%s21923_s1 + $0x72c] ss:$16 sps:$4 sm:$0xff]  }
   0x3   :  { %1626 = vmatpush1.bf16.msra.mxu0 %v14388_v2  ;;  %1790 = vmatpush1.bf16.msra.mxu1 %v14389_v3  ;;  %v14394_v6 = vld [vmem:[%s21923_s1 + $0x720] ss:$16 sps:$4 sm:$0xff]   ;;  %v14395_v7 = vld [vmem:[%s21923_s1 + $0x728] ss:$16 sps:$4 sm:$0xff]   ;;  %v14396_v8 = vld [vmem:[%s21923_s1 + $0x744] ss:$16 sps:$4 sm:$0xff]  }
   0x4   :  { %1627 = vmatprep.subr.bf16.mxu0 %v14390_v4  ;;  %1791 = vmatprep.subr.bf16.mxu1 %v14392_v5  ;;  %v14398_v9 = vld [vmem:[%s21923_s1 + $0x74c] ss:$16 sps:$4 sm:$0xff]   ;;  %v14400_v10 = vld [vmem:[%s21923_s1 + $0x740] ss:$16 sps:$4 sm:$0xff]   ;;  %v14401_v11 = vld [vmem:[%s21923_s1 + $0x748] ss:$16 sps:$4 sm:$0xff]  }
   0x5   :  { %v14402_v12 = vld [vmem:[%s21923_s1 + $0x764] ss:$16 sps:$4 sm:$0xff]   ;;  %v14404_v13 = vld [vmem:[%s21923_s1 + $0x76c] ss:$16 sps:$4 sm:$0xff]   ;;  %v14406_v14 = vld [vmem:[%s21923_s1 + $0x760] ss:$16 sps:$4 sm:$0xff]  }
   0x6   :  { %v14407_v15 = vld [vmem:[%s21923_s1 + $0x768] ss:$16 sps:$4 sm:$0xff]   ;;  %v14408_v16 = vld [vmem:[%s21923_s1 + $0x784] ss:$16 sps:$4 sm:$0xff]   ;;  %v14410_v17 = vld [vmem:[%s21923_s1 + $0x78c] ss:$16 sps:$4 sm:$0xff]  }
   0x7   :  { %1628 = vmatpush1.bf16.msra.mxu0 %v14394_v6  ;;  %1792 = vmatpush1.bf16.msra.mxu1 %v14395_v7  ;;  %v14412_v18 = vld [vmem:[%s21923_s1 + $0x780] ss:$16 sps:$4 sm:$0xff]   ;;  %v14413_v19 = vld [vmem:[%s21923_s1 + $0x788] ss:$16 sps:$4 sm:$0xff]   ;;  %v14414_v20 = vld [vmem:[%s21923_s1 + $0x7a4] ss:$16 sps:$4 sm:$0xff]  }
   0x8   :  { %1629 = vmatprep.subr.bf16.mxu0 %v14396_v8  ;;  %1793 = vmatprep.subr.bf16.mxu1 %v14398_v9  ;;  %v14416_v21 = vld [vmem:[%s21923_s1 + $0x7ac] ss:$16 sps:$4 sm:$0xff]   ;;  %v14418_v22 = vld [vmem:[%s21923_s1 + $0x7a0] ss:$16 sps:$4 sm:$0xff]   ;;  %v14419_v23 = vld [vmem:[%s21923_s1 + $0x7a8] ss:$16 sps:$4 sm:$0xff]  }
   0x9   :  { %v14420_v24 = vld [vmem:[%s21923_s1 + $0x7c4] ss:$16 sps:$4 sm:$0xff]   ;;  %v14422_v25 = vld [vmem:[%s21923_s1 + $0x7cc] ss:$16 sps:$4 sm:$0xff]   ;;  %v14424_v26 = vld [vmem:[%s21923_s1 + $0x7c0] ss:$16 sps:$4 sm:$0xff]  }
   0xa   :  { %v14425_v27 = vld [vmem:[%s21923_s1 + $0x7c8] ss:$16 sps:$4 sm:$0xff]   ;;  %v14426_v28 = vld [vmem:[%s21923_s1 + $0x7e4] ss:$16 sps:$4 sm:$0xff]   ;;  %v14428_v29 = vld [vmem:[%s21923_s1 + $0x7ec] ss:$16 sps:$4 sm:$0xff]  }
   0xb   :  { %1630 = vmatpush1.bf16.msra.mxu0 %v14400_v10  ;;  %1794 = vmatpush1.bf16.msra.mxu1 %v14401_v11  ;;  %v14430_v30 = vld [vmem:[%s21923_s1 + $0x7e0] ss:$16 sps:$4 sm:$0xff]   ;;  %v14431_v31 = vld [vmem:[%s21923_s1 + $0x7e8] ss:$16 sps:$4 sm:$0xff]   ;;  %v14432_v32 = vld [vmem:[%s21923_s1 + $0x804] ss:$16 sps:$4 sm:$0xff]  }
   0xc   :  { %1631 = vmatprep.subr.bf16.mxu0 %v14402_v12  ;;  %1795 = vmatprep.subr.bf16.mxu1 %v14404_v13  ;;  %v14434_v33 = vld [vmem:[%s21923_s1 + $0x80c] ss:$16 sps:$4 sm:$0xff]   ;;  %v14436_v34 = vld [vmem:[%s21923_s1 + $0x800] ss:$16 sps:$4 sm:$0xff]   ;;  %v14437_v35 = vld [vmem:[%s21923_s1 + $0x808] ss:$16 sps:$4 sm:$0xff]  }
   0xd   :  { %v14438_v36 = vld [vmem:[%s21923_s1 + $0x824] ss:$16 sps:$4 sm:$0xff]   ;;  %v14440_v37 = vld [vmem:[%s21923_s1 + $0x82c] ss:$16 sps:$4 sm:$0xff]   ;;  %v14442_v38 = vld [vmem:[%s21923_s1 + $0x820] ss:$16 sps:$4 sm:$0xff]  }
   0xe   :  { %v14443_v39 = vld [vmem:[%s21923_s1 + $0x828] ss:$16 sps:$4 sm:$0xff]   ;;  %v14444_v40 = vld [vmem:[%s21923_s1 + $0x844] ss:$16 sps:$4 sm:$0xff]   ;;  %v14446_v41 = vld [vmem:[%s21923_s1 + $0x84c] ss:$16 sps:$4 sm:$0xff]  }
   0xf   :  { %1632 = vmatpush1.bf16.msra.mxu0 %v14406_v14  ;;  %1796 = vmatpush1.bf16.msra.mxu1 %v14407_v15  ;;  %v14448_v42 = vld [vmem:[%s21923_s1 + $0x840] ss:$16 sps:$4 sm:$0xff]   ;;  %v14449_v43 = vld [vmem:[%s21923_s1 + $0x848] ss:$16 sps:$4 sm:$0xff]   ;;  %v14450_v44 = vld [vmem:[%s21923_s1 + $0x864] ss:$16 sps:$4 sm:$0xff]  }
  0x10   :  { %1633 = vmatprep.subr.bf16.mxu0 %v14408_v16  ;;  %1797 = vmatprep.subr.bf16.mxu1 %v14410_v17  ;;  %v14452_v45 = vld [vmem:[%s21923_s1 + $0x86c] ss:$16 sps:$4 sm:$0xff]   ;;  %v14454_v47 = vld [vmem:[%s21923_s1 + $0x860] ss:$16 sps:$4 sm:$0xff]   ;;  %v14455_v49 = vld [vmem:[%s21923_s1 + $0x868] ss:$16 sps:$4 sm:$0xff]  }
  0x11   :  { %v252_v46 = vld [vmem:[%s21924_s0 + $0x1c] sm:$0xff]  ;;  %v14456_v50 = vld [vmem:[%s21923_s1 + $0x884] ss:$16 sps:$4 sm:$0xff]   ;;  %v14461_v53 = vld [vmem:[%s21923_s1 + $0x888] ss:$16 sps:$4 sm:$0xff]  }
  0x12   :  { %v12474_v48 = vcombine.high %v252_v46, %v252_v46  ;;  %v14458_v51 = vld [vmem:[%s21923_s1 + $0x88c] ss:$16 sps:$4 sm:$0xff]   ;;  %v14460_v52 = vld [vmem:[%s21923_s1 + $0x880] ss:$16 sps:$4 sm:$0xff]   ;;  %v14462_v54 = vld [vmem:[%s21923_s1 + $0x8a4] ss:$16 sps:$4 sm:$0xff]   ;;  %v12473_v4 = vcombine.low %v252_v46, %v252_v46 }
  0x13   :  { %1634 = vmatpush1.bf16.msra.mxu0 %v14412_v18  ;;  %1798 = vmatpush1.bf16.msra.mxu1 %v14413_v19  ;;  %v14464_v55 = vld [vmem:[%s21923_s1 + $0x8ac] ss:$16 sps:$4 sm:$0xff]   ;;  %v14466_v56 = vld [vmem:[%s21923_s1 + $0x8a0] ss:$16 sps:$4 sm:$0xff]   ;;  %v14467_v57 = vld [vmem:[%s21923_s1 + $0x8a8] ss:$16 sps:$4 sm:$0xff]  }
  0x14   :  { %1635 = vmatprep.subr.bf16.mxu0 %v14414_v20  ;;  %1799 = vmatprep.subr.bf16.mxu1 %v14416_v21  ;;  %v14468_v58 = vld [vmem:[%s21923_s1 + $0x8c4] ss:$16 sps:$4 sm:$0xff]   ;;  %v14470_v59 = vld [vmem:[%s21923_s1 + $0x8cc] ss:$16 sps:$4 sm:$0xff]   ;;  %v14472_v60 = vld [vmem:[%s21923_s1 + $0x8c0] ss:$16 sps:$4 sm:$0xff]  }
  0x15   :  { %1657 = vmatprep.mubr.bf16.mxu0 %v12474_v48  ;;  %1821 = vmatprep.mubr.bf16.mxu1 %v12474_v48  ;;  %v14473_v61 = vld [vmem:[%s21923_s1 + $0x8c8] ss:$16 sps:$4 sm:$0xff]   ;;  %v14474_v62 = vld [vmem:[%s21923_s1 + $0x8e4] ss:$16 sps:$4 sm:$0xff]   ;;  %v14476_v63 = vld [vmem:[%s21923_s1 + $0x8ec] ss:$16 sps:$4 sm:$0xff]  }
  0x16   :  { %v14478_v0 = vld [vmem:[%s21923_s1 + $0x8e0] ss:$16 sps:$4 sm:$0xff]   ;;  %v14479_v1 = vld [vmem:[%s21923_s1 + $0x8e8] ss:$16 sps:$4 sm:$0xff]   ;;  %v14484_v2 = vld [vmem:[%s21923_s1 + $0x904] ss:$16 sps:$4 sm:$0xff]  }
  0x17   :  { %1636 = vmatpush1.bf16.msra.mxu0 %v14418_v22  ;;  %1800 = vmatpush1.bf16.msra.mxu1 %v14419_v23  ;;  %v14487_v3 = vld [vmem:[%s21923_s1 + $0x90c] ss:$16 sps:$4 sm:$0xff]   ;;  %v14482_v5 = vld [vmem:[%s21923_s1 + $0x900] ss:$16 sps:$4 sm:$0xff]   ;;  %v14485_v6 = vld [vmem:[%s21923_s1 + $0x908] ss:$16 sps:$4 sm:$0xff]  }
  0x18   :  { %1637 = vmatprep.subr.bf16.mxu0 %v14420_v24  ;;  %1801 = vmatprep.subr.bf16.mxu1 %v14422_v25  ;;  %v14490_v7 = vld [vmem:[%s21923_s1 + $0x924] ss:$16 sps:$4 sm:$0xff]   ;;  %v14493_v8 = vld [vmem:[%s21923_s1 + $0x92c] ss:$16 sps:$4 sm:$0xff]   ;;  %v14488_v9 = vld [vmem:[%s21923_s1 + $0x920] ss:$16 sps:$4 sm:$0xff]  }
  0x19   :  { %v14491_v10 = vld [vmem:[%s21923_s1 + $0x928] ss:$16 sps:$4 sm:$0xff]   ;;  %v14496_v11 = vld [vmem:[%s21923_s1 + $0x944] ss:$16 sps:$4 sm:$0xff]   ;;  %v14499_v12 = vld [vmem:[%s21923_s1 + $0x94c] ss:$16 sps:$4 sm:$0xff]  }
  0x1a   :  { %v14494_v13 = vld [vmem:[%s21923_s1 + $0x940] ss:$16 sps:$4 sm:$0xff]   ;;  %v14497_v14 = vld [vmem:[%s21923_s1 + $0x948] ss:$16 sps:$4 sm:$0xff]   ;;  %v14502_v15 = vld [vmem:[%s21923_s1 + $0x964] ss:$16 sps:$4 sm:$0xff]  }
  0x1b   :  { %1638 = vmatpush1.bf16.msra.mxu0 %v14424_v26  ;;  %1802 = vmatpush1.bf16.msra.mxu1 %v14425_v27  ;;  %v14505_v16 = vld [vmem:[%s21923_s1 + $0x96c] ss:$16 sps:$4 sm:$0xff]   ;;  %v14500_v17 = vld [vmem:[%s21923_s1 + $0x960] ss:$16 sps:$4 sm:$0xff]   ;;  %v14503_v18 = vld [vmem:[%s21923_s1 + $0x968] ss:$16 sps:$4 sm:$0xff]  }
  0x1c   :  { %1639 = vmatprep.subr.bf16.mxu0 %v14426_v28  ;;  %1803 = vmatprep.subr.bf16.mxu1 %v14428_v29  ;;  %v14508_v19 = vld [vmem:[%s21923_s1 + $0x984] ss:$16 sps:$4 sm:$0xff]   ;;  %v14511_v20 = vld [vmem:[%s21923_s1 + $0x98c] ss:$16 sps:$4 sm:$0xff]   ;;  %v14506_v21 = vld [vmem:[%s21923_s1 + $0x980] ss:$16 sps:$4 sm:$0xff]  }
  0x1d   :  { %v14509_v22 = vld [vmem:[%s21923_s1 + $0x988] ss:$16 sps:$4 sm:$0xff]   ;;  %v14514_v23 = vld [vmem:[%s21923_s1 + $0x9a4] ss:$16 sps:$4 sm:$0xff]   ;;  %v14517_v24 = vld [vmem:[%s21923_s1 + $0x9ac] ss:$16 sps:$4 sm:$0xff]  }
  0x1e   :  { %v14512_v25 = vld [vmem:[%s21923_s1 + $0x9a0] ss:$16 sps:$4 sm:$0xff]   ;;  %v14515_v26 = vld [vmem:[%s21923_s1 + $0x9a8] ss:$16 sps:$4 sm:$0xff]   ;;  %v14520_v27 = vld [vmem:[%s21923_s1 + $0x9c4] ss:$16 sps:$4 sm:$0xff]  }
  0x1f   :  { %1640 = vmatpush1.bf16.msra.mxu0 %v14430_v30  ;;  %1804 = vmatpush1.bf16.msra.mxu1 %v14431_v31  ;;  %v14523_v28 = vld [vmem:[%s21923_s1 + $0x9cc] ss:$16 sps:$4 sm:$0xff]   ;;  %v17141_v29 = vld [vmem:[%s21924_s0 + $0x24] sm:$0xff]  ;;  %v14518_v31 = vld [vmem:[%s21923_s1 + $0x9c0] ss:$16 sps:$4 sm:$0xff]  }
  0x20   :  { %1641 = vmatprep.subr.bf16.mxu0 %v14432_v32  ;;  %1805 = vmatprep.subr.bf16.mxu1 %v14434_v33  ;;  %v12476_v30 = vcombine.high %v17141_v29, %v17141_v29  ;;  %v14521_v32 = vld [vmem:[%s21923_s1 + $0x9c8] ss:$16 sps:$4 sm:$0xff]   ;;  %v14526_v33 = vld [vmem:[%s21923_s1 + $0x9e4] ss:$16 sps:$4 sm:$0xff]   ;;  %v14547_v46 = vld [vmem:[%s21923_s1 + $0xa4c] ss:$16 sps:$4 sm:$0xff]  }
  0x21   :  { %v14545_v48 = vld [vmem:[%s21923_s1 + $0xa48] ss:$16 sps:$4 sm:$0xff]  }
  0x23   :  { %1642 = vmatpush1.bf16.msra.mxu0 %v14436_v34  ;;  %1806 = vmatpush1.bf16.msra.mxu1 %v14437_v35  ;;  %v14529_v34 = vld [vmem:[%s21923_s1 + $0x9ec] ss:$16 sps:$4 sm:$0xff]   ;;  %v14524_v35 = vld [vmem:[%s21923_s1 + $0x9e0] ss:$16 sps:$4 sm:$0xff]  }
  0x24   :  { %1643 = vmatprep.subr.bf16.mxu0 %v14438_v36  ;;  %1807 = vmatprep.subr.bf16.mxu1 %v14440_v37  ;;  %v14527_v36 = vld [vmem:[%s21923_s1 + $0x9e8] ss:$16 sps:$4 sm:$0xff]   ;;  %v14532_v37 = vld [vmem:[%s21923_s1 + $0xa04] ss:$16 sps:$4 sm:$0xff]  }
  0x27   :  { %1644 = vmatpush1.bf16.msra.mxu0 %v14442_v38  ;;  %1808 = vmatpush1.bf16.msra.mxu1 %v14443_v39  ;;  %v14535_v38 = vld [vmem:[%s21923_s1 + $0xa0c] ss:$16 sps:$4 sm:$0xff]   ;;  %v14530_v39 = vld [vmem:[%s21923_s1 + $0xa00] ss:$16 sps:$4 sm:$0xff]  }
  0x28   :  { %1645 = vmatprep.subr.bf16.mxu0 %v14444_v40  ;;  %1809 = vmatprep.subr.bf16.mxu1 %v14446_v41  ;;  %v14533_v40 = vld [vmem:[%s21923_s1 + $0xa08] ss:$16 sps:$4 sm:$0xff]   ;;  %v14538_v41 = vld [vmem:[%s21923_s1 + $0xa24] ss:$16 sps:$4 sm:$0xff]  }
  0x2b   :  { %1646 = vmatpush1.bf16.msra.mxu0 %v14448_v42  ;;  %1810 = vmatpush1.bf16.msra.mxu1 %v14449_v43  ;;  %v14541_v42 = vld [vmem:[%s21923_s1 + $0xa2c] ss:$16 sps:$4 sm:$0xff]   ;;  %v14536_v43 = vld [vmem:[%s21923_s1 + $0xa20] ss:$16 sps:$4 sm:$0xff]  }
  0x2c   :  { %1647 = vmatprep.subr.bf16.mxu0 %v14450_v44  ;;  %1811 = vmatprep.subr.bf16.mxu1 %v14452_v45  ;;  %v14539_v44 = vld [vmem:[%s21923_s1 + $0xa28] ss:$16 sps:$4 sm:$0xff]   ;;  %v14544_v45 = vld [vmem:[%s21923_s1 + $0xa44] ss:$16 sps:$4 sm:$0xff]  }
  0x2f   :  { %1648 = vmatpush1.bf16.msra.mxu0 %v14454_v47  ;;  %1812 = vmatpush1.bf16.msra.mxu1 %v14455_v49  ;;  %v14542_v47 = vld [vmem:[%s21923_s1 + $0xa40] ss:$16 sps:$4 sm:$0xff]   ;;  %v14550_v49 = vld [vmem:[%s21923_s1 + $0xa64] ss:$16 sps:$4 sm:$0xff]  }
  0x30   :  { %1649 = vmatprep.subr.bf16.mxu0 %v14456_v50  ;;  %1813 = vmatprep.subr.bf16.mxu1 %v14458_v51  ;;  %v14553_v50 = vld [vmem:[%s21923_s1 + $0xa6c] ss:$16 sps:$4 sm:$0xff]   ;;  %v14548_v51 = vld [vmem:[%s21923_s1 + $0xa60] ss:$16 sps:$4 sm:$0xff]  }
  0x33   :  { %1650 = vmatpush1.bf16.msra.mxu0 %v14460_v52  ;;  %1814 = vmatpush1.bf16.msra.mxu1 %v14461_v53  ;;  %v14551_v52 = vld [vmem:[%s21923_s1 + $0xa68] ss:$16 sps:$4 sm:$0xff]   ;;  %v14556_v53 = vld [vmem:[%s21923_s1 + $0xa84] ss:$16 sps:$4 sm:$0xff]  }
  0x34   :  { %1651 = vmatprep.subr.bf16.mxu0 %v14462_v54  ;;  %1815 = vmatprep.subr.bf16.mxu1 %v14464_v55  ;;  %v14559_v54 = vld [vmem:[%s21923_s1 + $0xa8c] ss:$16 sps:$4 sm:$0xff]   ;;  %v14554_v55 = vld [vmem:[%s21923_s1 + $0xa80] ss:$16 sps:$4 sm:$0xff]  }
  0x37   :  { %1652 = vmatpush1.bf16.msra.mxu0 %v14466_v56  ;;  %1816 = vmatpush1.bf16.msra.mxu1 %v14467_v57  ;;  %v14557_v56 = vld [vmem:[%s21923_s1 + $0xa88] ss:$16 sps:$4 sm:$0xff]   ;;  %v14562_v57 = vld [vmem:[%s21923_s1 + $0xaa4] ss:$16 sps:$4 sm:$0xff]  }
  0x38   :  { %1653 = vmatprep.subr.bf16.mxu0 %v14468_v58  ;;  %1817 = vmatprep.subr.bf16.mxu1 %v14470_v59  ;;  %v14565_v58 = vld [vmem:[%s21923_s1 + $0xaac] ss:$16 sps:$4 sm:$0xff]   ;;  %v14560_v59 = vld [vmem:[%s21923_s1 + $0xaa0] ss:$16 sps:$4 sm:$0xff]  }
  0x3b   :  { %1654 = vmatpush1.bf16.msra.mxu0 %v14472_v60  ;;  %1818 = vmatpush1.bf16.msra.mxu1 %v14473_v61  ;;  %v14563_v60 = vld [vmem:[%s21923_s1 + $0xaa8] ss:$16 sps:$4 sm:$0xff]   ;;  %v14568_v61 = vld [vmem:[%s21923_s1 + $0xac4] ss:$16 sps:$4 sm:$0xff]  }
  0x3c   :  { %1655 = vmatprep.subr.bf16.mxu0 %v14474_v62  ;;  %1819 = vmatprep.subr.bf16.mxu1 %v14476_v63  ;;  %v14571_v62 = vld [vmem:[%s21923_s1 + $0xacc] ss:$16 sps:$4 sm:$0xff]   ;;  %v14566_v63 = vld [vmem:[%s21923_s1 + $0xac0] ss:$16 sps:$4 sm:$0xff]  }
  0x3f   :  { %1656 = vmatpush1.bf16.msra.mxu0 %v14478_v0  ;;  %1820 = vmatpush1.bf16.msra.mxu1 %v14479_v1  ;;  %v14569_v0 = vld [vmem:[%s21923_s1 + $0xac8] ss:$16 sps:$4 sm:$0xff]   ;;  %v14574_v1 = vld [vmem:[%s21923_s1 + $0xae4] ss:$16 sps:$4 sm:$0xff]  }
  0x40   :  { %1666 = vmatprep.subr.bf16.mxu0 %v14484_v2  ;;  %1830 = vmatprep.subr.bf16.mxu1 %v14487_v3  ;;  %v14577_v2 = vld [vmem:[%s21923_s1 + $0xaec] ss:$16 sps:$4 sm:$0xff]   ;;  %v14572_v3 = vld [vmem:[%s21923_s1 + $0xae0] ss:$16 sps:$4 sm:$0xff]  }
  0x42   :  { %1658 = vmatmul.mubr.bf16.vlgmr.msra.gmra.mrb[0].mxu0 %v12473_v4  ;;  %1822 = vmatmul.mubr.bf16.vlgmr.msra.gmra.mrb[0].mxu1 %v12473_v4  ;;  %v14575_v4 = vld [vmem:[%s21923_s1 + $0xae8] ss:$16 sps:$4 sm:$0xff]  }
  0x43   :  { %1667 = vmatpush1.bf16.msra.mxu0 %v14482_v5  ;;  %1831 = vmatpush1.bf16.msra.mxu1 %v14485_v6  ;;  %v14582_v5 = vld [vmem:[%s21923_s1 + $0xb04] ss:$16 sps:$4 sm:$0xff]   ;;  %v14585_v6 = vld [vmem:[%s21923_s1 + $0xb0c] ss:$16 sps:$4 sm:$0xff]  }
  0x44   :  { %1668 = vmatprep.subr.bf16.mxu0 %v14490_v7  ;;  %1832 = vmatprep.subr.bf16.mxu1 %v14493_v8  ;;  %v12475_v7 = vcombine.low %v17141_v29, %v17141_v29  ;;  %v14580_v8 = vld [vmem:[%s21923_s1 + $0xb00] ss:$16 sps:$4 sm:$0xff]   ;;  %v14615_v29 = vld [vmem:[%s21923_s1 + $0xbac] ss:$16 sps:$4 sm:$0xff]  }
  0x45   :  { %1698 = vmatprep.mubr.bf16.mxu0 %v12476_v30  ;;  %1862 = vmatprep.mubr.bf16.mxu1 %v12476_v30  ;;  %v14610_v30 = vld [vmem:[%s21923_s1 + $0xba0] ss:$16 sps:$4 sm:$0xff]  }
  0x47   :  { %1669 = vmatpush1.bf16.msra.mxu0 %v14488_v9  ;;  %1833 = vmatpush1.bf16.msra.mxu1 %v14491_v10  ;;  %v14583_v9 = vld [vmem:[%s21923_s1 + $0xb08] ss:$16 sps:$4 sm:$0xff]   ;;  %v14588_v10 = vld [vmem:[%s21923_s1 + $0xb24] ss:$16 sps:$4 sm:$0xff]  }
  0x48   :  { %1670 = vmatprep.subr.bf16.mxu0 %v14496_v11  ;;  %1834 = vmatprep.subr.bf16.mxu1 %v14499_v12  ;;  %v17279_v11 = vld [vmem:[%s21924_s0 + $0x2c] sm:$0xff] }
  0x49   :  { %v14591_v12 = vld [vmem:[%s21923_s1 + $0xb2c] ss:$16 sps:$4 sm:$0xff]  }
  0x4b   :  { %1671 = vmatpush1.bf16.msra.mxu0 %v14494_v13  ;;  %1835 = vmatpush1.bf16.msra.mxu1 %v14497_v14  ;;  %v12478_v13 = vcombine.high %v17279_v11, %v17279_v11  ;;  %v14586_v14 = vld [vmem:[%s21923_s1 + $0xb20] ss:$16 sps:$4 sm:$0xff]  }
  0x4c   :  { %1672 = vmatprep.subr.bf16.mxu0 %v14502_v15  ;;  %1836 = vmatprep.subr.bf16.mxu1 %v14505_v16  ;;  %v14589_v15 = vld [vmem:[%s21923_s1 + $0xb28] ss:$16 sps:$4 sm:$0xff]   ;;  %v14594_v16 = vld [vmem:[%s21923_s1 + $0xb44] ss:$16 sps:$4 sm:$0xff]  }
  0x4f   :  { %1673 = vmatpush1.bf16.msra.mxu0 %v14500_v17  ;;  %1837 = vmatpush1.bf16.msra.mxu1 %v14503_v18  ;;  %v14597_v17 = vld [vmem:[%s21923_s1 + $0xb4c] ss:$16 sps:$4 sm:$0xff]   ;;  %v14592_v18 = vld [vmem:[%s21923_s1 + $0xb40] ss:$16 sps:$4 sm:$0xff]  }
  0x50   :  { %1674 = vmatprep.subr.bf16.mxu0 %v14508_v19  ;;  %1838 = vmatprep.subr.bf16.mxu1 %v14511_v20  ;;  %v14595_v19 = vld [vmem:[%s21923_s1 + $0xb48] ss:$16 sps:$4 sm:$0xff]   ;;  %v14600_v20 = vld [vmem:[%s21923_s1 + $0xb64] ss:$16 sps:$4 sm:$0xff]  }
  0x53   :  { %1675 = vmatpush1.bf16.msra.mxu0 %v14506_v21  ;;  %1839 = vmatpush1.bf16.msra.mxu1 %v14509_v22  ;;  %v14603_v21 = vld [vmem:[%s21923_s1 + $0xb6c] ss:$16 sps:$4 sm:$0xff]   ;;  %v14598_v22 = vld [vmem:[%s21923_s1 + $0xb60] ss:$16 sps:$4 sm:$0xff]  }
  0x54   :  { %1676 = vmatprep.subr.bf16.mxu0 %v14514_v23  ;;  %1840 = vmatprep.subr.bf16.mxu1 %v14517_v24  ;;  %v14601_v23 = vld [vmem:[%s21923_s1 + $0xb68] ss:$16 sps:$4 sm:$0xff]   ;;  %v14606_v24 = vld [vmem:[%s21923_s1 + $0xb84] ss:$16 sps:$4 sm:$0xff]  }
  0x57   :  { %1677 = vmatpush1.bf16.msra.mxu0 %v14512_v25  ;;  %1841 = vmatpush1.bf16.msra.mxu1 %v14515_v26  ;;  %v14609_v25 = vld [vmem:[%s21923_s1 + $0xb8c] ss:$16 sps:$4 sm:$0xff]   ;;  %v14604_v26 = vld [vmem:[%s21923_s1 + $0xb80] ss:$16 sps:$4 sm:$0xff]  }
  0x58   :  { %1678 = vmatprep.subr.bf16.mxu0 %v14520_v27  ;;  %1842 = vmatprep.subr.bf16.mxu1 %v14523_v28  ;;  %v14607_v27 = vld [vmem:[%s21923_s1 + $0xb88] ss:$16 sps:$4 sm:$0xff]   ;;  %v14612_v28 = vld [vmem:[%s21923_s1 + $0xba4] ss:$16 sps:$4 sm:$0xff]  }
  0x5b   :  { %1679 = vmatpush1.bf16.msra.mxu0 %v14518_v31  ;;  %1843 = vmatpush1.bf16.msra.mxu1 %v14521_v32  ;;  %v14613_v31 = vld [vmem:[%s21923_s1 + $0xba8] ss:$16 sps:$4 sm:$0xff]   ;;  %v14618_v32 = vld [vmem:[%s21923_s1 + $0xbc4] ss:$16 sps:$4 sm:$0xff]  }
  0x5c   :  { %1680 = vmatprep.subr.bf16.mxu0 %v14526_v33  ;;  %1844 = vmatprep.subr.bf16.mxu1 %v14529_v34  ;;  %v14621_v33 = vld [vmem:[%s21923_s1 + $0xbcc] ss:$16 sps:$4 sm:$0xff]   ;;  %v14616_v34 = vld [vmem:[%s21923_s1 + $0xbc0] ss:$16 sps:$4 sm:$0xff]  }
  0x5f   :  { %1681 = vmatpush1.bf16.msra.mxu0 %v14524_v35  ;;  %1845 = vmatpush1.bf16.msra.mxu1 %v14527_v36  ;;  %v14619_v35 = vld [vmem:[%s21923_s1 + $0xbc8] ss:$16 sps:$4 sm:$0xff]   ;;  %v14624_v36 = vld [vmem:[%s21923_s1 + $0xbe4] ss:$16 sps:$4 sm:$0xff]  }
  0x60   :  { %1682 = vmatprep.subr.bf16.mxu0 %v14532_v37  ;;  %1846 = vmatprep.subr.bf16.mxu1 %v14535_v38  ;;  %v14627_v37 = vld [vmem:[%s21923_s1 + $0xbec] ss:$16 sps:$4 sm:$0xff]   ;;  %v14622_v38 = vld [vmem:[%s21923_s1 + $0xbe0] ss:$16 sps:$4 sm:$0xff]  }
  0x63   :  { %1683 = vmatpush1.bf16.msra.mxu0 %v14530_v39  ;;  %1847 = vmatpush1.bf16.msra.mxu1 %v14533_v40  ;;  %v14625_v39 = vld [vmem:[%s21923_s1 + $0xbe8] ss:$16 sps:$4 sm:$0xff]   ;;  %v14630_v40 = vld [vmem:[%s21923_s1 + $0xc04] ss:$16 sps:$4 sm:$0xff]  }
  0x64   :  { %1684 = vmatprep.subr.bf16.mxu0 %v14538_v41  ;;  %1848 = vmatprep.subr.bf16.mxu1 %v14541_v42  ;;  %v14633_v41 = vld [vmem:[%s21923_s1 + $0xc0c] ss:$16 sps:$4 sm:$0xff]   ;;  %v14628_v42 = vld [vmem:[%s21923_s1 + $0xc00] ss:$16 sps:$4 sm:$0xff]  }
  0x67   :  { %1685 = vmatpush1.bf16.msra.mxu0 %v14536_v43  ;;  %1849 = vmatpush1.bf16.msra.mxu1 %v14539_v44  ;;  %v14631_v43 = vld [vmem:[%s21923_s1 + $0xc08] ss:$16 sps:$4 sm:$0xff]   ;;  %v14636_v44 = vld [vmem:[%s21923_s1 + $0xc24] ss:$16 sps:$4 sm:$0xff]  }
  0x68   :  { %1686 = vmatprep.subr.bf16.mxu0 %v14544_v45  ;;  %1850 = vmatprep.subr.bf16.mxu1 %v14547_v46  ;;  %v14639_v45 = vld [vmem:[%s21923_s1 + $0xc2c] ss:$16 sps:$4 sm:$0xff]   ;;  %v14634_v46 = vld [vmem:[%s21923_s1 + $0xc20] ss:$16 sps:$4 sm:$0xff]  }
  0x6b   :  { %1687 = vmatpush1.bf16.msra.mxu0 %v14542_v47  ;;  %1851 = vmatpush1.bf16.msra.mxu1 %v14545_v48  ;;  %v14637_v47 = vld [vmem:[%s21923_s1 + $0xc28] ss:$16 sps:$4 sm:$0xff]   ;;  %v14642_v48 = vld [vmem:[%s21923_s1 + $0xc44] ss:$16 sps:$4 sm:$0xff]  }
  0x6c   :  { %1688 = vmatprep.subr.bf16.mxu0 %v14550_v49  ;;  %1852 = vmatprep.subr.bf16.mxu1 %v14553_v50  ;;  %v14645_v49 = vld [vmem:[%s21923_s1 + $0xc4c] ss:$16 sps:$4 sm:$0xff]   ;;  %v14640_v50 = vld [vmem:[%s21923_s1 + $0xc40] ss:$16 sps:$4 sm:$0xff]  }
  0x6f   :  { %1689 = vmatpush1.bf16.msra.mxu0 %v14548_v51  ;;  %1853 = vmatpush1.bf16.msra.mxu1 %v14551_v52  ;;  %v14643_v51 = vld [vmem:[%s21923_s1 + $0xc48] ss:$16 sps:$4 sm:$0xff]   ;;  %v14648_v52 = vld [vmem:[%s21923_s1 + $0xc64] ss:$16 sps:$4 sm:$0xff]  }
  0x70   :  { %1690 = vmatprep.subr.bf16.mxu0 %v14556_v53  ;;  %1854 = vmatprep.subr.bf16.mxu1 %v14559_v54  ;;  %v14651_v53 = vld [vmem:[%s21923_s1 + $0xc6c] ss:$16 sps:$4 sm:$0xff]   ;;  %v14646_v54 = vld [vmem:[%s21923_s1 + $0xc60] ss:$16 sps:$4 sm:$0xff]  }
  0x73   :  { %1691 = vmatpush1.bf16.msra.mxu0 %v14554_v55  ;;  %1855 = vmatpush1.bf16.msra.mxu1 %v14557_v56  ;;  %v14649_v55 = vld [vmem:[%s21923_s1 + $0xc68] ss:$16 sps:$4 sm:$0xff]   ;;  %v14654_v56 = vld [vmem:[%s21923_s1 + $0xc84] ss:$16 sps:$4 sm:$0xff]  }
  0x74   :  { %1692 = vmatprep.subr.bf16.mxu0 %v14562_v57  ;;  %1856 = vmatprep.subr.bf16.mxu1 %v14565_v58  ;;  %v14657_v57 = vld [vmem:[%s21923_s1 + $0xc8c] ss:$16 sps:$4 sm:$0xff]   ;;  %v14652_v58 = vld [vmem:[%s21923_s1 + $0xc80] ss:$16 sps:$4 sm:$0xff]  }
  0x77   :  { %1693 = vmatpush1.bf16.msra.mxu0 %v14560_v59  ;;  %1857 = vmatpush1.bf16.msra.mxu1 %v14563_v60  ;;  %v14655_v59 = vld [vmem:[%s21923_s1 + $0xc88] ss:$16 sps:$4 sm:$0xff]   ;;  %v14660_v60 = vld [vmem:[%s21923_s1 + $0xca4] ss:$16 sps:$4 sm:$0xff]  }
  0x78   :  { %1694 = vmatprep.subr.bf16.mxu0 %v14568_v61  ;;  %1858 = vmatprep.subr.bf16.mxu1 %v14571_v62  ;;  %v14663_v61 = vld [vmem:[%s21923_s1 + $0xcac] ss:$16 sps:$4 sm:$0xff]   ;;  %v14658_v62 = vld [vmem:[%s21923_s1 + $0xca0] ss:$16 sps:$4 sm:$0xff]  }
  0x7b   :  { %1695 = vmatpush1.bf16.msra.mxu0 %v14566_v63  ;;  %1859 = vmatpush1.bf16.msra.mxu1 %v14569_v0  ;;  %v14661_v63 = vld [vmem:[%s21923_s1 + $0xca8] ss:$16 sps:$4 sm:$0xff]   ;;  %v14666_v0 = vld [vmem:[%s21923_s1 + $0xcc4] ss:$16 sps:$4 sm:$0xff]  }
  0x7c   :  { %1696 = vmatprep.subr.bf16.mxu0 %v14574_v1  ;;  %1860 = vmatprep.subr.bf16.mxu1 %v14577_v2  ;;  %v14669_v1 = vld [vmem:[%s21923_s1 + $0xccc] ss:$16 sps:$4 sm:$0xff]   ;;  %v14664_v2 = vld [vmem:[%s21923_s1 + $0xcc0] ss:$16 sps:$4 sm:$0xff]  }
  0x7f   :  { %1697 = vmatpush1.bf16.msra.mxu0 %v14572_v3  ;;  %1861 = vmatpush1.bf16.msra.mxu1 %v14575_v4  ;;  %v14667_v3 = vld [vmem:[%s21923_s1 + $0xcc8] ss:$16 sps:$4 sm:$0xff]   ;;  %v14672_v4 = vld [vmem:[%s21923_s1 + $0xce4] ss:$16 sps:$4 sm:$0xff]  }
  0x80   :  { %1707 = vmatprep.subr.bf16.mxu0 %v14582_v5  ;;  %1871 = vmatprep.subr.bf16.mxu1 %v14585_v6  ;;  %v14675_v5 = vld [vmem:[%s21923_s1 + $0xcec] ss:$16 sps:$4 sm:$0xff]   ;;  %v14670_v6 = vld [vmem:[%s21923_s1 + $0xce0] ss:$16 sps:$4 sm:$0xff]  }
  0x82   :  { %1699 = vmatmul.mubr.bf16.vlgmr.msra.gmra.mrb[0].mxu0 %v12475_v7  ;;  %1863 = vmatmul.mubr.bf16.vlgmr.msra.gmra.mrb[0].mxu1 %v12475_v7  ;;  %v14673_v7 = vld [vmem:[%s21923_s1 + $0xce8] ss:$16 sps:$4 sm:$0xff]  }
  0x83   :  { %1708 = vmatpush1.bf16.msra.mxu0 %v14580_v8  ;;  %1872 = vmatpush1.bf16.msra.mxu1 %v14583_v9  ;;  %v14680_v8 = vld [vmem:[%s21923_s1 + $0xd04] ss:$16 sps:$4 sm:$0xff]   ;;  %v14683_v9 = vld [vmem:[%s21923_s1 + $0xd0c] ss:$16 sps:$4 sm:$0xff]  }
  0x84   :  { %1709 = vmatprep.subr.bf16.mxu0 %v14588_v10  ;;  %1873 = vmatprep.subr.bf16.mxu1 %v14591_v12  ;;  %v12477_v10 = vcombine.low %v17279_v11, %v17279_v11  ;;  %v14678_v12 = vld [vmem:[%s21923_s1 + $0xd00] ss:$16 sps:$4 sm:$0xff]   ;;  %v14689_v11 = vld [vmem:[%s21923_s1 + $0xd2c] ss:$16 sps:$4 sm:$0xff]  }
  0x85   :  { %1739 = vmatprep.mubr.bf16.mxu0 %v12478_v13  ;;  %1903 = vmatprep.mubr.bf16.mxu1 %v12478_v13  ;;  %v14681_v13 = vld [vmem:[%s21923_s1 + $0xd08] ss:$16 sps:$4 sm:$0xff]  }
  0x87   :  { %1710 = vmatpush1.bf16.msra.mxu0 %v14586_v14  ;;  %1874 = vmatpush1.bf16.msra.mxu1 %v14589_v15  ;;  %v14686_v14 = vld [vmem:[%s21923_s1 + $0xd24] ss:$16 sps:$4 sm:$0xff]   ;;  %v14684_v15 = vld [vmem:[%s21923_s1 + $0xd20] ss:$16 sps:$4 sm:$0xff]  }
  0x88   :  { %1711 = vmatprep.subr.bf16.mxu0 %v14594_v16  ;;  %1875 = vmatprep.subr.bf16.mxu1 %v14597_v17  ;;  %v14687_v16 = vld [vmem:[%s21923_s1 + $0xd28] ss:$16 sps:$4 sm:$0xff]   ;;  %v14692_v17 = vld [vmem:[%s21923_s1 + $0xd44] ss:$16 sps:$4 sm:$0xff]  }
  0x8b   :  { %1712 = vmatpush1.bf16.msra.mxu0 %v14592_v18  ;;  %1876 = vmatpush1.bf16.msra.mxu1 %v14595_v19  ;;  %v14695_v18 = vld [vmem:[%s21923_s1 + $0xd4c] ss:$16 sps:$4 sm:$0xff]   ;;  %v16829_v19 = vmov 0  }
  0x8c   :  { %1713 = vmatprep.subr.bf16.mxu0 %v14600_v20  ;;  %1877 = vmatprep.subr.bf16.mxu1 %v14603_v21  ;;  %v14690_v20 = vld [vmem:[%s21923_s1 + $0xd40] ss:$16 sps:$4 sm:$0xff]   ;;  %v14693_v21 = vld [vmem:[%s21923_s1 + $0xd48] ss:$16 sps:$4 sm:$0xff]  }
  0x8f   :  { %1714 = vmatpush1.bf16.msra.mxu0 %v14598_v22  ;;  %1878 = vmatpush1.bf16.msra.mxu1 %v14601_v23  ;;  %v14698_v22 = vld [vmem:[%s21923_s1 + $0xd64] ss:$16 sps:$4 sm:$0xff]   ;;  %v14701_v23 = vld [vmem:[%s21923_s1 + $0xd6c] ss:$16 sps:$4 sm:$0xff]  }
  0x90   :  { %1715 = vmatprep.subr.bf16.mxu0 %v14606_v24  ;;  %1879 = vmatprep.subr.bf16.mxu1 %v14609_v25  ;;  %v14696_v24 = vld [vmem:[%s21923_s1 + $0xd60] ss:$16 sps:$4 sm:$0xff]   ;;  %v14699_v25 = vld [vmem:[%s21923_s1 + $0xd68] ss:$16 sps:$4 sm:$0xff]  }
  0x93   :  { %1716 = vmatpush1.bf16.msra.mxu0 %v14604_v26  ;;  %1880 = vmatpush1.bf16.msra.mxu1 %v14607_v27  ;;  %v14704_v26 = vld [vmem:[%s21923_s1 + $0xd84] ss:$16 sps:$4 sm:$0xff]   ;;  %v14707_v27 = vld [vmem:[%s21923_s1 + $0xd8c] ss:$16 sps:$4 sm:$0xff]  }
  0x94   :  { %1717 = vmatprep.subr.bf16.mxu0 %v14612_v28  ;;  %1881 = vmatprep.subr.bf16.mxu1 %v14615_v29  ;;  %v14702_v28 = vld [vmem:[%s21923_s1 + $0xd80] ss:$16 sps:$4 sm:$0xff]   ;;  %v14705_v29 = vld [vmem:[%s21923_s1 + $0xd88] ss:$16 sps:$4 sm:$0xff]  }
  0x97   :  { %1718 = vmatpush1.bf16.msra.mxu0 %v14610_v30  ;;  %1882 = vmatpush1.bf16.msra.mxu1 %v14613_v31  ;;  %v14710_v30 = vld [vmem:[%s21923_s1 + $0xda4] ss:$16 sps:$4 sm:$0xff]   ;;  %v14713_v31 = vld [vmem:[%s21923_s1 + $0xdac] ss:$16 sps:$4 sm:$0xff]  }
  0x98   :  { %1719 = vmatprep.subr.bf16.mxu0 %v14618_v32  ;;  %1883 = vmatprep.subr.bf16.mxu1 %v14621_v33  ;;  %v14708_v32 = vld [vmem:[%s21923_s1 + $0xda0] ss:$16 sps:$4 sm:$0xff]   ;;  %v14711_v33 = vld [vmem:[%s21923_s1 + $0xda8] ss:$16 sps:$4 sm:$0xff]  }
  0x9b   :  { %1720 = vmatpush1.bf16.msra.mxu0 %v14616_v34  ;;  %1884 = vmatpush1.bf16.msra.mxu1 %v14619_v35  ;;  %v14716_v34 = vld [vmem:[%s21923_s1 + $0xdc4] ss:$16 sps:$4 sm:$0xff]   ;;  %v14719_v35 = vld [vmem:[%s21923_s1 + $0xdcc] ss:$16 sps:$4 sm:$0xff]  }
  0x9c   :  { %1721 = vmatprep.subr.bf16.mxu0 %v14624_v36  ;;  %1885 = vmatprep.subr.bf16.mxu1 %v14627_v37  ;;  %v14714_v36 = vld [vmem:[%s21923_s1 + $0xdc0] ss:$16 sps:$4 sm:$0xff]   ;;  %v14717_v37 = vld [vmem:[%s21923_s1 + $0xdc8] ss:$16 sps:$4 sm:$0xff]  }
  0x9f   :  { %1722 = vmatpush1.bf16.msra.mxu0 %v14622_v38  ;;  %1886 = vmatpush1.bf16.msra.mxu1 %v14625_v39  ;;  %v14722_v38 = vld [vmem:[%s21923_s1 + $0xde4] ss:$16 sps:$4 sm:$0xff]   ;;  %v14725_v39 = vld [vmem:[%s21923_s1 + $0xdec] ss:$16 sps:$4 sm:$0xff]  }
  0xa0   :  { %1723 = vmatprep.subr.bf16.mxu0 %v14630_v40  ;;  %1887 = vmatprep.subr.bf16.mxu1 %v14633_v41  ;;  %v14720_v40 = vld [vmem:[%s21923_s1 + $0xde0] ss:$16 sps:$4 sm:$0xff]   ;;  %v14723_v41 = vld [vmem:[%s21923_s1 + $0xde8] ss:$16 sps:$4 sm:$0xff]  }
  0xa3   :  { %1724 = vmatpush1.bf16.msra.mxu0 %v14628_v42  ;;  %1888 = vmatpush1.bf16.msra.mxu1 %v14631_v43  ;;  %v14728_v42 = vld [vmem:[%s21923_s1 + $0x4] ss:$16 sps:$4 sm:$0xff]   ;;  %v14731_v43 = vld [vmem:[%s21923_s1 + $0xc] ss:$16 sps:$4 sm:$0xff]  }
  0xa4   :  { %1725 = vmatprep.subr.bf16.mxu0 %v14636_v44  ;;  %1889 = vmatprep.subr.bf16.mxu1 %v14639_v45  ;;  %v14732_v44 = vld [vmem:[%s21924_s0 + $0x34] ss:$0 sps:$4 sm:$0xff]   ;;  %v17572_v45 = vld [vmem:[%s21924_s0] sm:$0xff] }
  0xa7   :  { %1726 = vmatpush1.bf16.msra.mxu0 %v14634_v46  ;;  %1890 = vmatpush1.bf16.msra.mxu1 %v14637_v47  ;;  %v14726_v46 = vld [vmem:[%s21923_s1] ss:$16 sps:$4 sm:$0xff]   ;;  %v14729_v47 = vld [vmem:[%s21923_s1 + $0x8] ss:$16 sps:$4 sm:$0xff]  }
  0xa8   :  { %1727 = vmatprep.subr.bf16.mxu0 %v14642_v48  ;;  %1891 = vmatprep.subr.bf16.mxu1 %v14645_v49  ;;  %v14735_v48 = vld [vmem:[%s21923_s1 + $0x24] ss:$16 sps:$4 sm:$0xff]   ;;  %v14738_v49 = vld [vmem:[%s21923_s1 + $0x2c] ss:$16 sps:$4 sm:$0xff]  }
  0xab   :  { %1728 = vmatpush1.bf16.msra.mxu0 %v14640_v50  ;;  %1892 = vmatpush1.bf16.msra.mxu1 %v14643_v51  ;;  %v12705_v50 = vcombine.high %v17572_v45, %v17572_v45  ;;  %v14733_v51 = vld [vmem:[%s21923_s1 + $0x20] ss:$16 sps:$4 sm:$0xff]  }
  0xac   :  { %1729 = vmatprep.subr.bf16.mxu0 %v14648_v52  ;;  %1893 = vmatprep.subr.bf16.mxu1 %v14651_v53  ;;  %v14736_v52 = vld [vmem:[%s21923_s1 + $0x28] ss:$16 sps:$4 sm:$0xff]   ;;  %v14741_v53 = vld [vmem:[%s21923_s1 + $0x44] ss:$16 sps:$4 sm:$0xff]  }
  0xaf   :  { %1730 = vmatpush1.bf16.msra.mxu0 %v14646_v54  ;;  %1894 = vmatpush1.bf16.msra.mxu1 %v14649_v55  ;;  %v14744_v54 = vld [vmem:[%s21923_s1 + $0x4c] ss:$16 sps:$4 sm:$0xff]   ;;  %v14739_v55 = vld [vmem:[%s21923_s1 + $0x40] ss:$16 sps:$4 sm:$0xff]  }
  0xb0   :  { %1731 = vmatprep.subr.bf16.mxu0 %v14654_v56  ;;  %1895 = vmatprep.subr.bf16.mxu1 %v14657_v57  ;;  %v14742_v56 = vld [vmem:[%s21923_s1 + $0x48] ss:$16 sps:$4 sm:$0xff]   ;;  %v14747_v57 = vld [vmem:[%s21923_s1 + $0x64] ss:$16 sps:$4 sm:$0xff]  }
  0xb3   :  { %1732 = vmatpush1.bf16.msra.mxu0 %v14652_v58  ;;  %1896 = vmatpush1.bf16.msra.mxu1 %v14655_v59  ;;  %v14750_v58 = vld [vmem:[%s21923_s1 + $0x6c] ss:$16 sps:$4 sm:$0xff]   ;;  %v14745_v59 = vld [vmem:[%s21923_s1 + $0x60] ss:$16 sps:$4 sm:$0xff]  }
  0xb4   :  { %1733 = vmatprep.subr.bf16.mxu0 %v14660_v60  ;;  %1897 = vmatprep.subr.bf16.mxu1 %v14663_v61  ;;  %v14748_v60 = vld [vmem:[%s21923_s1 + $0x68] ss:$16 sps:$4 sm:$0xff]   ;;  %v14753_v61 = vld [vmem:[%s21923_s1 + $0x84] ss:$16 sps:$4 sm:$0xff]  }
  0xb7   :  { %1734 = vmatpush1.bf16.msra.mxu0 %v14658_v62  ;;  %1898 = vmatpush1.bf16.msra.mxu1 %v14661_v63  ;;  %v14756_v62 = vld [vmem:[%s21923_s1 + $0x8c] ss:$16 sps:$4 sm:$0xff]   ;;  %v14751_v63 = vld [vmem:[%s21923_s1 + $0x80] ss:$16 sps:$4 sm:$0xff]  }
  0xb8   :  { %1735 = vmatprep.subr.bf16.mxu0 %v14666_v0  ;;  %1899 = vmatprep.subr.bf16.mxu1 %v14669_v1  ;;  %v14754_v0 = vld [vmem:[%s21923_s1 + $0x88] ss:$16 sps:$4 sm:$0xff]   ;;  %v14759_v1 = vld [vmem:[%s21923_s1 + $0xa4] ss:$16 sps:$4 sm:$0xff]  }
  0xbb   :  { %1736 = vmatpush1.bf16.msra.mxu0 %v14664_v2  ;;  %1900 = vmatpush1.bf16.msra.mxu1 %v14667_v3  ;;  %v14762_v2 = vld [vmem:[%s21923_s1 + $0xac] ss:$16 sps:$4 sm:$0xff]   ;;  %v14757_v3 = vld [vmem:[%s21923_s1 + $0xa0] ss:$16 sps:$4 sm:$0xff]  }
  0xbc   :  { %1737 = vmatprep.subr.bf16.mxu0 %v14672_v4  ;;  %1901 = vmatprep.subr.bf16.mxu1 %v14675_v5  ;;  %v14760_v4 = vld [vmem:[%s21923_s1 + $0xa8] ss:$16 sps:$4 sm:$0xff]   ;;  %v14765_v5 = vld [vmem:[%s21923_s1 + $0xc4] ss:$16 sps:$4 sm:$0xff]  }
  0xbf   :  { %1738 = vmatpush1.bf16.msra.mxu0 %v14670_v6  ;;  %1902 = vmatpush1.bf16.msra.mxu1 %v14673_v7  ;;  %v14768_v6 = vld [vmem:[%s21923_s1 + $0xcc] ss:$16 sps:$4 sm:$0xff]   ;;  %v14763_v7 = vld [vmem:[%s21923_s1 + $0xc0] ss:$16 sps:$4 sm:$0xff]  }
  0xc0   :  { %1748 = vmatprep.subr.bf16.mxu0 %v14680_v8  ;;  %1912 = vmatprep.subr.bf16.mxu1 %v14683_v9  ;;  %v14766_v8 = vld [vmem:[%s21923_s1 + $0xc8] ss:$16 sps:$4 sm:$0xff]   ;;  %v14771_v9 = vld [vmem:[%s21923_s1 + $0xe4] ss:$16 sps:$4 sm:$0xff]  }
  0xc2   :  { %1740 = vmatmul.mubr.bf16.vlgmr.msra.gmra.mrb[0].mxu0 %v12477_v10  ;;  %1904 = vmatmul.mubr.bf16.vlgmr.msra.gmra.mrb[0].mxu1 %v12477_v10  ;;  %v14774_v10 = vld [vmem:[%s21923_s1 + $0xec] ss:$16 sps:$4 sm:$0xff]  }
  0xc3   :  { %1749 = vmatpush1.bf16.msra.mxu0 %v14678_v12  ;;  %1913 = vmatpush1.bf16.msra.mxu1 %v14681_v13  ;;  %v14769_v12 = vld [vmem:[%s21923_s1 + $0xe0] ss:$16 sps:$4 sm:$0xff]   ;;  %v14772_v13 = vld [vmem:[%s21923_s1 + $0xe8] ss:$16 sps:$4 sm:$0xff]  }
  0xc4   :  { %1750 = vmatprep.subr.bf16.mxu0 %v14686_v14  ;;  %1914 = vmatprep.subr.bf16.mxu1 %v14689_v11  ;;  %v14777_v14 = vld [vmem:[%s21923_s1 + $0x104] ss:$16 sps:$4 sm:$0xff]   ;;  %v14780_v11 = vld [vmem:[%s21923_s1 + $0x10c] ss:$16 sps:$4 sm:$0xff]  }
  0xc5   :  { %1780 = vmatprep.mubr.bf16.mxu0 %v16829_v19  ;;  %1944 = vmatprep.mubr.bf16.mxu1 %v16829_v19 }
  0xc7   :  { %1751 = vmatpush1.bf16.msra.mxu0 %v14684_v15  ;;  %1915 = vmatpush1.bf16.msra.mxu1 %v14687_v16  ;;  %v14775_v15 = vld [vmem:[%s21923_s1 + $0x100] ss:$16 sps:$4 sm:$0xff]   ;;  %v14778_v16 = vld [vmem:[%s21923_s1 + $0x108] ss:$16 sps:$4 sm:$0xff]  }
  0xc8   :  { %1752 = vmatprep.subr.bf16.mxu0 %v14692_v17  ;;  %1916 = vmatprep.subr.bf16.mxu1 %v14695_v18  ;;  %v14783_v17 = vld [vmem:[%s21923_s1 + $0x124] ss:$16 sps:$4 sm:$0xff]   ;;  %v14786_v18 = vld [vmem:[%s21923_s1 + $0x12c] ss:$16 sps:$4 sm:$0xff]  }
  0xcb   :  { %1753 = vmatpush1.bf16.msra.mxu0 %v14690_v20  ;;  %1917 = vmatpush1.bf16.msra.mxu1 %v14693_v21  ;;  %v14781_v20 = vld [vmem:[%s21923_s1 + $0x120] ss:$16 sps:$4 sm:$0xff]   ;;  %v14784_v21 = vld [vmem:[%s21923_s1 + $0x128] ss:$16 sps:$4 sm:$0xff]  }
  0xcc   :  { %1754 = vmatprep.subr.bf16.mxu0 %v14698_v22  ;;  %1918 = vmatprep.subr.bf16.mxu1 %v14701_v23  ;;  %v14789_v22 = vld [vmem:[%s21923_s1 + $0x144] ss:$16 sps:$4 sm:$0xff]   ;;  %v14792_v23 = vld [vmem:[%s21923_s1 + $0x14c] ss:$16 sps:$4 sm:$0xff]  }
  0xcf   :  { %1755 = vmatpush1.bf16.msra.mxu0 %v14696_v24  ;;  %1919 = vmatpush1.bf16.msra.mxu1 %v14699_v25  ;;  %v14787_v24 = vld [vmem:[%s21923_s1 + $0x140] ss:$16 sps:$4 sm:$0xff]   ;;  %v14790_v25 = vld [vmem:[%s21923_s1 + $0x148] ss:$16 sps:$4 sm:$0xff]  }
  0xd0   :  { %1756 = vmatprep.subr.bf16.mxu0 %v14704_v26  ;;  %1920 = vmatprep.subr.bf16.mxu1 %v14707_v27  ;;  %v14795_v26 = vld [vmem:[%s21923_s1 + $0x164] ss:$16 sps:$4 sm:$0xff]   ;;  %v14798_v27 = vld [vmem:[%s21923_s1 + $0x16c] ss:$16 sps:$4 sm:$0xff]  }
  0xd3   :  { %1757 = vmatpush1.bf16.msra.mxu0 %v14702_v28  ;;  %1921 = vmatpush1.bf16.msra.mxu1 %v14705_v29  ;;  %v14793_v28 = vld [vmem:[%s21923_s1 + $0x160] ss:$16 sps:$4 sm:$0xff]   ;;  %v14796_v29 = vld [vmem:[%s21923_s1 + $0x168] ss:$16 sps:$4 sm:$0xff]  }
  0xd4   :  { %1758 = vmatprep.subr.bf16.mxu0 %v14710_v30  ;;  %1922 = vmatprep.subr.bf16.mxu1 %v14713_v31  ;;  %v14801_v30 = vld [vmem:[%s21923_s1 + $0x184] ss:$16 sps:$4 sm:$0xff]   ;;  %v14804_v31 = vld [vmem:[%s21923_s1 + $0x18c] ss:$16 sps:$4 sm:$0xff]  }
  0xd7   :  { %1759 = vmatpush1.bf16.msra.mxu0 %v14708_v32  ;;  %1923 = vmatpush1.bf16.msra.mxu1 %v14711_v33  ;;  %v14799_v32 = vld [vmem:[%s21923_s1 + $0x180] ss:$16 sps:$4 sm:$0xff]   ;;  %v14802_v33 = vld [vmem:[%s21923_s1 + $0x188] ss:$16 sps:$4 sm:$0xff]  }
  0xd8   :  { %1760 = vmatprep.subr.bf16.mxu0 %v14716_v34  ;;  %1924 = vmatprep.subr.bf16.mxu1 %v14719_v35  ;;  %v14807_v34 = vld [vmem:[%s21923_s1 + $0x1a4] ss:$16 sps:$4 sm:$0xff]   ;;  %v14810_v35 = vld [vmem:[%s21923_s1 + $0x1ac] ss:$16 sps:$4 sm:$0xff]  }
  0xdb   :  { %1761 = vmatpush1.bf16.msra.mxu0 %v14714_v36  ;;  %1925 = vmatpush1.bf16.msra.mxu1 %v14717_v37  ;;  %v14805_v36 = vld [vmem:[%s21923_s1 + $0x1a0] ss:$16 sps:$4 sm:$0xff]   ;;  %v14808_v37 = vld [vmem:[%s21923_s1 + $0x1a8] ss:$16 sps:$4 sm:$0xff]  }
  0xdc   :  { %1762 = vmatprep.subr.bf16.mxu0 %v14722_v38  ;;  %1926 = vmatprep.subr.bf16.mxu1 %v14725_v39  ;;  %v14813_v38 = vld [vmem:[%s21923_s1 + $0x1c4] ss:$16 sps:$4 sm:$0xff]   ;;  %v14816_v39 = vld [vmem:[%s21923_s1 + $0x1cc] ss:$16 sps:$4 sm:$0xff]  }
  0xdf   :  { %1763 = vmatpush1.bf16.msra.mxu0 %v14720_v40  ;;  %1927 = vmatpush1.bf16.msra.mxu1 %v14723_v41  ;;  %v14811_v40 = vld [vmem:[%s21923_s1 + $0x1c0] ss:$16 sps:$4 sm:$0xff]   ;;  %v14814_v41 = vld [vmem:[%s21923_s1 + $0x1c8] ss:$16 sps:$4 sm:$0xff]  }
  0xe0   :  { %3098 = vmatprep.subr.bf16.mxu0 %v14728_v42  ;;  %3262 = vmatprep.subr.bf16.mxu1 %v14731_v43  ;;  %v14819_v42 = vld [vmem:[%s21923_s1 + $0x1e4] ss:$16 sps:$4 sm:$0xff]   ;;  %v14822_v43 = vld [vmem:[%s21923_s1 + $0x1ec] ss:$16 sps:$4 sm:$0xff]  }
  0xe2   :  { %1781 = vmatmul.mubr.bf16.vlgmr.msra.gmra.mrb[0].mxu0 %v14732_v44  ;;  %1945 = vmatmul.mubr.bf16.vlgmr.msra.gmra.mrb[0].mxu1 %v14732_v44  ;;  %v14817_v44 = vld [vmem:[%s21923_s1 + $0x1e0] ss:$16 sps:$4 sm:$0xff]  }
  0xe3   :  { %3099 = vmatpush1.bf16.msra.mxu0 %v14726_v46  ;;  %3263 = vmatpush1.bf16.msra.mxu1 %v14729_v47  ;;  %v14820_v46 = vld [vmem:[%s21923_s1 + $0x1e8] ss:$16 sps:$4 sm:$0xff]   ;;  %v14827_v47 = vld [vmem:[%s21923_s1 + $0x204] ss:$16 sps:$4 sm:$0xff]  }
  0xe4   :  { %3100 = vmatprep.subr.bf16.mxu0 %v14735_v48  ;;  %3264 = vmatprep.subr.bf16.mxu1 %v14738_v49  ;;  %v14830_v48 = vld [vmem:[%s21923_s1 + $0x20c] ss:$16 sps:$4 sm:$0xff]  }
  0xe5   :  { %3130 = vmatprep.mubr.bf16.mxu0 %v12705_v50  ;;  %3294 = vmatprep.mubr.bf16.mxu1 %v12705_v50  ;;  %v17771_v49 = vld [vmem:[%s21924_s0 + $0x8] sm:$0xff]  ;;  %v12704_v50 = vcombine.low %v17572_v45, %v17572_v45 }
  0xe6   :  { %v14836_v45 = vld [vmem:[%s21923_s1 + $0x22c] ss:$16 sps:$4 sm:$0xff]  }
  0xe7   :  { %3101 = vmatpush1.bf16.msra.mxu0 %v14733_v51  ;;  %3265 = vmatpush1.bf16.msra.mxu1 %v14736_v52  ;;  %v14825_v51 = vld [vmem:[%s21923_s1 + $0x200] ss:$16 sps:$4 sm:$0xff]   ;;  %v14828_v52 = vld [vmem:[%s21923_s1 + $0x208] ss:$16 sps:$4 sm:$0xff]  }
  0xe8   :  { %3102 = vmatprep.subr.bf16.mxu0 %v14741_v53  ;;  %3266 = vmatprep.subr.bf16.mxu1 %v14744_v54  ;;  %v14833_v53 = vld [vmem:[%s21923_s1 + $0x224] ss:$16 sps:$4 sm:$0xff]   ;;  %v12707_v54 = vcombine.high %v17771_v49, %v17771_v49 }
  0xeb   :  { %3103 = vmatpush1.bf16.msra.mxu0 %v14739_v55  ;;  %3267 = vmatpush1.bf16.msra.mxu1 %v14742_v56  ;;  %v14831_v55 = vld [vmem:[%s21923_s1 + $0x220] ss:$16 sps:$4 sm:$0xff]   ;;  %v14834_v56 = vld [vmem:[%s21923_s1 + $0x228] ss:$16 sps:$4 sm:$0xff]  }
  0xec   :  { %3104 = vmatprep.subr.bf16.mxu0 %v14747_v57  ;;  %3268 = vmatprep.subr.bf16.mxu1 %v14750_v58  ;;  %v14839_v57 = vld [vmem:[%s21923_s1 + $0x244] ss:$16 sps:$4 sm:$0xff]   ;;  %v14842_v58 = vld [vmem:[%s21923_s1 + $0x24c] ss:$16 sps:$4 sm:$0xff]  }
  0xef   :  { %3105 = vmatpush1.bf16.msra.mxu0 %v14745_v59  ;;  %3269 = vmatpush1.bf16.msra.mxu1 %v14748_v60  ;;  %v14837_v59 = vld [vmem:[%s21923_s1 + $0x240] ss:$16 sps:$4 sm:$0xff]   ;;  %v14840_v60 = vld [vmem:[%s21923_s1 + $0x248] ss:$16 sps:$4 sm:$0xff]  }
  0xf0   :  { %3106 = vmatprep.subr.bf16.mxu0 %v14753_v61  ;;  %3270 = vmatprep.subr.bf16.mxu1 %v14756_v62  ;;  %v14845_v61 = vld [vmem:[%s21923_s1 + $0x264] ss:$16 sps:$4 sm:$0xff]   ;;  %v14848_v62 = vld [vmem:[%s21923_s1 + $0x26c] ss:$16 sps:$4 sm:$0xff]  }
  0xf3   :  { %3107 = vmatpush1.bf16.msra.mxu0 %v14751_v63  ;;  %3271 = vmatpush1.bf16.msra.mxu1 %v14754_v0  ;;  %v14843_v63 = vld [vmem:[%s21923_s1 + $0x260] ss:$16 sps:$4 sm:$0xff]   ;;  %v14846_v0 = vld [vmem:[%s21923_s1 + $0x268] ss:$16 sps:$4 sm:$0xff]  }
  0xf4   :  { %3108 = vmatprep.subr.bf16.mxu0 %v14759_v1  ;;  %3272 = vmatprep.subr.bf16.mxu1 %v14762_v2  ;;  %v14851_v1 = vld [vmem:[%s21923_s1 + $0x284] ss:$16 sps:$4 sm:$0xff]   ;;  %v14854_v2 = vld [vmem:[%s21923_s1 + $0x28c] ss:$16 sps:$4 sm:$0xff]  }
  0xf7   :  { %3109 = vmatpush1.bf16.msra.mxu0 %v14757_v3  ;;  %3273 = vmatpush1.bf16.msra.mxu1 %v14760_v4  ;;  %v14849_v3 = vld [vmem:[%s21923_s1 + $0x280] ss:$16 sps:$4 sm:$0xff]   ;;  %v14852_v4 = vld [vmem:[%s21923_s1 + $0x288] ss:$16 sps:$4 sm:$0xff]  }
  0xf8   :  { %3110 = vmatprep.subr.bf16.mxu0 %v14765_v5  ;;  %3274 = vmatprep.subr.bf16.mxu1 %v14768_v6  ;;  %v14857_v5 = vld [vmem:[%s21923_s1 + $0x2a4] ss:$16 sps:$4 sm:$0xff]   ;;  %v14860_v6 = vld [vmem:[%s21923_s1 + $0x2ac] ss:$16 sps:$4 sm:$0xff]  }
  0xfb   :  { %3111 = vmatpush1.bf16.msra.mxu0 %v14763_v7  ;;  %3275 = vmatpush1.bf16.msra.mxu1 %v14766_v8  ;;  %v14855_v7 = vld [vmem:[%s21923_s1 + $0x2a0] ss:$16 sps:$4 sm:$0xff]   ;;  %v14858_v8 = vld [vmem:[%s21923_s1 + $0x2a8] ss:$16 sps:$4 sm:$0xff]  }
  0xfc   :  { %3112 = vmatprep.subr.bf16.mxu0 %v14771_v9  ;;  %3276 = vmatprep.subr.bf16.mxu1 %v14774_v10  ;;  %v14863_v9 = vld [vmem:[%s21923_s1 + $0x2c4] ss:$16 sps:$4 sm:$0xff]   ;;  %v14866_v10 = vld [vmem:[%s21923_s1 + $0x2cc] ss:$16 sps:$4 sm:$0xff]  }
  0xff   :  { %3113 = vmatpush1.bf16.msra.mxu0 %v14769_v12  ;;  %3277 = vmatpush1.bf16.msra.mxu1 %v14772_v13  ;;  %v14861_v12 = vld [vmem:[%s21923_s1 + $0x2c0] ss:$16 sps:$4 sm:$0xff]   ;;  %v14864_v13 = vld [vmem:[%s21923_s1 + $0x2c8] ss:$16 sps:$4 sm:$0xff]  }
 0x100   :  { %3114 = vmatprep.subr.bf16.mxu0 %v14777_v14  ;;  %3278 = vmatprep.subr.bf16.mxu1 %v14780_v11  ;;  %v14869_v14 = vld [vmem:[%s21923_s1 + $0x2e4] ss:$16 sps:$4 sm:$0xff]   ;;  %v14872_v11 = vld [vmem:[%s21923_s1 + $0x2ec] ss:$16 sps:$4 sm:$0xff]  }
 0x103   :  { %3115 = vmatpush1.bf16.msra.mxu0 %v14775_v15  ;;  %3279 = vmatpush1.bf16.msra.mxu1 %v14778_v16  ;;  %v14867_v15 = vld [vmem:[%s21923_s1 + $0x2e0] ss:$16 sps:$4 sm:$0xff]   ;;  %v14870_v16 = vld [vmem:[%s21923_s1 + $0x2e8] ss:$16 sps:$4 sm:$0xff]  }
 0x104   :  { %3116 = vmatprep.subr.bf16.mxu0 %v14783_v17  ;;  %3280 = vmatprep.subr.bf16.mxu1 %v14786_v18  ;;  %v14875_v17 = vld [vmem:[%s21923_s1 + $0x304] ss:$16 sps:$4 sm:$0xff]   ;;  %v14878_v18 = vld [vmem:[%s21923_s1 + $0x30c] ss:$16 sps:$4 sm:$0xff]  }
 0x107   :  { %3117 = vmatpush1.bf16.msra.mxu0 %v14781_v20  ;;  %3281 = vmatpush1.bf16.msra.mxu1 %v14784_v21  ;;  %v14873_v20 = vld [vmem:[%s21923_s1 + $0x300] ss:$16 sps:$4 sm:$0xff]   ;;  %v14876_v21 = vld [vmem:[%s21923_s1 + $0x308] ss:$16 sps:$4 sm:$0xff]  }
 0x108   :  { %3118 = vmatprep.subr.bf16.mxu0 %v14789_v22  ;;  %3282 = vmatprep.subr.bf16.mxu1 %v14792_v23  ;;  %v14881_v22 = vld [vmem:[%s21923_s1 + $0x324] ss:$16 sps:$4 sm:$0xff]   ;;  %v14884_v23 = vld [vmem:[%s21923_s1 + $0x32c] ss:$16 sps:$4 sm:$0xff]  }
 0x10b   :  { %3119 = vmatpush1.bf16.msra.mxu0 %v14787_v24  ;;  %3283 = vmatpush1.bf16.msra.mxu1 %v14790_v25  ;;  %v14879_v24 = vld [vmem:[%s21923_s1 + $0x320] ss:$16 sps:$4 sm:$0xff]   ;;  %v14882_v25 = vld [vmem:[%s21923_s1 + $0x328] ss:$16 sps:$4 sm:$0xff]  }
 0x10c   :  { %3120 = vmatprep.subr.bf16.mxu0 %v14795_v26  ;;  %3284 = vmatprep.subr.bf16.mxu1 %v14798_v27  ;;  %v14887_v26 = vld [vmem:[%s21923_s1 + $0x344] ss:$16 sps:$4 sm:$0xff]   ;;  %v14890_v27 = vld [vmem:[%s21923_s1 + $0x34c] ss:$16 sps:$4 sm:$0xff]  }
 0x10f   :  { %3121 = vmatpush1.bf16.msra.mxu0 %v14793_v28  ;;  %3285 = vmatpush1.bf16.msra.mxu1 %v14796_v29  ;;  %v14885_v28 = vld [vmem:[%s21923_s1 + $0x340] ss:$16 sps:$4 sm:$0xff]   ;;  %v14888_v29 = vld [vmem:[%s21923_s1 + $0x348] ss:$16 sps:$4 sm:$0xff]  }
 0x110   :  { %3122 = vmatprep.subr.bf16.mxu0 %v14801_v30  ;;  %3286 = vmatprep.subr.bf16.mxu1 %v14804_v31  ;;  %v14893_v30 = vld [vmem:[%s21923_s1 + $0x364] ss:$16 sps:$4 sm:$0xff]   ;;  %v14896_v31 = vld [vmem:[%s21923_s1 + $0x36c] ss:$16 sps:$4 sm:$0xff]  }
 0x113   :  { %3123 = vmatpush1.bf16.msra.mxu0 %v14799_v32  ;;  %3287 = vmatpush1.bf16.msra.mxu1 %v14802_v33  ;;  %v14891_v32 = vld [vmem:[%s21923_s1 + $0x360] ss:$16 sps:$4 sm:$0xff]   ;;  %v14894_v33 = vld [vmem:[%s21923_s1 + $0x368] ss:$16 sps:$4 sm:$0xff]  }
 0x114   :  { %3124 = vmatprep.subr.bf16.mxu0 %v14807_v34  ;;  %3288 = vmatprep.subr.bf16.mxu1 %v14810_v35  ;;  %v14899_v34 = vld [vmem:[%s21923_s1 + $0x384] ss:$16 sps:$4 sm:$0xff]   ;;  %v14902_v35 = vld [vmem:[%s21923_s1 + $0x38c] ss:$16 sps:$4 sm:$0xff]  }
 0x117   :  { %3125 = vmatpush1.bf16.msra.mxu0 %v14805_v36  ;;  %3289 = vmatpush1.bf16.msra.mxu1 %v14808_v37  ;;  %v14897_v36 = vld [vmem:[%s21923_s1 + $0x380] ss:$16 sps:$4 sm:$0xff]   ;;  %v14900_v37 = vld [vmem:[%s21923_s1 + $0x388] ss:$16 sps:$4 sm:$0xff]  }
 0x118   :  { %3126 = vmatprep.subr.bf16.mxu0 %v14813_v38  ;;  %3290 = vmatprep.subr.bf16.mxu1 %v14816_v39  ;;  %v14905_v38 = vld [vmem:[%s21923_s1 + $0x3a4] ss:$16 sps:$4 sm:$0xff]   ;;  %v14908_v39 = vld [vmem:[%s21923_s1 + $0x3ac] ss:$16 sps:$4 sm:$0xff]  }
 0x11b   :  { %3127 = vmatpush1.bf16.msra.mxu0 %v14811_v40  ;;  %3291 = vmatpush1.bf16.msra.mxu1 %v14814_v41  ;;  %v14903_v40 = vld [vmem:[%s21923_s1 + $0x3a0] ss:$16 sps:$4 sm:$0xff]   ;;  %v14906_v41 = vld [vmem:[%s21923_s1 + $0x3a8] ss:$16 sps:$4 sm:$0xff]  }
 0x11c   :  { %3128 = vmatprep.subr.bf16.mxu0 %v14819_v42  ;;  %3292 = vmatprep.subr.bf16.mxu1 %v14822_v43  ;;  %v14911_v42 = vld [vmem:[%s21923_s1 + $0x3c4] ss:$16 sps:$4 sm:$0xff]   ;;  %v14914_v43 = vld [vmem:[%s21923_s1 + $0x3cc] ss:$16 sps:$4 sm:$0xff]  }
 0x11f   :  { %3129 = vmatpush1.bf16.msra.mxu0 %v14817_v44  ;;  %3293 = vmatpush1.bf16.msra.mxu1 %v14820_v46  ;;  %v14909_v44 = vld [vmem:[%s21923_s1 + $0x3c0] ss:$16 sps:$4 sm:$0xff]   ;;  %v14912_v46 = vld [vmem:[%s21923_s1 + $0x3c8] ss:$16 sps:$4 sm:$0xff]  }
 0x120   :  { %3139 = vmatprep.subr.bf16.mxu0 %v14827_v47  ;;  %3303 = vmatprep.subr.bf16.mxu1 %v14830_v48  ;;  %v14917_v47 = vld [vmem:[%s21923_s1 + $0x3e4] ss:$16 sps:$4 sm:$0xff]   ;;  %v14920_v48 = vld [vmem:[%s21923_s1 + $0x3ec] ss:$16 sps:$4 sm:$0xff]  }
 0x122   :  { %3131 = vmatmul.mubr.bf16.vlgmr.msra.gmra.mrb[0].mxu0 %v12704_v50  ;;  %3295 = vmatmul.mubr.bf16.vlgmr.msra.gmra.mrb[0].mxu1 %v12704_v50  ;;  %v14915_v50 = vld [vmem:[%s21923_s1 + $0x3e0] ss:$16 sps:$4 sm:$0xff]  }
 0x123   :  { %3140 = vmatpush1.bf16.msra.mxu0 %v14825_v51  ;;  %3304 = vmatpush1.bf16.msra.mxu1 %v14828_v52  ;;  %v14918_v51 = vld [vmem:[%s21923_s1 + $0x3e8] ss:$16 sps:$4 sm:$0xff]   ;;  %v14925_v52 = vld [vmem:[%s21923_s1 + $0x404] ss:$16 sps:$4 sm:$0xff]  }
 0x124   :  { %3141 = vmatprep.subr.bf16.mxu0 %v14833_v53  ;;  %3305 = vmatprep.subr.bf16.mxu1 %v14836_v45  ;;  %v14928_v53 = vld [vmem:[%s21923_s1 + $0x40c] ss:$16 sps:$4 sm:$0xff]   ;;  %v17972_v45 = vld [vmem:[%s21924_s0 + $0x10] sm:$0xff] }
 0x125   :  { %3171 = vmatprep.mubr.bf16.mxu0 %v12707_v54  ;;  %3335 = vmatprep.mubr.bf16.mxu1 %v12707_v54  ;;  %v12706_v54 = vcombine.low %v17771_v49, %v17771_v49  ;;  %v14934_v49 = vld [vmem:[%s21923_s1 + $0x42c] ss:$16 sps:$4 sm:$0xff]  }
 0x127   :  { %3142 = vmatpush1.bf16.msra.mxu0 %v14831_v55  ;;  %3306 = vmatpush1.bf16.msra.mxu1 %v14834_v56  ;;  %v14923_v55 = vld [vmem:[%s21923_s1 + $0x400] ss:$16 sps:$4 sm:$0xff]   ;;  %v14926_v56 = vld [vmem:[%s21923_s1 + $0x408] ss:$16 sps:$4 sm:$0xff]  }
 0x128   :  { %3143 = vmatprep.subr.bf16.mxu0 %v14839_v57  ;;  %3307 = vmatprep.subr.bf16.mxu1 %v14842_v58  ;;  %v14931_v57 = vld [vmem:[%s21923_s1 + $0x424] ss:$16 sps:$4 sm:$0xff]   ;;  %v12709_v58 = vcombine.high %v17972_v45, %v17972_v45 }
 0x12b   :  { %3144 = vmatpush1.bf16.msra.mxu0 %v14837_v59  ;;  %3308 = vmatpush1.bf16.msra.mxu1 %v14840_v60  ;;  %v14929_v59 = vld [vmem:[%s21923_s1 + $0x420] ss:$16 sps:$4 sm:$0xff]   ;;  %v14932_v60 = vld [vmem:[%s21923_s1 + $0x428] ss:$16 sps:$4 sm:$0xff]  }
 0x12c   :  { %3145 = vmatprep.subr.bf16.mxu0 %v14845_v61  ;;  %3309 = vmatprep.subr.bf16.mxu1 %v14848_v62  ;;  %v14937_v61 = vld [vmem:[%s21923_s1 + $0x444] ss:$16 sps:$4 sm:$0xff]   ;;  %v14940_v62 = vld [vmem:[%s21923_s1 + $0x44c] ss:$16 sps:$4 sm:$0xff]  }
 0x12f   :  { %3146 = vmatpush1.bf16.msra.mxu0 %v14843_v63  ;;  %3310 = vmatpush1.bf16.msra.mxu1 %v14846_v0  ;;  %v14935_v63 = vld [vmem:[%s21923_s1 + $0x440] ss:$16 sps:$4 sm:$0xff]   ;;  %v14938_v0 = vld [vmem:[%s21923_s1 + $0x448] ss:$16 sps:$4 sm:$0xff]  }
 0x130   :  { %3147 = vmatprep.subr.bf16.mxu0 %v14851_v1  ;;  %3311 = vmatprep.subr.bf16.mxu1 %v14854_v2  ;;  %v14943_v1 = vld [vmem:[%s21923_s1 + $0x464] ss:$16 sps:$4 sm:$0xff]   ;;  %v14946_v2 = vld [vmem:[%s21923_s1 + $0x46c] ss:$16 sps:$4 sm:$0xff]  }
 0x133   :  { %3148 = vmatpush1.bf16.msra.mxu0 %v14849_v3  ;;  %3312 = vmatpush1.bf16.msra.mxu1 %v14852_v4  ;;  %v14941_v3 = vld [vmem:[%s21923_s1 + $0x460] ss:$16 sps:$4 sm:$0xff]   ;;  %v14944_v4 = vld [vmem:[%s21923_s1 + $0x468] ss:$16 sps:$4 sm:$0xff]  }
 0x134   :  { %3149 = vmatprep.subr.bf16.mxu0 %v14857_v5  ;;  %3313 = vmatprep.subr.bf16.mxu1 %v14860_v6  ;;  %v14949_v5 = vld [vmem:[%s21923_s1 + $0x484] ss:$16 sps:$4 sm:$0xff]   ;;  %v14952_v6 = vld [vmem:[%s21923_s1 + $0x48c] ss:$16 sps:$4 sm:$0xff]  }
 0x137   :  { %3150 = vmatpush1.bf16.msra.mxu0 %v14855_v7  ;;  %3314 = vmatpush1.bf16.msra.mxu1 %v14858_v8  ;;  %v14947_v7 = vld [vmem:[%s21923_s1 + $0x480] ss:$16 sps:$4 sm:$0xff]   ;;  %v14950_v8 = vld [vmem:[%s21923_s1 + $0x488] ss:$16 sps:$4 sm:$0xff]  }
 0x138   :  { %3151 = vmatprep.subr.bf16.mxu0 %v14863_v9  ;;  %3315 = vmatprep.subr.bf16.mxu1 %v14866_v10  ;;  %v14955_v9 = vld [vmem:[%s21923_s1 + $0x4a4] ss:$16 sps:$4 sm:$0xff]   ;;  %v14958_v10 = vld [vmem:[%s21923_s1 + $0x4ac] ss:$16 sps:$4 sm:$0xff]  }
 0x13b   :  { %3152 = vmatpush1.bf16.msra.mxu0 %v14861_v12  ;;  %3316 = vmatpush1.bf16.msra.mxu1 %v14864_v13  ;;  %v14953_v12 = vld [vmem:[%s21923_s1 + $0x4a0] ss:$16 sps:$4 sm:$0xff]   ;;  %v14956_v13 = vld [vmem:[%s21923_s1 + $0x4a8] ss:$16 sps:$4 sm:$0xff]  }
 0x13c   :  { %3153 = vmatprep.subr.bf16.mxu0 %v14869_v14  ;;  %3317 = vmatprep.subr.bf16.mxu1 %v14872_v11  ;;  %v14961_v14 = vld [vmem:[%s21923_s1 + $0x4c4] ss:$16 sps:$4 sm:$0xff]   ;;  %v14964_v11 = vld [vmem:[%s21923_s1 + $0x4cc] ss:$16 sps:$4 sm:$0xff]  }
 0x13f   :  { %3154 = vmatpush1.bf16.msra.mxu0 %v14867_v15  ;;  %3318 = vmatpush1.bf16.msra.mxu1 %v14870_v16  ;;  %v14959_v15 = vld [vmem:[%s21923_s1 + $0x4c0] ss:$16 sps:$4 sm:$0xff]   ;;  %v14962_v16 = vld [vmem:[%s21923_s1 + $0x4c8] ss:$16 sps:$4 sm:$0xff]  }
 0x140   :  { %3155 = vmatprep.subr.bf16.mxu0 %v14875_v17  ;;  %3319 = vmatprep.subr.bf16.mxu1 %v14878_v18  ;;  %v14967_v17 = vld [vmem:[%s21923_s1 + $0x4e4] ss:$16 sps:$4 sm:$0xff]   ;;  %v14970_v18 = vld [vmem:[%s21923_s1 + $0x4ec] ss:$16 sps:$4 sm:$0xff]  }
 0x143   :  { %3156 = vmatpush1.bf16.msra.mxu0 %v14873_v20  ;;  %3320 = vmatpush1.bf16.msra.mxu1 %v14876_v21  ;;  %v14965_v20 = vld [vmem:[%s21923_s1 + $0x4e0] ss:$16 sps:$4 sm:$0xff]   ;;  %v14968_v21 = vld [vmem:[%s21923_s1 + $0x4e8] ss:$16 sps:$4 sm:$0xff]  }
 0x144   :  { %3157 = vmatprep.subr.bf16.mxu0 %v14881_v22  ;;  %3321 = vmatprep.subr.bf16.mxu1 %v14884_v23  ;;  %v14973_v22 = vld [vmem:[%s21923_s1 + $0x504] ss:$16 sps:$4 sm:$0xff]   ;;  %v14976_v23 = vld [vmem:[%s21923_s1 + $0x50c] ss:$16 sps:$4 sm:$0xff]  }
 0x147   :  { %3158 = vmatpush1.bf16.msra.mxu0 %v14879_v24  ;;  %3322 = vmatpush1.bf16.msra.mxu1 %v14882_v25  ;;  %v14971_v24 = vld [vmem:[%s21923_s1 + $0x500] ss:$16 sps:$4 sm:$0xff]   ;;  %v14974_v25 = vld [vmem:[%s21923_s1 + $0x508] ss:$16 sps:$4 sm:$0xff]  }
 0x148   :  { %3159 = vmatprep.subr.bf16.mxu0 %v14887_v26  ;;  %3323 = vmatprep.subr.bf16.mxu1 %v14890_v27  ;;  %v14979_v26 = vld [vmem:[%s21923_s1 + $0x524] ss:$16 sps:$4 sm:$0xff]   ;;  %v14982_v27 = vld [vmem:[%s21923_s1 + $0x52c] ss:$16 sps:$4 sm:$0xff]  }
 0x14b   :  { %3160 = vmatpush1.bf16.msra.mxu0 %v14885_v28  ;;  %3324 = vmatpush1.bf16.msra.mxu1 %v14888_v29  ;;  %v14977_v28 = vld [vmem:[%s21923_s1 + $0x520] ss:$16 sps:$4 sm:$0xff]   ;;  %v14980_v29 = vld [vmem:[%s21923_s1 + $0x528] ss:$16 sps:$4 sm:$0xff]  }
 0x14c   :  { %3161 = vmatprep.subr.bf16.mxu0 %v14893_v30  ;;  %3325 = vmatprep.subr.bf16.mxu1 %v14896_v31  ;;  %v14985_v30 = vld [vmem:[%s21923_s1 + $0x544] ss:$16 sps:$4 sm:$0xff]   ;;  %v14988_v31 = vld [vmem:[%s21923_s1 + $0x54c] ss:$16 sps:$4 sm:$0xff]  }
 0x14f   :  { %3162 = vmatpush1.bf16.msra.mxu0 %v14891_v32  ;;  %3326 = vmatpush1.bf16.msra.mxu1 %v14894_v33  ;;  %v14983_v32 = vld [vmem:[%s21923_s1 + $0x540] ss:$16 sps:$4 sm:$0xff]   ;;  %v14986_v33 = vld [vmem:[%s21923_s1 + $0x548] ss:$16 sps:$4 sm:$0xff]  }
 0x150   :  { %3163 = vmatprep.subr.bf16.mxu0 %v14899_v34  ;;  %3327 = vmatprep.subr.bf16.mxu1 %v14902_v35  ;;  %v14991_v34 = vld [vmem:[%s21923_s1 + $0x564] ss:$16 sps:$4 sm:$0xff]   ;;  %v14994_v35 = vld [vmem:[%s21923_s1 + $0x56c] ss:$16 sps:$4 sm:$0xff]  }
 0x153   :  { %3164 = vmatpush1.bf16.msra.mxu0 %v14897_v36  ;;  %3328 = vmatpush1.bf16.msra.mxu1 %v14900_v37  ;;  %v14989_v36 = vld [vmem:[%s21923_s1 + $0x560] ss:$16 sps:$4 sm:$0xff]   ;;  %v14992_v37 = vld [vmem:[%s21923_s1 + $0x568] ss:$16 sps:$4 sm:$0xff]  }
 0x154   :  { %3165 = vmatprep.subr.bf16.mxu0 %v14905_v38  ;;  %3329 = vmatprep.subr.bf16.mxu1 %v14908_v39  ;;  %v14997_v38 = vld [vmem:[%s21923_s1 + $0x584] ss:$16 sps:$4 sm:$0xff]   ;;  %v15000_v39 = vld [vmem:[%s21923_s1 + $0x58c] ss:$16 sps:$4 sm:$0xff]  }
 0x157   :  { %3166 = vmatpush1.bf16.msra.mxu0 %v14903_v40  ;;  %3330 = vmatpush1.bf16.msra.mxu1 %v14906_v41  ;;  %v14995_v40 = vld [vmem:[%s21923_s1 + $0x580] ss:$16 sps:$4 sm:$0xff]   ;;  %v14998_v41 = vld [vmem:[%s21923_s1 + $0x588] ss:$16 sps:$4 sm:$0xff]  }
 0x158   :  { %3167 = vmatprep.subr.bf16.mxu0 %v14911_v42  ;;  %3331 = vmatprep.subr.bf16.mxu1 %v14914_v43  ;;  %v15003_v42 = vld [vmem:[%s21923_s1 + $0x5a4] ss:$16 sps:$4 sm:$0xff]   ;;  %v15006_v43 = vld [vmem:[%s21923_s1 + $0x5ac] ss:$16 sps:$4 sm:$0xff]  }
 0x15b   :  { %3168 = vmatpush1.bf16.msra.mxu0 %v14909_v44  ;;  %3332 = vmatpush1.bf16.msra.mxu1 %v14912_v46  ;;  %v15001_v44 = vld [vmem:[%s21923_s1 + $0x5a0] ss:$16 sps:$4 sm:$0xff]   ;;  %v15004_v46 = vld [vmem:[%s21923_s1 + $0x5a8] ss:$16 sps:$4 sm:$0xff]  }
 0x15c   :  { %3169 = vmatprep.subr.bf16.mxu0 %v14917_v47  ;;  %3333 = vmatprep.subr.bf16.mxu1 %v14920_v48  ;;  %v15009_v47 = vld [vmem:[%s21923_s1 + $0x5c4] ss:$16 sps:$4 sm:$0xff]   ;;  %v15012_v48 = vld [vmem:[%s21923_s1 + $0x5cc] ss:$16 sps:$4 sm:$0xff]  }
 0x15f   :  { %3170 = vmatpush1.bf16.msra.mxu0 %v14915_v50  ;;  %3334 = vmatpush1.bf16.msra.mxu1 %v14918_v51  ;;  %v15007_v50 = vld [vmem:[%s21923_s1 + $0x5c0] ss:$16 sps:$4 sm:$0xff]   ;;  %v15010_v51 = vld [vmem:[%s21923_s1 + $0x5c8] ss:$16 sps:$4 sm:$0xff]  }
 0x160   :  { %3180 = vmatprep.subr.bf16.mxu0 %v14925_v52  ;;  %3344 = vmatprep.subr.bf16.mxu1 %v14928_v53  ;;  %v15015_v52 = vld [vmem:[%s21923_s1 + $0x5e4] ss:$16 sps:$4 sm:$0xff]   ;;  %v15018_v53 = vld [vmem:[%s21923_s1 + $0x5ec] ss:$16 sps:$4 sm:$0xff]  }
 0x162   :  { %3172 = vmatmul.mubr.bf16.vlgmr.msra.gmra.mrb[0].mxu0 %v12706_v54  ;;  %3336 = vmatmul.mubr.bf16.vlgmr.msra.gmra.mrb[0].mxu1 %v12706_v54  ;;  %v15013_v54 = vld [vmem:[%s21923_s1 + $0x5e0] ss:$16 sps:$4 sm:$0xff]  }
 0x163   :  { %3181 = vmatpush1.bf16.msra.mxu0 %v14923_v55  ;;  %3345 = vmatpush1.bf16.msra.mxu1 %v14926_v56  ;;  %v15016_v55 = vld [vmem:[%s21923_s1 + $0x5e8] ss:$16 sps:$4 sm:$0xff]   ;;  %v15023_v56 = vld [vmem:[%s21923_s1 + $0x604] ss:$16 sps:$4 sm:$0xff]  }
 0x164   :  { %3182 = vmatprep.subr.bf16.mxu0 %v14931_v57  ;;  %3346 = vmatprep.subr.bf16.mxu1 %v14934_v49  ;;  %v15026_v57 = vld [vmem:[%s21923_s1 + $0x60c] ss:$16 sps:$4 sm:$0xff]   ;;  %v12708_v49 = vcombine.low %v17972_v45, %v17972_v45 }
 0x165   :  { %3212 = vmatprep.mubr.bf16.mxu0 %v12709_v58  ;;  %3376 = vmatprep.mubr.bf16.mxu1 %v12709_v58  ;;  %v15021_v58 = vld [vmem:[%s21923_s1 + $0x600] ss:$16 sps:$4 sm:$0xff]   ;;  %v15032_v45 = vld [vmem:[%s21923_s1 + $0x62c] ss:$16 sps:$4 sm:$0xff]  }
 0x167   :  { %3183 = vmatpush1.bf16.msra.mxu0 %v14929_v59  ;;  %3347 = vmatpush1.bf16.msra.mxu1 %v14932_v60  ;;  %v15024_v59 = vld [vmem:[%s21923_s1 + $0x608] ss:$16 sps:$4 sm:$0xff]   ;;  %v15029_v60 = vld [vmem:[%s21923_s1 + $0x624] ss:$16 sps:$4 sm:$0xff]  }
 0x168   :  { %3184 = vmatprep.subr.bf16.mxu0 %v14937_v61  ;;  %3348 = vmatprep.subr.bf16.mxu1 %v14940_v62  ;;  %v15027_v61 = vld [vmem:[%s21923_s1 + $0x620] ss:$16 sps:$4 sm:$0xff]   ;;  %v15030_v62 = vld [vmem:[%s21923_s1 + $0x628] ss:$16 sps:$4 sm:$0xff]  }
 0x16b   :  { %3185 = vmatpush1.bf16.msra.mxu0 %v14935_v63  ;;  %3349 = vmatpush1.bf16.msra.mxu1 %v14938_v0  ;;  %v15035_v63 = vld [vmem:[%s21923_s1 + $0x644] ss:$16 sps:$4 sm:$0xff]   ;;  %v15038_v0 = vld [vmem:[%s21923_s1 + $0x64c] ss:$16 sps:$4 sm:$0xff]  }
 0x16c   :  { %3186 = vmatprep.subr.bf16.mxu0 %v14943_v1  ;;  %3350 = vmatprep.subr.bf16.mxu1 %v14946_v2  ;;  %v15033_v1 = vld [vmem:[%s21923_s1 + $0x640] ss:$16 sps:$4 sm:$0xff]   ;;  %v15036_v2 = vld [vmem:[%s21923_s1 + $0x648] ss:$16 sps:$4 sm:$0xff]  }
 0x16f   :  { %3187 = vmatpush1.bf16.msra.mxu0 %v14941_v3  ;;  %3351 = vmatpush1.bf16.msra.mxu1 %v14944_v4  ;;  %v15041_v3 = vld [vmem:[%s21923_s1 + $0x664] ss:$16 sps:$4 sm:$0xff]   ;;  %v15044_v4 = vld [vmem:[%s21923_s1 + $0x66c] ss:$16 sps:$4 sm:$0xff]  }
 0x170   :  { %3188 = vmatprep.subr.bf16.mxu0 %v14949_v5  ;;  %3352 = vmatprep.subr.bf16.mxu1 %v14952_v6  ;;  %v15039_v5 = vld [vmem:[%s21923_s1 + $0x660] ss:$16 sps:$4 sm:$0xff]   ;;  %v15042_v6 = vld [vmem:[%s21923_s1 + $0x668] ss:$16 sps:$4 sm:$0xff]  }
 0x173   :  { %3189 = vmatpush1.bf16.msra.mxu0 %v14947_v7  ;;  %3353 = vmatpush1.bf16.msra.mxu1 %v14950_v8  ;;  %v15047_v7 = vld [vmem:[%s21923_s1 + $0x684] ss:$16 sps:$4 sm:$0xff]   ;;  %v15050_v8 = vld [vmem:[%s21923_s1 + $0x68c] ss:$16 sps:$4 sm:$0xff]  }
 0x174   :  { %3190 = vmatprep.subr.bf16.mxu0 %v14955_v9  ;;  %3354 = vmatprep.subr.bf16.mxu1 %v14958_v10  ;;  %v15045_v9 = vld [vmem:[%s21923_s1 + $0x680] ss:$16 sps:$4 sm:$0xff]   ;;  %v15048_v10 = vld [vmem:[%s21923_s1 + $0x688] ss:$16 sps:$4 sm:$0xff]  }
 0x177   :  { %3191 = vmatpush1.bf16.msra.mxu0 %v14953_v12  ;;  %3355 = vmatpush1.bf16.msra.mxu1 %v14956_v13  ;;  %v15053_v12 = vld [vmem:[%s21923_s1 + $0x6a4] ss:$16 sps:$4 sm:$0xff]   ;;  %v15056_v13 = vld [vmem:[%s21923_s1 + $0x6ac] ss:$16 sps:$4 sm:$0xff]  }
 0x178   :  { %3192 = vmatprep.subr.bf16.mxu0 %v14961_v14  ;;  %3356 = vmatprep.subr.bf16.mxu1 %v14964_v11  ;;  %v15051_v14 = vld [vmem:[%s21923_s1 + $0x6a0] ss:$16 sps:$4 sm:$0xff]   ;;  %v15054_v11 = vld [vmem:[%s21923_s1 + $0x6a8] ss:$16 sps:$4 sm:$0xff]  }
 0x17b   :  { %3193 = vmatpush1.bf16.msra.mxu0 %v14959_v15  ;;  %3357 = vmatpush1.bf16.msra.mxu1 %v14962_v16  ;;  %v15059_v15 = vld [vmem:[%s21923_s1 + $0x6c4] ss:$16 sps:$4 sm:$0xff]   ;;  %v15062_v16 = vld [vmem:[%s21923_s1 + $0x6cc] ss:$16 sps:$4 sm:$0xff]  }
 0x17c   :  { %3194 = vmatprep.subr.bf16.mxu0 %v14967_v17  ;;  %3358 = vmatprep.subr.bf16.mxu1 %v14970_v18  ;;  %v15057_v17 = vld [vmem:[%s21923_s1 + $0x6c0] ss:$16 sps:$4 sm:$0xff]   ;;  %v15060_v18 = vld [vmem:[%s21923_s1 + $0x6c8] ss:$16 sps:$4 sm:$0xff]  }
 0x17f   :  { %3195 = vmatpush1.bf16.msra.mxu0 %v14965_v20  ;;  %3359 = vmatpush1.bf16.msra.mxu1 %v14968_v21  ;;  %v15065_v20 = vld [vmem:[%s21923_s1 + $0x6e4] ss:$16 sps:$4 sm:$0xff]   ;;  %v15068_v21 = vld [vmem:[%s21923_s1 + $0x6ec] ss:$16 sps:$4 sm:$0xff]  }
 0x180   :  { %3196 = vmatprep.subr.bf16.mxu0 %v14973_v22  ;;  %3360 = vmatprep.subr.bf16.mxu1 %v14976_v23  ;;  %v15063_v22 = vld [vmem:[%s21923_s1 + $0x6e0] ss:$16 sps:$4 sm:$0xff]   ;;  %v15066_v23 = vld [vmem:[%s21923_s1 + $0x6e8] ss:$16 sps:$4 sm:$0xff]  }
 0x183   :  { %3197 = vmatpush1.bf16.msra.mxu0 %v14971_v24  ;;  %3361 = vmatpush1.bf16.msra.mxu1 %v14974_v25  ;;  %v15071_v24 = vld [vmem:[%s21923_s1 + $0xe04] ss:$16 sps:$4 sm:$0xff]   ;;  %v15074_v25 = vld [vmem:[%s21923_s1 + $0xe0c] ss:$16 sps:$4 sm:$0xff]  }
 0x184   :  { %3198 = vmatprep.subr.bf16.mxu0 %v14979_v26  ;;  %3362 = vmatprep.subr.bf16.mxu1 %v14982_v27  ;;  %v15075_v26 = vld [vmem:[%s21924_s0 + $0x18] ss:$0 sps:$4 sm:$0xff]  }
 0x185   :  { %v18276_v27 = vld [vmem:[%s21924_s0 + $0x38] sm:$0xff] }
 0x187   :  { %3199 = vmatpush1.bf16.msra.mxu0 %v14977_v28  ;;  %3363 = vmatpush1.bf16.msra.mxu1 %v14980_v29  ;;  %v15069_v28 = vld [vmem:[%s21923_s1 + $0xe00] ss:$16 sps:$4 sm:$0xff]   ;;  %v15072_v29 = vld [vmem:[%s21923_s1 + $0xe08] ss:$16 sps:$4 sm:$0xff]  }
 0x188   :  { %3200 = vmatprep.subr.bf16.mxu0 %v14985_v30  ;;  %3364 = vmatprep.subr.bf16.mxu1 %v14988_v31  ;;  %v15078_v30 = vld [vmem:[%s21923_s1 + $0xe24] ss:$16 sps:$4 sm:$0xff]   ;;  %v15081_v31 = vld [vmem:[%s21923_s1 + $0xe2c] ss:$16 sps:$4 sm:$0xff]  }
 0x18b   :  { %3201 = vmatpush1.bf16.msra.mxu0 %v14983_v32  ;;  %3365 = vmatpush1.bf16.msra.mxu1 %v14986_v33  ;;  %v12936_v32 = vcombine.high %v18276_v27, %v18276_v27  ;;  %v15076_v33 = vld [vmem:[%s21923_s1 + $0xe20] ss:$16 sps:$4 sm:$0xff]  }
 0x18c   :  { %3202 = vmatprep.subr.bf16.mxu0 %v14991_v34  ;;  %3366 = vmatprep.subr.bf16.mxu1 %v14994_v35  ;;  %v15079_v34 = vld [vmem:[%s21923_s1 + $0xe28] ss:$16 sps:$4 sm:$0xff]   ;;  %v15084_v35 = vld [vmem:[%s21923_s1 + $0xe44] ss:$16 sps:$4 sm:$0xff]  }
 0x18f   :  { %3203 = vmatpush1.bf16.msra.mxu0 %v14989_v36  ;;  %3367 = vmatpush1.bf16.msra.mxu1 %v14992_v37  ;;  %v15087_v36 = vld [vmem:[%s21923_s1 + $0xe4c] ss:$16 sps:$4 sm:$0xff]   ;;  %v15082_v37 = vld [vmem:[%s21923_s1 + $0xe40] ss:$16 sps:$4 sm:$0xff]  }
 0x190   :  { %3204 = vmatprep.subr.bf16.mxu0 %v14997_v38  ;;  %3368 = vmatprep.subr.bf16.mxu1 %v15000_v39  ;;  %v15085_v38 = vld [vmem:[%s21923_s1 + $0xe48] ss:$16 sps:$4 sm:$0xff]   ;;  %v15090_v39 = vld [vmem:[%s21923_s1 + $0xe64] ss:$16 sps:$4 sm:$0xff]  }
 0x193   :  { %3205 = vmatpush1.bf16.msra.mxu0 %v14995_v40  ;;  %3369 = vmatpush1.bf16.msra.mxu1 %v14998_v41  ;;  %v15093_v40 = vld [vmem:[%s21923_s1 + $0xe6c] ss:$16 sps:$4 sm:$0xff]   ;;  %v15088_v41 = vld [vmem:[%s21923_s1 + $0xe60] ss:$16 sps:$4 sm:$0xff]  }
 0x194   :  { %3206 = vmatprep.subr.bf16.mxu0 %v15003_v42  ;;  %3370 = vmatprep.subr.bf16.mxu1 %v15006_v43  ;;  %v15091_v42 = vld [vmem:[%s21923_s1 + $0xe68] ss:$16 sps:$4 sm:$0xff]   ;;  %v15096_v43 = vld [vmem:[%s21923_s1 + $0xe84] ss:$16 sps:$4 sm:$0xff]  }
 0x197   :  { %3207 = vmatpush1.bf16.msra.mxu0 %v15001_v44  ;;  %3371 = vmatpush1.bf16.msra.mxu1 %v15004_v46  ;;  %v15099_v44 = vld [vmem:[%s21923_s1 + $0xe8c] ss:$16 sps:$4 sm:$0xff]   ;;  %v15094_v46 = vld [vmem:[%s21923_s1 + $0xe80] ss:$16 sps:$4 sm:$0xff]  }
 0x198   :  { %3208 = vmatprep.subr.bf16.mxu0 %v15009_v47  ;;  %3372 = vmatprep.subr.bf16.mxu1 %v15012_v48  ;;  %v15097_v47 = vld [vmem:[%s21923_s1 + $0xe88] ss:$16 sps:$4 sm:$0xff]   ;;  %v15102_v48 = vld [vmem:[%s21923_s1 + $0xea4] ss:$16 sps:$4 sm:$0xff]  }
 0x19b   :  { %3209 = vmatpush1.bf16.msra.mxu0 %v15007_v50  ;;  %3373 = vmatpush1.bf16.msra.mxu1 %v15010_v51  ;;  %v15105_v50 = vld [vmem:[%s21923_s1 + $0xeac] ss:$16 sps:$4 sm:$0xff]   ;;  %v15100_v51 = vld [vmem:[%s21923_s1 + $0xea0] ss:$16 sps:$4 sm:$0xff]  }
 0x19c   :  { %3210 = vmatprep.subr.bf16.mxu0 %v15015_v52  ;;  %3374 = vmatprep.subr.bf16.mxu1 %v15018_v53  ;;  %v15103_v52 = vld [vmem:[%s21923_s1 + $0xea8] ss:$16 sps:$4 sm:$0xff]   ;;  %v15108_v53 = vld [vmem:[%s21923_s1 + $0xec4] ss:$16 sps:$4 sm:$0xff]  }
 0x19f   :  { %3211 = vmatpush1.bf16.msra.mxu0 %v15013_v54  ;;  %3375 = vmatpush1.bf16.msra.mxu1 %v15016_v55  ;;  %v15111_v54 = vld [vmem:[%s21923_s1 + $0xecc] ss:$16 sps:$4 sm:$0xff]   ;;  %v15106_v55 = vld [vmem:[%s21923_s1 + $0xec0] ss:$16 sps:$4 sm:$0xff]  }
 0x1a0   :  { %3221 = vmatprep.subr.bf16.mxu0 %v15023_v56  ;;  %3385 = vmatprep.subr.bf16.mxu1 %v15026_v57  ;;  %v15109_v56 = vld [vmem:[%s21923_s1 + $0xec8] ss:$16 sps:$4 sm:$0xff]   ;;  %v15114_v57 = vld [vmem:[%s21923_s1 + $0xee4] ss:$16 sps:$4 sm:$0xff]  }
 0x1a2   :  { %3213 = vmatmul.mubr.bf16.vlgmr.msra.gmra.mrb[0].mxu0 %v12708_v49  ;;  %3377 = vmatmul.mubr.bf16.vlgmr.msra.gmra.mrb[0].mxu1 %v12708_v49  ;;  %v15117_v49 = vld [vmem:[%s21923_s1 + $0xeec] ss:$16 sps:$4 sm:$0xff]  }
 0x1a3   :  { %3222 = vmatpush1.bf16.msra.mxu0 %v15021_v58  ;;  %3386 = vmatpush1.bf16.msra.mxu1 %v15024_v59  ;;  %v15112_v58 = vld [vmem:[%s21923_s1 + $0xee0] ss:$16 sps:$4 sm:$0xff]   ;;  %v15115_v59 = vld [vmem:[%s21923_s1 + $0xee8] ss:$16 sps:$4 sm:$0xff]  }
 0x1a4   :  { %3223 = vmatprep.subr.bf16.mxu0 %v15029_v60  ;;  %3387 = vmatprep.subr.bf16.mxu1 %v15032_v45  ;;  %v15120_v60 = vld [vmem:[%s21923_s1 + $0xf04] ss:$16 sps:$4 sm:$0xff]   ;;  %v15123_v45 = vld [vmem:[%s21923_s1 + $0xf0c] ss:$16 sps:$4 sm:$0xff]  }
 0x1a5   :  { %3253 = vmatprep.mubr.bf16.mxu0 %v16829_v19  ;;  %3417 = vmatprep.mubr.bf16.mxu1 %v16829_v19 }
 0x1a7   :  { %3224 = vmatpush1.bf16.msra.mxu0 %v15027_v61  ;;  %3388 = vmatpush1.bf16.msra.mxu1 %v15030_v62  ;;  %v15118_v61 = vld [vmem:[%s21923_s1 + $0xf00] ss:$16 sps:$4 sm:$0xff]   ;;  %v15121_v62 = vld [vmem:[%s21923_s1 + $0xf08] ss:$16 sps:$4 sm:$0xff]  }
 0x1a8   :  { %3225 = vmatprep.subr.bf16.mxu0 %v15035_v63  ;;  %3389 = vmatprep.subr.bf16.mxu1 %v15038_v0  ;;  %v15126_v63 = vld [vmem:[%s21923_s1 + $0xf24] ss:$16 sps:$4 sm:$0xff]   ;;  %v15129_v0 = vld [vmem:[%s21923_s1 + $0xf2c] ss:$16 sps:$4 sm:$0xff]  }
 0x1ab   :  { %3226 = vmatpush1.bf16.msra.mxu0 %v15033_v1  ;;  %3390 = vmatpush1.bf16.msra.mxu1 %v15036_v2  ;;  %v15124_v1 = vld [vmem:[%s21923_s1 + $0xf20] ss:$16 sps:$4 sm:$0xff]   ;;  %v15127_v2 = vld [vmem:[%s21923_s1 + $0xf28] ss:$16 sps:$4 sm:$0xff]  }
 0x1ac   :  { %3227 = vmatprep.subr.bf16.mxu0 %v15041_v3  ;;  %3391 = vmatprep.subr.bf16.mxu1 %v15044_v4  ;;  %v15132_v3 = vld [vmem:[%s21923_s1 + $0xf44] ss:$16 sps:$4 sm:$0xff]   ;;  %v15135_v4 = vld [vmem:[%s21923_s1 + $0xf4c] ss:$16 sps:$4 sm:$0xff]  }
 0x1af   :  { %3228 = vmatpush1.bf16.msra.mxu0 %v15039_v5  ;;  %3392 = vmatpush1.bf16.msra.mxu1 %v15042_v6  ;;  %v15130_v5 = vld [vmem:[%s21923_s1 + $0xf40] ss:$16 sps:$4 sm:$0xff]   ;;  %v15133_v6 = vld [vmem:[%s21923_s1 + $0xf48] ss:$16 sps:$4 sm:$0xff]  }
 0x1b0   :  { %3229 = vmatprep.subr.bf16.mxu0 %v15047_v7  ;;  %3393 = vmatprep.subr.bf16.mxu1 %v15050_v8  ;;  %v15138_v7 = vld [vmem:[%s21923_s1 + $0xf64] ss:$16 sps:$4 sm:$0xff]   ;;  %v15141_v8 = vld [vmem:[%s21923_s1 + $0xf6c] ss:$16 sps:$4 sm:$0xff]  }
 0x1b3   :  { %3230 = vmatpush1.bf16.msra.mxu0 %v15045_v9  ;;  %3394 = vmatpush1.bf16.msra.mxu1 %v15048_v10  ;;  %v15136_v9 = vld [vmem:[%s21923_s1 + $0xf60] ss:$16 sps:$4 sm:$0xff]   ;;  %v15139_v10 = vld [vmem:[%s21923_s1 + $0xf68] ss:$16 sps:$4 sm:$0xff]  }
 0x1b4   :  { %3231 = vmatprep.subr.bf16.mxu0 %v15053_v12  ;;  %3395 = vmatprep.subr.bf16.mxu1 %v15056_v13  ;;  %v15144_v12 = vld [vmem:[%s21923_s1 + $0xf84] ss:$16 sps:$4 sm:$0xff]   ;;  %v15147_v13 = vld [vmem:[%s21923_s1 + $0xf8c] ss:$16 sps:$4 sm:$0xff]  }
 0x1b7   :  { %3232 = vmatpush1.bf16.msra.mxu0 %v15051_v14  ;;  %3396 = vmatpush1.bf16.msra.mxu1 %v15054_v11  ;;  %v15142_v14 = vld [vmem:[%s21923_s1 + $0xf80] ss:$16 sps:$4 sm:$0xff]   ;;  %v15145_v11 = vld [vmem:[%s21923_s1 + $0xf88] ss:$16 sps:$4 sm:$0xff]  }
 0x1b8   :  { %3233 = vmatprep.subr.bf16.mxu0 %v15059_v15  ;;  %3397 = vmatprep.subr.bf16.mxu1 %v15062_v16  ;;  %v15150_v15 = vld [vmem:[%s21923_s1 + $0xfa4] ss:$16 sps:$4 sm:$0xff]   ;;  %v15153_v16 = vld [vmem:[%s21923_s1 + $0xfac] ss:$16 sps:$4 sm:$0xff]  }
 0x1bb   :  { %3234 = vmatpush1.bf16.msra.mxu0 %v15057_v17  ;;  %3398 = vmatpush1.bf16.msra.mxu1 %v15060_v18  ;;  %v15148_v17 = vld [vmem:[%s21923_s1 + $0xfa0] ss:$16 sps:$4 sm:$0xff]   ;;  %v15151_v18 = vld [vmem:[%s21923_s1 + $0xfa8] ss:$16 sps:$4 sm:$0xff]  }
 0x1bc   :  { %3235 = vmatprep.subr.bf16.mxu0 %v15065_v20  ;;  %3399 = vmatprep.subr.bf16.mxu1 %v15068_v21  ;;  %v15156_v20 = vld [vmem:[%s21923_s1 + $0xfc4] ss:$16 sps:$4 sm:$0xff]   ;;  %v15159_v21 = vld [vmem:[%s21923_s1 + $0xfcc] ss:$16 sps:$4 sm:$0xff]  }
 0x1bf   :  { %3236 = vmatpush1.bf16.msra.mxu0 %v15063_v22  ;;  %3400 = vmatpush1.bf16.msra.mxu1 %v15066_v23  ;;  %v15154_v22 = vld [vmem:[%s21923_s1 + $0xfc0] ss:$16 sps:$4 sm:$0xff]   ;;  %v15157_v23 = vld [vmem:[%s21923_s1 + $0xfc8] ss:$16 sps:$4 sm:$0xff]  }
 0x1c0   :  { %4799 = vmatprep.subr.bf16.mxu0 %v15071_v24  ;;  %4963 = vmatprep.subr.bf16.mxu1 %v15074_v25  ;;  %v15162_v24 = vld [vmem:[%s21923_s1 + $0xfe4] ss:$16 sps:$4 sm:$0xff]   ;;  %v15165_v25 = vld [vmem:[%s21923_s1 + $0xfec] ss:$16 sps:$4 sm:$0xff]  }
 0x1c2   :  { %3254 = vmatmul.mubr.bf16.vlgmr.msra.gmra.mrb[0].mxu0 %v15075_v26  ;;  %3418 = vmatmul.mubr.bf16.vlgmr.msra.gmra.mrb[0].mxu1 %v15075_v26  ;;  %v15160_v26 = vld [vmem:[%s21923_s1 + $0xfe0] ss:$16 sps:$4 sm:$0xff]  }
 0x1c3   :  { %4800 = vmatpush1.bf16.msra.mxu0 %v15069_v28  ;;  %4964 = vmatpush1.bf16.msra.mxu1 %v15072_v29  ;;  %v15163_v28 = vld [vmem:[%s21923_s1 + $0xfe8] ss:$16 sps:$4 sm:$0xff]   ;;  %v15170_v29 = vld [vmem:[%s21923_s1 + $0x1004] ss:$16 sps:$4 sm:$0xff]  }
 0x1c4   :  { %4801 = vmatprep.subr.bf16.mxu0 %v15078_v30  ;;  %4965 = vmatprep.subr.bf16.mxu1 %v15081_v31  ;;  %v15173_v30 = vld [vmem:[%s21923_s1 + $0x100c] ss:$16 sps:$4 sm:$0xff]   ;;  %v18475_v31 = vld [vmem:[%s21924_s0 + $0x40] sm:$0xff] }
 0x1c5   :  { %4831 = vmatprep.mubr.bf16.mxu0 %v12936_v32  ;;  %4995 = vmatprep.mubr.bf16.mxu1 %v12936_v32  ;;  %v12935_v32 = vcombine.low %v18276_v27, %v18276_v27  ;;  %v15179_v27 = vld [vmem:[%s21923_s1 + $0x102c] ss:$16 sps:$4 sm:$0xff]  }
 0x1c7   :  { %4802 = vmatpush1.bf16.msra.mxu0 %v15076_v33  ;;  %4966 = vmatpush1.bf16.msra.mxu1 %v15079_v34  ;;  %v15168_v33 = vld [vmem:[%s21923_s1 + $0x1000] ss:$16 sps:$4 sm:$0xff]   ;;  %v15171_v34 = vld [vmem:[%s21923_s1 + $0x1008] ss:$16 sps:$4 sm:$0xff]  }
 0x1c8   :  { %4803 = vmatprep.subr.bf16.mxu0 %v15084_v35  ;;  %4967 = vmatprep.subr.bf16.mxu1 %v15087_v36  ;;  %v15176_v35 = vld [vmem:[%s21923_s1 + $0x1024] ss:$16 sps:$4 sm:$0xff]   ;;  %v12938_v36 = vcombine.high %v18475_v31, %v18475_v31 }
 0x1cb   :  { %4804 = vmatpush1.bf16.msra.mxu0 %v15082_v37  ;;  %4968 = vmatpush1.bf16.msra.mxu1 %v15085_v38  ;;  %v15174_v37 = vld [vmem:[%s21923_s1 + $0x1020] ss:$16 sps:$4 sm:$0xff]   ;;  %v15177_v38 = vld [vmem:[%s21923_s1 + $0x1028] ss:$16 sps:$4 sm:$0xff]  }
 0x1cc   :  { %4805 = vmatprep.subr.bf16.mxu0 %v15090_v39  ;;  %4969 = vmatprep.subr.bf16.mxu1 %v15093_v40  ;;  %v15182_v39 = vld [vmem:[%s21923_s1 + $0x1044] ss:$16 sps:$4 sm:$0xff]   ;;  %v15185_v40 = vld [vmem:[%s21923_s1 + $0x104c] ss:$16 sps:$4 sm:$0xff]  }
 0x1cf   :  { %4806 = vmatpush1.bf16.msra.mxu0 %v15088_v41  ;;  %4970 = vmatpush1.bf16.msra.mxu1 %v15091_v42  ;;  %v15180_v41 = vld [vmem:[%s21923_s1 + $0x1040] ss:$16 sps:$4 sm:$0xff]   ;;  %v15183_v42 = vld [vmem:[%s21923_s1 + $0x1048] ss:$16 sps:$4 sm:$0xff]  }
 0x1d0   :  { %4807 = vmatprep.subr.bf16.mxu0 %v15096_v43  ;;  %4971 = vmatprep.subr.bf16.mxu1 %v15099_v44  ;;  %v15188_v43 = vld [vmem:[%s21923_s1 + $0x1064] ss:$16 sps:$4 sm:$0xff]   ;;  %v15191_v44 = vld [vmem:[%s21923_s1 + $0x106c] ss:$16 sps:$4 sm:$0xff]  }
 0x1d3   :  { %4808 = vmatpush1.bf16.msra.mxu0 %v15094_v46  ;;  %4972 = vmatpush1.bf16.msra.mxu1 %v15097_v47  ;;  %v15186_v46 = vld [vmem:[%s21923_s1 + $0x1060] ss:$16 sps:$4 sm:$0xff]   ;;  %v15189_v47 = vld [vmem:[%s21923_s1 + $0x1068] ss:$16 sps:$4 sm:$0xff]  }
 0x1d4   :  { %4809 = vmatprep.subr.bf16.mxu0 %v15102_v48  ;;  %4973 = vmatprep.subr.bf16.mxu1 %v15105_v50  ;;  %v15194_v48 = vld [vmem:[%s21923_s1 + $0x1084] ss:$16 sps:$4 sm:$0xff]   ;;  %v15197_v50 = vld [vmem:[%s21923_s1 + $0x108c] ss:$16 sps:$4 sm:$0xff]  }
 0x1d7   :  { %4810 = vmatpush1.bf16.msra.mxu0 %v15100_v51  ;;  %4974 = vmatpush1.bf16.msra.mxu1 %v15103_v52  ;;  %v15192_v51 = vld [vmem:[%s21923_s1 + $0x1080] ss:$16 sps:$4 sm:$0xff]   ;;  %v15195_v52 = vld [vmem:[%s21923_s1 + $0x1088] ss:$16 sps:$4 sm:$0xff]  }
 0x1d8   :  { %4811 = vmatprep.subr.bf16.mxu0 %v15108_v53  ;;  %4975 = vmatprep.subr.bf16.mxu1 %v15111_v54  ;;  %v15200_v53 = vld [vmem:[%s21923_s1 + $0x10a4] ss:$16 sps:$4 sm:$0xff]   ;;  %v15203_v54 = vld [vmem:[%s21923_s1 + $0x10ac] ss:$16 sps:$4 sm:$0xff]  }
 0x1db   :  { %4812 = vmatpush1.bf16.msra.mxu0 %v15106_v55  ;;  %4976 = vmatpush1.bf16.msra.mxu1 %v15109_v56  ;;  %v15198_v55 = vld [vmem:[%s21923_s1 + $0x10a0] ss:$16 sps:$4 sm:$0xff]   ;;  %v15201_v56 = vld [vmem:[%s21923_s1 + $0x10a8] ss:$16 sps:$4 sm:$0xff]  }
 0x1dc   :  { %4813 = vmatprep.subr.bf16.mxu0 %v15114_v57  ;;  %4977 = vmatprep.subr.bf16.mxu1 %v15117_v49  ;;  %v15206_v57 = vld [vmem:[%s21923_s1 + $0x10c4] ss:$16 sps:$4 sm:$0xff]   ;;  %v15209_v49 = vld [vmem:[%s21923_s1 + $0x10cc] ss:$16 sps:$4 sm:$0xff]  }
 0x1df   :  { %4814 = vmatpush1.bf16.msra.mxu0 %v15112_v58  ;;  %4978 = vmatpush1.bf16.msra.mxu1 %v15115_v59  ;;  %v15204_v58 = vld [vmem:[%s21923_s1 + $0x10c0] ss:$16 sps:$4 sm:$0xff]   ;;  %v15207_v59 = vld [vmem:[%s21923_s1 + $0x10c8] ss:$16 sps:$4 sm:$0xff]  }
 0x1e0   :  { %4815 = vmatprep.subr.bf16.mxu0 %v15120_v60  ;;  %4979 = vmatprep.subr.bf16.mxu1 %v15123_v45  ;;  %v15212_v60 = vld [vmem:[%s21923_s1 + $0x10e4] ss:$16 sps:$4 sm:$0xff]   ;;  %v15215_v45 = vld [vmem:[%s21923_s1 + $0x10ec] ss:$16 sps:$4 sm:$0xff]  }
 0x1e3   :  { %4816 = vmatpush1.bf16.msra.mxu0 %v15118_v61  ;;  %4980 = vmatpush1.bf16.msra.mxu1 %v15121_v62  ;;  %v15210_v61 = vld [vmem:[%s21923_s1 + $0x10e0] ss:$16 sps:$4 sm:$0xff]   ;;  %v15213_v62 = vld [vmem:[%s21923_s1 + $0x10e8] ss:$16 sps:$4 sm:$0xff]  }
 0x1e4   :  { %4817 = vmatprep.subr.bf16.mxu0 %v15126_v63  ;;  %4981 = vmatprep.subr.bf16.mxu1 %v15129_v0  ;;  %v15218_v63 = vld [vmem:[%s21923_s1 + $0x1104] ss:$16 sps:$4 sm:$0xff]   ;;  %v15221_v0 = vld [vmem:[%s21923_s1 + $0x110c] ss:$16 sps:$4 sm:$0xff]  }
 0x1e7   :  { %4818 = vmatpush1.bf16.msra.mxu0 %v15124_v1  ;;  %4982 = vmatpush1.bf16.msra.mxu1 %v15127_v2  ;;  %v15216_v1 = vld [vmem:[%s21923_s1 + $0x1100] ss:$16 sps:$4 sm:$0xff]   ;;  %v15219_v2 = vld [vmem:[%s21923_s1 + $0x1108] ss:$16 sps:$4 sm:$0xff]  }
 0x1e8   :  { %4819 = vmatprep.subr.bf16.mxu0 %v15132_v3  ;;  %4983 = vmatprep.subr.bf16.mxu1 %v15135_v4  ;;  %v15224_v3 = vld [vmem:[%s21923_s1 + $0x1124] ss:$16 sps:$4 sm:$0xff]   ;;  %v15227_v4 = vld [vmem:[%s21923_s1 + $0x112c] ss:$16 sps:$4 sm:$0xff]  }
 0x1eb   :  { %4820 = vmatpush1.bf16.msra.mxu0 %v15130_v5  ;;  %4984 = vmatpush1.bf16.msra.mxu1 %v15133_v6  ;;  %v15222_v5 = vld [vmem:[%s21923_s1 + $0x1120] ss:$16 sps:$4 sm:$0xff]   ;;  %v15225_v6 = vld [vmem:[%s21923_s1 + $0x1128] ss:$16 sps:$4 sm:$0xff]  }
 0x1ec   :  { %4821 = vmatprep.subr.bf16.mxu0 %v15138_v7  ;;  %4985 = vmatprep.subr.bf16.mxu1 %v15141_v8  ;;  %v15230_v7 = vld [vmem:[%s21923_s1 + $0x1144] ss:$16 sps:$4 sm:$0xff]   ;;  %v15233_v8 = vld [vmem:[%s21923_s1 + $0x114c] ss:$16 sps:$4 sm:$0xff]  }
 0x1ef   :  { %4822 = vmatpush1.bf16.msra.mxu0 %v15136_v9  ;;  %4986 = vmatpush1.bf16.msra.mxu1 %v15139_v10  ;;  %v15228_v9 = vld [vmem:[%s21923_s1 + $0x1140] ss:$16 sps:$4 sm:$0xff]   ;;  %v15231_v10 = vld [vmem:[%s21923_s1 + $0x1148] ss:$16 sps:$4 sm:$0xff]  }
 0x1f0   :  { %4823 = vmatprep.subr.bf16.mxu0 %v15144_v12  ;;  %4987 = vmatprep.subr.bf16.mxu1 %v15147_v13  ;;  %v15236_v12 = vld [vmem:[%s21923_s1 + $0x1164] ss:$16 sps:$4 sm:$0xff]   ;;  %v15239_v13 = vld [vmem:[%s21923_s1 + $0x116c] ss:$16 sps:$4 sm:$0xff]  }
 0x1f3   :  { %4824 = vmatpush1.bf16.msra.mxu0 %v15142_v14  ;;  %4988 = vmatpush1.bf16.msra.mxu1 %v15145_v11  ;;  %v15234_v14 = vld [vmem:[%s21923_s1 + $0x1160] ss:$16 sps:$4 sm:$0xff]   ;;  %v15237_v11 = vld [vmem:[%s21923_s1 + $0x1168] ss:$16 sps:$4 sm:$0xff]  }
 0x1f4   :  { %4825 = vmatprep.subr.bf16.mxu0 %v15150_v15  ;;  %4989 = vmatprep.subr.bf16.mxu1 %v15153_v16  ;;  %v15242_v15 = vld [vmem:[%s21923_s1 + $0x1184] ss:$16 sps:$4 sm:$0xff]   ;;  %v15245_v16 = vld [vmem:[%s21923_s1 + $0x118c] ss:$16 sps:$4 sm:$0xff]  }
 0x1f7   :  { %4826 = vmatpush1.bf16.msra.mxu0 %v15148_v17  ;;  %4990 = vmatpush1.bf16.msra.mxu1 %v15151_v18  ;;  %v15240_v17 = vld [vmem:[%s21923_s1 + $0x1180] ss:$16 sps:$4 sm:$0xff]   ;;  %v15243_v18 = vld [vmem:[%s21923_s1 + $0x1188] ss:$16 sps:$4 sm:$0xff]  }
 0x1f8   :  { %4827 = vmatprep.subr.bf16.mxu0 %v15156_v20  ;;  %4991 = vmatprep.subr.bf16.mxu1 %v15159_v21  ;;  %v15248_v20 = vld [vmem:[%s21923_s1 + $0x11a4] ss:$16 sps:$4 sm:$0xff]   ;;  %v15251_v21 = vld [vmem:[%s21923_s1 + $0x11ac] ss:$16 sps:$4 sm:$0xff]  }
 0x1fb   :  { %4828 = vmatpush1.bf16.msra.mxu0 %v15154_v22  ;;  %4992 = vmatpush1.bf16.msra.mxu1 %v15157_v23  ;;  %v15246_v22 = vld [vmem:[%s21923_s1 + $0x11a0] ss:$16 sps:$4 sm:$0xff]   ;;  %v15249_v23 = vld [vmem:[%s21923_s1 + $0x11a8] ss:$16 sps:$4 sm:$0xff]  }
 0x1fc   :  { %4829 = vmatprep.subr.bf16.mxu0 %v15162_v24  ;;  %4993 = vmatprep.subr.bf16.mxu1 %v15165_v25  ;;  %v15254_v24 = vld [vmem:[%s21923_s1 + $0x11c4] ss:$16 sps:$4 sm:$0xff]   ;;  %v15257_v25 = vld [vmem:[%s21923_s1 + $0x11cc] ss:$16 sps:$4 sm:$0xff]  }
 0x1ff   :  { %4830 = vmatpush1.bf16.msra.mxu0 %v15160_v26  ;;  %4994 = vmatpush1.bf16.msra.mxu1 %v15163_v28  ;;  %v15252_v26 = vld [vmem:[%s21923_s1 + $0x11c0] ss:$16 sps:$4 sm:$0xff]   ;;  %v15255_v28 = vld [vmem:[%s21923_s1 + $0x11c8] ss:$16 sps:$4 sm:$0xff]  }
 0x200   :  { %4840 = vmatprep.subr.bf16.mxu0 %v15170_v29  ;;  %5004 = vmatprep.subr.bf16.mxu1 %v15173_v30  ;;  %v15260_v29 = vld [vmem:[%s21923_s1 + $0x11e4] ss:$16 sps:$4 sm:$0xff]   ;;  %v15263_v30 = vld [vmem:[%s21923_s1 + $0x11ec] ss:$16 sps:$4 sm:$0xff]  }
 0x202   :  { %4832 = vmatmul.mubr.bf16.vlgmr.msra.gmra.mrb[0].mxu0 %v12935_v32  ;;  %4996 = vmatmul.mubr.bf16.vlgmr.msra.gmra.mrb[0].mxu1 %v12935_v32  ;;  %v15258_v32 = vld [vmem:[%s21923_s1 + $0x11e0] ss:$16 sps:$4 sm:$0xff]  }
 0x203   :  { %4841 = vmatpush1.bf16.msra.mxu0 %v15168_v33  ;;  %5005 = vmatpush1.bf16.msra.mxu1 %v15171_v34  ;;  %v15261_v33 = vld [vmem:[%s21923_s1 + $0x11e8] ss:$16 sps:$4 sm:$0xff]   ;;  %v15268_v34 = vld [vmem:[%s21923_s1 + $0x1204] ss:$16 sps:$4 sm:$0xff]  }
 0x204   :  { %4842 = vmatprep.subr.bf16.mxu0 %v15176_v35  ;;  %5006 = vmatprep.subr.bf16.mxu1 %v15179_v27  ;;  %v15271_v35 = vld [vmem:[%s21923_s1 + $0x120c] ss:$16 sps:$4 sm:$0xff]  }
 0x205   :  { %4872 = vmatprep.mubr.bf16.mxu0 %v12938_v36  ;;  %5036 = vmatprep.mubr.bf16.mxu1 %v12938_v36  ;;  %v18676_v27 = vld [vmem:[%s21924_s0 + $0x48] sm:$0xff]  ;;  %v12937_v36 = vcombine.low %v18475_v31, %v18475_v31 }
 0x206   :  { %v15277_v31 = vld [vmem:[%s21923_s1 + $0x122c] ss:$16 sps:$4 sm:$0xff]  }
 0x207   :  { %4843 = vmatpush1.bf16.msra.mxu0 %v15174_v37  ;;  %5007 = vmatpush1.bf16.msra.mxu1 %v15177_v38  ;;  %v15266_v37 = vld [vmem:[%s21923_s1 + $0x1200] ss:$16 sps:$4 sm:$0xff]   ;;  %v15269_v38 = vld [vmem:[%s21923_s1 + $0x1208] ss:$16 sps:$4 sm:$0xff]  }
 0x208   :  { %4844 = vmatprep.subr.bf16.mxu0 %v15182_v39  ;;  %5008 = vmatprep.subr.bf16.mxu1 %v15185_v40  ;;  %v15274_v39 = vld [vmem:[%s21923_s1 + $0x1224] ss:$16 sps:$4 sm:$0xff]   ;;  %v12940_v40 = vcombine.high %v18676_v27, %v18676_v27 }
 0x20b   :  { %4845 = vmatpush1.bf16.msra.mxu0 %v15180_v41  ;;  %5009 = vmatpush1.bf16.msra.mxu1 %v15183_v42  ;;  %v15272_v41 = vld [vmem:[%s21923_s1 + $0x1220] ss:$16 sps:$4 sm:$0xff]   ;;  %v15275_v42 = vld [vmem:[%s21923_s1 + $0x1228] ss:$16 sps:$4 sm:$0xff]  }
 0x20c   :  { %4846 = vmatprep.subr.bf16.mxu0 %v15188_v43  ;;  %5010 = vmatprep.subr.bf16.mxu1 %v15191_v44  ;;  %v15280_v43 = vld [vmem:[%s21923_s1 + $0x1244] ss:$16 sps:$4 sm:$0xff]   ;;  %v15283_v44 = vld [vmem:[%s21923_s1 + $0x124c] ss:$16 sps:$4 sm:$0xff]  }
 0x20f   :  { %4847 = vmatpush1.bf16.msra.mxu0 %v15186_v46  ;;  %5011 = vmatpush1.bf16.msra.mxu1 %v15189_v47  ;;  %v15278_v46 = vld [vmem:[%s21923_s1 + $0x1240] ss:$16 sps:$4 sm:$0xff]   ;;  %v15281_v47 = vld [vmem:[%s21923_s1 + $0x1248] ss:$16 sps:$4 sm:$0xff]  }
 0x210   :  { %4848 = vmatprep.subr.bf16.mxu0 %v15194_v48  ;;  %5012 = vmatprep.subr.bf16.mxu1 %v15197_v50  ;;  %v15286_v48 = vld [vmem:[%s21923_s1 + $0x1264] ss:$16 sps:$4 sm:$0xff]   ;;  %v15289_v50 = vld [vmem:[%s21923_s1 + $0x126c] ss:$16 sps:$4 sm:$0xff]  }
 0x213   :  { %4849 = vmatpush1.bf16.msra.mxu0 %v15192_v51  ;;  %5013 = vmatpush1.bf16.msra.mxu1 %v15195_v52  ;;  %v15284_v51 = vld [vmem:[%s21923_s1 + $0x1260] ss:$16 sps:$4 sm:$0xff]   ;;  %v15287_v52 = vld [vmem:[%s21923_s1 + $0x1268] ss:$16 sps:$4 sm:$0xff]  }
 0x214   :  { %4850 = vmatprep.subr.bf16.mxu0 %v15200_v53  ;;  %5014 = vmatprep.subr.bf16.mxu1 %v15203_v54  ;;  %v15292_v53 = vld [vmem:[%s21923_s1 + $0x1284] ss:$16 sps:$4 sm:$0xff]   ;;  %v15295_v54 = vld [vmem:[%s21923_s1 + $0x128c] ss:$16 sps:$4 sm:$0xff]  }
 0x217   :  { %4851 = vmatpush1.bf16.msra.mxu0 %v15198_v55  ;;  %5015 = vmatpush1.bf16.msra.mxu1 %v15201_v56  ;;  %v15290_v55 = vld [vmem:[%s21923_s1 + $0x1280] ss:$16 sps:$4 sm:$0xff]   ;;  %v15293_v56 = vld [vmem:[%s21923_s1 + $0x1288] ss:$16 sps:$4 sm:$0xff]  }
 0x218   :  { %4852 = vmatprep.subr.bf16.mxu0 %v15206_v57  ;;  %5016 = vmatprep.subr.bf16.mxu1 %v15209_v49  ;;  %v15298_v57 = vld [vmem:[%s21923_s1 + $0x12a4] ss:$16 sps:$4 sm:$0xff]   ;;  %v15301_v49 = vld [vmem:[%s21923_s1 + $0x12ac] ss:$16 sps:$4 sm:$0xff]  }
 0x21b   :  { %4853 = vmatpush1.bf16.msra.mxu0 %v15204_v58  ;;  %5017 = vmatpush1.bf16.msra.mxu1 %v15207_v59  ;;  %v15296_v58 = vld [vmem:[%s21923_s1 + $0x12a0] ss:$16 sps:$4 sm:$0xff]   ;;  %v15299_v59 = vld [vmem:[%s21923_s1 + $0x12a8] ss:$16 sps:$4 sm:$0xff]  }
 0x21c   :  { %4854 = vmatprep.subr.bf16.mxu0 %v15212_v60  ;;  %5018 = vmatprep.subr.bf16.mxu1 %v15215_v45  ;;  %v15304_v60 = vld [vmem:[%s21923_s1 + $0x12c4] ss:$16 sps:$4 sm:$0xff]   ;;  %v15307_v45 = vld [vmem:[%s21923_s1 + $0x12cc] ss:$16 sps:$4 sm:$0xff]  }
 0x21f   :  { %4855 = vmatpush1.bf16.msra.mxu0 %v15210_v61  ;;  %5019 = vmatpush1.bf16.msra.mxu1 %v15213_v62  ;;  %v15302_v61 = vld [vmem:[%s21923_s1 + $0x12c0] ss:$16 sps:$4 sm:$0xff]   ;;  %v15305_v62 = vld [vmem:[%s21923_s1 + $0x12c8] ss:$16 sps:$4 sm:$0xff]  }
 0x220   :  { %4856 = vmatprep.subr.bf16.mxu0 %v15218_v63  ;;  %5020 = vmatprep.subr.bf16.mxu1 %v15221_v0  ;;  %v15310_v63 = vld [vmem:[%s21923_s1 + $0x12e4] ss:$16 sps:$4 sm:$0xff]   ;;  %v15313_v0 = vld [vmem:[%s21923_s1 + $0x12ec] ss:$16 sps:$4 sm:$0xff]  }
 0x223   :  { %4857 = vmatpush1.bf16.msra.mxu0 %v15216_v1  ;;  %5021 = vmatpush1.bf16.msra.mxu1 %v15219_v2  ;;  %v15308_v1 = vld [vmem:[%s21923_s1 + $0x12e0] ss:$16 sps:$4 sm:$0xff]   ;;  %v15311_v2 = vld [vmem:[%s21923_s1 + $0x12e8] ss:$16 sps:$4 sm:$0xff]  }
 0x224   :  { %4858 = vmatprep.subr.bf16.mxu0 %v15224_v3  ;;  %5022 = vmatprep.subr.bf16.mxu1 %v15227_v4  ;;  %v15316_v3 = vld [vmem:[%s21923_s1 + $0x1304] ss:$16 sps:$4 sm:$0xff]   ;;  %v15319_v4 = vld [vmem:[%s21923_s1 + $0x130c] ss:$16 sps:$4 sm:$0xff]  }
 0x227   :  { %4859 = vmatpush1.bf16.msra.mxu0 %v15222_v5  ;;  %5023 = vmatpush1.bf16.msra.mxu1 %v15225_v6  ;;  %v15314_v5 = vld [vmem:[%s21923_s1 + $0x1300] ss:$16 sps:$4 sm:$0xff]   ;;  %v15317_v6 = vld [vmem:[%s21923_s1 + $0x1308] ss:$16 sps:$4 sm:$0xff]  }
 0x228   :  { %4860 = vmatprep.subr.bf16.mxu0 %v15230_v7  ;;  %5024 = vmatprep.subr.bf16.mxu1 %v15233_v8  ;;  %v15322_v7 = vld [vmem:[%s21923_s1 + $0x1324] ss:$16 sps:$4 sm:$0xff]   ;;  %v15325_v8 = vld [vmem:[%s21923_s1 + $0x132c] ss:$16 sps:$4 sm:$0xff]  }
 0x22b   :  { %4861 = vmatpush1.bf16.msra.mxu0 %v15228_v9  ;;  %5025 = vmatpush1.bf16.msra.mxu1 %v15231_v10  ;;  %v15320_v9 = vld [vmem:[%s21923_s1 + $0x1320] ss:$16 sps:$4 sm:$0xff]   ;;  %v15323_v10 = vld [vmem:[%s21923_s1 + $0x1328] ss:$16 sps:$4 sm:$0xff]  }
 0x22c   :  { %4862 = vmatprep.subr.bf16.mxu0 %v15236_v12  ;;  %5026 = vmatprep.subr.bf16.mxu1 %v15239_v13  ;;  %v15328_v12 = vld [vmem:[%s21923_s1 + $0x1344] ss:$16 sps:$4 sm:$0xff]   ;;  %v15331_v13 = vld [vmem:[%s21923_s1 + $0x134c] ss:$16 sps:$4 sm:$0xff]  }
 0x22f   :  { %4863 = vmatpush1.bf16.msra.mxu0 %v15234_v14  ;;  %5027 = vmatpush1.bf16.msra.mxu1 %v15237_v11  ;;  %v15326_v14 = vld [vmem:[%s21923_s1 + $0x1340] ss:$16 sps:$4 sm:$0xff]   ;;  %v15329_v11 = vld [vmem:[%s21923_s1 + $0x1348] ss:$16 sps:$4 sm:$0xff]  }
 0x230   :  { %4864 = vmatprep.subr.bf16.mxu0 %v15242_v15  ;;  %5028 = vmatprep.subr.bf16.mxu1 %v15245_v16  ;;  %v15334_v15 = vld [vmem:[%s21923_s1 + $0x1364] ss:$16 sps:$4 sm:$0xff]   ;;  %v15337_v16 = vld [vmem:[%s21923_s1 + $0x136c] ss:$16 sps:$4 sm:$0xff]  }
 0x233   :  { %4865 = vmatpush1.bf16.msra.mxu0 %v15240_v17  ;;  %5029 = vmatpush1.bf16.msra.mxu1 %v15243_v18  ;;  %v15332_v17 = vld [vmem:[%s21923_s1 + $0x1360] ss:$16 sps:$4 sm:$0xff]   ;;  %v15335_v18 = vld [vmem:[%s21923_s1 + $0x1368] ss:$16 sps:$4 sm:$0xff]  }
 0x234   :  { %4866 = vmatprep.subr.bf16.mxu0 %v15248_v20  ;;  %5030 = vmatprep.subr.bf16.mxu1 %v15251_v21  ;;  %v15340_v20 = vld [vmem:[%s21923_s1 + $0x1384] ss:$16 sps:$4 sm:$0xff]   ;;  %v15343_v21 = vld [vmem:[%s21923_s1 + $0x138c] ss:$16 sps:$4 sm:$0xff]  }
 0x237   :  { %4867 = vmatpush1.bf16.msra.mxu0 %v15246_v22  ;;  %5031 = vmatpush1.bf16.msra.mxu1 %v15249_v23  ;;  %v15338_v22 = vld [vmem:[%s21923_s1 + $0x1380] ss:$16 sps:$4 sm:$0xff]   ;;  %v15341_v23 = vld [vmem:[%s21923_s1 + $0x1388] ss:$16 sps:$4 sm:$0xff]  }
 0x238   :  { %4868 = vmatprep.subr.bf16.mxu0 %v15254_v24  ;;  %5032 = vmatprep.subr.bf16.mxu1 %v15257_v25  ;;  %v15346_v24 = vld [vmem:[%s21923_s1 + $0x13a4] ss:$16 sps:$4 sm:$0xff]   ;;  %v15349_v25 = vld [vmem:[%s21923_s1 + $0x13ac] ss:$16 sps:$4 sm:$0xff]  }
 0x23b   :  { %4869 = vmatpush1.bf16.msra.mxu0 %v15252_v26  ;;  %5033 = vmatpush1.bf16.msra.mxu1 %v15255_v28  ;;  %v15344_v26 = vld [vmem:[%s21923_s1 + $0x13a0] ss:$16 sps:$4 sm:$0xff]   ;;  %v15347_v28 = vld [vmem:[%s21923_s1 + $0x13a8] ss:$16 sps:$4 sm:$0xff]  }
 0x23c   :  { %4870 = vmatprep.subr.bf16.mxu0 %v15260_v29  ;;  %5034 = vmatprep.subr.bf16.mxu1 %v15263_v30  ;;  %v15352_v29 = vld [vmem:[%s21923_s1 + $0x13c4] ss:$16 sps:$4 sm:$0xff]   ;;  %v15355_v30 = vld [vmem:[%s21923_s1 + $0x13cc] ss:$16 sps:$4 sm:$0xff]  }
 0x23f   :  { %4871 = vmatpush1.bf16.msra.mxu0 %v15258_v32  ;;  %5035 = vmatpush1.bf16.msra.mxu1 %v15261_v33  ;;  %v15350_v32 = vld [vmem:[%s21923_s1 + $0x13c0] ss:$16 sps:$4 sm:$0xff]   ;;  %v15353_v33 = vld [vmem:[%s21923_s1 + $0x13c8] ss:$16 sps:$4 sm:$0xff]  }
 0x240   :  { %4881 = vmatprep.subr.bf16.mxu0 %v15268_v34  ;;  %5045 = vmatprep.subr.bf16.mxu1 %v15271_v35  ;;  %v15358_v34 = vld [vmem:[%s21923_s1 + $0x13e4] ss:$16 sps:$4 sm:$0xff]   ;;  %v15361_v35 = vld [vmem:[%s21923_s1 + $0x13ec] ss:$16 sps:$4 sm:$0xff]  }
 0x242   :  { %4873 = vmatmul.mubr.bf16.vlgmr.msra.gmra.mrb[0].mxu0 %v12937_v36  ;;  %5037 = vmatmul.mubr.bf16.vlgmr.msra.gmra.mrb[0].mxu1 %v12937_v36  ;;  %v15356_v36 = vld [vmem:[%s21923_s1 + $0x13e0] ss:$16 sps:$4 sm:$0xff]  }
 0x243   :  { %4882 = vmatpush1.bf16.msra.mxu0 %v15266_v37  ;;  %5046 = vmatpush1.bf16.msra.mxu1 %v15269_v38  ;;  %v15359_v37 = vld [vmem:[%s21923_s1 + $0x13e8] ss:$16 sps:$4 sm:$0xff]   ;;  %v15366_v38 = vld [vmem:[%s21923_s1 + $0x1404] ss:$16 sps:$4 sm:$0xff]  }
 0x244   :  { %4883 = vmatprep.subr.bf16.mxu0 %v15274_v39  ;;  %5047 = vmatprep.subr.bf16.mxu1 %v15277_v31  ;;  %v15369_v39 = vld [vmem:[%s21923_s1 + $0x140c] ss:$16 sps:$4 sm:$0xff]   ;;  %v12939_v31 = vcombine.low %v18676_v27, %v18676_v27 }
 0x245   :  { %4913 = vmatprep.mubr.bf16.mxu0 %v12940_v40  ;;  %5077 = vmatprep.mubr.bf16.mxu1 %v12940_v40  ;;  %v15364_v40 = vld [vmem:[%s21923_s1 + $0x1400] ss:$16 sps:$4 sm:$0xff]   ;;  %v15375_v27 = vld [vmem:[%s21923_s1 + $0x142c] ss:$16 sps:$4 sm:$0xff]  }
 0x247   :  { %4884 = vmatpush1.bf16.msra.mxu0 %v15272_v41  ;;  %5048 = vmatpush1.bf16.msra.mxu1 %v15275_v42  ;;  %v15367_v41 = vld [vmem:[%s21923_s1 + $0x1408] ss:$16 sps:$4 sm:$0xff]   ;;  %v15372_v42 = vld [vmem:[%s21923_s1 + $0x1424] ss:$16 sps:$4 sm:$0xff]  }
 0x248   :  { %4885 = vmatprep.subr.bf16.mxu0 %v15280_v43  ;;  %5049 = vmatprep.subr.bf16.mxu1 %v15283_v44  ;;  %v15370_v43 = vld [vmem:[%s21923_s1 + $0x1420] ss:$16 sps:$4 sm:$0xff]   ;;  %v15373_v44 = vld [vmem:[%s21923_s1 + $0x1428] ss:$16 sps:$4 sm:$0xff]  }
 0x24b   :  { %4886 = vmatpush1.bf16.msra.mxu0 %v15278_v46  ;;  %5050 = vmatpush1.bf16.msra.mxu1 %v15281_v47  ;;  %v15378_v46 = vld [vmem:[%s21923_s1 + $0x1444] ss:$16 sps:$4 sm:$0xff]   ;;  %v15381_v47 = vld [vmem:[%s21923_s1 + $0x144c] ss:$16 sps:$4 sm:$0xff]  }
 0x24c   :  { %4887 = vmatprep.subr.bf16.mxu0 %v15286_v48  ;;  %5051 = vmatprep.subr.bf16.mxu1 %v15289_v50  ;;  %v15376_v48 = vld [vmem:[%s21923_s1 + $0x1440] ss:$16 sps:$4 sm:$0xff]   ;;  %v15379_v50 = vld [vmem:[%s21923_s1 + $0x1448] ss:$16 sps:$4 sm:$0xff]  }
 0x24f   :  { %4888 = vmatpush1.bf16.msra.mxu0 %v15284_v51  ;;  %5052 = vmatpush1.bf16.msra.mxu1 %v15287_v52  ;;  %v15384_v51 = vld [vmem:[%s21923_s1 + $0x1464] ss:$16 sps:$4 sm:$0xff]   ;;  %v15387_v52 = vld [vmem:[%s21923_s1 + $0x146c] ss:$16 sps:$4 sm:$0xff]  }
 0x250   :  { %4889 = vmatprep.subr.bf16.mxu0 %v15292_v53  ;;  %5053 = vmatprep.subr.bf16.mxu1 %v15295_v54  ;;  %v15382_v53 = vld [vmem:[%s21923_s1 + $0x1460] ss:$16 sps:$4 sm:$0xff]   ;;  %v15385_v54 = vld [vmem:[%s21923_s1 + $0x1468] ss:$16 sps:$4 sm:$0xff]  }
 0x253   :  { %4890 = vmatpush1.bf16.msra.mxu0 %v15290_v55  ;;  %5054 = vmatpush1.bf16.msra.mxu1 %v15293_v56  ;;  %v15390_v55 = vld [vmem:[%s21923_s1 + $0x1484] ss:$16 sps:$4 sm:$0xff]   ;;  %v15393_v56 = vld [vmem:[%s21923_s1 + $0x148c] ss:$16 sps:$4 sm:$0xff]  }
 0x254   :  { %4891 = vmatprep.subr.bf16.mxu0 %v15298_v57  ;;  %5055 = vmatprep.subr.bf16.mxu1 %v15301_v49  ;;  %v15388_v57 = vld [vmem:[%s21923_s1 + $0x1480] ss:$16 sps:$4 sm:$0xff]   ;;  %v15391_v49 = vld [vmem:[%s21923_s1 + $0x1488] ss:$16 sps:$4 sm:$0xff]  }
 0x257   :  { %4892 = vmatpush1.bf16.msra.mxu0 %v15296_v58  ;;  %5056 = vmatpush1.bf16.msra.mxu1 %v15299_v59  ;;  %v15396_v58 = vld [vmem:[%s21923_s1 + $0x14a4] ss:$16 sps:$4 sm:$0xff]   ;;  %v15399_v59 = vld [vmem:[%s21923_s1 + $0x14ac] ss:$16 sps:$4 sm:$0xff]  }
 0x258   :  { %4893 = vmatprep.subr.bf16.mxu0 %v15304_v60  ;;  %5057 = vmatprep.subr.bf16.mxu1 %v15307_v45  ;;  %v15394_v60 = vld [vmem:[%s21923_s1 + $0x14a0] ss:$16 sps:$4 sm:$0xff]   ;;  %v15397_v45 = vld [vmem:[%s21923_s1 + $0x14a8] ss:$16 sps:$4 sm:$0xff]  }
 0x25b   :  { %4894 = vmatpush1.bf16.msra.mxu0 %v15302_v61  ;;  %5058 = vmatpush1.bf16.msra.mxu1 %v15305_v62  ;;  %v15402_v61 = vld [vmem:[%s21923_s1 + $0x14c4] ss:$16 sps:$4 sm:$0xff]   ;;  %v15405_v62 = vld [vmem:[%s21923_s1 + $0x14cc] ss:$16 sps:$4 sm:$0xff]  }
 0x25c   :  { %4895 = vmatprep.subr.bf16.mxu0 %v15310_v63  ;;  %5059 = vmatprep.subr.bf16.mxu1 %v15313_v0  ;;  %v15400_v63 = vld [vmem:[%s21923_s1 + $0x14c0] ss:$16 sps:$4 sm:$0xff]   ;;  %v15403_v0 = vld [vmem:[%s21923_s1 + $0x14c8] ss:$16 sps:$4 sm:$0xff]  }
 0x25f   :  { %4896 = vmatpush1.bf16.msra.mxu0 %v15308_v1  ;;  %5060 = vmatpush1.bf16.msra.mxu1 %v15311_v2  ;;  %v15408_v1 = vld [vmem:[%s21923_s1 + $0x14e4] ss:$16 sps:$4 sm:$0xff]   ;;  %v15411_v2 = vld [vmem:[%s21923_s1 + $0x14ec] ss:$16 sps:$4 sm:$0xff]  }
 0x260   :  { %4897 = vmatprep.subr.bf16.mxu0 %v15316_v3  ;;  %5061 = vmatprep.subr.bf16.mxu1 %v15319_v4  ;;  %v15406_v3 = vld [vmem:[%s21923_s1 + $0x14e0] ss:$16 sps:$4 sm:$0xff]   ;;  %v15409_v4 = vld [vmem:[%s21923_s1 + $0x14e8] ss:$16 sps:$4 sm:$0xff]  }
 0x263   :  { %4898 = vmatpush1.bf16.msra.mxu0 %v15314_v5  ;;  %5062 = vmatpush1.bf16.msra.mxu1 %v15317_v6  ;;  %v15414_v5 = vld [vmem:[%s21923_s1 + $0x1504] ss:$16 sps:$4 sm:$0xff]   ;;  %v15417_v6 = vld [vmem:[%s21923_s1 + $0x150c] ss:$16 sps:$4 sm:$0xff]  }
 0x264   :  { %4899 = vmatprep.subr.bf16.mxu0 %v15322_v7  ;;  %5063 = vmatprep.subr.bf16.mxu1 %v15325_v8  ;;  %v15418_v7 = vld [vmem:[%s21924_s0 + $0x50] ss:$0 sps:$4 sm:$0xff]   ;;  %v18980_v8 = vld [vmem:[%s21924_s0 + $0x54] sm:$0xff] }
 0x267   :  { %4900 = vmatpush1.bf16.msra.mxu0 %v15320_v9  ;;  %5064 = vmatpush1.bf16.msra.mxu1 %v15323_v10  ;;  %v15412_v9 = vld [vmem:[%s21923_s1 + $0x1500] ss:$16 sps:$4 sm:$0xff]   ;;  %v15415_v10 = vld [vmem:[%s21923_s1 + $0x1508] ss:$16 sps:$4 sm:$0xff]  }
 0x268   :  { %4901 = vmatprep.subr.bf16.mxu0 %v15328_v12  ;;  %5065 = vmatprep.subr.bf16.mxu1 %v15331_v13  ;;  %v15421_v12 = vld [vmem:[%s21923_s1 + $0x1524] ss:$16 sps:$4 sm:$0xff]   ;;  %v15424_v13 = vld [vmem:[%s21923_s1 + $0x152c] ss:$16 sps:$4 sm:$0xff]  }
 0x26b   :  { %4902 = vmatpush1.bf16.msra.mxu0 %v15326_v14  ;;  %5066 = vmatpush1.bf16.msra.mxu1 %v15329_v11  ;;  %v13167_v14 = vcombine.high %v18980_v8, %v18980_v8  ;;  %v15419_v11 = vld [vmem:[%s21923_s1 + $0x1520] ss:$16 sps:$4 sm:$0xff]  }
 0x26c   :  { %4903 = vmatprep.subr.bf16.mxu0 %v15334_v15  ;;  %5067 = vmatprep.subr.bf16.mxu1 %v15337_v16  ;;  %v15422_v15 = vld [vmem:[%s21923_s1 + $0x1528] ss:$16 sps:$4 sm:$0xff]   ;;  %v15427_v16 = vld [vmem:[%s21923_s1 + $0x1544] ss:$16 sps:$4 sm:$0xff]  }
 0x26f   :  { %4904 = vmatpush1.bf16.msra.mxu0 %v15332_v17  ;;  %5068 = vmatpush1.bf16.msra.mxu1 %v15335_v18  ;;  %v15430_v17 = vld [vmem:[%s21923_s1 + $0x154c] ss:$16 sps:$4 sm:$0xff]   ;;  %v15425_v18 = vld [vmem:[%s21923_s1 + $0x1540] ss:$16 sps:$4 sm:$0xff]  }
 0x270   :  { %4905 = vmatprep.subr.bf16.mxu0 %v15340_v20  ;;  %5069 = vmatprep.subr.bf16.mxu1 %v15343_v21  ;;  %v15428_v20 = vld [vmem:[%s21923_s1 + $0x1548] ss:$16 sps:$4 sm:$0xff]   ;;  %v15433_v21 = vld [vmem:[%s21923_s1 + $0x1564] ss:$16 sps:$4 sm:$0xff]  }
 0x273   :  { %4906 = vmatpush1.bf16.msra.mxu0 %v15338_v22  ;;  %5070 = vmatpush1.bf16.msra.mxu1 %v15341_v23  ;;  %v15436_v22 = vld [vmem:[%s21923_s1 + $0x156c] ss:$16 sps:$4 sm:$0xff]   ;;  %v15431_v23 = vld [vmem:[%s21923_s1 + $0x1560] ss:$16 sps:$4 sm:$0xff]  }
 0x274   :  { %4907 = vmatprep.subr.bf16.mxu0 %v15346_v24  ;;  %5071 = vmatprep.subr.bf16.mxu1 %v15349_v25  ;;  %v15434_v24 = vld [vmem:[%s21923_s1 + $0x1568] ss:$16 sps:$4 sm:$0xff]   ;;  %v15439_v25 = vld [vmem:[%s21923_s1 + $0x1584] ss:$16 sps:$4 sm:$0xff]  }
 0x277   :  { %4908 = vmatpush1.bf16.msra.mxu0 %v15344_v26  ;;  %5072 = vmatpush1.bf16.msra.mxu1 %v15347_v28  ;;  %v15442_v26 = vld [vmem:[%s21923_s1 + $0x158c] ss:$16 sps:$4 sm:$0xff]   ;;  %v15437_v28 = vld [vmem:[%s21923_s1 + $0x1580] ss:$16 sps:$4 sm:$0xff]  }
 0x278   :  { %4909 = vmatprep.subr.bf16.mxu0 %v15352_v29  ;;  %5073 = vmatprep.subr.bf16.mxu1 %v15355_v30  ;;  %v15440_v29 = vld [vmem:[%s21923_s1 + $0x1588] ss:$16 sps:$4 sm:$0xff]   ;;  %v15445_v30 = vld [vmem:[%s21923_s1 + $0x15a4] ss:$16 sps:$4 sm:$0xff]  }
 0x27b   :  { %4910 = vmatpush1.bf16.msra.mxu0 %v15350_v32  ;;  %5074 = vmatpush1.bf16.msra.mxu1 %v15353_v33  ;;  %v15448_v32 = vld [vmem:[%s21923_s1 + $0x15ac] ss:$16 sps:$4 sm:$0xff]   ;;  %v15443_v33 = vld [vmem:[%s21923_s1 + $0x15a0] ss:$16 sps:$4 sm:$0xff]  }
 0x27c   :  { %4911 = vmatprep.subr.bf16.mxu0 %v15358_v34  ;;  %5075 = vmatprep.subr.bf16.mxu1 %v15361_v35  ;;  %v15446_v34 = vld [vmem:[%s21923_s1 + $0x15a8] ss:$16 sps:$4 sm:$0xff]   ;;  %v15451_v35 = vld [vmem:[%s21923_s1 + $0x15c4] ss:$16 sps:$4 sm:$0xff]  }
 0x27f   :  { %4912 = vmatpush1.bf16.msra.mxu0 %v15356_v36  ;;  %5076 = vmatpush1.bf16.msra.mxu1 %v15359_v37  ;;  %v15454_v36 = vld [vmem:[%s21923_s1 + $0x15cc] ss:$16 sps:$4 sm:$0xff]   ;;  %v15449_v37 = vld [vmem:[%s21923_s1 + $0x15c0] ss:$16 sps:$4 sm:$0xff]  }
 0x280   :  { %4922 = vmatprep.subr.bf16.mxu0 %v15366_v38  ;;  %5086 = vmatprep.subr.bf16.mxu1 %v15369_v39  ;;  %v15452_v38 = vld [vmem:[%s21923_s1 + $0x15c8] ss:$16 sps:$4 sm:$0xff]   ;;  %v15457_v39 = vld [vmem:[%s21923_s1 + $0x15e4] ss:$16 sps:$4 sm:$0xff]  }
 0x282   :  { %4914 = vmatmul.mubr.bf16.vlgmr.msra.gmra.mrb[0].mxu0 %v12939_v31  ;;  %5078 = vmatmul.mubr.bf16.vlgmr.msra.gmra.mrb[0].mxu1 %v12939_v31  ;;  %v15460_v31 = vld [vmem:[%s21923_s1 + $0x15ec] ss:$16 sps:$4 sm:$0xff]  }
 0x283   :  { %4923 = vmatpush1.bf16.msra.mxu0 %v15364_v40  ;;  %5087 = vmatpush1.bf16.msra.mxu1 %v15367_v41  ;;  %v15455_v40 = vld [vmem:[%s21923_s1 + $0x15e0] ss:$16 sps:$4 sm:$0xff]   ;;  %v15458_v41 = vld [vmem:[%s21923_s1 + $0x15e8] ss:$16 sps:$4 sm:$0xff]  }
 0x284   :  { %4924 = vmatprep.subr.bf16.mxu0 %v15372_v42  ;;  %5088 = vmatprep.subr.bf16.mxu1 %v15375_v27  ;;  %v15463_v42 = vld [vmem:[%s21923_s1 + $0x1604] ss:$16 sps:$4 sm:$0xff]   ;;  %v15466_v27 = vld [vmem:[%s21923_s1 + $0x160c] ss:$16 sps:$4 sm:$0xff]  }
 0x285   :  { %4954 = vmatprep.mubr.bf16.mxu0 %v16829_v19  ;;  %5118 = vmatprep.mubr.bf16.mxu1 %v16829_v19 }
 0x287   :  { %4925 = vmatpush1.bf16.msra.mxu0 %v15370_v43  ;;  %5089 = vmatpush1.bf16.msra.mxu1 %v15373_v44  ;;  %v15461_v43 = vld [vmem:[%s21923_s1 + $0x1600] ss:$16 sps:$4 sm:$0xff]   ;;  %v15464_v44 = vld [vmem:[%s21923_s1 + $0x1608] ss:$16 sps:$4 sm:$0xff]  }
 0x288   :  { %4926 = vmatprep.subr.bf16.mxu0 %v15378_v46  ;;  %5090 = vmatprep.subr.bf16.mxu1 %v15381_v47  ;;  %v15469_v46 = vld [vmem:[%s21923_s1 + $0x1624] ss:$16 sps:$4 sm:$0xff]   ;;  %v15472_v47 = vld [vmem:[%s21923_s1 + $0x162c] ss:$16 sps:$4 sm:$0xff]  }
 0x28b   :  { %4927 = vmatpush1.bf16.msra.mxu0 %v15376_v48  ;;  %5091 = vmatpush1.bf16.msra.mxu1 %v15379_v50  ;;  %v15467_v48 = vld [vmem:[%s21923_s1 + $0x1620] ss:$16 sps:$4 sm:$0xff]   ;;  %v15470_v50 = vld [vmem:[%s21923_s1 + $0x1628] ss:$16 sps:$4 sm:$0xff]  }
 0x28c   :  { %4928 = vmatprep.subr.bf16.mxu0 %v15384_v51  ;;  %5092 = vmatprep.subr.bf16.mxu1 %v15387_v52  ;;  %v15475_v51 = vld [vmem:[%s21923_s1 + $0x1644] ss:$16 sps:$4 sm:$0xff]   ;;  %v15478_v52 = vld [vmem:[%s21923_s1 + $0x164c] ss:$16 sps:$4 sm:$0xff]  }
 0x28f   :  { %4929 = vmatpush1.bf16.msra.mxu0 %v15382_v53  ;;  %5093 = vmatpush1.bf16.msra.mxu1 %v15385_v54  ;;  %v15473_v53 = vld [vmem:[%s21923_s1 + $0x1640] ss:$16 sps:$4 sm:$0xff]   ;;  %v15476_v54 = vld [vmem:[%s21923_s1 + $0x1648] ss:$16 sps:$4 sm:$0xff]  }
 0x290   :  { %4930 = vmatprep.subr.bf16.mxu0 %v15390_v55  ;;  %5094 = vmatprep.subr.bf16.mxu1 %v15393_v56  ;;  %v15481_v55 = vld [vmem:[%s21923_s1 + $0x1664] ss:$16 sps:$4 sm:$0xff]   ;;  %v15484_v56 = vld [vmem:[%s21923_s1 + $0x166c] ss:$16 sps:$4 sm:$0xff]  }
 0x293   :  { %4931 = vmatpush1.bf16.msra.mxu0 %v15388_v57  ;;  %5095 = vmatpush1.bf16.msra.mxu1 %v15391_v49  ;;  %v15479_v57 = vld [vmem:[%s21923_s1 + $0x1660] ss:$16 sps:$4 sm:$0xff]   ;;  %v15482_v49 = vld [vmem:[%s21923_s1 + $0x1668] ss:$16 sps:$4 sm:$0xff]  }
 0x294   :  { %4932 = vmatprep.subr.bf16.mxu0 %v15396_v58  ;;  %5096 = vmatprep.subr.bf16.mxu1 %v15399_v59  ;;  %v15487_v58 = vld [vmem:[%s21923_s1 + $0x1684] ss:$16 sps:$4 sm:$0xff]   ;;  %v15490_v59 = vld [vmem:[%s21923_s1 + $0x168c] ss:$16 sps:$4 sm:$0xff]  }
 0x297   :  { %4933 = vmatpush1.bf16.msra.mxu0 %v15394_v60  ;;  %5097 = vmatpush1.bf16.msra.mxu1 %v15397_v45  ;;  %v15485_v60 = vld [vmem:[%s21923_s1 + $0x1680] ss:$16 sps:$4 sm:$0xff]   ;;  %v15488_v45 = vld [vmem:[%s21923_s1 + $0x1688] ss:$16 sps:$4 sm:$0xff]  }
 0x298   :  { %4934 = vmatprep.subr.bf16.mxu0 %v15402_v61  ;;  %5098 = vmatprep.subr.bf16.mxu1 %v15405_v62  ;;  %v15493_v61 = vld [vmem:[%s21923_s1 + $0x16a4] ss:$16 sps:$4 sm:$0xff]   ;;  %v15496_v62 = vld [vmem:[%s21923_s1 + $0x16ac] ss:$16 sps:$4 sm:$0xff]  }
 0x29b   :  { %4935 = vmatpush1.bf16.msra.mxu0 %v15400_v63  ;;  %5099 = vmatpush1.bf16.msra.mxu1 %v15403_v0  ;;  %v15491_v63 = vld [vmem:[%s21923_s1 + $0x16a0] ss:$16 sps:$4 sm:$0xff]   ;;  %v15494_v0 = vld [vmem:[%s21923_s1 + $0x16a8] ss:$16 sps:$4 sm:$0xff]  }
 0x29c   :  { %4936 = vmatprep.subr.bf16.mxu0 %v15408_v1  ;;  %5100 = vmatprep.subr.bf16.mxu1 %v15411_v2  ;;  %v15499_v1 = vld [vmem:[%s21923_s1 + $0x16c4] ss:$16 sps:$4 sm:$0xff]   ;;  %v15502_v2 = vld [vmem:[%s21923_s1 + $0x16cc] ss:$16 sps:$4 sm:$0xff]  }
 0x29f   :  { %4937 = vmatpush1.bf16.msra.mxu0 %v15406_v3  ;;  %5101 = vmatpush1.bf16.msra.mxu1 %v15409_v4  ;;  %v15497_v3 = vld [vmem:[%s21923_s1 + $0x16c0] ss:$16 sps:$4 sm:$0xff]   ;;  %v15500_v4 = vld [vmem:[%s21923_s1 + $0x16c8] ss:$16 sps:$4 sm:$0xff]  }
 0x2a0   :  { %6504 = vmatprep.subr.bf16.mxu0 %v15414_v5  ;;  %6668 = vmatprep.subr.bf16.mxu1 %v15417_v6  ;;  %v15505_v5 = vld [vmem:[%s21923_s1 + $0x16e4] ss:$16 sps:$4 sm:$0xff]   ;;  %v15508_v6 = vld [vmem:[%s21923_s1 + $0x16ec] ss:$16 sps:$4 sm:$0xff]  }
 0x2a2   :  { %4955 = vmatmul.mubr.bf16.vlgmr.msra.gmra.mrb[0].mxu0 %v15418_v7  ;;  %5119 = vmatmul.mubr.bf16.vlgmr.msra.gmra.mrb[0].mxu1 %v15418_v7  ;;  %v15503_v7 = vld [vmem:[%s21923_s1 + $0x16e0] ss:$16 sps:$4 sm:$0xff]  }
 0x2a3   :  { %6505 = vmatpush1.bf16.msra.mxu0 %v15412_v9  ;;  %6669 = vmatpush1.bf16.msra.mxu1 %v15415_v10  ;;  %v15506_v9 = vld [vmem:[%s21923_s1 + $0x16e8] ss:$16 sps:$4 sm:$0xff]   ;;  %v15513_v10 = vld [vmem:[%s21923_s1 + $0x1704] ss:$16 sps:$4 sm:$0xff]  }
 0x2a4   :  { %6506 = vmatprep.subr.bf16.mxu0 %v15421_v12  ;;  %6670 = vmatprep.subr.bf16.mxu1 %v15424_v13  ;;  %v15516_v12 = vld [vmem:[%s21923_s1 + $0x170c] ss:$16 sps:$4 sm:$0xff]  }
 0x2a5   :  { %6536 = vmatprep.mubr.bf16.mxu0 %v13167_v14  ;;  %6700 = vmatprep.mubr.bf16.mxu1 %v13167_v14  ;;  %v19179_v13 = vld [vmem:[%s21924_s0 + $0x5c] sm:$0xff]  ;;  %v13166_v14 = vcombine.low %v18980_v8, %v18980_v8 }
 0x2a6   :  { %v15522_v8 = vld [vmem:[%s21923_s1 + $0x172c] ss:$16 sps:$4 sm:$0xff]  }
 0x2a7   :  { %6507 = vmatpush1.bf16.msra.mxu0 %v15419_v11  ;;  %6671 = vmatpush1.bf16.msra.mxu1 %v15422_v15  ;;  %v15511_v11 = vld [vmem:[%s21923_s1 + $0x1700] ss:$16 sps:$4 sm:$0xff]   ;;  %v15514_v15 = vld [vmem:[%s21923_s1 + $0x1708] ss:$16 sps:$4 sm:$0xff]  }
 0x2a8   :  { %6508 = vmatprep.subr.bf16.mxu0 %v15427_v16  ;;  %6672 = vmatprep.subr.bf16.mxu1 %v15430_v17  ;;  %v15519_v16 = vld [vmem:[%s21923_s1 + $0x1724] ss:$16 sps:$4 sm:$0xff]   ;;  %v13169_v17 = vcombine.high %v19179_v13, %v19179_v13 }
 0x2ab   :  { %6509 = vmatpush1.bf16.msra.mxu0 %v15425_v18  ;;  %6673 = vmatpush1.bf16.msra.mxu1 %v15428_v20  ;;  %v15517_v18 = vld [vmem:[%s21923_s1 + $0x1720] ss:$16 sps:$4 sm:$0xff]   ;;  %v15520_v20 = vld [vmem:[%s21923_s1 + $0x1728] ss:$16 sps:$4 sm:$0xff]  }
 0x2ac   :  { %6510 = vmatprep.subr.bf16.mxu0 %v15433_v21  ;;  %6674 = vmatprep.subr.bf16.mxu1 %v15436_v22  ;;  %v15525_v21 = vld [vmem:[%s21923_s1 + $0x1744] ss:$16 sps:$4 sm:$0xff]   ;;  %v15528_v22 = vld [vmem:[%s21923_s1 + $0x174c] ss:$16 sps:$4 sm:$0xff]  }
 0x2af   :  { %6511 = vmatpush1.bf16.msra.mxu0 %v15431_v23  ;;  %6675 = vmatpush1.bf16.msra.mxu1 %v15434_v24  ;;  %v15523_v23 = vld [vmem:[%s21923_s1 + $0x1740] ss:$16 sps:$4 sm:$0xff]   ;;  %v15526_v24 = vld [vmem:[%s21923_s1 + $0x1748] ss:$16 sps:$4 sm:$0xff]  }
 0x2b0   :  { %6512 = vmatprep.subr.bf16.mxu0 %v15439_v25  ;;  %6676 = vmatprep.subr.bf16.mxu1 %v15442_v26  ;;  %v15531_v25 = vld [vmem:[%s21923_s1 + $0x1764] ss:$16 sps:$4 sm:$0xff]   ;;  %v15534_v26 = vld [vmem:[%s21923_s1 + $0x176c] ss:$16 sps:$4 sm:$0xff]  }
 0x2b3   :  { %6513 = vmatpush1.bf16.msra.mxu0 %v15437_v28  ;;  %6677 = vmatpush1.bf16.msra.mxu1 %v15440_v29  ;;  %v15529_v28 = vld [vmem:[%s21923_s1 + $0x1760] ss:$16 sps:$4 sm:$0xff]   ;;  %v15532_v29 = vld [vmem:[%s21923_s1 + $0x1768] ss:$16 sps:$4 sm:$0xff]  }
 0x2b4   :  { %6514 = vmatprep.subr.bf16.mxu0 %v15445_v30  ;;  %6678 = vmatprep.subr.bf16.mxu1 %v15448_v32  ;;  %v15537_v30 = vld [vmem:[%s21923_s1 + $0x1784] ss:$16 sps:$4 sm:$0xff]   ;;  %v15540_v32 = vld [vmem:[%s21923_s1 + $0x178c] ss:$16 sps:$4 sm:$0xff]  }
 0x2b7   :  { %6515 = vmatpush1.bf16.msra.mxu0 %v15443_v33  ;;  %6679 = vmatpush1.bf16.msra.mxu1 %v15446_v34  ;;  %v15535_v33 = vld [vmem:[%s21923_s1 + $0x1780] ss:$16 sps:$4 sm:$0xff]   ;;  %v15538_v34 = vld [vmem:[%s21923_s1 + $0x1788] ss:$16 sps:$4 sm:$0xff]  }
 0x2b8   :  { %6516 = vmatprep.subr.bf16.mxu0 %v15451_v35  ;;  %6680 = vmatprep.subr.bf16.mxu1 %v15454_v36  ;;  %v15543_v35 = vld [vmem:[%s21923_s1 + $0x17a4] ss:$16 sps:$4 sm:$0xff]   ;;  %v15546_v36 = vld [vmem:[%s21923_s1 + $0x17ac] ss:$16 sps:$4 sm:$0xff]  }
 0x2bb   :  { %6517 = vmatpush1.bf16.msra.mxu0 %v15449_v37  ;;  %6681 = vmatpush1.bf16.msra.mxu1 %v15452_v38  ;;  %v15541_v37 = vld [vmem:[%s21923_s1 + $0x17a0] ss:$16 sps:$4 sm:$0xff]   ;;  %v15544_v38 = vld [vmem:[%s21923_s1 + $0x17a8] ss:$16 sps:$4 sm:$0xff]  }
 0x2bc   :  { %6518 = vmatprep.subr.bf16.mxu0 %v15457_v39  ;;  %6682 = vmatprep.subr.bf16.mxu1 %v15460_v31  ;;  %v15549_v39 = vld [vmem:[%s21923_s1 + $0x17c4] ss:$16 sps:$4 sm:$0xff]   ;;  %v15552_v31 = vld [vmem:[%s21923_s1 + $0x17cc] ss:$16 sps:$4 sm:$0xff]  }
 0x2bf   :  { %6519 = vmatpush1.bf16.msra.mxu0 %v15455_v40  ;;  %6683 = vmatpush1.bf16.msra.mxu1 %v15458_v41  ;;  %v15547_v40 = vld [vmem:[%s21923_s1 + $0x17c0] ss:$16 sps:$4 sm:$0xff]   ;;  %v15550_v41 = vld [vmem:[%s21923_s1 + $0x17c8] ss:$16 sps:$4 sm:$0xff]  }
 0x2c0   :  { %6520 = vmatprep.subr.bf16.mxu0 %v15463_v42  ;;  %6684 = vmatprep.subr.bf16.mxu1 %v15466_v27  ;;  %v15555_v42 = vld [vmem:[%s21923_s1 + $0x17e4] ss:$16 sps:$4 sm:$0xff]   ;;  %v15558_v27 = vld [vmem:[%s21923_s1 + $0x17ec] ss:$16 sps:$4 sm:$0xff]  }
 0x2c3   :  { %6521 = vmatpush1.bf16.msra.mxu0 %v15461_v43  ;;  %6685 = vmatpush1.bf16.msra.mxu1 %v15464_v44  ;;  %v15553_v43 = vld [vmem:[%s21923_s1 + $0x17e0] ss:$16 sps:$4 sm:$0xff]   ;;  %v15556_v44 = vld [vmem:[%s21923_s1 + $0x17e8] ss:$16 sps:$4 sm:$0xff]  }
 0x2c4   :  { %6522 = vmatprep.subr.bf16.mxu0 %v15469_v46  ;;  %6686 = vmatprep.subr.bf16.mxu1 %v15472_v47  ;;  %v15561_v46 = vld [vmem:[%s21923_s1 + $0x1804] ss:$16 sps:$4 sm:$0xff]   ;;  %v15564_v47 = vld [vmem:[%s21923_s1 + $0x180c] ss:$16 sps:$4 sm:$0xff]  }
 0x2c7   :  { %6523 = vmatpush1.bf16.msra.mxu0 %v15467_v48  ;;  %6687 = vmatpush1.bf16.msra.mxu1 %v15470_v50  ;;  %v15559_v48 = vld [vmem:[%s21923_s1 + $0x1800] ss:$16 sps:$4 sm:$0xff]   ;;  %v15562_v50 = vld [vmem:[%s21923_s1 + $0x1808] ss:$16 sps:$4 sm:$0xff]  }
 0x2c8   :  { %6524 = vmatprep.subr.bf16.mxu0 %v15475_v51  ;;  %6688 = vmatprep.subr.bf16.mxu1 %v15478_v52  ;;  %v15567_v51 = vld [vmem:[%s21923_s1 + $0x1824] ss:$16 sps:$4 sm:$0xff]   ;;  %v15570_v52 = vld [vmem:[%s21923_s1 + $0x182c] ss:$16 sps:$4 sm:$0xff]  }
 0x2cb   :  { %6525 = vmatpush1.bf16.msra.mxu0 %v15473_v53  ;;  %6689 = vmatpush1.bf16.msra.mxu1 %v15476_v54  ;;  %v15565_v53 = vld [vmem:[%s21923_s1 + $0x1820] ss:$16 sps:$4 sm:$0xff]   ;;  %v15568_v54 = vld [vmem:[%s21923_s1 + $0x1828] ss:$16 sps:$4 sm:$0xff]  }
 0x2cc   :  { %6526 = vmatprep.subr.bf16.mxu0 %v15481_v55  ;;  %6690 = vmatprep.subr.bf16.mxu1 %v15484_v56  ;;  %v15573_v55 = vld [vmem:[%s21923_s1 + $0x1844] ss:$16 sps:$4 sm:$0xff]   ;;  %v15576_v56 = vld [vmem:[%s21923_s1 + $0x184c] ss:$16 sps:$4 sm:$0xff]  }
 0x2cf   :  { %6527 = vmatpush1.bf16.msra.mxu0 %v15479_v57  ;;  %6691 = vmatpush1.bf16.msra.mxu1 %v15482_v49  ;;  %v15571_v57 = vld [vmem:[%s21923_s1 + $0x1840] ss:$16 sps:$4 sm:$0xff]   ;;  %v15574_v49 = vld [vmem:[%s21923_s1 + $0x1848] ss:$16 sps:$4 sm:$0xff]  }
 0x2d0   :  { %6528 = vmatprep.subr.bf16.mxu0 %v15487_v58  ;;  %6692 = vmatprep.subr.bf16.mxu1 %v15490_v59  ;;  %v15579_v58 = vld [vmem:[%s21923_s1 + $0x1864] ss:$16 sps:$4 sm:$0xff]   ;;  %v15582_v59 = vld [vmem:[%s21923_s1 + $0x186c] ss:$16 sps:$4 sm:$0xff]  }
 0x2d3   :  { %6529 = vmatpush1.bf16.msra.mxu0 %v15485_v60  ;;  %6693 = vmatpush1.bf16.msra.mxu1 %v15488_v45  ;;  %v15577_v60 = vld [vmem:[%s21923_s1 + $0x1860] ss:$16 sps:$4 sm:$0xff]   ;;  %v15580_v45 = vld [vmem:[%s21923_s1 + $0x1868] ss:$16 sps:$4 sm:$0xff]  }
 0x2d4   :  { %6530 = vmatprep.subr.bf16.mxu0 %v15493_v61  ;;  %6694 = vmatprep.subr.bf16.mxu1 %v15496_v62  ;;  %v15585_v61 = vld [vmem:[%s21923_s1 + $0x1884] ss:$16 sps:$4 sm:$0xff]   ;;  %v15588_v62 = vld [vmem:[%s21923_s1 + $0x188c] ss:$16 sps:$4 sm:$0xff]  }
 0x2d7   :  { %6531 = vmatpush1.bf16.msra.mxu0 %v15491_v63  ;;  %6695 = vmatpush1.bf16.msra.mxu1 %v15494_v0  ;;  %v15583_v63 = vld [vmem:[%s21923_s1 + $0x1880] ss:$16 sps:$4 sm:$0xff]   ;;  %v15586_v0 = vld [vmem:[%s21923_s1 + $0x1888] ss:$16 sps:$4 sm:$0xff]  }
 0x2d8   :  { %6532 = vmatprep.subr.bf16.mxu0 %v15499_v1  ;;  %6696 = vmatprep.subr.bf16.mxu1 %v15502_v2  ;;  %v15591_v1 = vld [vmem:[%s21923_s1 + $0x18a4] ss:$16 sps:$4 sm:$0xff]   ;;  %v15594_v2 = vld [vmem:[%s21923_s1 + $0x18ac] ss:$16 sps:$4 sm:$0xff]  }
 0x2db   :  { %6533 = vmatpush1.bf16.msra.mxu0 %v15497_v3  ;;  %6697 = vmatpush1.bf16.msra.mxu1 %v15500_v4  ;;  %v15589_v3 = vld [vmem:[%s21923_s1 + $0x18a0] ss:$16 sps:$4 sm:$0xff]   ;;  %v15592_v4 = vld [vmem:[%s21923_s1 + $0x18a8] ss:$16 sps:$4 sm:$0xff]  }
 0x2dc   :  { %6534 = vmatprep.subr.bf16.mxu0 %v15505_v5  ;;  %6698 = vmatprep.subr.bf16.mxu1 %v15508_v6  ;;  %v15597_v5 = vld [vmem:[%s21923_s1 + $0x18c4] ss:$16 sps:$4 sm:$0xff]   ;;  %v15600_v6 = vld [vmem:[%s21923_s1 + $0x18cc] ss:$16 sps:$4 sm:$0xff]  }
 0x2df   :  { %6535 = vmatpush1.bf16.msra.mxu0 %v15503_v7  ;;  %6699 = vmatpush1.bf16.msra.mxu1 %v15506_v9  ;;  %v15595_v7 = vld [vmem:[%s21923_s1 + $0x18c0] ss:$16 sps:$4 sm:$0xff]   ;;  %v15598_v9 = vld [vmem:[%s21923_s1 + $0x18c8] ss:$16 sps:$4 sm:$0xff]  }
 0x2e0   :  { %6545 = vmatprep.subr.bf16.mxu0 %v15513_v10  ;;  %6709 = vmatprep.subr.bf16.mxu1 %v15516_v12  ;;  %v15603_v10 = vld [vmem:[%s21923_s1 + $0x18e4] ss:$16 sps:$4 sm:$0xff]   ;;  %v15606_v12 = vld [vmem:[%s21923_s1 + $0x18ec] ss:$16 sps:$4 sm:$0xff]  }
 0x2e2   :  { %6537 = vmatmul.mubr.bf16.vlgmr.msra.gmra.mrb[0].mxu0 %v13166_v14  ;;  %6701 = vmatmul.mubr.bf16.vlgmr.msra.gmra.mrb[0].mxu1 %v13166_v14  ;;  %v15601_v14 = vld [vmem:[%s21923_s1 + $0x18e0] ss:$16 sps:$4 sm:$0xff]  }
 0x2e3   :  { %6546 = vmatpush1.bf16.msra.mxu0 %v15511_v11  ;;  %6710 = vmatpush1.bf16.msra.mxu1 %v15514_v15  ;;  %v15604_v11 = vld [vmem:[%s21923_s1 + $0x18e8] ss:$16 sps:$4 sm:$0xff]   ;;  %v15611_v15 = vld [vmem:[%s21923_s1 + $0x1904] ss:$16 sps:$4 sm:$0xff]  }
 0x2e4   :  { %6547 = vmatprep.subr.bf16.mxu0 %v15519_v16  ;;  %6711 = vmatprep.subr.bf16.mxu1 %v15522_v8  ;;  %v15614_v16 = vld [vmem:[%s21923_s1 + $0x190c] ss:$16 sps:$4 sm:$0xff]   ;;  %v19380_v8 = vld [vmem:[%s21924_s0 + $0x64] sm:$0xff] }
 0x2e5   :  { %6577 = vmatprep.mubr.bf16.mxu0 %v13169_v17  ;;  %6741 = vmatprep.mubr.bf16.mxu1 %v13169_v17  ;;  %v13168_v17 = vcombine.low %v19179_v13, %v19179_v13  ;;  %v15620_v13 = vld [vmem:[%s21923_s1 + $0x192c] ss:$16 sps:$4 sm:$0xff]  }
 0x2e7   :  { %6548 = vmatpush1.bf16.msra.mxu0 %v15517_v18  ;;  %6712 = vmatpush1.bf16.msra.mxu1 %v15520_v20  ;;  %v15609_v18 = vld [vmem:[%s21923_s1 + $0x1900] ss:$16 sps:$4 sm:$0xff]   ;;  %v15612_v20 = vld [vmem:[%s21923_s1 + $0x1908] ss:$16 sps:$4 sm:$0xff]  }
 0x2e8   :  { %6549 = vmatprep.subr.bf16.mxu0 %v15525_v21  ;;  %6713 = vmatprep.subr.bf16.mxu1 %v15528_v22  ;;  %v15617_v21 = vld [vmem:[%s21923_s1 + $0x1924] ss:$16 sps:$4 sm:$0xff]   ;;  %v13171_v22 = vcombine.high %v19380_v8, %v19380_v8 }
 0x2eb   :  { %6550 = vmatpush1.bf16.msra.mxu0 %v15523_v23  ;;  %6714 = vmatpush1.bf16.msra.mxu1 %v15526_v24  ;;  %v15615_v23 = vld [vmem:[%s21923_s1 + $0x1920] ss:$16 sps:$4 sm:$0xff]   ;;  %v15618_v24 = vld [vmem:[%s21923_s1 + $0x1928] ss:$16 sps:$4 sm:$0xff]  }
 0x2ec   :  { %6551 = vmatprep.subr.bf16.mxu0 %v15531_v25  ;;  %6715 = vmatprep.subr.bf16.mxu1 %v15534_v26  ;;  %v15623_v25 = vld [vmem:[%s21923_s1 + $0x1944] ss:$16 sps:$4 sm:$0xff]   ;;  %v15626_v26 = vld [vmem:[%s21923_s1 + $0x194c] ss:$16 sps:$4 sm:$0xff]  }
 0x2ef   :  { %6552 = vmatpush1.bf16.msra.mxu0 %v15529_v28  ;;  %6716 = vmatpush1.bf16.msra.mxu1 %v15532_v29  ;;  %v15621_v28 = vld [vmem:[%s21923_s1 + $0x1940] ss:$16 sps:$4 sm:$0xff]   ;;  %v15624_v29 = vld [vmem:[%s21923_s1 + $0x1948] ss:$16 sps:$4 sm:$0xff]  }
 0x2f0   :  { %6553 = vmatprep.subr.bf16.mxu0 %v15537_v30  ;;  %6717 = vmatprep.subr.bf16.mxu1 %v15540_v32  ;;  %v15629_v30 = vld [vmem:[%s21923_s1 + $0x1964] ss:$16 sps:$4 sm:$0xff]   ;;  %v15632_v32 = vld [vmem:[%s21923_s1 + $0x196c] ss:$16 sps:$4 sm:$0xff]  }
 0x2f3   :  { %6554 = vmatpush1.bf16.msra.mxu0 %v15535_v33  ;;  %6718 = vmatpush1.bf16.msra.mxu1 %v15538_v34  ;;  %v15627_v33 = vld [vmem:[%s21923_s1 + $0x1960] ss:$16 sps:$4 sm:$0xff]   ;;  %v15630_v34 = vld [vmem:[%s21923_s1 + $0x1968] ss:$16 sps:$4 sm:$0xff]  }
 0x2f4   :  { %6555 = vmatprep.subr.bf16.mxu0 %v15543_v35  ;;  %6719 = vmatprep.subr.bf16.mxu1 %v15546_v36  ;;  %v15635_v35 = vld [vmem:[%s21923_s1 + $0x1984] ss:$16 sps:$4 sm:$0xff]   ;;  %v15638_v36 = vld [vmem:[%s21923_s1 + $0x198c] ss:$16 sps:$4 sm:$0xff]  }
 0x2f7   :  { %6556 = vmatpush1.bf16.msra.mxu0 %v15541_v37  ;;  %6720 = vmatpush1.bf16.msra.mxu1 %v15544_v38  ;;  %v15633_v37 = vld [vmem:[%s21923_s1 + $0x1980] ss:$16 sps:$4 sm:$0xff]   ;;  %v15636_v38 = vld [vmem:[%s21923_s1 + $0x1988] ss:$16 sps:$4 sm:$0xff]  }
 0x2f8   :  { %6557 = vmatprep.subr.bf16.mxu0 %v15549_v39  ;;  %6721 = vmatprep.subr.bf16.mxu1 %v15552_v31  ;;  %v15641_v39 = vld [vmem:[%s21923_s1 + $0x19a4] ss:$16 sps:$4 sm:$0xff]   ;;  %v15644_v31 = vld [vmem:[%s21923_s1 + $0x19ac] ss:$16 sps:$4 sm:$0xff]  }
 0x2fb   :  { %6558 = vmatpush1.bf16.msra.mxu0 %v15547_v40  ;;  %6722 = vmatpush1.bf16.msra.mxu1 %v15550_v41  ;;  %v15639_v40 = vld [vmem:[%s21923_s1 + $0x19a0] ss:$16 sps:$4 sm:$0xff]   ;;  %v15642_v41 = vld [vmem:[%s21923_s1 + $0x19a8] ss:$16 sps:$4 sm:$0xff]  }
 0x2fc   :  { %6559 = vmatprep.subr.bf16.mxu0 %v15555_v42  ;;  %6723 = vmatprep.subr.bf16.mxu1 %v15558_v27  ;;  %v15647_v42 = vld [vmem:[%s21923_s1 + $0x19c4] ss:$16 sps:$4 sm:$0xff]   ;;  %v15650_v27 = vld [vmem:[%s21923_s1 + $0x19cc] ss:$16 sps:$4 sm:$0xff]  }
 0x2ff   :  { %6560 = vmatpush1.bf16.msra.mxu0 %v15553_v43  ;;  %6724 = vmatpush1.bf16.msra.mxu1 %v15556_v44  ;;  %v15645_v43 = vld [vmem:[%s21923_s1 + $0x19c0] ss:$16 sps:$4 sm:$0xff]   ;;  %v15648_v44 = vld [vmem:[%s21923_s1 + $0x19c8] ss:$16 sps:$4 sm:$0xff]  }
 0x300   :  { %6561 = vmatprep.subr.bf16.mxu0 %v15561_v46  ;;  %6725 = vmatprep.subr.bf16.mxu1 %v15564_v47  ;;  %v15653_v46 = vld [vmem:[%s21923_s1 + $0x19e4] ss:$16 sps:$4 sm:$0xff]   ;;  %v15656_v47 = vld [vmem:[%s21923_s1 + $0x19ec] ss:$16 sps:$4 sm:$0xff]  }
 0x303   :  { %6562 = vmatpush1.bf16.msra.mxu0 %v15559_v48  ;;  %6726 = vmatpush1.bf16.msra.mxu1 %v15562_v50  ;;  %v15651_v48 = vld [vmem:[%s21923_s1 + $0x19e0] ss:$16 sps:$4 sm:$0xff]   ;;  %v15654_v50 = vld [vmem:[%s21923_s1 + $0x19e8] ss:$16 sps:$4 sm:$0xff]  }
 0x304   :  { %6563 = vmatprep.subr.bf16.mxu0 %v15567_v51  ;;  %6727 = vmatprep.subr.bf16.mxu1 %v15570_v52  ;;  %v15659_v51 = vld [vmem:[%s21923_s1 + $0x1a04] ss:$16 sps:$4 sm:$0xff]   ;;  %v15662_v52 = vld [vmem:[%s21923_s1 + $0x1a0c] ss:$16 sps:$4 sm:$0xff]  }
 0x307   :  { %6564 = vmatpush1.bf16.msra.mxu0 %v15565_v53  ;;  %6728 = vmatpush1.bf16.msra.mxu1 %v15568_v54  ;;  %v15657_v53 = vld [vmem:[%s21923_s1 + $0x1a00] ss:$16 sps:$4 sm:$0xff]   ;;  %v15660_v54 = vld [vmem:[%s21923_s1 + $0x1a08] ss:$16 sps:$4 sm:$0xff]  }
 0x308   :  { %6565 = vmatprep.subr.bf16.mxu0 %v15573_v55  ;;  %6729 = vmatprep.subr.bf16.mxu1 %v15576_v56  ;;  %v15665_v55 = vld [vmem:[%s21923_s1 + $0x1a24] ss:$16 sps:$4 sm:$0xff]   ;;  %v15668_v56 = vld [vmem:[%s21923_s1 + $0x1a2c] ss:$16 sps:$4 sm:$0xff]  }
 0x30b   :  { %6566 = vmatpush1.bf16.msra.mxu0 %v15571_v57  ;;  %6730 = vmatpush1.bf16.msra.mxu1 %v15574_v49  ;;  %v15663_v57 = vld [vmem:[%s21923_s1 + $0x1a20] ss:$16 sps:$4 sm:$0xff]   ;;  %v15666_v49 = vld [vmem:[%s21923_s1 + $0x1a28] ss:$16 sps:$4 sm:$0xff]  }
 0x30c   :  { %6567 = vmatprep.subr.bf16.mxu0 %v15579_v58  ;;  %6731 = vmatprep.subr.bf16.mxu1 %v15582_v59  ;;  %v15671_v58 = vld [vmem:[%s21923_s1 + $0x1a44] ss:$16 sps:$4 sm:$0xff]   ;;  %v15674_v59 = vld [vmem:[%s21923_s1 + $0x1a4c] ss:$16 sps:$4 sm:$0xff]  }
 0x30f   :  { %6568 = vmatpush1.bf16.msra.mxu0 %v15577_v60  ;;  %6732 = vmatpush1.bf16.msra.mxu1 %v15580_v45  ;;  %v15669_v60 = vld [vmem:[%s21923_s1 + $0x1a40] ss:$16 sps:$4 sm:$0xff]   ;;  %v15672_v45 = vld [vmem:[%s21923_s1 + $0x1a48] ss:$16 sps:$4 sm:$0xff]  }
 0x310   :  { %6569 = vmatprep.subr.bf16.mxu0 %v15585_v61  ;;  %6733 = vmatprep.subr.bf16.mxu1 %v15588_v62  ;;  %v15677_v61 = vld [vmem:[%s21923_s1 + $0x1a64] ss:$16 sps:$4 sm:$0xff]   ;;  %v15680_v62 = vld [vmem:[%s21923_s1 + $0x1a6c] ss:$16 sps:$4 sm:$0xff]  }
 0x313   :  { %6570 = vmatpush1.bf16.msra.mxu0 %v15583_v63  ;;  %6734 = vmatpush1.bf16.msra.mxu1 %v15586_v0  ;;  %v15675_v63 = vld [vmem:[%s21923_s1 + $0x1a60] ss:$16 sps:$4 sm:$0xff]   ;;  %v15678_v0 = vld [vmem:[%s21923_s1 + $0x1a68] ss:$16 sps:$4 sm:$0xff]  }
 0x314   :  { %6571 = vmatprep.subr.bf16.mxu0 %v15591_v1  ;;  %6735 = vmatprep.subr.bf16.mxu1 %v15594_v2  ;;  %v15683_v1 = vld [vmem:[%s21923_s1 + $0x1a84] ss:$16 sps:$4 sm:$0xff]   ;;  %v15686_v2 = vld [vmem:[%s21923_s1 + $0x1a8c] ss:$16 sps:$4 sm:$0xff]  }
 0x317   :  { %6572 = vmatpush1.bf16.msra.mxu0 %v15589_v3  ;;  %6736 = vmatpush1.bf16.msra.mxu1 %v15592_v4  ;;  %v15681_v3 = vld [vmem:[%s21923_s1 + $0x1a80] ss:$16 sps:$4 sm:$0xff]   ;;  %v15684_v4 = vld [vmem:[%s21923_s1 + $0x1a88] ss:$16 sps:$4 sm:$0xff]  }
 0x318   :  { %6573 = vmatprep.subr.bf16.mxu0 %v15597_v5  ;;  %6737 = vmatprep.subr.bf16.mxu1 %v15600_v6  ;;  %v15689_v5 = vld [vmem:[%s21923_s1 + $0x1aa4] ss:$16 sps:$4 sm:$0xff]   ;;  %v15692_v6 = vld [vmem:[%s21923_s1 + $0x1aac] ss:$16 sps:$4 sm:$0xff]  }
 0x31b   :  { %6574 = vmatpush1.bf16.msra.mxu0 %v15595_v7  ;;  %6738 = vmatpush1.bf16.msra.mxu1 %v15598_v9  ;;  %v15687_v7 = vld [vmem:[%s21923_s1 + $0x1aa0] ss:$16 sps:$4 sm:$0xff]   ;;  %v15690_v9 = vld [vmem:[%s21923_s1 + $0x1aa8] ss:$16 sps:$4 sm:$0xff]  }
 0x31c   :  { %6575 = vmatprep.subr.bf16.mxu0 %v15603_v10  ;;  %6739 = vmatprep.subr.bf16.mxu1 %v15606_v12  ;;  %v15695_v10 = vld [vmem:[%s21923_s1 + $0x1ac4] ss:$16 sps:$4 sm:$0xff]   ;;  %v15698_v12 = vld [vmem:[%s21923_s1 + $0x1acc] ss:$16 sps:$4 sm:$0xff]  }
 0x31f   :  { %6576 = vmatpush1.bf16.msra.mxu0 %v15601_v14  ;;  %6740 = vmatpush1.bf16.msra.mxu1 %v15604_v11  ;;  %v15693_v14 = vld [vmem:[%s21923_s1 + $0x1ac0] ss:$16 sps:$4 sm:$0xff]   ;;  %v15696_v11 = vld [vmem:[%s21923_s1 + $0x1ac8] ss:$16 sps:$4 sm:$0xff]  }
 0x320   :  { %6586 = vmatprep.subr.bf16.mxu0 %v15611_v15  ;;  %6750 = vmatprep.subr.bf16.mxu1 %v15614_v16  ;;  %v15701_v15 = vld [vmem:[%s21923_s1 + $0x1ae4] ss:$16 sps:$4 sm:$0xff]   ;;  %v15704_v16 = vld [vmem:[%s21923_s1 + $0x1aec] ss:$16 sps:$4 sm:$0xff]  }
 0x322   :  { %6578 = vmatmul.mubr.bf16.vlgmr.msra.gmra.mrb[0].mxu0 %v13168_v17  ;;  %6742 = vmatmul.mubr.bf16.vlgmr.msra.gmra.mrb[0].mxu1 %v13168_v17  ;;  %v15699_v17 = vld [vmem:[%s21923_s1 + $0x1ae0] ss:$16 sps:$4 sm:$0xff]  }
 0x323   :  { %6587 = vmatpush1.bf16.msra.mxu0 %v15609_v18  ;;  %6751 = vmatpush1.bf16.msra.mxu1 %v15612_v20  ;;  %v15702_v18 = vld [vmem:[%s21923_s1 + $0x1ae8] ss:$16 sps:$4 sm:$0xff]   ;;  %v15709_v20 = vld [vmem:[%s21923_s1 + $0x1b04] ss:$16 sps:$4 sm:$0xff]  }
 0x324   :  { %6588 = vmatprep.subr.bf16.mxu0 %v15617_v21  ;;  %6752 = vmatprep.subr.bf16.mxu1 %v15620_v13  ;;  %v15712_v21 = vld [vmem:[%s21923_s1 + $0x1b0c] ss:$16 sps:$4 sm:$0xff]   ;;  %v13170_v13 = vcombine.low %v19380_v8, %v19380_v8 }
 0x325   :  { %6618 = vmatprep.mubr.bf16.mxu0 %v13171_v22  ;;  %6782 = vmatprep.mubr.bf16.mxu1 %v13171_v22  ;;  %v15707_v22 = vld [vmem:[%s21923_s1 + $0x1b00] ss:$16 sps:$4 sm:$0xff]   ;;  %v15718_v8 = vld [vmem:[%s21923_s1 + $0x1b2c] ss:$16 sps:$4 sm:$0xff]  }
 0x327   :  { %6589 = vmatpush1.bf16.msra.mxu0 %v15615_v23  ;;  %6753 = vmatpush1.bf16.msra.mxu1 %v15618_v24  ;;  %v15710_v23 = vld [vmem:[%s21923_s1 + $0x1b08] ss:$16 sps:$4 sm:$0xff]   ;;  %v15715_v24 = vld [vmem:[%s21923_s1 + $0x1b24] ss:$16 sps:$4 sm:$0xff]  }
 0x328   :  { %6590 = vmatprep.subr.bf16.mxu0 %v15623_v25  ;;  %6754 = vmatprep.subr.bf16.mxu1 %v15626_v26  ;;  %v15713_v25 = vld [vmem:[%s21923_s1 + $0x1b20] ss:$16 sps:$4 sm:$0xff]   ;;  %v15716_v26 = vld [vmem:[%s21923_s1 + $0x1b28] ss:$16 sps:$4 sm:$0xff]  }
 0x32b   :  { %6591 = vmatpush1.bf16.msra.mxu0 %v15621_v28  ;;  %6755 = vmatpush1.bf16.msra.mxu1 %v15624_v29  ;;  %v15721_v28 = vld [vmem:[%s21923_s1 + $0x1b44] ss:$16 sps:$4 sm:$0xff]   ;;  %v15724_v29 = vld [vmem:[%s21923_s1 + $0x1b4c] ss:$16 sps:$4 sm:$0xff]  }
 0x32c   :  { %6592 = vmatprep.subr.bf16.mxu0 %v15629_v30  ;;  %6756 = vmatprep.subr.bf16.mxu1 %v15632_v32  ;;  %v15719_v30 = vld [vmem:[%s21923_s1 + $0x1b40] ss:$16 sps:$4 sm:$0xff]   ;;  %v15722_v32 = vld [vmem:[%s21923_s1 + $0x1b48] ss:$16 sps:$4 sm:$0xff]  }
 0x32f   :  { %6593 = vmatpush1.bf16.msra.mxu0 %v15627_v33  ;;  %6757 = vmatpush1.bf16.msra.mxu1 %v15630_v34  ;;  %v15727_v33 = vld [vmem:[%s21923_s1 + $0x1b64] ss:$16 sps:$4 sm:$0xff]   ;;  %v15730_v34 = vld [vmem:[%s21923_s1 + $0x1b6c] ss:$16 sps:$4 sm:$0xff]  }
 0x330   :  { %6594 = vmatprep.subr.bf16.mxu0 %v15635_v35  ;;  %6758 = vmatprep.subr.bf16.mxu1 %v15638_v36  ;;  %v15725_v35 = vld [vmem:[%s21923_s1 + $0x1b60] ss:$16 sps:$4 sm:$0xff]   ;;  %v15728_v36 = vld [vmem:[%s21923_s1 + $0x1b68] ss:$16 sps:$4 sm:$0xff]  }
 0x333   :  { %6595 = vmatpush1.bf16.msra.mxu0 %v15633_v37  ;;  %6759 = vmatpush1.bf16.msra.mxu1 %v15636_v38  ;;  %v15733_v37 = vld [vmem:[%s21923_s1 + $0x1b84] ss:$16 sps:$4 sm:$0xff]   ;;  %v15736_v38 = vld [vmem:[%s21923_s1 + $0x1b8c] ss:$16 sps:$4 sm:$0xff]  }
 0x334   :  { %6596 = vmatprep.subr.bf16.mxu0 %v15641_v39  ;;  %6760 = vmatprep.subr.bf16.mxu1 %v15644_v31  ;;  %v15731_v39 = vld [vmem:[%s21923_s1 + $0x1b80] ss:$16 sps:$4 sm:$0xff]   ;;  %v15734_v31 = vld [vmem:[%s21923_s1 + $0x1b88] ss:$16 sps:$4 sm:$0xff]  }
 0x337   :  { %6597 = vmatpush1.bf16.msra.mxu0 %v15639_v40  ;;  %6761 = vmatpush1.bf16.msra.mxu1 %v15642_v41  ;;  %v15739_v40 = vld [vmem:[%s21923_s1 + $0x1ba4] ss:$16 sps:$4 sm:$0xff]   ;;  %v15742_v41 = vld [vmem:[%s21923_s1 + $0x1bac] ss:$16 sps:$4 sm:$0xff]  }
 0x338   :  { %6598 = vmatprep.subr.bf16.mxu0 %v15647_v42  ;;  %6762 = vmatprep.subr.bf16.mxu1 %v15650_v27  ;;  %v15737_v42 = vld [vmem:[%s21923_s1 + $0x1ba0] ss:$16 sps:$4 sm:$0xff]   ;;  %v15740_v27 = vld [vmem:[%s21923_s1 + $0x1ba8] ss:$16 sps:$4 sm:$0xff]  }
 0x33b   :  { %6599 = vmatpush1.bf16.msra.mxu0 %v15645_v43  ;;  %6763 = vmatpush1.bf16.msra.mxu1 %v15648_v44  ;;  %v15745_v43 = vld [vmem:[%s21923_s1 + $0x1bc4] ss:$16 sps:$4 sm:$0xff]   ;;  %v15748_v44 = vld [vmem:[%s21923_s1 + $0x1bcc] ss:$16 sps:$4 sm:$0xff]  }
 0x33c   :  { %6600 = vmatprep.subr.bf16.mxu0 %v15653_v46  ;;  %6764 = vmatprep.subr.bf16.mxu1 %v15656_v47  ;;  %v15743_v46 = vld [vmem:[%s21923_s1 + $0x1bc0] ss:$16 sps:$4 sm:$0xff]   ;;  %v15746_v47 = vld [vmem:[%s21923_s1 + $0x1bc8] ss:$16 sps:$4 sm:$0xff]  }
 0x33f   :  { %6601 = vmatpush1.bf16.msra.mxu0 %v15651_v48  ;;  %6765 = vmatpush1.bf16.msra.mxu1 %v15654_v50  ;;  %v15751_v48 = vld [vmem:[%s21923_s1 + $0x1be4] ss:$16 sps:$4 sm:$0xff]   ;;  %v15754_v50 = vld [vmem:[%s21923_s1 + $0x1bec] ss:$16 sps:$4 sm:$0xff]  }
 0x340   :  { %6602 = vmatprep.subr.bf16.mxu0 %v15659_v51  ;;  %6766 = vmatprep.subr.bf16.mxu1 %v15662_v52  ;;  %v15749_v51 = vld [vmem:[%s21923_s1 + $0x1be0] ss:$16 sps:$4 sm:$0xff]   ;;  %v15752_v52 = vld [vmem:[%s21923_s1 + $0x1be8] ss:$16 sps:$4 sm:$0xff]  }
 0x343   :  { %6603 = vmatpush1.bf16.msra.mxu0 %v15657_v53  ;;  %6767 = vmatpush1.bf16.msra.mxu1 %v15660_v54  ;;  %v15757_v53 = vld [vmem:[%s21923_s1 + $0x1c04] ss:$16 sps:$4 sm:$0xff]   ;;  %v15760_v54 = vld [vmem:[%s21923_s1 + $0x1c0c] ss:$16 sps:$4 sm:$0xff]  }
 0x344   :  { %6604 = vmatprep.subr.bf16.mxu0 %v15665_v55  ;;  %6768 = vmatprep.subr.bf16.mxu1 %v15668_v56  ;;  %v15761_v55 = vld [vmem:[%s21924_s0 + $0x6c] ss:$0 sps:$4 sm:$0xff]   ;;  %v19684_v56 = vld [vmem:[%s21924_s0 + $0x70] sm:$0xff] }
 0x347   :  { %6605 = vmatpush1.bf16.msra.mxu0 %v15663_v57  ;;  %6769 = vmatpush1.bf16.msra.mxu1 %v15666_v49  ;;  %v15755_v57 = vld [vmem:[%s21923_s1 + $0x1c00] ss:$16 sps:$4 sm:$0xff]   ;;  %v15758_v49 = vld [vmem:[%s21923_s1 + $0x1c08] ss:$16 sps:$4 sm:$0xff]  }
 0x348   :  { %6606 = vmatprep.subr.bf16.mxu0 %v15671_v58  ;;  %6770 = vmatprep.subr.bf16.mxu1 %v15674_v59  ;;  %v15764_v58 = vld [vmem:[%s21923_s1 + $0x1c24] ss:$16 sps:$4 sm:$0xff]   ;;  %v15767_v59 = vld [vmem:[%s21923_s1 + $0x1c2c] ss:$16 sps:$4 sm:$0xff]  }
 0x34b   :  { %6607 = vmatpush1.bf16.msra.mxu0 %v15669_v60  ;;  %6771 = vmatpush1.bf16.msra.mxu1 %v15672_v45  ;;  %v13398_v60 = vcombine.high %v19684_v56, %v19684_v56  ;;  %v15762_v45 = vld [vmem:[%s21923_s1 + $0x1c20] ss:$16 sps:$4 sm:$0xff]  }
 0x34c   :  { %6608 = vmatprep.subr.bf16.mxu0 %v15677_v61  ;;  %6772 = vmatprep.subr.bf16.mxu1 %v15680_v62  ;;  %v15765_v61 = vld [vmem:[%s21923_s1 + $0x1c28] ss:$16 sps:$4 sm:$0xff]   ;;  %v15770_v62 = vld [vmem:[%s21923_s1 + $0x1c44] ss:$16 sps:$4 sm:$0xff]  }
 0x34f   :  { %6609 = vmatpush1.bf16.msra.mxu0 %v15675_v63  ;;  %6773 = vmatpush1.bf16.msra.mxu1 %v15678_v0  ;;  %v15773_v63 = vld [vmem:[%s21923_s1 + $0x1c4c] ss:$16 sps:$4 sm:$0xff]   ;;  %v15768_v0 = vld [vmem:[%s21923_s1 + $0x1c40] ss:$16 sps:$4 sm:$0xff]  }
 0x350   :  { %6610 = vmatprep.subr.bf16.mxu0 %v15683_v1  ;;  %6774 = vmatprep.subr.bf16.mxu1 %v15686_v2  ;;  %v15771_v1 = vld [vmem:[%s21923_s1 + $0x1c48] ss:$16 sps:$4 sm:$0xff]   ;;  %v15776_v2 = vld [vmem:[%s21923_s1 + $0x1c64] ss:$16 sps:$4 sm:$0xff]  }
 0x353   :  { %6611 = vmatpush1.bf16.msra.mxu0 %v15681_v3  ;;  %6775 = vmatpush1.bf16.msra.mxu1 %v15684_v4  ;;  %v15779_v3 = vld [vmem:[%s21923_s1 + $0x1c6c] ss:$16 sps:$4 sm:$0xff]   ;;  %v15774_v4 = vld [vmem:[%s21923_s1 + $0x1c60] ss:$16 sps:$4 sm:$0xff]  }
 0x354   :  { %6612 = vmatprep.subr.bf16.mxu0 %v15689_v5  ;;  %6776 = vmatprep.subr.bf16.mxu1 %v15692_v6  ;;  %v15777_v5 = vld [vmem:[%s21923_s1 + $0x1c68] ss:$16 sps:$4 sm:$0xff]   ;;  %v15782_v6 = vld [vmem:[%s21923_s1 + $0x1c84] ss:$16 sps:$4 sm:$0xff]  }
 0x357   :  { %6613 = vmatpush1.bf16.msra.mxu0 %v15687_v7  ;;  %6777 = vmatpush1.bf16.msra.mxu1 %v15690_v9  ;;  %v15785_v7 = vld [vmem:[%s21923_s1 + $0x1c8c] ss:$16 sps:$4 sm:$0xff]   ;;  %v15780_v9 = vld [vmem:[%s21923_s1 + $0x1c80] ss:$16 sps:$4 sm:$0xff]  }
 0x358   :  { %6614 = vmatprep.subr.bf16.mxu0 %v15695_v10  ;;  %6778 = vmatprep.subr.bf16.mxu1 %v15698_v12  ;;  %v15783_v10 = vld [vmem:[%s21923_s1 + $0x1c88] ss:$16 sps:$4 sm:$0xff]   ;;  %v15788_v12 = vld [vmem:[%s21923_s1 + $0x1ca4] ss:$16 sps:$4 sm:$0xff]  }
 0x35b   :  { %6615 = vmatpush1.bf16.msra.mxu0 %v15693_v14  ;;  %6779 = vmatpush1.bf16.msra.mxu1 %v15696_v11  ;;  %v15791_v14 = vld [vmem:[%s21923_s1 + $0x1cac] ss:$16 sps:$4 sm:$0xff]   ;;  %v15786_v11 = vld [vmem:[%s21923_s1 + $0x1ca0] ss:$16 sps:$4 sm:$0xff]  }
 0x35c   :  { %6616 = vmatprep.subr.bf16.mxu0 %v15701_v15  ;;  %6780 = vmatprep.subr.bf16.mxu1 %v15704_v16  ;;  %v15789_v15 = vld [vmem:[%s21923_s1 + $0x1ca8] ss:$16 sps:$4 sm:$0xff]   ;;  %v15794_v16 = vld [vmem:[%s21923_s1 + $0x1cc4] ss:$16 sps:$4 sm:$0xff]  }
 0x35f   :  { %6617 = vmatpush1.bf16.msra.mxu0 %v15699_v17  ;;  %6781 = vmatpush1.bf16.msra.mxu1 %v15702_v18  ;;  %v15797_v17 = vld [vmem:[%s21923_s1 + $0x1ccc] ss:$16 sps:$4 sm:$0xff]   ;;  %v15792_v18 = vld [vmem:[%s21923_s1 + $0x1cc0] ss:$16 sps:$4 sm:$0xff]  }
 0x360   :  { %6627 = vmatprep.subr.bf16.mxu0 %v15709_v20  ;;  %6791 = vmatprep.subr.bf16.mxu1 %v15712_v21  ;;  %v15795_v20 = vld [vmem:[%s21923_s1 + $0x1cc8] ss:$16 sps:$4 sm:$0xff]   ;;  %v15800_v21 = vld [vmem:[%s21923_s1 + $0x1ce4] ss:$16 sps:$4 sm:$0xff]  }
 0x362   :  { %6619 = vmatmul.mubr.bf16.vlgmr.msra.gmra.mrb[0].mxu0 %v13170_v13  ;;  %6783 = vmatmul.mubr.bf16.vlgmr.msra.gmra.mrb[0].mxu1 %v13170_v13  ;;  %v15803_v13 = vld [vmem:[%s21923_s1 + $0x1cec] ss:$16 sps:$4 sm:$0xff]  }
 0x363   :  { %6628 = vmatpush1.bf16.msra.mxu0 %v15707_v22  ;;  %6792 = vmatpush1.bf16.msra.mxu1 %v15710_v23  ;;  %v15798_v22 = vld [vmem:[%s21923_s1 + $0x1ce0] ss:$16 sps:$4 sm:$0xff]   ;;  %v15801_v23 = vld [vmem:[%s21923_s1 + $0x1ce8] ss:$16 sps:$4 sm:$0xff]  }
 0x364   :  { %6629 = vmatprep.subr.bf16.mxu0 %v15715_v24  ;;  %6793 = vmatprep.subr.bf16.mxu1 %v15718_v8  ;;  %v15806_v24 = vld [vmem:[%s21923_s1 + $0x1d04] ss:$16 sps:$4 sm:$0xff]   ;;  %v15809_v8 = vld [vmem:[%s21923_s1 + $0x1d0c] ss:$16 sps:$4 sm:$0xff]  }
 0x365   :  { %6659 = vmatprep.mubr.bf16.mxu0 %v16829_v19  ;;  %6823 = vmatprep.mubr.bf16.mxu1 %v16829_v19 }
 0x367   :  { %6630 = vmatpush1.bf16.msra.mxu0 %v15713_v25  ;;  %6794 = vmatpush1.bf16.msra.mxu1 %v15716_v26  ;;  %v15804_v25 = vld [vmem:[%s21923_s1 + $0x1d00] ss:$16 sps:$4 sm:$0xff]   ;;  %v15807_v26 = vld [vmem:[%s21923_s1 + $0x1d08] ss:$16 sps:$4 sm:$0xff]  }
 0x368   :  { %6631 = vmatprep.subr.bf16.mxu0 %v15721_v28  ;;  %6795 = vmatprep.subr.bf16.mxu1 %v15724_v29  ;;  %v15812_v28 = vld [vmem:[%s21923_s1 + $0x1d24] ss:$16 sps:$4 sm:$0xff]   ;;  %v15815_v29 = vld [vmem:[%s21923_s1 + $0x1d2c] ss:$16 sps:$4 sm:$0xff]  }
 0x36b   :  { %6632 = vmatpush1.bf16.msra.mxu0 %v15719_v30  ;;  %6796 = vmatpush1.bf16.msra.mxu1 %v15722_v32  ;;  %v15810_v30 = vld [vmem:[%s21923_s1 + $0x1d20] ss:$16 sps:$4 sm:$0xff]   ;;  %v15813_v32 = vld [vmem:[%s21923_s1 + $0x1d28] ss:$16 sps:$4 sm:$0xff]  }
 0x36c   :  { %6633 = vmatprep.subr.bf16.mxu0 %v15727_v33  ;;  %6797 = vmatprep.subr.bf16.mxu1 %v15730_v34  ;;  %v15818_v33 = vld [vmem:[%s21923_s1 + $0x1d44] ss:$16 sps:$4 sm:$0xff]   ;;  %v15821_v34 = vld [vmem:[%s21923_s1 + $0x1d4c] ss:$16 sps:$4 sm:$0xff]  }
 0x36f   :  { %6634 = vmatpush1.bf16.msra.mxu0 %v15725_v35  ;;  %6798 = vmatpush1.bf16.msra.mxu1 %v15728_v36  ;;  %v15816_v35 = vld [vmem:[%s21923_s1 + $0x1d40] ss:$16 sps:$4 sm:$0xff]   ;;  %v15819_v36 = vld [vmem:[%s21923_s1 + $0x1d48] ss:$16 sps:$4 sm:$0xff]  }
 0x370   :  { %6635 = vmatprep.subr.bf16.mxu0 %v15733_v37  ;;  %6799 = vmatprep.subr.bf16.mxu1 %v15736_v38  ;;  %v15824_v37 = vld [vmem:[%s21923_s1 + $0x1d64] ss:$16 sps:$4 sm:$0xff]   ;;  %v15827_v38 = vld [vmem:[%s21923_s1 + $0x1d6c] ss:$16 sps:$4 sm:$0xff]  }
 0x373   :  { %6636 = vmatpush1.bf16.msra.mxu0 %v15731_v39  ;;  %6800 = vmatpush1.bf16.msra.mxu1 %v15734_v31  ;;  %v15822_v39 = vld [vmem:[%s21923_s1 + $0x1d60] ss:$16 sps:$4 sm:$0xff]   ;;  %v15825_v31 = vld [vmem:[%s21923_s1 + $0x1d68] ss:$16 sps:$4 sm:$0xff]  }
 0x374   :  { %6637 = vmatprep.subr.bf16.mxu0 %v15739_v40  ;;  %6801 = vmatprep.subr.bf16.mxu1 %v15742_v41  ;;  %v15830_v40 = vld [vmem:[%s21923_s1 + $0x1d84] ss:$16 sps:$4 sm:$0xff]   ;;  %v15833_v41 = vld [vmem:[%s21923_s1 + $0x1d8c] ss:$16 sps:$4 sm:$0xff]  }
 0x377   :  { %6638 = vmatpush1.bf16.msra.mxu0 %v15737_v42  ;;  %6802 = vmatpush1.bf16.msra.mxu1 %v15740_v27  ;;  %v15828_v42 = vld [vmem:[%s21923_s1 + $0x1d80] ss:$16 sps:$4 sm:$0xff]   ;;  %v15831_v27 = vld [vmem:[%s21923_s1 + $0x1d88] ss:$16 sps:$4 sm:$0xff]  }
 0x378   :  { %6639 = vmatprep.subr.bf16.mxu0 %v15745_v43  ;;  %6803 = vmatprep.subr.bf16.mxu1 %v15748_v44  ;;  %v15836_v43 = vld [vmem:[%s21923_s1 + $0x1da4] ss:$16 sps:$4 sm:$0xff]   ;;  %v15839_v44 = vld [vmem:[%s21923_s1 + $0x1dac] ss:$16 sps:$4 sm:$0xff]  }
 0x37b   :  { %6640 = vmatpush1.bf16.msra.mxu0 %v15743_v46  ;;  %6804 = vmatpush1.bf16.msra.mxu1 %v15746_v47  ;;  %v15834_v46 = vld [vmem:[%s21923_s1 + $0x1da0] ss:$16 sps:$4 sm:$0xff]   ;;  %v15837_v47 = vld [vmem:[%s21923_s1 + $0x1da8] ss:$16 sps:$4 sm:$0xff]  }
 0x37c   :  { %6641 = vmatprep.subr.bf16.mxu0 %v15751_v48  ;;  %6805 = vmatprep.subr.bf16.mxu1 %v15754_v50  ;;  %v15842_v48 = vld [vmem:[%s21923_s1 + $0x1dc4] ss:$16 sps:$4 sm:$0xff]   ;;  %v15845_v50 = vld [vmem:[%s21923_s1 + $0x1dcc] ss:$16 sps:$4 sm:$0xff]  }
 0x37f   :  { %6642 = vmatpush1.bf16.msra.mxu0 %v15749_v51  ;;  %6806 = vmatpush1.bf16.msra.mxu1 %v15752_v52  ;;  %v15840_v51 = vld [vmem:[%s21923_s1 + $0x1dc0] ss:$16 sps:$4 sm:$0xff]   ;;  %v15843_v52 = vld [vmem:[%s21923_s1 + $0x1dc8] ss:$16 sps:$4 sm:$0xff]  }
 0x380   :  { %8209 = vmatprep.subr.bf16.mxu0 %v15757_v53  ;;  %8373 = vmatprep.subr.bf16.mxu1 %v15760_v54  ;;  %v15848_v53 = vld [vmem:[%s21923_s1 + $0x1de4] ss:$16 sps:$4 sm:$0xff]   ;;  %v15851_v54 = vld [vmem:[%s21923_s1 + $0x1dec] ss:$16 sps:$4 sm:$0xff]  }
 0x382   :  { %6660 = vmatmul.mubr.bf16.vlgmr.msra.gmra.mrb[0].mxu0 %v15761_v55  ;;  %6824 = vmatmul.mubr.bf16.vlgmr.msra.gmra.mrb[0].mxu1 %v15761_v55  ;;  %v15846_v55 = vld [vmem:[%s21923_s1 + $0x1de0] ss:$16 sps:$4 sm:$0xff]  }
 0x383   :  { %8210 = vmatpush1.bf16.msra.mxu0 %v15755_v57  ;;  %8374 = vmatpush1.bf16.msra.mxu1 %v15758_v49  ;;  %v15849_v57 = vld [vmem:[%s21923_s1 + $0x1de8] ss:$16 sps:$4 sm:$0xff]   ;;  %v15856_v49 = vld [vmem:[%s21923_s1 + $0x1e04] ss:$16 sps:$4 sm:$0xff]  }
 0x384   :  { %8211 = vmatprep.subr.bf16.mxu0 %v15764_v58  ;;  %8375 = vmatprep.subr.bf16.mxu1 %v15767_v59  ;;  %v15859_v58 = vld [vmem:[%s21923_s1 + $0x1e0c] ss:$16 sps:$4 sm:$0xff]   ;;  %v13397_v59 = vcombine.low %v19684_v56, %v19684_v56  ;;  %v15862_v56 = vld [vmem:[%s21923_s1 + $0x1e24] ss:$16 sps:$4 sm:$0xff]  }
 0x385   :  { %8241 = vmatprep.mubr.bf16.mxu0 %v13398_v60  ;;  %8405 = vmatprep.mubr.bf16.mxu1 %v13398_v60  ;;  %v19885_v60 = vld [vmem:[%s21924_s0 + $0x78] sm:$0xff] }
 0x387   :  { %8212 = vmatpush1.bf16.msra.mxu0 %v15762_v45  ;;  %8376 = vmatpush1.bf16.msra.mxu1 %v15765_v61  ;;  %v15854_v45 = vld [vmem:[%s21923_s1 + $0x1e00] ss:$16 sps:$4 sm:$0xff]   ;;  %v15857_v61 = vld [vmem:[%s21923_s1 + $0x1e08] ss:$16 sps:$4 sm:$0xff]  }
 0x388   :  { %8213 = vmatprep.subr.bf16.mxu0 %v15770_v62  ;;  %8377 = vmatprep.subr.bf16.mxu1 %v15773_v63  ;;  %v15865_v62 = vld [vmem:[%s21923_s1 + $0x1e2c] ss:$16 sps:$4 sm:$0xff]   ;;  %v13400_v63 = vcombine.high %v19885_v60, %v19885_v60 }
 0x38b   :  { %8214 = vmatpush1.bf16.msra.mxu0 %v15768_v0  ;;  %8378 = vmatpush1.bf16.msra.mxu1 %v15771_v1  ;;  %v15860_v0 = vld [vmem:[%s21923_s1 + $0x1e20] ss:$16 sps:$4 sm:$0xff]   ;;  %v15863_v1 = vld [vmem:[%s21923_s1 + $0x1e28] ss:$16 sps:$4 sm:$0xff]  }
 0x38c   :  { %8215 = vmatprep.subr.bf16.mxu0 %v15776_v2  ;;  %8379 = vmatprep.subr.bf16.mxu1 %v15779_v3  ;;  %v15868_v2 = vld [vmem:[%s21923_s1 + $0x1e44] ss:$16 sps:$4 sm:$0xff]   ;;  %v15871_v3 = vld [vmem:[%s21923_s1 + $0x1e4c] ss:$16 sps:$4 sm:$0xff]  }
 0x38f   :  { %8216 = vmatpush1.bf16.msra.mxu0 %v15774_v4  ;;  %8380 = vmatpush1.bf16.msra.mxu1 %v15777_v5  ;;  %v15866_v4 = vld [vmem:[%s21923_s1 + $0x1e40] ss:$16 sps:$4 sm:$0xff]   ;;  %v15869_v5 = vld [vmem:[%s21923_s1 + $0x1e48] ss:$16 sps:$4 sm:$0xff]  }
 0x390   :  { %8217 = vmatprep.subr.bf16.mxu0 %v15782_v6  ;;  %8381 = vmatprep.subr.bf16.mxu1 %v15785_v7  ;;  %v15874_v6 = vld [vmem:[%s21923_s1 + $0x1e64] ss:$16 sps:$4 sm:$0xff]   ;;  %v15877_v7 = vld [vmem:[%s21923_s1 + $0x1e6c] ss:$16 sps:$4 sm:$0xff]  }
 0x393   :  { %8218 = vmatpush1.bf16.msra.mxu0 %v15780_v9  ;;  %8382 = vmatpush1.bf16.msra.mxu1 %v15783_v10  ;;  %v15872_v9 = vld [vmem:[%s21923_s1 + $0x1e60] ss:$16 sps:$4 sm:$0xff]   ;;  %v15875_v10 = vld [vmem:[%s21923_s1 + $0x1e68] ss:$16 sps:$4 sm:$0xff]  }
 0x394   :  { %8219 = vmatprep.subr.bf16.mxu0 %v15788_v12  ;;  %8383 = vmatprep.subr.bf16.mxu1 %v15791_v14  ;;  %v15880_v12 = vld [vmem:[%s21923_s1 + $0x1e84] ss:$16 sps:$4 sm:$0xff]   ;;  %v15883_v14 = vld [vmem:[%s21923_s1 + $0x1e8c] ss:$16 sps:$4 sm:$0xff]  }
 0x397   :  { %8220 = vmatpush1.bf16.msra.mxu0 %v15786_v11  ;;  %8384 = vmatpush1.bf16.msra.mxu1 %v15789_v15  ;;  %v15878_v11 = vld [vmem:[%s21923_s1 + $0x1e80] ss:$16 sps:$4 sm:$0xff]   ;;  %v15881_v15 = vld [vmem:[%s21923_s1 + $0x1e88] ss:$16 sps:$4 sm:$0xff]  }
 0x398   :  { %8221 = vmatprep.subr.bf16.mxu0 %v15794_v16  ;;  %8385 = vmatprep.subr.bf16.mxu1 %v15797_v17  ;;  %v15886_v16 = vld [vmem:[%s21923_s1 + $0x1ea4] ss:$16 sps:$4 sm:$0xff]   ;;  %v15889_v17 = vld [vmem:[%s21923_s1 + $0x1eac] ss:$16 sps:$4 sm:$0xff]  }
 0x39b   :  { %8222 = vmatpush1.bf16.msra.mxu0 %v15792_v18  ;;  %8386 = vmatpush1.bf16.msra.mxu1 %v15795_v20  ;;  %v15884_v18 = vld [vmem:[%s21923_s1 + $0x1ea0] ss:$16 sps:$4 sm:$0xff]   ;;  %v15887_v20 = vld [vmem:[%s21923_s1 + $0x1ea8] ss:$16 sps:$4 sm:$0xff]  }
 0x39c   :  { %8223 = vmatprep.subr.bf16.mxu0 %v15800_v21  ;;  %8387 = vmatprep.subr.bf16.mxu1 %v15803_v13  ;;  %v15892_v21 = vld [vmem:[%s21923_s1 + $0x1ec4] ss:$16 sps:$4 sm:$0xff]   ;;  %v15895_v13 = vld [vmem:[%s21923_s1 + $0x1ecc] ss:$16 sps:$4 sm:$0xff]  }
 0x39f   :  { %8224 = vmatpush1.bf16.msra.mxu0 %v15798_v22  ;;  %8388 = vmatpush1.bf16.msra.mxu1 %v15801_v23  ;;  %v15890_v22 = vld [vmem:[%s21923_s1 + $0x1ec0] ss:$16 sps:$4 sm:$0xff]   ;;  %v15893_v23 = vld [vmem:[%s21923_s1 + $0x1ec8] ss:$16 sps:$4 sm:$0xff]  }
 0x3a0   :  { %8225 = vmatprep.subr.bf16.mxu0 %v15806_v24  ;;  %8389 = vmatprep.subr.bf16.mxu1 %v15809_v8  ;;  %v15898_v24 = vld [vmem:[%s21923_s1 + $0x1ee4] ss:$16 sps:$4 sm:$0xff]   ;;  %v15901_v8 = vld [vmem:[%s21923_s1 + $0x1eec] ss:$16 sps:$4 sm:$0xff]  }
 0x3a3   :  { %8226 = vmatpush1.bf16.msra.mxu0 %v15804_v25  ;;  %8390 = vmatpush1.bf16.msra.mxu1 %v15807_v26  ;;  %v15896_v25 = vld [vmem:[%s21923_s1 + $0x1ee0] ss:$16 sps:$4 sm:$0xff]   ;;  %v15899_v26 = vld [vmem:[%s21923_s1 + $0x1ee8] ss:$16 sps:$4 sm:$0xff]  }
 0x3a4   :  { %8227 = vmatprep.subr.bf16.mxu0 %v15812_v28  ;;  %8391 = vmatprep.subr.bf16.mxu1 %v15815_v29  ;;  %v15904_v28 = vld [vmem:[%s21923_s1 + $0x1f04] ss:$16 sps:$4 sm:$0xff]   ;;  %v15907_v29 = vld [vmem:[%s21923_s1 + $0x1f0c] ss:$16 sps:$4 sm:$0xff]  }
 0x3a7   :  { %8228 = vmatpush1.bf16.msra.mxu0 %v15810_v30  ;;  %8392 = vmatpush1.bf16.msra.mxu1 %v15813_v32  ;;  %v15902_v30 = vld [vmem:[%s21923_s1 + $0x1f00] ss:$16 sps:$4 sm:$0xff]   ;;  %v15905_v32 = vld [vmem:[%s21923_s1 + $0x1f08] ss:$16 sps:$4 sm:$0xff]  }
 0x3a8   :  { %8229 = vmatprep.subr.bf16.mxu0 %v15818_v33  ;;  %8393 = vmatprep.subr.bf16.mxu1 %v15821_v34  ;;  %v15910_v33 = vld [vmem:[%s21923_s1 + $0x1f24] ss:$16 sps:$4 sm:$0xff]   ;;  %v15913_v34 = vld [vmem:[%s21923_s1 + $0x1f2c] ss:$16 sps:$4 sm:$0xff]  }
 0x3ab   :  { %8230 = vmatpush1.bf16.msra.mxu0 %v15816_v35  ;;  %8394 = vmatpush1.bf16.msra.mxu1 %v15819_v36  ;;  %v15908_v35 = vld [vmem:[%s21923_s1 + $0x1f20] ss:$16 sps:$4 sm:$0xff]   ;;  %v15911_v36 = vld [vmem:[%s21923_s1 + $0x1f28] ss:$16 sps:$4 sm:$0xff]  }
 0x3ac   :  { %8231 = vmatprep.subr.bf16.mxu0 %v15824_v37  ;;  %8395 = vmatprep.subr.bf16.mxu1 %v15827_v38  ;;  %v15916_v37 = vld [vmem:[%s21923_s1 + $0x1f44] ss:$16 sps:$4 sm:$0xff]   ;;  %v15919_v38 = vld [vmem:[%s21923_s1 + $0x1f4c] ss:$16 sps:$4 sm:$0xff]  }
 0x3af   :  { %8232 = vmatpush1.bf16.msra.mxu0 %v15822_v39  ;;  %8396 = vmatpush1.bf16.msra.mxu1 %v15825_v31  ;;  %v15914_v39 = vld [vmem:[%s21923_s1 + $0x1f40] ss:$16 sps:$4 sm:$0xff]   ;;  %v15917_v31 = vld [vmem:[%s21923_s1 + $0x1f48] ss:$16 sps:$4 sm:$0xff]  }
 0x3b0   :  { %8233 = vmatprep.subr.bf16.mxu0 %v15830_v40  ;;  %8397 = vmatprep.subr.bf16.mxu1 %v15833_v41  ;;  %v15922_v40 = vld [vmem:[%s21923_s1 + $0x1f64] ss:$16 sps:$4 sm:$0xff]   ;;  %v15925_v41 = vld [vmem:[%s21923_s1 + $0x1f6c] ss:$16 sps:$4 sm:$0xff]  }
 0x3b3   :  { %8234 = vmatpush1.bf16.msra.mxu0 %v15828_v42  ;;  %8398 = vmatpush1.bf16.msra.mxu1 %v15831_v27  ;;  %v15920_v42 = vld [vmem:[%s21923_s1 + $0x1f60] ss:$16 sps:$4 sm:$0xff]   ;;  %v15923_v27 = vld [vmem:[%s21923_s1 + $0x1f68] ss:$16 sps:$4 sm:$0xff]  }
 0x3b4   :  { %8235 = vmatprep.subr.bf16.mxu0 %v15836_v43  ;;  %8399 = vmatprep.subr.bf16.mxu1 %v15839_v44  ;;  %v15928_v43 = vld [vmem:[%s21923_s1 + $0x1f84] ss:$16 sps:$4 sm:$0xff]   ;;  %v15931_v44 = vld [vmem:[%s21923_s1 + $0x1f8c] ss:$16 sps:$4 sm:$0xff]  }
 0x3b7   :  { %8236 = vmatpush1.bf16.msra.mxu0 %v15834_v46  ;;  %8400 = vmatpush1.bf16.msra.mxu1 %v15837_v47  ;;  %v15926_v46 = vld [vmem:[%s21923_s1 + $0x1f80] ss:$16 sps:$4 sm:$0xff]   ;;  %v15929_v47 = vld [vmem:[%s21923_s1 + $0x1f88] ss:$16 sps:$4 sm:$0xff]  }
 0x3b8   :  { %8237 = vmatprep.subr.bf16.mxu0 %v15842_v48  ;;  %8401 = vmatprep.subr.bf16.mxu1 %v15845_v50  ;;  %v15934_v48 = vld [vmem:[%s21923_s1 + $0x1fa4] ss:$16 sps:$4 sm:$0xff]   ;;  %v15937_v50 = vld [vmem:[%s21923_s1 + $0x1fac] ss:$16 sps:$4 sm:$0xff]  }
 0x3bb   :  { %8238 = vmatpush1.bf16.msra.mxu0 %v15840_v51  ;;  %8402 = vmatpush1.bf16.msra.mxu1 %v15843_v52  ;;  %v15932_v51 = vld [vmem:[%s21923_s1 + $0x1fa0] ss:$16 sps:$4 sm:$0xff]   ;;  %v15935_v52 = vld [vmem:[%s21923_s1 + $0x1fa8] ss:$16 sps:$4 sm:$0xff]  }
 0x3bc   :  { %8239 = vmatprep.subr.bf16.mxu0 %v15848_v53  ;;  %8403 = vmatprep.subr.bf16.mxu1 %v15851_v54  ;;  %v15940_v53 = vld [vmem:[%s21923_s1 + $0x1fc4] ss:$16 sps:$4 sm:$0xff]   ;;  %v15943_v54 = vld [vmem:[%s21923_s1 + $0x1fcc] ss:$16 sps:$4 sm:$0xff]  }
 0x3bf   :  { %8240 = vmatpush1.bf16.msra.mxu0 %v15846_v55  ;;  %8404 = vmatpush1.bf16.msra.mxu1 %v15849_v57  ;;  %v15938_v55 = vld [vmem:[%s21923_s1 + $0x1fc0] ss:$16 sps:$4 sm:$0xff]   ;;  %v15941_v57 = vld [vmem:[%s21923_s1 + $0x1fc8] ss:$16 sps:$4 sm:$0xff]  }
 0x3c0   :  { %8250 = vmatprep.subr.bf16.mxu0 %v15856_v49  ;;  %8414 = vmatprep.subr.bf16.mxu1 %v15859_v58  ;;  %v15946_v49 = vld [vmem:[%s21923_s1 + $0x1fe4] ss:$16 sps:$4 sm:$0xff]   ;;  %v15949_v58 = vld [vmem:[%s21923_s1 + $0x1fec] ss:$16 sps:$4 sm:$0xff]  }
 0x3c2   :  { %8242 = vmatmul.mubr.bf16.vlgmr.msra.gmra.mrb[0].mxu0 %v13397_v59  ;;  %8406 = vmatmul.mubr.bf16.vlgmr.msra.gmra.mrb[0].mxu1 %v13397_v59  ;;  %v15944_v59 = vld [vmem:[%s21923_s1 + $0x1fe0] ss:$16 sps:$4 sm:$0xff]  }
 0x3c3   :  { %8251 = vmatpush1.bf16.msra.mxu0 %v15854_v45  ;;  %8415 = vmatpush1.bf16.msra.mxu1 %v15857_v61  ;;  %v15947_v45 = vld [vmem:[%s21923_s1 + $0x1fe8] ss:$16 sps:$4 sm:$0xff]   ;;  %v15954_v61 = vld [vmem:[%s21923_s1 + $0x2004] ss:$16 sps:$4 sm:$0xff]  }
 0x3c4   :  { %8252 = vmatprep.subr.bf16.mxu0 %v15862_v56  ;;  %8416 = vmatprep.subr.bf16.mxu1 %v15865_v62  ;;  %v15957_v56 = vld [vmem:[%s21923_s1 + $0x200c] ss:$16 sps:$4 sm:$0xff]   ;;  %v13399_v62 = vcombine.low %v19885_v60, %v19885_v60  ;;  %v15960_v60 = vld [vmem:[%s21923_s1 + $0x2024] ss:$16 sps:$4 sm:$0xff]  }
 0x3c5   :  { %8282 = vmatprep.mubr.bf16.mxu0 %v13400_v63  ;;  %8446 = vmatprep.mubr.bf16.mxu1 %v13400_v63  ;;  %v20086_v63 = vld [vmem:[%s21924_s0 + $0x80] sm:$0xff] }
 0x3c7   :  { %8253 = vmatpush1.bf16.msra.mxu0 %v15860_v0  ;;  %8417 = vmatpush1.bf16.msra.mxu1 %v15863_v1  ;;  %v15952_v0 = vld [vmem:[%s21923_s1 + $0x2000] ss:$16 sps:$4 sm:$0xff]   ;;  %v15955_v1 = vld [vmem:[%s21923_s1 + $0x2008] ss:$16 sps:$4 sm:$0xff]  }
 0x3c8   :  { %8254 = vmatprep.subr.bf16.mxu0 %v15868_v2  ;;  %8418 = vmatprep.subr.bf16.mxu1 %v15871_v3  ;;  %v15963_v2 = vld [vmem:[%s21923_s1 + $0x202c] ss:$16 sps:$4 sm:$0xff]   ;;  %v13402_v3 = vcombine.high %v20086_v63, %v20086_v63 }
 0x3cb   :  { %8255 = vmatpush1.bf16.msra.mxu0 %v15866_v4  ;;  %8419 = vmatpush1.bf16.msra.mxu1 %v15869_v5  ;;  %v15958_v4 = vld [vmem:[%s21923_s1 + $0x2020] ss:$16 sps:$4 sm:$0xff]   ;;  %v15961_v5 = vld [vmem:[%s21923_s1 + $0x2028] ss:$16 sps:$4 sm:$0xff]  }
 0x3cc   :  { %8256 = vmatprep.subr.bf16.mxu0 %v15874_v6  ;;  %8420 = vmatprep.subr.bf16.mxu1 %v15877_v7  ;;  %v15966_v6 = vld [vmem:[%s21923_s1 + $0x2044] ss:$16 sps:$4 sm:$0xff]   ;;  %v15969_v7 = vld [vmem:[%s21923_s1 + $0x204c] ss:$16 sps:$4 sm:$0xff]  }
 0x3cf   :  { %8257 = vmatpush1.bf16.msra.mxu0 %v15872_v9  ;;  %8421 = vmatpush1.bf16.msra.mxu1 %v15875_v10  ;;  %v15964_v9 = vld [vmem:[%s21923_s1 + $0x2040] ss:$16 sps:$4 sm:$0xff]   ;;  %v15967_v10 = vld [vmem:[%s21923_s1 + $0x2048] ss:$16 sps:$4 sm:$0xff]  }
 0x3d0   :  { %8258 = vmatprep.subr.bf16.mxu0 %v15880_v12  ;;  %8422 = vmatprep.subr.bf16.mxu1 %v15883_v14  ;;  %v15972_v12 = vld [vmem:[%s21923_s1 + $0x2064] ss:$16 sps:$4 sm:$0xff]   ;;  %v15975_v14 = vld [vmem:[%s21923_s1 + $0x206c] ss:$16 sps:$4 sm:$0xff]  }
 0x3d3   :  { %8259 = vmatpush1.bf16.msra.mxu0 %v15878_v11  ;;  %8423 = vmatpush1.bf16.msra.mxu1 %v15881_v15  ;;  %v15970_v11 = vld [vmem:[%s21923_s1 + $0x2060] ss:$16 sps:$4 sm:$0xff]   ;;  %v15973_v15 = vld [vmem:[%s21923_s1 + $0x2068] ss:$16 sps:$4 sm:$0xff]  }
 0x3d4   :  { %8260 = vmatprep.subr.bf16.mxu0 %v15886_v16  ;;  %8424 = vmatprep.subr.bf16.mxu1 %v15889_v17  ;;  %v15978_v16 = vld [vmem:[%s21923_s1 + $0x2084] ss:$16 sps:$4 sm:$0xff]   ;;  %v15981_v17 = vld [vmem:[%s21923_s1 + $0x208c] ss:$16 sps:$4 sm:$0xff]  }
 0x3d7   :  { %8261 = vmatpush1.bf16.msra.mxu0 %v15884_v18  ;;  %8425 = vmatpush1.bf16.msra.mxu1 %v15887_v20  ;;  %v15976_v18 = vld [vmem:[%s21923_s1 + $0x2080] ss:$16 sps:$4 sm:$0xff]   ;;  %v15979_v20 = vld [vmem:[%s21923_s1 + $0x2088] ss:$16 sps:$4 sm:$0xff]  }
 0x3d8   :  { %8262 = vmatprep.subr.bf16.mxu0 %v15892_v21  ;;  %8426 = vmatprep.subr.bf16.mxu1 %v15895_v13  ;;  %v15984_v21 = vld [vmem:[%s21923_s1 + $0x20a4] ss:$16 sps:$4 sm:$0xff]   ;;  %v15987_v13 = vld [vmem:[%s21923_s1 + $0x20ac] ss:$16 sps:$4 sm:$0xff]  }
 0x3db   :  { %8263 = vmatpush1.bf16.msra.mxu0 %v15890_v22  ;;  %8427 = vmatpush1.bf16.msra.mxu1 %v15893_v23  ;;  %v15982_v22 = vld [vmem:[%s21923_s1 + $0x20a0] ss:$16 sps:$4 sm:$0xff]   ;;  %v15985_v23 = vld [vmem:[%s21923_s1 + $0x20a8] ss:$16 sps:$4 sm:$0xff]  }
 0x3dc   :  { %8264 = vmatprep.subr.bf16.mxu0 %v15898_v24  ;;  %8428 = vmatprep.subr.bf16.mxu1 %v15901_v8  ;;  %v15990_v24 = vld [vmem:[%s21923_s1 + $0x20c4] ss:$16 sps:$4 sm:$0xff]   ;;  %v15993_v8 = vld [vmem:[%s21923_s1 + $0x20cc] ss:$16 sps:$4 sm:$0xff]  }
 0x3df   :  { %8265 = vmatpush1.bf16.msra.mxu0 %v15896_v25  ;;  %8429 = vmatpush1.bf16.msra.mxu1 %v15899_v26  ;;  %v15988_v25 = vld [vmem:[%s21923_s1 + $0x20c0] ss:$16 sps:$4 sm:$0xff]   ;;  %v15991_v26 = vld [vmem:[%s21923_s1 + $0x20c8] ss:$16 sps:$4 sm:$0xff]  }
 0x3e0   :  { %8266 = vmatprep.subr.bf16.mxu0 %v15904_v28  ;;  %8430 = vmatprep.subr.bf16.mxu1 %v15907_v29  ;;  %v15996_v28 = vld [vmem:[%s21923_s1 + $0x20e4] ss:$16 sps:$4 sm:$0xff]   ;;  %v15999_v29 = vld [vmem:[%s21923_s1 + $0x20ec] ss:$16 sps:$4 sm:$0xff]  }
 0x3e3   :  { %8267 = vmatpush1.bf16.msra.mxu0 %v15902_v30  ;;  %8431 = vmatpush1.bf16.msra.mxu1 %v15905_v32  ;;  %v15994_v30 = vld [vmem:[%s21923_s1 + $0x20e0] ss:$16 sps:$4 sm:$0xff]   ;;  %v15997_v32 = vld [vmem:[%s21923_s1 + $0x20e8] ss:$16 sps:$4 sm:$0xff]  }
 0x3e4   :  { %8268 = vmatprep.subr.bf16.mxu0 %v15910_v33  ;;  %8432 = vmatprep.subr.bf16.mxu1 %v15913_v34  ;;  %v16002_v33 = vld [vmem:[%s21923_s1 + $0x2104] ss:$16 sps:$4 sm:$0xff]   ;;  %v16005_v34 = vld [vmem:[%s21923_s1 + $0x210c] ss:$16 sps:$4 sm:$0xff]  }
 0x3e7   :  { %8269 = vmatpush1.bf16.msra.mxu0 %v15908_v35  ;;  %8433 = vmatpush1.bf16.msra.mxu1 %v15911_v36  ;;  %v16000_v35 = vld [vmem:[%s21923_s1 + $0x2100] ss:$16 sps:$4 sm:$0xff]   ;;  %v16003_v36 = vld [vmem:[%s21923_s1 + $0x2108] ss:$16 sps:$4 sm:$0xff]  }
 0x3e8   :  { %8270 = vmatprep.subr.bf16.mxu0 %v15916_v37  ;;  %8434 = vmatprep.subr.bf16.mxu1 %v15919_v38  ;;  %v16008_v37 = vld [vmem:[%s21923_s1 + $0x2124] ss:$16 sps:$4 sm:$0xff]   ;;  %v16011_v38 = vld [vmem:[%s21923_s1 + $0x212c] ss:$16 sps:$4 sm:$0xff]  }
 0x3eb   :  { %8271 = vmatpush1.bf16.msra.mxu0 %v15914_v39  ;;  %8435 = vmatpush1.bf16.msra.mxu1 %v15917_v31  ;;  %v16006_v39 = vld [vmem:[%s21923_s1 + $0x2120] ss:$16 sps:$4 sm:$0xff]   ;;  %v16009_v31 = vld [vmem:[%s21923_s1 + $0x2128] ss:$16 sps:$4 sm:$0xff]  }
 0x3ec   :  { %8272 = vmatprep.subr.bf16.mxu0 %v15922_v40  ;;  %8436 = vmatprep.subr.bf16.mxu1 %v15925_v41  ;;  %v16014_v40 = vld [vmem:[%s21923_s1 + $0x2144] ss:$16 sps:$4 sm:$0xff]   ;;  %v16017_v41 = vld [vmem:[%s21923_s1 + $0x214c] ss:$16 sps:$4 sm:$0xff]  }
 0x3ef   :  { %8273 = vmatpush1.bf16.msra.mxu0 %v15920_v42  ;;  %8437 = vmatpush1.bf16.msra.mxu1 %v15923_v27  ;;  %v16012_v42 = vld [vmem:[%s21923_s1 + $0x2140] ss:$16 sps:$4 sm:$0xff]   ;;  %v16015_v27 = vld [vmem:[%s21923_s1 + $0x2148] ss:$16 sps:$4 sm:$0xff]  }
 0x3f0   :  { %8274 = vmatprep.subr.bf16.mxu0 %v15928_v43  ;;  %8438 = vmatprep.subr.bf16.mxu1 %v15931_v44  ;;  %v16020_v43 = vld [vmem:[%s21923_s1 + $0x2164] ss:$16 sps:$4 sm:$0xff]   ;;  %v16023_v44 = vld [vmem:[%s21923_s1 + $0x216c] ss:$16 sps:$4 sm:$0xff]  }
 0x3f3   :  { %8275 = vmatpush1.bf16.msra.mxu0 %v15926_v46  ;;  %8439 = vmatpush1.bf16.msra.mxu1 %v15929_v47  ;;  %v16018_v46 = vld [vmem:[%s21923_s1 + $0x2160] ss:$16 sps:$4 sm:$0xff]   ;;  %v16021_v47 = vld [vmem:[%s21923_s1 + $0x2168] ss:$16 sps:$4 sm:$0xff]  }
 0x3f4   :  { %8276 = vmatprep.subr.bf16.mxu0 %v15934_v48  ;;  %8440 = vmatprep.subr.bf16.mxu1 %v15937_v50  ;;  %v16026_v48 = vld [vmem:[%s21923_s1 + $0x2184] ss:$16 sps:$4 sm:$0xff]   ;;  %v16029_v50 = vld [vmem:[%s21923_s1 + $0x218c] ss:$16 sps:$4 sm:$0xff]  }
 0x3f7   :  { %8277 = vmatpush1.bf16.msra.mxu0 %v15932_v51  ;;  %8441 = vmatpush1.bf16.msra.mxu1 %v15935_v52  ;;  %v16024_v51 = vld [vmem:[%s21923_s1 + $0x2180] ss:$16 sps:$4 sm:$0xff]   ;;  %v16027_v52 = vld [vmem:[%s21923_s1 + $0x2188] ss:$16 sps:$4 sm:$0xff]  }
 0x3f8   :  { %8278 = vmatprep.subr.bf16.mxu0 %v15940_v53  ;;  %8442 = vmatprep.subr.bf16.mxu1 %v15943_v54  ;;  %v16032_v53 = vld [vmem:[%s21923_s1 + $0x21a4] ss:$16 sps:$4 sm:$0xff]   ;;  %v16035_v54 = vld [vmem:[%s21923_s1 + $0x21ac] ss:$16 sps:$4 sm:$0xff]  }
 0x3fb   :  { %8279 = vmatpush1.bf16.msra.mxu0 %v15938_v55  ;;  %8443 = vmatpush1.bf16.msra.mxu1 %v15941_v57  ;;  %v16030_v55 = vld [vmem:[%s21923_s1 + $0x21a0] ss:$16 sps:$4 sm:$0xff]   ;;  %v16033_v57 = vld [vmem:[%s21923_s1 + $0x21a8] ss:$16 sps:$4 sm:$0xff]  }
 0x3fc   :  { %8280 = vmatprep.subr.bf16.mxu0 %v15946_v49  ;;  %8444 = vmatprep.subr.bf16.mxu1 %v15949_v58  ;;  %v16038_v49 = vld [vmem:[%s21923_s1 + $0x21c4] ss:$16 sps:$4 sm:$0xff]   ;;  %v16041_v58 = vld [vmem:[%s21923_s1 + $0x21cc] ss:$16 sps:$4 sm:$0xff]  }
 0x3ff   :  { %8281 = vmatpush1.bf16.msra.mxu0 %v15944_v59  ;;  %8445 = vmatpush1.bf16.msra.mxu1 %v15947_v45  ;;  %v16036_v59 = vld [vmem:[%s21923_s1 + $0x21c0] ss:$16 sps:$4 sm:$0xff]   ;;  %v16039_v45 = vld [vmem:[%s21923_s1 + $0x21c8] ss:$16 sps:$4 sm:$0xff]  }
 0x400   :  { %8291 = vmatprep.subr.bf16.mxu0 %v15954_v61  ;;  %8455 = vmatprep.subr.bf16.mxu1 %v15957_v56  ;;  %v16044_v61 = vld [vmem:[%s21923_s1 + $0x21e4] ss:$16 sps:$4 sm:$0xff]   ;;  %v16047_v56 = vld [vmem:[%s21923_s1 + $0x21ec] ss:$16 sps:$4 sm:$0xff]  }
 0x402   :  { %8283 = vmatmul.mubr.bf16.vlgmr.msra.gmra.mrb[0].mxu0 %v13399_v62  ;;  %8447 = vmatmul.mubr.bf16.vlgmr.msra.gmra.mrb[0].mxu1 %v13399_v62  ;;  %v16042_v62 = vld [vmem:[%s21923_s1 + $0x21e0] ss:$16 sps:$4 sm:$0xff]  }
 0x403   :  { %8292 = vmatpush1.bf16.msra.mxu0 %v15952_v0  ;;  %8456 = vmatpush1.bf16.msra.mxu1 %v15955_v1  ;;  %v16045_v0 = vld [vmem:[%s21923_s1 + $0x21e8] ss:$16 sps:$4 sm:$0xff]   ;;  %v16052_v1 = vld [vmem:[%s21923_s1 + $0x2204] ss:$16 sps:$4 sm:$0xff]  }
 0x404   :  { %8293 = vmatprep.subr.bf16.mxu0 %v15960_v60  ;;  %8457 = vmatprep.subr.bf16.mxu1 %v15963_v2  ;;  %v16055_v60 = vld [vmem:[%s21923_s1 + $0x220c] ss:$16 sps:$4 sm:$0xff]   ;;  %v13401_v2 = vcombine.low %v20086_v63, %v20086_v63 }
 0x405   :  { %8323 = vmatprep.mubr.bf16.mxu0 %v13402_v3  ;;  %8487 = vmatprep.mubr.bf16.mxu1 %v13402_v3  ;;  %v16050_v3 = vld [vmem:[%s21923_s1 + $0x2200] ss:$16 sps:$4 sm:$0xff]   ;;  %v16061_v63 = vld [vmem:[%s21923_s1 + $0x222c] ss:$16 sps:$4 sm:$0xff]  }
 0x407   :  { %8294 = vmatpush1.bf16.msra.mxu0 %v15958_v4  ;;  %8458 = vmatpush1.bf16.msra.mxu1 %v15961_v5  ;;  %v16053_v4 = vld [vmem:[%s21923_s1 + $0x2208] ss:$16 sps:$4 sm:$0xff]   ;;  %v16058_v5 = vld [vmem:[%s21923_s1 + $0x2224] ss:$16 sps:$4 sm:$0xff]  }
 0x408   :  { %8295 = vmatprep.subr.bf16.mxu0 %v15966_v6  ;;  %8459 = vmatprep.subr.bf16.mxu1 %v15969_v7  ;;  %v16056_v6 = vld [vmem:[%s21923_s1 + $0x2220] ss:$16 sps:$4 sm:$0xff]   ;;  %v16059_v7 = vld [vmem:[%s21923_s1 + $0x2228] ss:$16 sps:$4 sm:$0xff]  }
 0x40b   :  { %8296 = vmatpush1.bf16.msra.mxu0 %v15964_v9  ;;  %8460 = vmatpush1.bf16.msra.mxu1 %v15967_v10  ;;  %v16064_v9 = vld [vmem:[%s21923_s1 + $0x2244] ss:$16 sps:$4 sm:$0xff]   ;;  %v16067_v10 = vld [vmem:[%s21923_s1 + $0x224c] ss:$16 sps:$4 sm:$0xff]  }
 0x40c   :  { %8297 = vmatprep.subr.bf16.mxu0 %v15972_v12  ;;  %8461 = vmatprep.subr.bf16.mxu1 %v15975_v14  ;;  %v16062_v12 = vld [vmem:[%s21923_s1 + $0x2240] ss:$16 sps:$4 sm:$0xff]   ;;  %v16065_v14 = vld [vmem:[%s21923_s1 + $0x2248] ss:$16 sps:$4 sm:$0xff]  }
 0x40f   :  { %8298 = vmatpush1.bf16.msra.mxu0 %v15970_v11  ;;  %8462 = vmatpush1.bf16.msra.mxu1 %v15973_v15  ;;  %v16070_v11 = vld [vmem:[%s21923_s1 + $0x2264] ss:$16 sps:$4 sm:$0xff]   ;;  %v16073_v15 = vld [vmem:[%s21923_s1 + $0x226c] ss:$16 sps:$4 sm:$0xff]  }
 0x410   :  { %8299 = vmatprep.subr.bf16.mxu0 %v15978_v16  ;;  %8463 = vmatprep.subr.bf16.mxu1 %v15981_v17  ;;  %v16068_v16 = vld [vmem:[%s21923_s1 + $0x2260] ss:$16 sps:$4 sm:$0xff]   ;;  %v16071_v17 = vld [vmem:[%s21923_s1 + $0x2268] ss:$16 sps:$4 sm:$0xff]  }
 0x413   :  { %8300 = vmatpush1.bf16.msra.mxu0 %v15976_v18  ;;  %8464 = vmatpush1.bf16.msra.mxu1 %v15979_v20  ;;  %v16076_v18 = vld [vmem:[%s21923_s1 + $0x2284] ss:$16 sps:$4 sm:$0xff]   ;;  %v16079_v20 = vld [vmem:[%s21923_s1 + $0x228c] ss:$16 sps:$4 sm:$0xff]  }
 0x414   :  { %8301 = vmatprep.subr.bf16.mxu0 %v15984_v21  ;;  %8465 = vmatprep.subr.bf16.mxu1 %v15987_v13  ;;  %v16074_v21 = vld [vmem:[%s21923_s1 + $0x2280] ss:$16 sps:$4 sm:$0xff]   ;;  %v16077_v13 = vld [vmem:[%s21923_s1 + $0x2288] ss:$16 sps:$4 sm:$0xff]  }
 0x417   :  { %8302 = vmatpush1.bf16.msra.mxu0 %v15982_v22  ;;  %8466 = vmatpush1.bf16.msra.mxu1 %v15985_v23  ;;  %v16082_v22 = vld [vmem:[%s21923_s1 + $0x22a4] ss:$16 sps:$4 sm:$0xff]   ;;  %v16085_v23 = vld [vmem:[%s21923_s1 + $0x22ac] ss:$16 sps:$4 sm:$0xff]  }
 0x418   :  { %8303 = vmatprep.subr.bf16.mxu0 %v15990_v24  ;;  %8467 = vmatprep.subr.bf16.mxu1 %v15993_v8  ;;  %v16080_v24 = vld [vmem:[%s21923_s1 + $0x22a0] ss:$16 sps:$4 sm:$0xff]   ;;  %v16083_v8 = vld [vmem:[%s21923_s1 + $0x22a8] ss:$16 sps:$4 sm:$0xff]  }
 0x41b   :  { %8304 = vmatpush1.bf16.msra.mxu0 %v15988_v25  ;;  %8468 = vmatpush1.bf16.msra.mxu1 %v15991_v26  ;;  %v16088_v25 = vld [vmem:[%s21923_s1 + $0x22c4] ss:$16 sps:$4 sm:$0xff]   ;;  %v16091_v26 = vld [vmem:[%s21923_s1 + $0x22cc] ss:$16 sps:$4 sm:$0xff]  }
 0x41c   :  { %8305 = vmatprep.subr.bf16.mxu0 %v15996_v28  ;;  %8469 = vmatprep.subr.bf16.mxu1 %v15999_v29  ;;  %v16086_v28 = vld [vmem:[%s21923_s1 + $0x22c0] ss:$16 sps:$4 sm:$0xff]   ;;  %v16089_v29 = vld [vmem:[%s21923_s1 + $0x22c8] ss:$16 sps:$4 sm:$0xff]  }
 0x41f   :  { %8306 = vmatpush1.bf16.msra.mxu0 %v15994_v30  ;;  %8470 = vmatpush1.bf16.msra.mxu1 %v15997_v32  ;;  %v16094_v30 = vld [vmem:[%s21923_s1 + $0x22e4] ss:$16 sps:$4 sm:$0xff]   ;;  %v16097_v32 = vld [vmem:[%s21923_s1 + $0x22ec] ss:$16 sps:$4 sm:$0xff]  }
 0x420   :  { %8307 = vmatprep.subr.bf16.mxu0 %v16002_v33  ;;  %8471 = vmatprep.subr.bf16.mxu1 %v16005_v34  ;;  %v16092_v33 = vld [vmem:[%s21923_s1 + $0x22e0] ss:$16 sps:$4 sm:$0xff]   ;;  %v16095_v34 = vld [vmem:[%s21923_s1 + $0x22e8] ss:$16 sps:$4 sm:$0xff]  }
 0x423   :  { %8308 = vmatpush1.bf16.msra.mxu0 %v16000_v35  ;;  %8472 = vmatpush1.bf16.msra.mxu1 %v16003_v36  ;;  %v16100_v35 = vld [vmem:[%s21923_s1 + $0x2304] ss:$16 sps:$4 sm:$0xff]   ;;  %v16103_v36 = vld [vmem:[%s21923_s1 + $0x230c] ss:$16 sps:$4 sm:$0xff]  }
 0x424   :  { %8309 = vmatprep.subr.bf16.mxu0 %v16008_v37  ;;  %8473 = vmatprep.subr.bf16.mxu1 %v16011_v38  ;;  %v16104_v37 = vld [vmem:[%s21924_s0 + $0x88] ss:$0 sps:$4 sm:$0xff]   ;;  %v20388_v38 = vld [vmem:[%s21924_s0 + $0x8c] sm:$0xff] }
 0x427   :  { %8310 = vmatpush1.bf16.msra.mxu0 %v16006_v39  ;;  %8474 = vmatpush1.bf16.msra.mxu1 %v16009_v31  ;;  %v16098_v39 = vld [vmem:[%s21923_s1 + $0x2300] ss:$16 sps:$4 sm:$0xff]   ;;  %v16101_v31 = vld [vmem:[%s21923_s1 + $0x2308] ss:$16 sps:$4 sm:$0xff]  }
 0x428   :  { %8311 = vmatprep.subr.bf16.mxu0 %v16014_v40  ;;  %8475 = vmatprep.subr.bf16.mxu1 %v16017_v41  ;;  %v16107_v40 = vld [vmem:[%s21923_s1 + $0x2324] ss:$16 sps:$4 sm:$0xff]   ;;  %v16110_v41 = vld [vmem:[%s21923_s1 + $0x232c] ss:$16 sps:$4 sm:$0xff]  }
 0x42b   :  { %8312 = vmatpush1.bf16.msra.mxu0 %v16012_v42  ;;  %8476 = vmatpush1.bf16.msra.mxu1 %v16015_v27  ;;  %v13629_v42 = vcombine.high %v20388_v38, %v20388_v38  ;;  %v16105_v27 = vld [vmem:[%s21923_s1 + $0x2320] ss:$16 sps:$4 sm:$0xff]  }
 0x42c   :  { %8313 = vmatprep.subr.bf16.mxu0 %v16020_v43  ;;  %8477 = vmatprep.subr.bf16.mxu1 %v16023_v44  ;;  %v16108_v43 = vld [vmem:[%s21923_s1 + $0x2328] ss:$16 sps:$4 sm:$0xff]   ;;  %v16113_v44 = vld [vmem:[%s21923_s1 + $0x2344] ss:$16 sps:$4 sm:$0xff]  }
 0x42f   :  { %8314 = vmatpush1.bf16.msra.mxu0 %v16018_v46  ;;  %8478 = vmatpush1.bf16.msra.mxu1 %v16021_v47  ;;  %v16116_v46 = vld [vmem:[%s21923_s1 + $0x234c] ss:$16 sps:$4 sm:$0xff]   ;;  %v16111_v47 = vld [vmem:[%s21923_s1 + $0x2340] ss:$16 sps:$4 sm:$0xff]  }
 0x430   :  { %8315 = vmatprep.subr.bf16.mxu0 %v16026_v48  ;;  %8479 = vmatprep.subr.bf16.mxu1 %v16029_v50  ;;  %v16114_v48 = vld [vmem:[%s21923_s1 + $0x2348] ss:$16 sps:$4 sm:$0xff]   ;;  %v16119_v50 = vld [vmem:[%s21923_s1 + $0x2364] ss:$16 sps:$4 sm:$0xff]  }
 0x433   :  { %8316 = vmatpush1.bf16.msra.mxu0 %v16024_v51  ;;  %8480 = vmatpush1.bf16.msra.mxu1 %v16027_v52  ;;  %v16122_v51 = vld [vmem:[%s21923_s1 + $0x236c] ss:$16 sps:$4 sm:$0xff]   ;;  %v16117_v52 = vld [vmem:[%s21923_s1 + $0x2360] ss:$16 sps:$4 sm:$0xff]  }
 0x434   :  { %8317 = vmatprep.subr.bf16.mxu0 %v16032_v53  ;;  %8481 = vmatprep.subr.bf16.mxu1 %v16035_v54  ;;  %v16120_v53 = vld [vmem:[%s21923_s1 + $0x2368] ss:$16 sps:$4 sm:$0xff]   ;;  %v16125_v54 = vld [vmem:[%s21923_s1 + $0x2384] ss:$16 sps:$4 sm:$0xff]  }
 0x437   :  { %8318 = vmatpush1.bf16.msra.mxu0 %v16030_v55  ;;  %8482 = vmatpush1.bf16.msra.mxu1 %v16033_v57  ;;  %v16128_v55 = vld [vmem:[%s21923_s1 + $0x238c] ss:$16 sps:$4 sm:$0xff]   ;;  %v16123_v57 = vld [vmem:[%s21923_s1 + $0x2380] ss:$16 sps:$4 sm:$0xff]  }
 0x438   :  { %8319 = vmatprep.subr.bf16.mxu0 %v16038_v49  ;;  %8483 = vmatprep.subr.bf16.mxu1 %v16041_v58  ;;  %v16126_v49 = vld [vmem:[%s21923_s1 + $0x2388] ss:$16 sps:$4 sm:$0xff]   ;;  %v16131_v58 = vld [vmem:[%s21923_s1 + $0x23a4] ss:$16 sps:$4 sm:$0xff]  }
 0x43b   :  { %8320 = vmatpush1.bf16.msra.mxu0 %v16036_v59  ;;  %8484 = vmatpush1.bf16.msra.mxu1 %v16039_v45  ;;  %v16134_v59 = vld [vmem:[%s21923_s1 + $0x23ac] ss:$16 sps:$4 sm:$0xff]   ;;  %v16129_v45 = vld [vmem:[%s21923_s1 + $0x23a0] ss:$16 sps:$4 sm:$0xff]  }
 0x43c   :  { %8321 = vmatprep.subr.bf16.mxu0 %v16044_v61  ;;  %8485 = vmatprep.subr.bf16.mxu1 %v16047_v56  ;;  %v16132_v61 = vld [vmem:[%s21923_s1 + $0x23a8] ss:$16 sps:$4 sm:$0xff]   ;;  %v16137_v56 = vld [vmem:[%s21923_s1 + $0x23c4] ss:$16 sps:$4 sm:$0xff]  }
 0x43f   :  { %8322 = vmatpush1.bf16.msra.mxu0 %v16042_v62  ;;  %8486 = vmatpush1.bf16.msra.mxu1 %v16045_v0  ;;  %v16140_v62 = vld [vmem:[%s21923_s1 + $0x23cc] ss:$16 sps:$4 sm:$0xff]   ;;  %v16135_v0 = vld [vmem:[%s21923_s1 + $0x23c0] ss:$16 sps:$4 sm:$0xff]  }
 0x440   :  { %8332 = vmatprep.subr.bf16.mxu0 %v16052_v1  ;;  %8496 = vmatprep.subr.bf16.mxu1 %v16055_v60  ;;  %v16138_v1 = vld [vmem:[%s21923_s1 + $0x23c8] ss:$16 sps:$4 sm:$0xff]   ;;  %v16143_v60 = vld [vmem:[%s21923_s1 + $0x23e4] ss:$16 sps:$4 sm:$0xff]  }
 0x442   :  { %8324 = vmatmul.mubr.bf16.vlgmr.msra.gmra.mrb[0].mxu0 %v13401_v2  ;;  %8488 = vmatmul.mubr.bf16.vlgmr.msra.gmra.mrb[0].mxu1 %v13401_v2  ;;  %v16146_v2 = vld [vmem:[%s21923_s1 + $0x23ec] ss:$16 sps:$4 sm:$0xff]  }
 0x443   :  { %8333 = vmatpush1.bf16.msra.mxu0 %v16050_v3  ;;  %8497 = vmatpush1.bf16.msra.mxu1 %v16053_v4  ;;  %v16141_v3 = vld [vmem:[%s21923_s1 + $0x23e0] ss:$16 sps:$4 sm:$0xff]   ;;  %v16144_v4 = vld [vmem:[%s21923_s1 + $0x23e8] ss:$16 sps:$4 sm:$0xff]  }
 0x444   :  { %8334 = vmatprep.subr.bf16.mxu0 %v16058_v5  ;;  %8498 = vmatprep.subr.bf16.mxu1 %v16061_v63  ;;  %v16149_v5 = vld [vmem:[%s21923_s1 + $0x2404] ss:$16 sps:$4 sm:$0xff]   ;;  %v16152_v63 = vld [vmem:[%s21923_s1 + $0x240c] ss:$16 sps:$4 sm:$0xff]  }
 0x445   :  { %8364 = vmatprep.mubr.bf16.mxu0 %v16829_v19  ;;  %8528 = vmatprep.mubr.bf16.mxu1 %v16829_v19 }
 0x447   :  { %8335 = vmatpush1.bf16.msra.mxu0 %v16056_v6  ;;  %8499 = vmatpush1.bf16.msra.mxu1 %v16059_v7  ;;  %v16147_v6 = vld [vmem:[%s21923_s1 + $0x2400] ss:$16 sps:$4 sm:$0xff]   ;;  %v16150_v7 = vld [vmem:[%s21923_s1 + $0x2408] ss:$16 sps:$4 sm:$0xff]  }
 0x448   :  { %8336 = vmatprep.subr.bf16.mxu0 %v16064_v9  ;;  %8500 = vmatprep.subr.bf16.mxu1 %v16067_v10  ;;  %v16155_v9 = vld [vmem:[%s21923_s1 + $0x2424] ss:$16 sps:$4 sm:$0xff]   ;;  %v16158_v10 = vld [vmem:[%s21923_s1 + $0x242c] ss:$16 sps:$4 sm:$0xff]  }
 0x44b   :  { %8337 = vmatpush1.bf16.msra.mxu0 %v16062_v12  ;;  %8501 = vmatpush1.bf16.msra.mxu1 %v16065_v14  ;;  %v16153_v12 = vld [vmem:[%s21923_s1 + $0x2420] ss:$16 sps:$4 sm:$0xff]   ;;  %v16156_v14 = vld [vmem:[%s21923_s1 + $0x2428] ss:$16 sps:$4 sm:$0xff]  }
 0x44c   :  { %8338 = vmatprep.subr.bf16.mxu0 %v16070_v11  ;;  %8502 = vmatprep.subr.bf16.mxu1 %v16073_v15  ;;  %v16161_v11 = vld [vmem:[%s21923_s1 + $0x2444] ss:$16 sps:$4 sm:$0xff]   ;;  %v16164_v15 = vld [vmem:[%s21923_s1 + $0x244c] ss:$16 sps:$4 sm:$0xff]  }
 0x44f   :  { %8339 = vmatpush1.bf16.msra.mxu0 %v16068_v16  ;;  %8503 = vmatpush1.bf16.msra.mxu1 %v16071_v17  ;;  %v16159_v16 = vld [vmem:[%s21923_s1 + $0x2440] ss:$16 sps:$4 sm:$0xff]   ;;  %v16162_v17 = vld [vmem:[%s21923_s1 + $0x2448] ss:$16 sps:$4 sm:$0xff]  }
 0x450   :  { %8340 = vmatprep.subr.bf16.mxu0 %v16076_v18  ;;  %8504 = vmatprep.subr.bf16.mxu1 %v16079_v20  ;;  %v16167_v18 = vld [vmem:[%s21923_s1 + $0x2464] ss:$16 sps:$4 sm:$0xff]   ;;  %v16170_v20 = vld [vmem:[%s21923_s1 + $0x246c] ss:$16 sps:$4 sm:$0xff]  }
 0x453   :  { %8341 = vmatpush1.bf16.msra.mxu0 %v16074_v21  ;;  %8505 = vmatpush1.bf16.msra.mxu1 %v16077_v13  ;;  %v16165_v21 = vld [vmem:[%s21923_s1 + $0x2460] ss:$16 sps:$4 sm:$0xff]   ;;  %v16168_v13 = vld [vmem:[%s21923_s1 + $0x2468] ss:$16 sps:$4 sm:$0xff]  }
 0x454   :  { %8342 = vmatprep.subr.bf16.mxu0 %v16082_v22  ;;  %8506 = vmatprep.subr.bf16.mxu1 %v16085_v23  ;;  %v16173_v22 = vld [vmem:[%s21923_s1 + $0x2484] ss:$16 sps:$4 sm:$0xff]   ;;  %v16176_v23 = vld [vmem:[%s21923_s1 + $0x248c] ss:$16 sps:$4 sm:$0xff]  }
 0x457   :  { %8343 = vmatpush1.bf16.msra.mxu0 %v16080_v24  ;;  %8507 = vmatpush1.bf16.msra.mxu1 %v16083_v8  ;;  %v16171_v24 = vld [vmem:[%s21923_s1 + $0x2480] ss:$16 sps:$4 sm:$0xff]   ;;  %v16174_v8 = vld [vmem:[%s21923_s1 + $0x2488] ss:$16 sps:$4 sm:$0xff]  }
 0x458   :  { %8344 = vmatprep.subr.bf16.mxu0 %v16088_v25  ;;  %8508 = vmatprep.subr.bf16.mxu1 %v16091_v26  ;;  %v16179_v25 = vld [vmem:[%s21923_s1 + $0x24a4] ss:$16 sps:$4 sm:$0xff]   ;;  %v16182_v26 = vld [vmem:[%s21923_s1 + $0x24ac] ss:$16 sps:$4 sm:$0xff]  }
 0x45b   :  { %8345 = vmatpush1.bf16.msra.mxu0 %v16086_v28  ;;  %8509 = vmatpush1.bf16.msra.mxu1 %v16089_v29  ;;  %v16177_v28 = vld [vmem:[%s21923_s1 + $0x24a0] ss:$16 sps:$4 sm:$0xff]   ;;  %v16180_v29 = vld [vmem:[%s21923_s1 + $0x24a8] ss:$16 sps:$4 sm:$0xff]  }
 0x45c   :  { %8346 = vmatprep.subr.bf16.mxu0 %v16094_v30  ;;  %8510 = vmatprep.subr.bf16.mxu1 %v16097_v32  ;;  %v16185_v30 = vld [vmem:[%s21923_s1 + $0x24c4] ss:$16 sps:$4 sm:$0xff]   ;;  %v16188_v32 = vld [vmem:[%s21923_s1 + $0x24cc] ss:$16 sps:$4 sm:$0xff]  }
 0x45f   :  { %8347 = vmatpush1.bf16.msra.mxu0 %v16092_v33  ;;  %8511 = vmatpush1.bf16.msra.mxu1 %v16095_v34  ;;  %v16183_v33 = vld [vmem:[%s21923_s1 + $0x24c0] ss:$16 sps:$4 sm:$0xff]   ;;  %v16186_v34 = vld [vmem:[%s21923_s1 + $0x24c8] ss:$16 sps:$4 sm:$0xff]  }
 0x460   :  { %9914 = vmatprep.subr.bf16.mxu0 %v16100_v35  ;;  %10078 = vmatprep.subr.bf16.mxu1 %v16103_v36  ;;  %v16191_v35 = vld [vmem:[%s21923_s1 + $0x24e4] ss:$16 sps:$4 sm:$0xff]   ;;  %v16194_v36 = vld [vmem:[%s21923_s1 + $0x24ec] ss:$16 sps:$4 sm:$0xff]  }
 0x462   :  { %8365 = vmatmul.mubr.bf16.vlgmr.msra.gmra.mrb[0].mxu0 %v16104_v37  ;;  %8529 = vmatmul.mubr.bf16.vlgmr.msra.gmra.mrb[0].mxu1 %v16104_v37  ;;  %v16189_v37 = vld [vmem:[%s21923_s1 + $0x24e0] ss:$16 sps:$4 sm:$0xff]  }
 0x463   :  { %9915 = vmatpush1.bf16.msra.mxu0 %v16098_v39  ;;  %10079 = vmatpush1.bf16.msra.mxu1 %v16101_v31  ;;  %v16192_v39 = vld [vmem:[%s21923_s1 + $0x24e8] ss:$16 sps:$4 sm:$0xff]   ;;  %v16199_v31 = vld [vmem:[%s21923_s1 + $0x2504] ss:$16 sps:$4 sm:$0xff]  }
 0x464   :  { %9916 = vmatprep.subr.bf16.mxu0 %v16107_v40  ;;  %10080 = vmatprep.subr.bf16.mxu1 %v16110_v41  ;;  %v16202_v40 = vld [vmem:[%s21923_s1 + $0x250c] ss:$16 sps:$4 sm:$0xff]   ;;  %v13628_v41 = vcombine.low %v20388_v38, %v20388_v38  ;;  %v16205_v38 = vld [vmem:[%s21923_s1 + $0x2524] ss:$16 sps:$4 sm:$0xff]  }
 0x465   :  { %9946 = vmatprep.mubr.bf16.mxu0 %v13629_v42  ;;  %10110 = vmatprep.mubr.bf16.mxu1 %v13629_v42  ;;  %v20589_v42 = vld [vmem:[%s21924_s0 + $0x94] sm:$0xff] }
 0x467   :  { %9917 = vmatpush1.bf16.msra.mxu0 %v16105_v27  ;;  %10081 = vmatpush1.bf16.msra.mxu1 %v16108_v43  ;;  %v16197_v27 = vld [vmem:[%s21923_s1 + $0x2500] ss:$16 sps:$4 sm:$0xff]   ;;  %v16200_v43 = vld [vmem:[%s21923_s1 + $0x2508] ss:$16 sps:$4 sm:$0xff]  }
 0x468   :  { %9918 = vmatprep.subr.bf16.mxu0 %v16113_v44  ;;  %10082 = vmatprep.subr.bf16.mxu1 %v16116_v46  ;;  %v16208_v44 = vld [vmem:[%s21923_s1 + $0x252c] ss:$16 sps:$4 sm:$0xff]   ;;  %v13631_v46 = vcombine.high %v20589_v42, %v20589_v42 }
 0x46b   :  { %9919 = vmatpush1.bf16.msra.mxu0 %v16111_v47  ;;  %10083 = vmatpush1.bf16.msra.mxu1 %v16114_v48  ;;  %v16203_v47 = vld [vmem:[%s21923_s1 + $0x2520] ss:$16 sps:$4 sm:$0xff]   ;;  %v16206_v48 = vld [vmem:[%s21923_s1 + $0x2528] ss:$16 sps:$4 sm:$0xff]  }
 0x46c   :  { %9920 = vmatprep.subr.bf16.mxu0 %v16119_v50  ;;  %10084 = vmatprep.subr.bf16.mxu1 %v16122_v51  ;;  %v16211_v50 = vld [vmem:[%s21923_s1 + $0x2544] ss:$16 sps:$4 sm:$0xff]   ;;  %v16214_v51 = vld [vmem:[%s21923_s1 + $0x254c] ss:$16 sps:$4 sm:$0xff]  }
 0x46f   :  { %9921 = vmatpush1.bf16.msra.mxu0 %v16117_v52  ;;  %10085 = vmatpush1.bf16.msra.mxu1 %v16120_v53  ;;  %v16209_v52 = vld [vmem:[%s21923_s1 + $0x2540] ss:$16 sps:$4 sm:$0xff]   ;;  %v16212_v53 = vld [vmem:[%s21923_s1 + $0x2548] ss:$16 sps:$4 sm:$0xff]  }
 0x470   :  { %9922 = vmatprep.subr.bf16.mxu0 %v16125_v54  ;;  %10086 = vmatprep.subr.bf16.mxu1 %v16128_v55  ;;  %v16217_v54 = vld [vmem:[%s21923_s1 + $0x2564] ss:$16 sps:$4 sm:$0xff]   ;;  %v16220_v55 = vld [vmem:[%s21923_s1 + $0x256c] ss:$16 sps:$4 sm:$0xff]  }
 0x473   :  { %9923 = vmatpush1.bf16.msra.mxu0 %v16123_v57  ;;  %10087 = vmatpush1.bf16.msra.mxu1 %v16126_v49  ;;  %v16215_v57 = vld [vmem:[%s21923_s1 + $0x2560] ss:$16 sps:$4 sm:$0xff]   ;;  %v16218_v49 = vld [vmem:[%s21923_s1 + $0x2568] ss:$16 sps:$4 sm:$0xff]  }
 0x474   :  { %9924 = vmatprep.subr.bf16.mxu0 %v16131_v58  ;;  %10088 = vmatprep.subr.bf16.mxu1 %v16134_v59  ;;  %v16223_v58 = vld [vmem:[%s21923_s1 + $0x2584] ss:$16 sps:$4 sm:$0xff]   ;;  %v16226_v59 = vld [vmem:[%s21923_s1 + $0x258c] ss:$16 sps:$4 sm:$0xff]  }
 0x477   :  { %9925 = vmatpush1.bf16.msra.mxu0 %v16129_v45  ;;  %10089 = vmatpush1.bf16.msra.mxu1 %v16132_v61  ;;  %v16221_v45 = vld [vmem:[%s21923_s1 + $0x2580] ss:$16 sps:$4 sm:$0xff]   ;;  %v16224_v61 = vld [vmem:[%s21923_s1 + $0x2588] ss:$16 sps:$4 sm:$0xff]  }
 0x478   :  { %9926 = vmatprep.subr.bf16.mxu0 %v16137_v56  ;;  %10090 = vmatprep.subr.bf16.mxu1 %v16140_v62  ;;  %v16229_v56 = vld [vmem:[%s21923_s1 + $0x25a4] ss:$16 sps:$4 sm:$0xff]   ;;  %v16232_v62 = vld [vmem:[%s21923_s1 + $0x25ac] ss:$16 sps:$4 sm:$0xff]  }
 0x47b   :  { %9927 = vmatpush1.bf16.msra.mxu0 %v16135_v0  ;;  %10091 = vmatpush1.bf16.msra.mxu1 %v16138_v1  ;;  %v16227_v0 = vld [vmem:[%s21923_s1 + $0x25a0] ss:$16 sps:$4 sm:$0xff]   ;;  %v16230_v1 = vld [vmem:[%s21923_s1 + $0x25a8] ss:$16 sps:$4 sm:$0xff]  }
 0x47c   :  { %9928 = vmatprep.subr.bf16.mxu0 %v16143_v60  ;;  %10092 = vmatprep.subr.bf16.mxu1 %v16146_v2  ;;  %v16235_v60 = vld [vmem:[%s21923_s1 + $0x25c4] ss:$16 sps:$4 sm:$0xff]   ;;  %v16238_v2 = vld [vmem:[%s21923_s1 + $0x25cc] ss:$16 sps:$4 sm:$0xff]  }
 0x47f   :  { %9929 = vmatpush1.bf16.msra.mxu0 %v16141_v3  ;;  %10093 = vmatpush1.bf16.msra.mxu1 %v16144_v4  ;;  %v16233_v3 = vld [vmem:[%s21923_s1 + $0x25c0] ss:$16 sps:$4 sm:$0xff]   ;;  %v16236_v4 = vld [vmem:[%s21923_s1 + $0x25c8] ss:$16 sps:$4 sm:$0xff]  }
 0x480   :  { %9930 = vmatprep.subr.bf16.mxu0 %v16149_v5  ;;  %10094 = vmatprep.subr.bf16.mxu1 %v16152_v63  ;;  %v16241_v5 = vld [vmem:[%s21923_s1 + $0x25e4] ss:$16 sps:$4 sm:$0xff]   ;;  %v16244_v63 = vld [vmem:[%s21923_s1 + $0x25ec] ss:$16 sps:$4 sm:$0xff]  }
 0x483   :  { %9931 = vmatpush1.bf16.msra.mxu0 %v16147_v6  ;;  %10095 = vmatpush1.bf16.msra.mxu1 %v16150_v7  ;;  %v16239_v6 = vld [vmem:[%s21923_s1 + $0x25e0] ss:$16 sps:$4 sm:$0xff]   ;;  %v16242_v7 = vld [vmem:[%s21923_s1 + $0x25e8] ss:$16 sps:$4 sm:$0xff]  }
 0x484   :  { %9932 = vmatprep.subr.bf16.mxu0 %v16155_v9  ;;  %10096 = vmatprep.subr.bf16.mxu1 %v16158_v10  ;;  %v16247_v9 = vld [vmem:[%s21923_s1 + $0x2604] ss:$16 sps:$4 sm:$0xff]   ;;  %v16250_v10 = vld [vmem:[%s21923_s1 + $0x260c] ss:$16 sps:$4 sm:$0xff]  }
 0x487   :  { %9933 = vmatpush1.bf16.msra.mxu0 %v16153_v12  ;;  %10097 = vmatpush1.bf16.msra.mxu1 %v16156_v14  ;;  %v16245_v12 = vld [vmem:[%s21923_s1 + $0x2600] ss:$16 sps:$4 sm:$0xff]   ;;  %v16248_v14 = vld [vmem:[%s21923_s1 + $0x2608] ss:$16 sps:$4 sm:$0xff]  }
 0x488   :  { %9934 = vmatprep.subr.bf16.mxu0 %v16161_v11  ;;  %10098 = vmatprep.subr.bf16.mxu1 %v16164_v15  ;;  %v16253_v11 = vld [vmem:[%s21923_s1 + $0x2624] ss:$16 sps:$4 sm:$0xff]   ;;  %v16256_v15 = vld [vmem:[%s21923_s1 + $0x262c] ss:$16 sps:$4 sm:$0xff]  }
 0x48b   :  { %9935 = vmatpush1.bf16.msra.mxu0 %v16159_v16  ;;  %10099 = vmatpush1.bf16.msra.mxu1 %v16162_v17  ;;  %v16251_v16 = vld [vmem:[%s21923_s1 + $0x2620] ss:$16 sps:$4 sm:$0xff]   ;;  %v16254_v17 = vld [vmem:[%s21923_s1 + $0x2628] ss:$16 sps:$4 sm:$0xff]  }
 0x48c   :  { %9936 = vmatprep.subr.bf16.mxu0 %v16167_v18  ;;  %10100 = vmatprep.subr.bf16.mxu1 %v16170_v20  ;;  %v16259_v18 = vld [vmem:[%s21923_s1 + $0x2644] ss:$16 sps:$4 sm:$0xff]   ;;  %v16262_v20 = vld [vmem:[%s21923_s1 + $0x264c] ss:$16 sps:$4 sm:$0xff]  }
 0x48f   :  { %9937 = vmatpush1.bf16.msra.mxu0 %v16165_v21  ;;  %10101 = vmatpush1.bf16.msra.mxu1 %v16168_v13  ;;  %v16257_v21 = vld [vmem:[%s21923_s1 + $0x2640] ss:$16 sps:$4 sm:$0xff]   ;;  %v16260_v13 = vld [vmem:[%s21923_s1 + $0x2648] ss:$16 sps:$4 sm:$0xff]  }
 0x490   :  { %9938 = vmatprep.subr.bf16.mxu0 %v16173_v22  ;;  %10102 = vmatprep.subr.bf16.mxu1 %v16176_v23  ;;  %v16265_v22 = vld [vmem:[%s21923_s1 + $0x2664] ss:$16 sps:$4 sm:$0xff]   ;;  %v16268_v23 = vld [vmem:[%s21923_s1 + $0x266c] ss:$16 sps:$4 sm:$0xff]  }
 0x493   :  { %9939 = vmatpush1.bf16.msra.mxu0 %v16171_v24  ;;  %10103 = vmatpush1.bf16.msra.mxu1 %v16174_v8  ;;  %v16263_v24 = vld [vmem:[%s21923_s1 + $0x2660] ss:$16 sps:$4 sm:$0xff]   ;;  %v16266_v8 = vld [vmem:[%s21923_s1 + $0x2668] ss:$16 sps:$4 sm:$0xff]  }
 0x494   :  { %9940 = vmatprep.subr.bf16.mxu0 %v16179_v25  ;;  %10104 = vmatprep.subr.bf16.mxu1 %v16182_v26  ;;  %v16271_v25 = vld [vmem:[%s21923_s1 + $0x2684] ss:$16 sps:$4 sm:$0xff]   ;;  %v16274_v26 = vld [vmem:[%s21923_s1 + $0x268c] ss:$16 sps:$4 sm:$0xff]  }
 0x497   :  { %9941 = vmatpush1.bf16.msra.mxu0 %v16177_v28  ;;  %10105 = vmatpush1.bf16.msra.mxu1 %v16180_v29  ;;  %v16269_v28 = vld [vmem:[%s21923_s1 + $0x2680] ss:$16 sps:$4 sm:$0xff]   ;;  %v16272_v29 = vld [vmem:[%s21923_s1 + $0x2688] ss:$16 sps:$4 sm:$0xff]  }
 0x498   :  { %9942 = vmatprep.subr.bf16.mxu0 %v16185_v30  ;;  %10106 = vmatprep.subr.bf16.mxu1 %v16188_v32  ;;  %v16277_v30 = vld [vmem:[%s21923_s1 + $0x26a4] ss:$16 sps:$4 sm:$0xff]   ;;  %v16280_v32 = vld [vmem:[%s21923_s1 + $0x26ac] ss:$16 sps:$4 sm:$0xff]  }
 0x49b   :  { %9943 = vmatpush1.bf16.msra.mxu0 %v16183_v33  ;;  %10107 = vmatpush1.bf16.msra.mxu1 %v16186_v34  ;;  %v16275_v33 = vld [vmem:[%s21923_s1 + $0x26a0] ss:$16 sps:$4 sm:$0xff]   ;;  %v16278_v34 = vld [vmem:[%s21923_s1 + $0x26a8] ss:$16 sps:$4 sm:$0xff]  }
 0x49c   :  { %9944 = vmatprep.subr.bf16.mxu0 %v16191_v35  ;;  %10108 = vmatprep.subr.bf16.mxu1 %v16194_v36  ;;  %v16283_v35 = vld [vmem:[%s21923_s1 + $0x26c4] ss:$16 sps:$4 sm:$0xff]   ;;  %v16286_v36 = vld [vmem:[%s21923_s1 + $0x26cc] ss:$16 sps:$4 sm:$0xff]  }
 0x49f   :  { %9945 = vmatpush1.bf16.msra.mxu0 %v16189_v37  ;;  %10109 = vmatpush1.bf16.msra.mxu1 %v16192_v39  ;;  %v16281_v37 = vld [vmem:[%s21923_s1 + $0x26c0] ss:$16 sps:$4 sm:$0xff]   ;;  %v16284_v39 = vld [vmem:[%s21923_s1 + $0x26c8] ss:$16 sps:$4 sm:$0xff]  }
 0x4a0   :  { %9955 = vmatprep.subr.bf16.mxu0 %v16199_v31  ;;  %10119 = vmatprep.subr.bf16.mxu1 %v16202_v40  ;;  %v16289_v31 = vld [vmem:[%s21923_s1 + $0x26e4] ss:$16 sps:$4 sm:$0xff]   ;;  %v16292_v40 = vld [vmem:[%s21923_s1 + $0x26ec] ss:$16 sps:$4 sm:$0xff]  }
 0x4a2   :  { %9947 = vmatmul.mubr.bf16.vlgmr.msra.gmra.mrb[0].mxu0 %v13628_v41  ;;  %10111 = vmatmul.mubr.bf16.vlgmr.msra.gmra.mrb[0].mxu1 %v13628_v41  ;;  %v16287_v41 = vld [vmem:[%s21923_s1 + $0x26e0] ss:$16 sps:$4 sm:$0xff]  }
 0x4a3   :  { %9956 = vmatpush1.bf16.msra.mxu0 %v16197_v27  ;;  %10120 = vmatpush1.bf16.msra.mxu1 %v16200_v43  ;;  %v16290_v27 = vld [vmem:[%s21923_s1 + $0x26e8] ss:$16 sps:$4 sm:$0xff]   ;;  %v16297_v43 = vld [vmem:[%s21923_s1 + $0x2704] ss:$16 sps:$4 sm:$0xff]  }
 0x4a4   :  { %9957 = vmatprep.subr.bf16.mxu0 %v16205_v38  ;;  %10121 = vmatprep.subr.bf16.mxu1 %v16208_v44  ;;  %v16300_v38 = vld [vmem:[%s21923_s1 + $0x270c] ss:$16 sps:$4 sm:$0xff]   ;;  %v13630_v44 = vcombine.low %v20589_v42, %v20589_v42  ;;  %v16303_v42 = vld [vmem:[%s21923_s1 + $0x2724] ss:$16 sps:$4 sm:$0xff]  }
 0x4a5   :  { %9987 = vmatprep.mubr.bf16.mxu0 %v13631_v46  ;;  %10151 = vmatprep.mubr.bf16.mxu1 %v13631_v46  ;;  %v20790_v46 = vld [vmem:[%s21924_s0 + $0x9c] sm:$0xff] }
 0x4a7   :  { %9958 = vmatpush1.bf16.msra.mxu0 %v16203_v47  ;;  %10122 = vmatpush1.bf16.msra.mxu1 %v16206_v48  ;;  %v16295_v47 = vld [vmem:[%s21923_s1 + $0x2700] ss:$16 sps:$4 sm:$0xff]   ;;  %v16298_v48 = vld [vmem:[%s21923_s1 + $0x2708] ss:$16 sps:$4 sm:$0xff]  }
 0x4a8   :  { %9959 = vmatprep.subr.bf16.mxu0 %v16211_v50  ;;  %10123 = vmatprep.subr.bf16.mxu1 %v16214_v51  ;;  %v16306_v50 = vld [vmem:[%s21923_s1 + $0x272c] ss:$16 sps:$4 sm:$0xff]   ;;  %v13633_v51 = vcombine.high %v20790_v46, %v20790_v46 }
 0x4ab   :  { %9960 = vmatpush1.bf16.msra.mxu0 %v16209_v52  ;;  %10124 = vmatpush1.bf16.msra.mxu1 %v16212_v53  ;;  %v16301_v52 = vld [vmem:[%s21923_s1 + $0x2720] ss:$16 sps:$4 sm:$0xff]   ;;  %v16304_v53 = vld [vmem:[%s21923_s1 + $0x2728] ss:$16 sps:$4 sm:$0xff]  }
 0x4ac   :  { %9961 = vmatprep.subr.bf16.mxu0 %v16217_v54  ;;  %10125 = vmatprep.subr.bf16.mxu1 %v16220_v55  ;;  %v16309_v54 = vld [vmem:[%s21923_s1 + $0x2744] ss:$16 sps:$4 sm:$0xff]   ;;  %v16312_v55 = vld [vmem:[%s21923_s1 + $0x274c] ss:$16 sps:$4 sm:$0xff]  }
 0x4af   :  { %9962 = vmatpush1.bf16.msra.mxu0 %v16215_v57  ;;  %10126 = vmatpush1.bf16.msra.mxu1 %v16218_v49  ;;  %v16307_v57 = vld [vmem:[%s21923_s1 + $0x2740] ss:$16 sps:$4 sm:$0xff]   ;;  %v16310_v49 = vld [vmem:[%s21923_s1 + $0x2748] ss:$16 sps:$4 sm:$0xff]  }
 0x4b0   :  { %9963 = vmatprep.subr.bf16.mxu0 %v16223_v58  ;;  %10127 = vmatprep.subr.bf16.mxu1 %v16226_v59  ;;  %v16315_v58 = vld [vmem:[%s21923_s1 + $0x2764] ss:$16 sps:$4 sm:$0xff]   ;;  %v16318_v59 = vld [vmem:[%s21923_s1 + $0x276c] ss:$16 sps:$4 sm:$0xff]  }
 0x4b3   :  { %9964 = vmatpush1.bf16.msra.mxu0 %v16221_v45  ;;  %10128 = vmatpush1.bf16.msra.mxu1 %v16224_v61  ;;  %v16313_v45 = vld [vmem:[%s21923_s1 + $0x2760] ss:$16 sps:$4 sm:$0xff]   ;;  %v16316_v61 = vld [vmem:[%s21923_s1 + $0x2768] ss:$16 sps:$4 sm:$0xff]  }
 0x4b4   :  { %9965 = vmatprep.subr.bf16.mxu0 %v16229_v56  ;;  %10129 = vmatprep.subr.bf16.mxu1 %v16232_v62  ;;  %v16321_v56 = vld [vmem:[%s21923_s1 + $0x2784] ss:$16 sps:$4 sm:$0xff]   ;;  %v16324_v62 = vld [vmem:[%s21923_s1 + $0x278c] ss:$16 sps:$4 sm:$0xff]  }
 0x4b7   :  { %9966 = vmatpush1.bf16.msra.mxu0 %v16227_v0  ;;  %10130 = vmatpush1.bf16.msra.mxu1 %v16230_v1  ;;  %v16319_v0 = vld [vmem:[%s21923_s1 + $0x2780] ss:$16 sps:$4 sm:$0xff]   ;;  %v16322_v1 = vld [vmem:[%s21923_s1 + $0x2788] ss:$16 sps:$4 sm:$0xff]  }
 0x4b8   :  { %9967 = vmatprep.subr.bf16.mxu0 %v16235_v60  ;;  %10131 = vmatprep.subr.bf16.mxu1 %v16238_v2  ;;  %v16327_v60 = vld [vmem:[%s21923_s1 + $0x27a4] ss:$16 sps:$4 sm:$0xff]   ;;  %v16330_v2 = vld [vmem:[%s21923_s1 + $0x27ac] ss:$16 sps:$4 sm:$0xff]  }
 0x4bb   :  { %9968 = vmatpush1.bf16.msra.mxu0 %v16233_v3  ;;  %10132 = vmatpush1.bf16.msra.mxu1 %v16236_v4  ;;  %v16325_v3 = vld [vmem:[%s21923_s1 + $0x27a0] ss:$16 sps:$4 sm:$0xff]   ;;  %v16328_v4 = vld [vmem:[%s21923_s1 + $0x27a8] ss:$16 sps:$4 sm:$0xff]  }
 0x4bc   :  { %9969 = vmatprep.subr.bf16.mxu0 %v16241_v5  ;;  %10133 = vmatprep.subr.bf16.mxu1 %v16244_v63  ;;  %v16333_v5 = vld [vmem:[%s21923_s1 + $0x27c4] ss:$16 sps:$4 sm:$0xff]   ;;  %v16336_v63 = vld [vmem:[%s21923_s1 + $0x27cc] ss:$16 sps:$4 sm:$0xff]  }
 0x4bf   :  { %9970 = vmatpush1.bf16.msra.mxu0 %v16239_v6  ;;  %10134 = vmatpush1.bf16.msra.mxu1 %v16242_v7  ;;  %v16331_v6 = vld [vmem:[%s21923_s1 + $0x27c0] ss:$16 sps:$4 sm:$0xff]   ;;  %v16334_v7 = vld [vmem:[%s21923_s1 + $0x27c8] ss:$16 sps:$4 sm:$0xff]  }
 0x4c0   :  { %9971 = vmatprep.subr.bf16.mxu0 %v16247_v9  ;;  %10135 = vmatprep.subr.bf16.mxu1 %v16250_v10  ;;  %v16339_v9 = vld [vmem:[%s21923_s1 + $0x27e4] ss:$16 sps:$4 sm:$0xff]   ;;  %v16342_v10 = vld [vmem:[%s21923_s1 + $0x27ec] ss:$16 sps:$4 sm:$0xff]  }
 0x4c3   :  { %9972 = vmatpush1.bf16.msra.mxu0 %v16245_v12  ;;  %10136 = vmatpush1.bf16.msra.mxu1 %v16248_v14  ;;  %v16337_v12 = vld [vmem:[%s21923_s1 + $0x27e0] ss:$16 sps:$4 sm:$0xff]   ;;  %v16340_v14 = vld [vmem:[%s21923_s1 + $0x27e8] ss:$16 sps:$4 sm:$0xff]  }
 0x4c4   :  { %9973 = vmatprep.subr.bf16.mxu0 %v16253_v11  ;;  %10137 = vmatprep.subr.bf16.mxu1 %v16256_v15  ;;  %v16345_v11 = vld [vmem:[%s21923_s1 + $0x2804] ss:$16 sps:$4 sm:$0xff]   ;;  %v16348_v15 = vld [vmem:[%s21923_s1 + $0x280c] ss:$16 sps:$4 sm:$0xff]  }
 0x4c7   :  { %9974 = vmatpush1.bf16.msra.mxu0 %v16251_v16  ;;  %10138 = vmatpush1.bf16.msra.mxu1 %v16254_v17  ;;  %v16343_v16 = vld [vmem:[%s21923_s1 + $0x2800] ss:$16 sps:$4 sm:$0xff]   ;;  %v16346_v17 = vld [vmem:[%s21923_s1 + $0x2808] ss:$16 sps:$4 sm:$0xff]  }
 0x4c8   :  { %9975 = vmatprep.subr.bf16.mxu0 %v16259_v18  ;;  %10139 = vmatprep.subr.bf16.mxu1 %v16262_v20  ;;  %v16351_v18 = vld [vmem:[%s21923_s1 + $0x2824] ss:$16 sps:$4 sm:$0xff]   ;;  %v16354_v20 = vld [vmem:[%s21923_s1 + $0x282c] ss:$16 sps:$4 sm:$0xff]  }
 0x4cb   :  { %9976 = vmatpush1.bf16.msra.mxu0 %v16257_v21  ;;  %10140 = vmatpush1.bf16.msra.mxu1 %v16260_v13  ;;  %v16349_v21 = vld [vmem:[%s21923_s1 + $0x2820] ss:$16 sps:$4 sm:$0xff]   ;;  %v16352_v13 = vld [vmem:[%s21923_s1 + $0x2828] ss:$16 sps:$4 sm:$0xff]  }
 0x4cc   :  { %9977 = vmatprep.subr.bf16.mxu0 %v16265_v22  ;;  %10141 = vmatprep.subr.bf16.mxu1 %v16268_v23  ;;  %v16357_v22 = vld [vmem:[%s21923_s1 + $0x2844] ss:$16 sps:$4 sm:$0xff]   ;;  %v16360_v23 = vld [vmem:[%s21923_s1 + $0x284c] ss:$16 sps:$4 sm:$0xff]  }
 0x4cf   :  { %9978 = vmatpush1.bf16.msra.mxu0 %v16263_v24  ;;  %10142 = vmatpush1.bf16.msra.mxu1 %v16266_v8  ;;  %v16355_v24 = vld [vmem:[%s21923_s1 + $0x2840] ss:$16 sps:$4 sm:$0xff]   ;;  %v16358_v8 = vld [vmem:[%s21923_s1 + $0x2848] ss:$16 sps:$4 sm:$0xff]  }
 0x4d0   :  { %9979 = vmatprep.subr.bf16.mxu0 %v16271_v25  ;;  %10143 = vmatprep.subr.bf16.mxu1 %v16274_v26  ;;  %v16363_v25 = vld [vmem:[%s21923_s1 + $0x2864] ss:$16 sps:$4 sm:$0xff]   ;;  %v16366_v26 = vld [vmem:[%s21923_s1 + $0x286c] ss:$16 sps:$4 sm:$0xff]  }
 0x4d3   :  { %9980 = vmatpush1.bf16.msra.mxu0 %v16269_v28  ;;  %10144 = vmatpush1.bf16.msra.mxu1 %v16272_v29  ;;  %v16361_v28 = vld [vmem:[%s21923_s1 + $0x2860] ss:$16 sps:$4 sm:$0xff]   ;;  %v16364_v29 = vld [vmem:[%s21923_s1 + $0x2868] ss:$16 sps:$4 sm:$0xff]  }
 0x4d4   :  { %9981 = vmatprep.subr.bf16.mxu0 %v16277_v30  ;;  %10145 = vmatprep.subr.bf16.mxu1 %v16280_v32  ;;  %v16369_v30 = vld [vmem:[%s21923_s1 + $0x2884] ss:$16 sps:$4 sm:$0xff]   ;;  %v16372_v32 = vld [vmem:[%s21923_s1 + $0x288c] ss:$16 sps:$4 sm:$0xff]  }
 0x4d7   :  { %9982 = vmatpush1.bf16.msra.mxu0 %v16275_v33  ;;  %10146 = vmatpush1.bf16.msra.mxu1 %v16278_v34  ;;  %v16367_v33 = vld [vmem:[%s21923_s1 + $0x2880] ss:$16 sps:$4 sm:$0xff]   ;;  %v16370_v34 = vld [vmem:[%s21923_s1 + $0x2888] ss:$16 sps:$4 sm:$0xff]  }
 0x4d8   :  { %9983 = vmatprep.subr.bf16.mxu0 %v16283_v35  ;;  %10147 = vmatprep.subr.bf16.mxu1 %v16286_v36  ;;  %v16375_v35 = vld [vmem:[%s21923_s1 + $0x28a4] ss:$16 sps:$4 sm:$0xff]   ;;  %v16378_v36 = vld [vmem:[%s21923_s1 + $0x28ac] ss:$16 sps:$4 sm:$0xff]  }
 0x4db   :  { %9984 = vmatpush1.bf16.msra.mxu0 %v16281_v37  ;;  %10148 = vmatpush1.bf16.msra.mxu1 %v16284_v39  ;;  %v16373_v37 = vld [vmem:[%s21923_s1 + $0x28a0] ss:$16 sps:$4 sm:$0xff]   ;;  %v16376_v39 = vld [vmem:[%s21923_s1 + $0x28a8] ss:$16 sps:$4 sm:$0xff]  }
 0x4dc   :  { %9985 = vmatprep.subr.bf16.mxu0 %v16289_v31  ;;  %10149 = vmatprep.subr.bf16.mxu1 %v16292_v40  ;;  %v16381_v31 = vld [vmem:[%s21923_s1 + $0x28c4] ss:$16 sps:$4 sm:$0xff]   ;;  %v16384_v40 = vld [vmem:[%s21923_s1 + $0x28cc] ss:$16 sps:$4 sm:$0xff]  }
 0x4df   :  { %9986 = vmatpush1.bf16.msra.mxu0 %v16287_v41  ;;  %10150 = vmatpush1.bf16.msra.mxu1 %v16290_v27  ;;  %v16379_v41 = vld [vmem:[%s21923_s1 + $0x28c0] ss:$16 sps:$4 sm:$0xff]   ;;  %v16382_v27 = vld [vmem:[%s21923_s1 + $0x28c8] ss:$16 sps:$4 sm:$0xff]  }
 0x4e0   :  { %9996 = vmatprep.subr.bf16.mxu0 %v16297_v43  ;;  %10160 = vmatprep.subr.bf16.mxu1 %v16300_v38  ;;  %v16387_v43 = vld [vmem:[%s21923_s1 + $0x28e4] ss:$16 sps:$4 sm:$0xff]   ;;  %v16390_v38 = vld [vmem:[%s21923_s1 + $0x28ec] ss:$16 sps:$4 sm:$0xff]  }
 0x4e2   :  { %9988 = vmatmul.mubr.bf16.vlgmr.msra.gmra.mrb[0].mxu0 %v13630_v44  ;;  %10152 = vmatmul.mubr.bf16.vlgmr.msra.gmra.mrb[0].mxu1 %v13630_v44  ;;  %v16385_v44 = vld [vmem:[%s21923_s1 + $0x28e0] ss:$16 sps:$4 sm:$0xff]  }
 0x4e3   :  { %9997 = vmatpush1.bf16.msra.mxu0 %v16295_v47  ;;  %10161 = vmatpush1.bf16.msra.mxu1 %v16298_v48  ;;  %v16388_v47 = vld [vmem:[%s21923_s1 + $0x28e8] ss:$16 sps:$4 sm:$0xff]   ;;  %v16395_v48 = vld [vmem:[%s21923_s1 + $0x2904] ss:$16 sps:$4 sm:$0xff]  }
 0x4e4   :  { %9998 = vmatprep.subr.bf16.mxu0 %v16303_v42  ;;  %10162 = vmatprep.subr.bf16.mxu1 %v16306_v50  ;;  %v16398_v42 = vld [vmem:[%s21923_s1 + $0x290c] ss:$16 sps:$4 sm:$0xff]   ;;  %v13632_v50 = vcombine.low %v20790_v46, %v20790_v46 }
 0x4e5   :  { %10028 = vmatprep.mubr.bf16.mxu0 %v13633_v51  ;;  %10192 = vmatprep.mubr.bf16.mxu1 %v13633_v51  ;;  %v16393_v51 = vld [vmem:[%s21923_s1 + $0x2900] ss:$16 sps:$4 sm:$0xff]   ;;  %v16404_v46 = vld [vmem:[%s21923_s1 + $0x292c] ss:$16 sps:$4 sm:$0xff]  }
 0x4e7   :  { %9999 = vmatpush1.bf16.msra.mxu0 %v16301_v52  ;;  %10163 = vmatpush1.bf16.msra.mxu1 %v16304_v53  ;;  %v16396_v52 = vld [vmem:[%s21923_s1 + $0x2908] ss:$16 sps:$4 sm:$0xff]   ;;  %v16401_v53 = vld [vmem:[%s21923_s1 + $0x2924] ss:$16 sps:$4 sm:$0xff]  }
 0x4e8   :  { %10000 = vmatprep.subr.bf16.mxu0 %v16309_v54  ;;  %10164 = vmatprep.subr.bf16.mxu1 %v16312_v55  ;;  %v16399_v54 = vld [vmem:[%s21923_s1 + $0x2920] ss:$16 sps:$4 sm:$0xff]   ;;  %v16402_v55 = vld [vmem:[%s21923_s1 + $0x2928] ss:$16 sps:$4 sm:$0xff]  }
 0x4eb   :  { %10001 = vmatpush1.bf16.msra.mxu0 %v16307_v57  ;;  %10165 = vmatpush1.bf16.msra.mxu1 %v16310_v49  ;;  %v16407_v57 = vld [vmem:[%s21923_s1 + $0x2944] ss:$16 sps:$4 sm:$0xff]   ;;  %v16410_v49 = vld [vmem:[%s21923_s1 + $0x294c] ss:$16 sps:$4 sm:$0xff]  }
 0x4ec   :  { %10002 = vmatprep.subr.bf16.mxu0 %v16315_v58  ;;  %10166 = vmatprep.subr.bf16.mxu1 %v16318_v59  ;;  %v16405_v58 = vld [vmem:[%s21923_s1 + $0x2940] ss:$16 sps:$4 sm:$0xff]   ;;  %v16408_v59 = vld [vmem:[%s21923_s1 + $0x2948] ss:$16 sps:$4 sm:$0xff]  }
 0x4ef   :  { %10003 = vmatpush1.bf16.msra.mxu0 %v16313_v45  ;;  %10167 = vmatpush1.bf16.msra.mxu1 %v16316_v61  ;;  %v16413_v45 = vld [vmem:[%s21923_s1 + $0x2964] ss:$16 sps:$4 sm:$0xff]   ;;  %v16416_v61 = vld [vmem:[%s21923_s1 + $0x296c] ss:$16 sps:$4 sm:$0xff]  }
 0x4f0   :  { %10004 = vmatprep.subr.bf16.mxu0 %v16321_v56  ;;  %10168 = vmatprep.subr.bf16.mxu1 %v16324_v62  ;;  %v16411_v56 = vld [vmem:[%s21923_s1 + $0x2960] ss:$16 sps:$4 sm:$0xff]   ;;  %v16414_v62 = vld [vmem:[%s21923_s1 + $0x2968] ss:$16 sps:$4 sm:$0xff]  }
 0x4f3   :  { %10005 = vmatpush1.bf16.msra.mxu0 %v16319_v0  ;;  %10169 = vmatpush1.bf16.msra.mxu1 %v16322_v1  ;;  %v16419_v0 = vld [vmem:[%s21923_s1 + $0x2984] ss:$16 sps:$4 sm:$0xff]   ;;  %v16422_v1 = vld [vmem:[%s21923_s1 + $0x298c] ss:$16 sps:$4 sm:$0xff]  }
 0x4f4   :  { %10006 = vmatprep.subr.bf16.mxu0 %v16327_v60  ;;  %10170 = vmatprep.subr.bf16.mxu1 %v16330_v2  ;;  %v16417_v60 = vld [vmem:[%s21923_s1 + $0x2980] ss:$16 sps:$4 sm:$0xff]   ;;  %v16420_v2 = vld [vmem:[%s21923_s1 + $0x2988] ss:$16 sps:$4 sm:$0xff]  }
 0x4f7   :  { %10007 = vmatpush1.bf16.msra.mxu0 %v16325_v3  ;;  %10171 = vmatpush1.bf16.msra.mxu1 %v16328_v4  ;;  %v16425_v3 = vld [vmem:[%s21923_s1 + $0x29a4] ss:$16 sps:$4 sm:$0xff]   ;;  %v16428_v4 = vld [vmem:[%s21923_s1 + $0x29ac] ss:$16 sps:$4 sm:$0xff]  }
 0x4f8   :  { %10008 = vmatprep.subr.bf16.mxu0 %v16333_v5  ;;  %10172 = vmatprep.subr.bf16.mxu1 %v16336_v63  ;;  %v16423_v5 = vld [vmem:[%s21923_s1 + $0x29a0] ss:$16 sps:$4 sm:$0xff]   ;;  %v16426_v63 = vld [vmem:[%s21923_s1 + $0x29a8] ss:$16 sps:$4 sm:$0xff]  }
 0x4fb   :  { %10009 = vmatpush1.bf16.msra.mxu0 %v16331_v6  ;;  %10173 = vmatpush1.bf16.msra.mxu1 %v16334_v7  ;;  %v16431_v6 = vld [vmem:[%s21923_s1 + $0x29c4] ss:$16 sps:$4 sm:$0xff]   ;;  %v16434_v7 = vld [vmem:[%s21923_s1 + $0x29cc] ss:$16 sps:$4 sm:$0xff]  }
 0x4fc   :  { %10010 = vmatprep.subr.bf16.mxu0 %v16339_v9  ;;  %10174 = vmatprep.subr.bf16.mxu1 %v16342_v10  ;;  %v16429_v9 = vld [vmem:[%s21923_s1 + $0x29c0] ss:$16 sps:$4 sm:$0xff]   ;;  %v16432_v10 = vld [vmem:[%s21923_s1 + $0x29c8] ss:$16 sps:$4 sm:$0xff]  }
 0x4ff   :  { %10011 = vmatpush1.bf16.msra.mxu0 %v16337_v12  ;;  %10175 = vmatpush1.bf16.msra.mxu1 %v16340_v14  ;;  %v16437_v12 = vld [vmem:[%s21923_s1 + $0x29e4] ss:$16 sps:$4 sm:$0xff]   ;;  %v16440_v14 = vld [vmem:[%s21923_s1 + $0x29ec] ss:$16 sps:$4 sm:$0xff]  }
 0x500   :  { %10012 = vmatprep.subr.bf16.mxu0 %v16345_v11  ;;  %10176 = vmatprep.subr.bf16.mxu1 %v16348_v15  ;;  %v16435_v11 = vld [vmem:[%s21923_s1 + $0x29e0] ss:$16 sps:$4 sm:$0xff]   ;;  %v16438_v15 = vld [vmem:[%s21923_s1 + $0x29e8] ss:$16 sps:$4 sm:$0xff]  }
 0x503   :  { %10013 = vmatpush1.bf16.msra.mxu0 %v16343_v16  ;;  %10177 = vmatpush1.bf16.msra.mxu1 %v16346_v17  ;;  %v16443_v16 = vld [vmem:[%s21923_s1 + $0x2a04] ss:$16 sps:$4 sm:$0xff]   ;;  %v16446_v17 = vld [vmem:[%s21923_s1 + $0x2a0c] ss:$16 sps:$4 sm:$0xff]  }
 0x504   :  { %10014 = vmatprep.subr.bf16.mxu0 %v16351_v18  ;;  %10178 = vmatprep.subr.bf16.mxu1 %v16354_v20  ;;  %v16447_v18 = vld [vmem:[%s21924_s0 + $0xa4] ss:$0 sps:$4 sm:$0xff]   ;;  %v21092_v20 = vld [vmem:[%s21924_s0 + $0xa8] sm:$0xff] }
 0x507   :  { %10015 = vmatpush1.bf16.msra.mxu0 %v16349_v21  ;;  %10179 = vmatpush1.bf16.msra.mxu1 %v16352_v13  ;;  %v16441_v21 = vld [vmem:[%s21923_s1 + $0x2a00] ss:$16 sps:$4 sm:$0xff]   ;;  %v16444_v13 = vld [vmem:[%s21923_s1 + $0x2a08] ss:$16 sps:$4 sm:$0xff]  }
 0x508   :  { %10016 = vmatprep.subr.bf16.mxu0 %v16357_v22  ;;  %10180 = vmatprep.subr.bf16.mxu1 %v16360_v23  ;;  %v16450_v22 = vld [vmem:[%s21923_s1 + $0x2a24] ss:$16 sps:$4 sm:$0xff]   ;;  %v16453_v23 = vld [vmem:[%s21923_s1 + $0x2a2c] ss:$16 sps:$4 sm:$0xff]  }
 0x50b   :  { %10017 = vmatpush1.bf16.msra.mxu0 %v16355_v24  ;;  %10181 = vmatpush1.bf16.msra.mxu1 %v16358_v8  ;;  %v13860_v24 = vcombine.high %v21092_v20, %v21092_v20  ;;  %v16448_v8 = vld [vmem:[%s21923_s1 + $0x2a20] ss:$16 sps:$4 sm:$0xff]  }
 0x50c   :  { %10018 = vmatprep.subr.bf16.mxu0 %v16363_v25  ;;  %10182 = vmatprep.subr.bf16.mxu1 %v16366_v26  ;;  %v16451_v25 = vld [vmem:[%s21923_s1 + $0x2a28] ss:$16 sps:$4 sm:$0xff]   ;;  %v16456_v26 = vld [vmem:[%s21923_s1 + $0x2a44] ss:$16 sps:$4 sm:$0xff]  }
 0x50f   :  { %10019 = vmatpush1.bf16.msra.mxu0 %v16361_v28  ;;  %10183 = vmatpush1.bf16.msra.mxu1 %v16364_v29  ;;  %v16459_v28 = vld [vmem:[%s21923_s1 + $0x2a4c] ss:$16 sps:$4 sm:$0xff]   ;;  %v16454_v29 = vld [vmem:[%s21923_s1 + $0x2a40] ss:$16 sps:$4 sm:$0xff]  }
 0x510   :  { %10020 = vmatprep.subr.bf16.mxu0 %v16369_v30  ;;  %10184 = vmatprep.subr.bf16.mxu1 %v16372_v32  ;;  %v16457_v30 = vld [vmem:[%s21923_s1 + $0x2a48] ss:$16 sps:$4 sm:$0xff]   ;;  %v16462_v32 = vld [vmem:[%s21923_s1 + $0x2a64] ss:$16 sps:$4 sm:$0xff]  }
 0x513   :  { %10021 = vmatpush1.bf16.msra.mxu0 %v16367_v33  ;;  %10185 = vmatpush1.bf16.msra.mxu1 %v16370_v34  ;;  %v16465_v33 = vld [vmem:[%s21923_s1 + $0x2a6c] ss:$16 sps:$4 sm:$0xff]   ;;  %v16460_v34 = vld [vmem:[%s21923_s1 + $0x2a60] ss:$16 sps:$4 sm:$0xff]  }
 0x514   :  { %10022 = vmatprep.subr.bf16.mxu0 %v16375_v35  ;;  %10186 = vmatprep.subr.bf16.mxu1 %v16378_v36  ;;  %v16463_v35 = vld [vmem:[%s21923_s1 + $0x2a68] ss:$16 sps:$4 sm:$0xff]   ;;  %v16468_v36 = vld [vmem:[%s21923_s1 + $0x2a84] ss:$16 sps:$4 sm:$0xff]  }
 0x517   :  { %10023 = vmatpush1.bf16.msra.mxu0 %v16373_v37  ;;  %10187 = vmatpush1.bf16.msra.mxu1 %v16376_v39  ;;  %v16471_v37 = vld [vmem:[%s21923_s1 + $0x2a8c] ss:$16 sps:$4 sm:$0xff]   ;;  %v16466_v39 = vld [vmem:[%s21923_s1 + $0x2a80] ss:$16 sps:$4 sm:$0xff]  }
 0x518   :  { %10024 = vmatprep.subr.bf16.mxu0 %v16381_v31  ;;  %10188 = vmatprep.subr.bf16.mxu1 %v16384_v40  ;;  %v16469_v31 = vld [vmem:[%s21923_s1 + $0x2a88] ss:$16 sps:$4 sm:$0xff]   ;;  %v16474_v40 = vld [vmem:[%s21923_s1 + $0x2aa4] ss:$16 sps:$4 sm:$0xff]  }
 0x51b   :  { %10025 = vmatpush1.bf16.msra.mxu0 %v16379_v41  ;;  %10189 = vmatpush1.bf16.msra.mxu1 %v16382_v27  ;;  %v16477_v41 = vld [vmem:[%s21923_s1 + $0x2aac] ss:$16 sps:$4 sm:$0xff]   ;;  %v16472_v27 = vld [vmem:[%s21923_s1 + $0x2aa0] ss:$16 sps:$4 sm:$0xff]  }
 0x51c   :  { %10026 = vmatprep.subr.bf16.mxu0 %v16387_v43  ;;  %10190 = vmatprep.subr.bf16.mxu1 %v16390_v38  ;;  %v16475_v43 = vld [vmem:[%s21923_s1 + $0x2aa8] ss:$16 sps:$4 sm:$0xff]   ;;  %v16480_v38 = vld [vmem:[%s21923_s1 + $0x2ac4] ss:$16 sps:$4 sm:$0xff]  }
 0x51f   :  { %10027 = vmatpush1.bf16.msra.mxu0 %v16385_v44  ;;  %10191 = vmatpush1.bf16.msra.mxu1 %v16388_v47  ;;  %v16483_v44 = vld [vmem:[%s21923_s1 + $0x2acc] ss:$16 sps:$4 sm:$0xff]   ;;  %v16478_v47 = vld [vmem:[%s21923_s1 + $0x2ac0] ss:$16 sps:$4 sm:$0xff]  }
 0x520   :  { %10037 = vmatprep.subr.bf16.mxu0 %v16395_v48  ;;  %10201 = vmatprep.subr.bf16.mxu1 %v16398_v42  ;;  %v16481_v48 = vld [vmem:[%s21923_s1 + $0x2ac8] ss:$16 sps:$4 sm:$0xff]   ;;  %v16486_v42 = vld [vmem:[%s21923_s1 + $0x2ae4] ss:$16 sps:$4 sm:$0xff]  }
 0x522   :  { %10029 = vmatmul.mubr.bf16.vlgmr.msra.gmra.mrb[0].mxu0 %v13632_v50  ;;  %10193 = vmatmul.mubr.bf16.vlgmr.msra.gmra.mrb[0].mxu1 %v13632_v50  ;;  %v16489_v50 = vld [vmem:[%s21923_s1 + $0x2aec] ss:$16 sps:$4 sm:$0xff]  }
 0x523   :  { %10038 = vmatpush1.bf16.msra.mxu0 %v16393_v51  ;;  %10202 = vmatpush1.bf16.msra.mxu1 %v16396_v52  ;;  %v16484_v51 = vld [vmem:[%s21923_s1 + $0x2ae0] ss:$16 sps:$4 sm:$0xff]   ;;  %v16487_v52 = vld [vmem:[%s21923_s1 + $0x2ae8] ss:$16 sps:$4 sm:$0xff]  }
 0x524   :  { %10039 = vmatprep.subr.bf16.mxu0 %v16401_v53  ;;  %10203 = vmatprep.subr.bf16.mxu1 %v16404_v46  ;;  %v16492_v53 = vld [vmem:[%s21923_s1 + $0x2b04] ss:$16 sps:$4 sm:$0xff]   ;;  %v16495_v46 = vld [vmem:[%s21923_s1 + $0x2b0c] ss:$16 sps:$4 sm:$0xff]  }
 0x525   :  { %10069 = vmatprep.mubr.bf16.mxu0 %v16829_v19  ;;  %10233 = vmatprep.mubr.bf16.mxu1 %v16829_v19 }
 0x527   :  { %10040 = vmatpush1.bf16.msra.mxu0 %v16399_v54  ;;  %10204 = vmatpush1.bf16.msra.mxu1 %v16402_v55  ;;  %v16490_v54 = vld [vmem:[%s21923_s1 + $0x2b00] ss:$16 sps:$4 sm:$0xff]   ;;  %v16493_v55 = vld [vmem:[%s21923_s1 + $0x2b08] ss:$16 sps:$4 sm:$0xff]  }
 0x528   :  { %10041 = vmatprep.subr.bf16.mxu0 %v16407_v57  ;;  %10205 = vmatprep.subr.bf16.mxu1 %v16410_v49  ;;  %v16498_v57 = vld [vmem:[%s21923_s1 + $0x2b24] ss:$16 sps:$4 sm:$0xff]   ;;  %v16501_v49 = vld [vmem:[%s21923_s1 + $0x2b2c] ss:$16 sps:$4 sm:$0xff]  }
 0x52b   :  { %10042 = vmatpush1.bf16.msra.mxu0 %v16405_v58  ;;  %10206 = vmatpush1.bf16.msra.mxu1 %v16408_v59  ;;  %v16496_v58 = vld [vmem:[%s21923_s1 + $0x2b20] ss:$16 sps:$4 sm:$0xff]   ;;  %v16499_v59 = vld [vmem:[%s21923_s1 + $0x2b28] ss:$16 sps:$4 sm:$0xff]  }
 0x52c   :  { %10043 = vmatprep.subr.bf16.mxu0 %v16413_v45  ;;  %10207 = vmatprep.subr.bf16.mxu1 %v16416_v61  ;;  %v16504_v45 = vld [vmem:[%s21923_s1 + $0x2b44] ss:$16 sps:$4 sm:$0xff]   ;;  %v16507_v61 = vld [vmem:[%s21923_s1 + $0x2b4c] ss:$16 sps:$4 sm:$0xff]  }
 0x52f   :  { %10044 = vmatpush1.bf16.msra.mxu0 %v16411_v56  ;;  %10208 = vmatpush1.bf16.msra.mxu1 %v16414_v62  ;;  %v16502_v56 = vld [vmem:[%s21923_s1 + $0x2b40] ss:$16 sps:$4 sm:$0xff]   ;;  %v16505_v62 = vld [vmem:[%s21923_s1 + $0x2b48] ss:$16 sps:$4 sm:$0xff]  }
 0x530   :  { %10045 = vmatprep.subr.bf16.mxu0 %v16419_v0  ;;  %10209 = vmatprep.subr.bf16.mxu1 %v16422_v1  ;;  %v16510_v0 = vld [vmem:[%s21923_s1 + $0x2b64] ss:$16 sps:$4 sm:$0xff]   ;;  %v16513_v1 = vld [vmem:[%s21923_s1 + $0x2b6c] ss:$16 sps:$4 sm:$0xff]  }
 0x533   :  { %10046 = vmatpush1.bf16.msra.mxu0 %v16417_v60  ;;  %10210 = vmatpush1.bf16.msra.mxu1 %v16420_v2  ;;  %v16508_v60 = vld [vmem:[%s21923_s1 + $0x2b60] ss:$16 sps:$4 sm:$0xff]   ;;  %v16511_v2 = vld [vmem:[%s21923_s1 + $0x2b68] ss:$16 sps:$4 sm:$0xff]  }
 0x534   :  { %10047 = vmatprep.subr.bf16.mxu0 %v16425_v3  ;;  %10211 = vmatprep.subr.bf16.mxu1 %v16428_v4  ;;  %v16516_v3 = vld [vmem:[%s21923_s1 + $0x2b84] ss:$16 sps:$4 sm:$0xff]   ;;  %v16519_v4 = vld [vmem:[%s21923_s1 + $0x2b8c] ss:$16 sps:$4 sm:$0xff]  }
 0x537   :  { %10048 = vmatpush1.bf16.msra.mxu0 %v16423_v5  ;;  %10212 = vmatpush1.bf16.msra.mxu1 %v16426_v63  ;;  %v16514_v5 = vld [vmem:[%s21923_s1 + $0x2b80] ss:$16 sps:$4 sm:$0xff]   ;;  %v16517_v63 = vld [vmem:[%s21923_s1 + $0x2b88] ss:$16 sps:$4 sm:$0xff]  }
 0x538   :  { %10049 = vmatprep.subr.bf16.mxu0 %v16431_v6  ;;  %10213 = vmatprep.subr.bf16.mxu1 %v16434_v7  ;;  %v16522_v6 = vld [vmem:[%s21923_s1 + $0x2ba4] ss:$16 sps:$4 sm:$0xff]   ;;  %v16525_v7 = vld [vmem:[%s21923_s1 + $0x2bac] ss:$16 sps:$4 sm:$0xff]  }
 0x53b   :  { %10050 = vmatpush1.bf16.msra.mxu0 %v16429_v9  ;;  %10214 = vmatpush1.bf16.msra.mxu1 %v16432_v10  ;;  %v16520_v9 = vld [vmem:[%s21923_s1 + $0x2ba0] ss:$16 sps:$4 sm:$0xff]   ;;  %v16523_v10 = vld [vmem:[%s21923_s1 + $0x2ba8] ss:$16 sps:$4 sm:$0xff]  }
 0x53c   :  { %10051 = vmatprep.subr.bf16.mxu0 %v16437_v12  ;;  %10215 = vmatprep.subr.bf16.mxu1 %v16440_v14  ;;  %v16528_v12 = vld [vmem:[%s21923_s1 + $0x2bc4] ss:$16 sps:$4 sm:$0xff]   ;;  %v16531_v14 = vld [vmem:[%s21923_s1 + $0x2bcc] ss:$16 sps:$4 sm:$0xff]  }
 0x53f   :  { %10052 = vmatpush1.bf16.msra.mxu0 %v16435_v11  ;;  %10216 = vmatpush1.bf16.msra.mxu1 %v16438_v15  ;;  %v16526_v11 = vld [vmem:[%s21923_s1 + $0x2bc0] ss:$16 sps:$4 sm:$0xff]   ;;  %v16529_v15 = vld [vmem:[%s21923_s1 + $0x2bc8] ss:$16 sps:$4 sm:$0xff]  }
 0x540   :  { %11619 = vmatprep.subr.bf16.mxu0 %v16443_v16  ;;  %11783 = vmatprep.subr.bf16.mxu1 %v16446_v17  ;;  %v16534_v16 = vld [vmem:[%s21923_s1 + $0x2be4] ss:$16 sps:$4 sm:$0xff]   ;;  %v16537_v17 = vld [vmem:[%s21923_s1 + $0x2bec] ss:$16 sps:$4 sm:$0xff]  }
 0x542   :  { %10070 = vmatmul.mubr.bf16.vlgmr.msra.gmra.mrb[0].mxu0 %v16447_v18  ;;  %10234 = vmatmul.mubr.bf16.vlgmr.msra.gmra.mrb[0].mxu1 %v16447_v18  ;;  %v16532_v18 = vld [vmem:[%s21923_s1 + $0x2be0] ss:$16 sps:$4 sm:$0xff]  }
 0x543   :  { %11620 = vmatpush1.bf16.msra.mxu0 %v16441_v21  ;;  %11784 = vmatpush1.bf16.msra.mxu1 %v16444_v13  ;;  %v16535_v21 = vld [vmem:[%s21923_s1 + $0x2be8] ss:$16 sps:$4 sm:$0xff]   ;;  %v16542_v13 = vld [vmem:[%s21923_s1 + $0x2c04] ss:$16 sps:$4 sm:$0xff]  }
 0x544   :  { %11621 = vmatprep.subr.bf16.mxu0 %v16450_v22  ;;  %11785 = vmatprep.subr.bf16.mxu1 %v16453_v23  ;;  %v16545_v22 = vld [vmem:[%s21923_s1 + $0x2c0c] ss:$16 sps:$4 sm:$0xff]   ;;  %v13859_v23 = vcombine.low %v21092_v20, %v21092_v20  ;;  %v16548_v20 = vld [vmem:[%s21923_s1 + $0x2c24] ss:$16 sps:$4 sm:$0xff]  }
 0x545   :  { %11651 = vmatprep.mubr.bf16.mxu0 %v13860_v24  ;;  %11815 = vmatprep.mubr.bf16.mxu1 %v13860_v24  ;;  %v21293_v24 = vld [vmem:[%s21924_s0 + $0xb0] sm:$0xff] }
 0x547   :  { %11622 = vmatpush1.bf16.msra.mxu0 %v16448_v8  ;;  %11786 = vmatpush1.bf16.msra.mxu1 %v16451_v25  ;;  %v16540_v8 = vld [vmem:[%s21923_s1 + $0x2c00] ss:$16 sps:$4 sm:$0xff]   ;;  %v16543_v25 = vld [vmem:[%s21923_s1 + $0x2c08] ss:$16 sps:$4 sm:$0xff]  }
 0x548   :  { %11623 = vmatprep.subr.bf16.mxu0 %v16456_v26  ;;  %11787 = vmatprep.subr.bf16.mxu1 %v16459_v28  ;;  %v16551_v26 = vld [vmem:[%s21923_s1 + $0x2c2c] ss:$16 sps:$4 sm:$0xff]   ;;  %v13862_v28 = vcombine.high %v21293_v24, %v21293_v24 }
 0x54b   :  { %11624 = vmatpush1.bf16.msra.mxu0 %v16454_v29  ;;  %11788 = vmatpush1.bf16.msra.mxu1 %v16457_v30  ;;  %v16546_v29 = vld [vmem:[%s21923_s1 + $0x2c20] ss:$16 sps:$4 sm:$0xff]   ;;  %v16549_v30 = vld [vmem:[%s21923_s1 + $0x2c28] ss:$16 sps:$4 sm:$0xff]  }
 0x54c   :  { %11625 = vmatprep.subr.bf16.mxu0 %v16462_v32  ;;  %11789 = vmatprep.subr.bf16.mxu1 %v16465_v33  ;;  %v16554_v32 = vld [vmem:[%s21923_s1 + $0x2c44] ss:$16 sps:$4 sm:$0xff]   ;;  %v16557_v33 = vld [vmem:[%s21923_s1 + $0x2c4c] ss:$16 sps:$4 sm:$0xff]  }
 0x54f   :  { %11626 = vmatpush1.bf16.msra.mxu0 %v16460_v34  ;;  %11790 = vmatpush1.bf16.msra.mxu1 %v16463_v35  ;;  %v16552_v34 = vld [vmem:[%s21923_s1 + $0x2c40] ss:$16 sps:$4 sm:$0xff]   ;;  %v16555_v35 = vld [vmem:[%s21923_s1 + $0x2c48] ss:$16 sps:$4 sm:$0xff]  }
 0x550   :  { %11627 = vmatprep.subr.bf16.mxu0 %v16468_v36  ;;  %11791 = vmatprep.subr.bf16.mxu1 %v16471_v37  ;;  %v16560_v36 = vld [vmem:[%s21923_s1 + $0x2c64] ss:$16 sps:$4 sm:$0xff]   ;;  %v16563_v37 = vld [vmem:[%s21923_s1 + $0x2c6c] ss:$16 sps:$4 sm:$0xff]  }
 0x553   :  { %11628 = vmatpush1.bf16.msra.mxu0 %v16466_v39  ;;  %11792 = vmatpush1.bf16.msra.mxu1 %v16469_v31  ;;  %v16558_v39 = vld [vmem:[%s21923_s1 + $0x2c60] ss:$16 sps:$4 sm:$0xff]   ;;  %v16561_v31 = vld [vmem:[%s21923_s1 + $0x2c68] ss:$16 sps:$4 sm:$0xff]  }
 0x554   :  { %11629 = vmatprep.subr.bf16.mxu0 %v16474_v40  ;;  %11793 = vmatprep.subr.bf16.mxu1 %v16477_v41  ;;  %v16566_v40 = vld [vmem:[%s21923_s1 + $0x2c84] ss:$16 sps:$4 sm:$0xff]   ;;  %v16569_v41 = vld [vmem:[%s21923_s1 + $0x2c8c] ss:$16 sps:$4 sm:$0xff]  }
 0x557   :  { %11630 = vmatpush1.bf16.msra.mxu0 %v16472_v27  ;;  %11794 = vmatpush1.bf16.msra.mxu1 %v16475_v43  ;;  %v16564_v27 = vld [vmem:[%s21923_s1 + $0x2c80] ss:$16 sps:$4 sm:$0xff]   ;;  %v16567_v43 = vld [vmem:[%s21923_s1 + $0x2c88] ss:$16 sps:$4 sm:$0xff]  }
 0x558   :  { %11631 = vmatprep.subr.bf16.mxu0 %v16480_v38  ;;  %11795 = vmatprep.subr.bf16.mxu1 %v16483_v44  ;;  %v16572_v38 = vld [vmem:[%s21923_s1 + $0x2ca4] ss:$16 sps:$4 sm:$0xff]   ;;  %v16575_v44 = vld [vmem:[%s21923_s1 + $0x2cac] ss:$16 sps:$4 sm:$0xff]  }
 0x55b   :  { %11632 = vmatpush1.bf16.msra.mxu0 %v16478_v47  ;;  %11796 = vmatpush1.bf16.msra.mxu1 %v16481_v48  ;;  %v16570_v47 = vld [vmem:[%s21923_s1 + $0x2ca0] ss:$16 sps:$4 sm:$0xff]   ;;  %v16573_v48 = vld [vmem:[%s21923_s1 + $0x2ca8] ss:$16 sps:$4 sm:$0xff]  }
 0x55c   :  { %11633 = vmatprep.subr.bf16.mxu0 %v16486_v42  ;;  %11797 = vmatprep.subr.bf16.mxu1 %v16489_v50  ;;  %v16578_v42 = vld [vmem:[%s21923_s1 + $0x2cc4] ss:$16 sps:$4 sm:$0xff]   ;;  %v16581_v50 = vld [vmem:[%s21923_s1 + $0x2ccc] ss:$16 sps:$4 sm:$0xff]  }
 0x55f   :  { %11634 = vmatpush1.bf16.msra.mxu0 %v16484_v51  ;;  %11798 = vmatpush1.bf16.msra.mxu1 %v16487_v52  ;;  %v16576_v51 = vld [vmem:[%s21923_s1 + $0x2cc0] ss:$16 sps:$4 sm:$0xff]   ;;  %v16579_v52 = vld [vmem:[%s21923_s1 + $0x2cc8] ss:$16 sps:$4 sm:$0xff]  }
 0x560   :  { %11635 = vmatprep.subr.bf16.mxu0 %v16492_v53  ;;  %11799 = vmatprep.subr.bf16.mxu1 %v16495_v46  ;;  %v16584_v53 = vld [vmem:[%s21923_s1 + $0x2ce4] ss:$16 sps:$4 sm:$0xff]   ;;  %v16587_v46 = vld [vmem:[%s21923_s1 + $0x2cec] ss:$16 sps:$4 sm:$0xff]  }
 0x563   :  { %11636 = vmatpush1.bf16.msra.mxu0 %v16490_v54  ;;  %11800 = vmatpush1.bf16.msra.mxu1 %v16493_v55  ;;  %v16582_v54 = vld [vmem:[%s21923_s1 + $0x2ce0] ss:$16 sps:$4 sm:$0xff]   ;;  %v16585_v55 = vld [vmem:[%s21923_s1 + $0x2ce8] ss:$16 sps:$4 sm:$0xff]  }
 0x564   :  { %11637 = vmatprep.subr.bf16.mxu0 %v16498_v57  ;;  %11801 = vmatprep.subr.bf16.mxu1 %v16501_v49  ;;  %v16590_v57 = vld [vmem:[%s21923_s1 + $0x2d04] ss:$16 sps:$4 sm:$0xff]   ;;  %v16593_v49 = vld [vmem:[%s21923_s1 + $0x2d0c] ss:$16 sps:$4 sm:$0xff]  }
 0x567   :  { %11638 = vmatpush1.bf16.msra.mxu0 %v16496_v58  ;;  %11802 = vmatpush1.bf16.msra.mxu1 %v16499_v59  ;;  %v16588_v58 = vld [vmem:[%s21923_s1 + $0x2d00] ss:$16 sps:$4 sm:$0xff]   ;;  %v16591_v59 = vld [vmem:[%s21923_s1 + $0x2d08] ss:$16 sps:$4 sm:$0xff]  }
 0x568   :  { %11639 = vmatprep.subr.bf16.mxu0 %v16504_v45  ;;  %11803 = vmatprep.subr.bf16.mxu1 %v16507_v61  ;;  %v16596_v45 = vld [vmem:[%s21923_s1 + $0x2d24] ss:$16 sps:$4 sm:$0xff]   ;;  %v16599_v61 = vld [vmem:[%s21923_s1 + $0x2d2c] ss:$16 sps:$4 sm:$0xff]  }
 0x56b   :  { %11640 = vmatpush1.bf16.msra.mxu0 %v16502_v56  ;;  %11804 = vmatpush1.bf16.msra.mxu1 %v16505_v62  ;;  %v16594_v56 = vld [vmem:[%s21923_s1 + $0x2d20] ss:$16 sps:$4 sm:$0xff]   ;;  %v16597_v62 = vld [vmem:[%s21923_s1 + $0x2d28] ss:$16 sps:$4 sm:$0xff]  }
 0x56c   :  { %11641 = vmatprep.subr.bf16.mxu0 %v16510_v0  ;;  %11805 = vmatprep.subr.bf16.mxu1 %v16513_v1  ;;  %v16602_v0 = vld [vmem:[%s21923_s1 + $0x2d44] ss:$16 sps:$4 sm:$0xff]   ;;  %v16605_v1 = vld [vmem:[%s21923_s1 + $0x2d4c] ss:$16 sps:$4 sm:$0xff]  }
 0x56f   :  { %11642 = vmatpush1.bf16.msra.mxu0 %v16508_v60  ;;  %11806 = vmatpush1.bf16.msra.mxu1 %v16511_v2  ;;  %v16600_v60 = vld [vmem:[%s21923_s1 + $0x2d40] ss:$16 sps:$4 sm:$0xff]   ;;  %v16603_v2 = vld [vmem:[%s21923_s1 + $0x2d48] ss:$16 sps:$4 sm:$0xff]  }
 0x570   :  { %11643 = vmatprep.subr.bf16.mxu0 %v16516_v3  ;;  %11807 = vmatprep.subr.bf16.mxu1 %v16519_v4  ;;  %v16608_v3 = vld [vmem:[%s21923_s1 + $0x2d64] ss:$16 sps:$4 sm:$0xff]   ;;  %v16611_v4 = vld [vmem:[%s21923_s1 + $0x2d6c] ss:$16 sps:$4 sm:$0xff]  }
 0x573   :  { %11644 = vmatpush1.bf16.msra.mxu0 %v16514_v5  ;;  %11808 = vmatpush1.bf16.msra.mxu1 %v16517_v63  ;;  %v16606_v5 = vld [vmem:[%s21923_s1 + $0x2d60] ss:$16 sps:$4 sm:$0xff]   ;;  %v16609_v63 = vld [vmem:[%s21923_s1 + $0x2d68] ss:$16 sps:$4 sm:$0xff]  }
 0x574   :  { %11645 = vmatprep.subr.bf16.mxu0 %v16522_v6  ;;  %11809 = vmatprep.subr.bf16.mxu1 %v16525_v7  ;;  %v16614_v6 = vld [vmem:[%s21923_s1 + $0x2d84] ss:$16 sps:$4 sm:$0xff]   ;;  %v16617_v7 = vld [vmem:[%s21923_s1 + $0x2d8c] ss:$16 sps:$4 sm:$0xff]  }
 0x577   :  { %11646 = vmatpush1.bf16.msra.mxu0 %v16520_v9  ;;  %11810 = vmatpush1.bf16.msra.mxu1 %v16523_v10  ;;  %v16612_v9 = vld [vmem:[%s21923_s1 + $0x2d80] ss:$16 sps:$4 sm:$0xff]   ;;  %v16615_v10 = vld [vmem:[%s21923_s1 + $0x2d88] ss:$16 sps:$4 sm:$0xff]  }
 0x578   :  { %11647 = vmatprep.subr.bf16.mxu0 %v16528_v12  ;;  %11811 = vmatprep.subr.bf16.mxu1 %v16531_v14  ;;  %v16620_v12 = vld [vmem:[%s21923_s1 + $0x2da4] ss:$16 sps:$4 sm:$0xff]   ;;  %v16623_v14 = vld [vmem:[%s21923_s1 + $0x2dac] ss:$16 sps:$4 sm:$0xff]  }
 0x57b   :  { %11648 = vmatpush1.bf16.msra.mxu0 %v16526_v11  ;;  %11812 = vmatpush1.bf16.msra.mxu1 %v16529_v15  ;;  %v16618_v11 = vld [vmem:[%s21923_s1 + $0x2da0] ss:$16 sps:$4 sm:$0xff]   ;;  %v16621_v15 = vld [vmem:[%s21923_s1 + $0x2da8] ss:$16 sps:$4 sm:$0xff]  }
 0x57c   :  { %11649 = vmatprep.subr.bf16.mxu0 %v16534_v16  ;;  %11813 = vmatprep.subr.bf16.mxu1 %v16537_v17  ;;  %v16626_v16 = vld [vmem:[%s21923_s1 + $0x2dc4] ss:$16 sps:$4 sm:$0xff]   ;;  %v16629_v17 = vld [vmem:[%s21923_s1 + $0x2dcc] ss:$16 sps:$4 sm:$0xff]  }
 0x57f   :  { %11650 = vmatpush1.bf16.msra.mxu0 %v16532_v18  ;;  %11814 = vmatpush1.bf16.msra.mxu1 %v16535_v21  ;;  %v16624_v18 = vld [vmem:[%s21923_s1 + $0x2dc0] ss:$16 sps:$4 sm:$0xff]   ;;  %v16627_v21 = vld [vmem:[%s21923_s1 + $0x2dc8] ss:$16 sps:$4 sm:$0xff]  }
 0x580   :  { %11660 = vmatprep.subr.bf16.mxu0 %v16542_v13  ;;  %11824 = vmatprep.subr.bf16.mxu1 %v16545_v22  ;;  %v16632_v13 = vld [vmem:[%s21923_s1 + $0x2de4] ss:$16 sps:$4 sm:$0xff]   ;;  %v16635_v22 = vld [vmem:[%s21923_s1 + $0x2dec] ss:$16 sps:$4 sm:$0xff]  }
 0x582   :  { %11652 = vmatmul.mubr.bf16.vlgmr.msra.gmra.mrb[0].mxu0 %v13859_v23  ;;  %11816 = vmatmul.mubr.bf16.vlgmr.msra.gmra.mrb[0].mxu1 %v13859_v23  ;;  %v16630_v23 = vld [vmem:[%s21923_s1 + $0x2de0] ss:$16 sps:$4 sm:$0xff]  }
 0x583   :  { %11661 = vmatpush1.bf16.msra.mxu0 %v16540_v8  ;;  %11825 = vmatpush1.bf16.msra.mxu1 %v16543_v25  ;;  %v16633_v8 = vld [vmem:[%s21923_s1 + $0x2de8] ss:$16 sps:$4 sm:$0xff]   ;;  %v16640_v25 = vld [vmem:[%s21923_s1 + $0x2e04] ss:$16 sps:$4 sm:$0xff]  }
 0x584   :  { %11662 = vmatprep.subr.bf16.mxu0 %v16548_v20  ;;  %11826 = vmatprep.subr.bf16.mxu1 %v16551_v26  ;;  %v16643_v20 = vld [vmem:[%s21923_s1 + $0x2e0c] ss:$16 sps:$4 sm:$0xff]   ;;  %v13861_v26 = vcombine.low %v21293_v24, %v21293_v24  ;;  %v16646_v24 = vld [vmem:[%s21923_s1 + $0x2e24] ss:$16 sps:$4 sm:$0xff]  }
 0x585   :  { %11692 = vmatprep.mubr.bf16.mxu0 %v13862_v28  ;;  %11856 = vmatprep.mubr.bf16.mxu1 %v13862_v28  ;;  %v21494_v28 = vld [vmem:[%s21924_s0 + $0xb8] sm:$0xff] }
 0x587   :  { %11663 = vmatpush1.bf16.msra.mxu0 %v16546_v29  ;;  %11827 = vmatpush1.bf16.msra.mxu1 %v16549_v30  ;;  %v16638_v29 = vld [vmem:[%s21923_s1 + $0x2e00] ss:$16 sps:$4 sm:$0xff]   ;;  %v16641_v30 = vld [vmem:[%s21923_s1 + $0x2e08] ss:$16 sps:$4 sm:$0xff]  }
 0x588   :  { %11664 = vmatprep.subr.bf16.mxu0 %v16554_v32  ;;  %11828 = vmatprep.subr.bf16.mxu1 %v16557_v33  ;;  %v16649_v32 = vld [vmem:[%s21923_s1 + $0x2e2c] ss:$16 sps:$4 sm:$0xff]   ;;  %v13864_v33 = vcombine.high %v21494_v28, %v21494_v28 }
 0x58b   :  { %11665 = vmatpush1.bf16.msra.mxu0 %v16552_v34  ;;  %11829 = vmatpush1.bf16.msra.mxu1 %v16555_v35  ;;  %v16644_v34 = vld [vmem:[%s21923_s1 + $0x2e20] ss:$16 sps:$4 sm:$0xff]   ;;  %v16647_v35 = vld [vmem:[%s21923_s1 + $0x2e28] ss:$16 sps:$4 sm:$0xff]  }
 0x58c   :  { %11666 = vmatprep.subr.bf16.mxu0 %v16560_v36  ;;  %11830 = vmatprep.subr.bf16.mxu1 %v16563_v37  ;;  %v16652_v36 = vld [vmem:[%s21923_s1 + $0x2e44] ss:$16 sps:$4 sm:$0xff]   ;;  %v16655_v37 = vld [vmem:[%s21923_s1 + $0x2e4c] ss:$16 sps:$4 sm:$0xff]  }
 0x58f   :  { %11667 = vmatpush1.bf16.msra.mxu0 %v16558_v39  ;;  %11831 = vmatpush1.bf16.msra.mxu1 %v16561_v31  ;;  %v16650_v39 = vld [vmem:[%s21923_s1 + $0x2e40] ss:$16 sps:$4 sm:$0xff]   ;;  %v16653_v31 = vld [vmem:[%s21923_s1 + $0x2e48] ss:$16 sps:$4 sm:$0xff]  }
 0x590   :  { %11668 = vmatprep.subr.bf16.mxu0 %v16566_v40  ;;  %11832 = vmatprep.subr.bf16.mxu1 %v16569_v41  ;;  %v16658_v40 = vld [vmem:[%s21923_s1 + $0x2e64] ss:$16 sps:$4 sm:$0xff]   ;;  %v16661_v41 = vld [vmem:[%s21923_s1 + $0x2e6c] ss:$16 sps:$4 sm:$0xff]  }
 0x593   :  { %11669 = vmatpush1.bf16.msra.mxu0 %v16564_v27  ;;  %11833 = vmatpush1.bf16.msra.mxu1 %v16567_v43  ;;  %v16656_v27 = vld [vmem:[%s21923_s1 + $0x2e60] ss:$16 sps:$4 sm:$0xff]   ;;  %v16659_v43 = vld [vmem:[%s21923_s1 + $0x2e68] ss:$16 sps:$4 sm:$0xff]  }
 0x594   :  { %11670 = vmatprep.subr.bf16.mxu0 %v16572_v38  ;;  %11834 = vmatprep.subr.bf16.mxu1 %v16575_v44  ;;  %v16664_v38 = vld [vmem:[%s21923_s1 + $0x2e84] ss:$16 sps:$4 sm:$0xff]   ;;  %v16667_v44 = vld [vmem:[%s21923_s1 + $0x2e8c] ss:$16 sps:$4 sm:$0xff]  }
 0x597   :  { %11671 = vmatpush1.bf16.msra.mxu0 %v16570_v47  ;;  %11835 = vmatpush1.bf16.msra.mxu1 %v16573_v48  ;;  %v16662_v47 = vld [vmem:[%s21923_s1 + $0x2e80] ss:$16 sps:$4 sm:$0xff]   ;;  %v16665_v48 = vld [vmem:[%s21923_s1 + $0x2e88] ss:$16 sps:$4 sm:$0xff]  }
 0x598   :  { %11672 = vmatprep.subr.bf16.mxu0 %v16578_v42  ;;  %11836 = vmatprep.subr.bf16.mxu1 %v16581_v50  ;;  %v16670_v42 = vld [vmem:[%s21923_s1 + $0x2ea4] ss:$16 sps:$4 sm:$0xff]   ;;  %v16673_v50 = vld [vmem:[%s21923_s1 + $0x2eac] ss:$16 sps:$4 sm:$0xff]  }
 0x59b   :  { %11673 = vmatpush1.bf16.msra.mxu0 %v16576_v51  ;;  %11837 = vmatpush1.bf16.msra.mxu1 %v16579_v52  ;;  %v16668_v51 = vld [vmem:[%s21923_s1 + $0x2ea0] ss:$16 sps:$4 sm:$0xff]   ;;  %v16671_v52 = vld [vmem:[%s21923_s1 + $0x2ea8] ss:$16 sps:$4 sm:$0xff]  }
 0x59c   :  { %11674 = vmatprep.subr.bf16.mxu0 %v16584_v53  ;;  %11838 = vmatprep.subr.bf16.mxu1 %v16587_v46  ;;  %v16676_v53 = vld [vmem:[%s21923_s1 + $0x2ec4] ss:$16 sps:$4 sm:$0xff]   ;;  %v16679_v46 = vld [vmem:[%s21923_s1 + $0x2ecc] ss:$16 sps:$4 sm:$0xff]  }
 0x59f   :  { %11675 = vmatpush1.bf16.msra.mxu0 %v16582_v54  ;;  %11839 = vmatpush1.bf16.msra.mxu1 %v16585_v55  ;;  %v16674_v54 = vld [vmem:[%s21923_s1 + $0x2ec0] ss:$16 sps:$4 sm:$0xff]   ;;  %v16677_v55 = vld [vmem:[%s21923_s1 + $0x2ec8] ss:$16 sps:$4 sm:$0xff]  }
 0x5a0   :  { %11676 = vmatprep.subr.bf16.mxu0 %v16590_v57  ;;  %11840 = vmatprep.subr.bf16.mxu1 %v16593_v49  ;;  %v16682_v57 = vld [vmem:[%s21923_s1 + $0x2ee4] ss:$16 sps:$4 sm:$0xff]   ;;  %v16685_v49 = vld [vmem:[%s21923_s1 + $0x2eec] ss:$16 sps:$4 sm:$0xff]  }
 0x5a3   :  { %11677 = vmatpush1.bf16.msra.mxu0 %v16588_v58  ;;  %11841 = vmatpush1.bf16.msra.mxu1 %v16591_v59  ;;  %v16680_v58 = vld [vmem:[%s21923_s1 + $0x2ee0] ss:$16 sps:$4 sm:$0xff]   ;;  %v16683_v59 = vld [vmem:[%s21923_s1 + $0x2ee8] ss:$16 sps:$4 sm:$0xff]  }
 0x5a4   :  { %11678 = vmatprep.subr.bf16.mxu0 %v16596_v45  ;;  %11842 = vmatprep.subr.bf16.mxu1 %v16599_v61  ;;  %v16688_v45 = vld [vmem:[%s21923_s1 + $0x2f04] ss:$16 sps:$4 sm:$0xff]   ;;  %v16691_v61 = vld [vmem:[%s21923_s1 + $0x2f0c] ss:$16 sps:$4 sm:$0xff]  }
 0x5a7   :  { %11679 = vmatpush1.bf16.msra.mxu0 %v16594_v56  ;;  %11843 = vmatpush1.bf16.msra.mxu1 %v16597_v62  ;;  %v16686_v56 = vld [vmem:[%s21923_s1 + $0x2f00] ss:$16 sps:$4 sm:$0xff]   ;;  %v16689_v62 = vld [vmem:[%s21923_s1 + $0x2f08] ss:$16 sps:$4 sm:$0xff]  }
 0x5a8   :  { %11680 = vmatprep.subr.bf16.mxu0 %v16602_v0  ;;  %11844 = vmatprep.subr.bf16.mxu1 %v16605_v1  ;;  %v16694_v0 = vld [vmem:[%s21923_s1 + $0x2f24] ss:$16 sps:$4 sm:$0xff]   ;;  %v16697_v1 = vld [vmem:[%s21923_s1 + $0x2f2c] ss:$16 sps:$4 sm:$0xff]  }
 0x5ab   :  { %11681 = vmatpush1.bf16.msra.mxu0 %v16600_v60  ;;  %11845 = vmatpush1.bf16.msra.mxu1 %v16603_v2  ;;  %v16692_v60 = vld [vmem:[%s21923_s1 + $0x2f20] ss:$16 sps:$4 sm:$0xff]   ;;  %v16695_v2 = vld [vmem:[%s21923_s1 + $0x2f28] ss:$16 sps:$4 sm:$0xff]  }
 0x5ac   :  { %11682 = vmatprep.subr.bf16.mxu0 %v16608_v3  ;;  %11846 = vmatprep.subr.bf16.mxu1 %v16611_v4  ;;  %v16700_v3 = vld [vmem:[%s21923_s1 + $0x2f44] ss:$16 sps:$4 sm:$0xff]   ;;  %v16703_v4 = vld [vmem:[%s21923_s1 + $0x2f4c] ss:$16 sps:$4 sm:$0xff]  }
 0x5af   :  { %11683 = vmatpush1.bf16.msra.mxu0 %v16606_v5  ;;  %11847 = vmatpush1.bf16.msra.mxu1 %v16609_v63  ;;  %v16698_v5 = vld [vmem:[%s21923_s1 + $0x2f40] ss:$16 sps:$4 sm:$0xff]   ;;  %v16701_v63 = vld [vmem:[%s21923_s1 + $0x2f48] ss:$16 sps:$4 sm:$0xff]  }
 0x5b0   :  { %11684 = vmatprep.subr.bf16.mxu0 %v16614_v6  ;;  %11848 = vmatprep.subr.bf16.mxu1 %v16617_v7  ;;  %v16706_v6 = vld [vmem:[%s21923_s1 + $0x2f64] ss:$16 sps:$4 sm:$0xff]   ;;  %v16709_v7 = vld [vmem:[%s21923_s1 + $0x2f6c] ss:$16 sps:$4 sm:$0xff]  }
 0x5b3   :  { %11685 = vmatpush1.bf16.msra.mxu0 %v16612_v9  ;;  %11849 = vmatpush1.bf16.msra.mxu1 %v16615_v10  ;;  %v16704_v9 = vld [vmem:[%s21923_s1 + $0x2f60] ss:$16 sps:$4 sm:$0xff]   ;;  %v16707_v10 = vld [vmem:[%s21923_s1 + $0x2f68] ss:$16 sps:$4 sm:$0xff]  }
 0x5b4   :  { %11686 = vmatprep.subr.bf16.mxu0 %v16620_v12  ;;  %11850 = vmatprep.subr.bf16.mxu1 %v16623_v14  ;;  %v16712_v12 = vld [vmem:[%s21923_s1 + $0x2f84] ss:$16 sps:$4 sm:$0xff]   ;;  %v16715_v14 = vld [vmem:[%s21923_s1 + $0x2f8c] ss:$16 sps:$4 sm:$0xff]  }
 0x5b7   :  { %11687 = vmatpush1.bf16.msra.mxu0 %v16618_v11  ;;  %11851 = vmatpush1.bf16.msra.mxu1 %v16621_v15  ;;  %v16710_v11 = vld [vmem:[%s21923_s1 + $0x2f80] ss:$16 sps:$4 sm:$0xff]   ;;  %v16713_v15 = vld [vmem:[%s21923_s1 + $0x2f88] ss:$16 sps:$4 sm:$0xff]  }
 0x5b8   :  { %11688 = vmatprep.subr.bf16.mxu0 %v16626_v16  ;;  %11852 = vmatprep.subr.bf16.mxu1 %v16629_v17  ;;  %v16718_v16 = vld [vmem:[%s21923_s1 + $0x2fa4] ss:$16 sps:$4 sm:$0xff]   ;;  %v16721_v17 = vld [vmem:[%s21923_s1 + $0x2fac] ss:$16 sps:$4 sm:$0xff]  }
 0x5bb   :  { %11689 = vmatpush1.bf16.msra.mxu0 %v16624_v18  ;;  %11853 = vmatpush1.bf16.msra.mxu1 %v16627_v21  ;;  %v16716_v18 = vld [vmem:[%s21923_s1 + $0x2fa0] ss:$16 sps:$4 sm:$0xff]   ;;  %v16719_v21 = vld [vmem:[%s21923_s1 + $0x2fa8] ss:$16 sps:$4 sm:$0xff]  }
 0x5bc   :  { %11690 = vmatprep.subr.bf16.mxu0 %v16632_v13  ;;  %11854 = vmatprep.subr.bf16.mxu1 %v16635_v22  ;;  %v16724_v13 = vld [vmem:[%s21923_s1 + $0x2fc4] ss:$16 sps:$4 sm:$0xff]   ;;  %v16727_v22 = vld [vmem:[%s21923_s1 + $0x2fcc] ss:$16 sps:$4 sm:$0xff]  }
 0x5bf   :  { %11691 = vmatpush1.bf16.msra.mxu0 %v16630_v23  ;;  %11855 = vmatpush1.bf16.msra.mxu1 %v16633_v8  ;;  %v16722_v23 = vld [vmem:[%s21923_s1 + $0x2fc0] ss:$16 sps:$4 sm:$0xff]   ;;  %v16725_v8 = vld [vmem:[%s21923_s1 + $0x2fc8] ss:$16 sps:$4 sm:$0xff]  }
 0x5c0   :  { %11701 = vmatprep.subr.bf16.mxu0 %v16640_v25  ;;  %11865 = vmatprep.subr.bf16.mxu1 %v16643_v20  ;;  %v16730_v25 = vld [vmem:[%s21923_s1 + $0x2fe4] ss:$16 sps:$4 sm:$0xff]   ;;  %v16733_v20 = vld [vmem:[%s21923_s1 + $0x2fec] ss:$16 sps:$4 sm:$0xff]  }
 0x5c2   :  { %11693 = vmatmul.mubr.bf16.vlgmr.msra.gmra.mrb[0].mxu0 %v13861_v26  ;;  %11857 = vmatmul.mubr.bf16.vlgmr.msra.gmra.mrb[0].mxu1 %v13861_v26  ;;  %v16728_v26 = vld [vmem:[%s21923_s1 + $0x2fe0] ss:$16 sps:$4 sm:$0xff]  }
 0x5c3   :  { %11702 = vmatpush1.bf16.msra.mxu0 %v16638_v29  ;;  %11866 = vmatpush1.bf16.msra.mxu1 %v16641_v30  ;;  %v16731_v29 = vld [vmem:[%s21923_s1 + $0x2fe8] ss:$16 sps:$4 sm:$0xff]   ;;  %v16738_v30 = vld [vmem:[%s21923_s1 + $0x3004] ss:$16 sps:$4 sm:$0xff]  }
 0x5c4   :  { %11703 = vmatprep.subr.bf16.mxu0 %v16646_v24  ;;  %11867 = vmatprep.subr.bf16.mxu1 %v16649_v32  ;;  %v16741_v24 = vld [vmem:[%s21923_s1 + $0x300c] ss:$16 sps:$4 sm:$0xff]   ;;  %v13863_v32 = vcombine.low %v21494_v28, %v21494_v28 }
 0x5c5   :  { %11733 = vmatprep.mubr.bf16.mxu0 %v13864_v33  ;;  %11897 = vmatprep.mubr.bf16.mxu1 %v13864_v33  ;;  %v16736_v33 = vld [vmem:[%s21923_s1 + $0x3000] ss:$16 sps:$4 sm:$0xff]   ;;  %v16747_v28 = vld [vmem:[%s21923_s1 + $0x302c] ss:$16 sps:$4 sm:$0xff]  }
 0x5c7   :  { %11704 = vmatpush1.bf16.msra.mxu0 %v16644_v34  ;;  %11868 = vmatpush1.bf16.msra.mxu1 %v16647_v35  ;;  %v16739_v34 = vld [vmem:[%s21923_s1 + $0x3008] ss:$16 sps:$4 sm:$0xff]   ;;  %v16744_v35 = vld [vmem:[%s21923_s1 + $0x3024] ss:$16 sps:$4 sm:$0xff]  }
 0x5c8   :  { %11705 = vmatprep.subr.bf16.mxu0 %v16652_v36  ;;  %11869 = vmatprep.subr.bf16.mxu1 %v16655_v37  ;;  %v16742_v36 = vld [vmem:[%s21923_s1 + $0x3020] ss:$16 sps:$4 sm:$0xff]   ;;  %v16745_v37 = vld [vmem:[%s21923_s1 + $0x3028] ss:$16 sps:$4 sm:$0xff]  }
 0x5cb   :  { %11706 = vmatpush1.bf16.msra.mxu0 %v16650_v39  ;;  %11870 = vmatpush1.bf16.msra.mxu1 %v16653_v31  ;;  %v16750_v39 = vld [vmem:[%s21923_s1 + $0x3044] ss:$16 sps:$4 sm:$0xff]   ;;  %v16753_v31 = vld [vmem:[%s21923_s1 + $0x304c] ss:$16 sps:$4 sm:$0xff]  }
 0x5cc   :  { %11707 = vmatprep.subr.bf16.mxu0 %v16658_v40  ;;  %11871 = vmatprep.subr.bf16.mxu1 %v16661_v41  ;;  %v16748_v40 = vld [vmem:[%s21923_s1 + $0x3040] ss:$16 sps:$4 sm:$0xff]   ;;  %v16751_v41 = vld [vmem:[%s21923_s1 + $0x3048] ss:$16 sps:$4 sm:$0xff]  }
 0x5cf   :  { %11708 = vmatpush1.bf16.msra.mxu0 %v16656_v27  ;;  %11872 = vmatpush1.bf16.msra.mxu1 %v16659_v43  ;;  %v16756_v27 = vld [vmem:[%s21923_s1 + $0x3064] ss:$16 sps:$4 sm:$0xff]   ;;  %v16754_v43 = vld [vmem:[%s21923_s1 + $0x3060] ss:$16 sps:$4 sm:$0xff]  }
 0x5d0   :  { %11709 = vmatprep.subr.bf16.mxu0 %v16664_v38  ;;  %11873 = vmatprep.subr.bf16.mxu1 %v16667_v44  ;;  %v16757_v38 = vld [vmem:[%s21923_s1 + $0x3068] ss:$16 sps:$4 sm:$0xff]   ;;  %v16762_v44 = vld [vmem:[%s21923_s1 + $0x3084] ss:$16 sps:$4 sm:$0xff]  }
 0x5d3   :  { %11710 = vmatpush1.bf16.msra.mxu0 %v16662_v47  ;;  %11874 = vmatpush1.bf16.msra.mxu1 %v16665_v48  ;;  %v16765_v47 = vld [vmem:[%s21923_s1 + $0x308c] ss:$16 sps:$4 sm:$0xff]   ;;  %v16760_v48 = vld [vmem:[%s21923_s1 + $0x3080] ss:$16 sps:$4 sm:$0xff]  }
 0x5d4   :  { %11711 = vmatprep.subr.bf16.mxu0 %v16670_v42  ;;  %11875 = vmatprep.subr.bf16.mxu1 %v16673_v50  ;;  %v16763_v42 = vld [vmem:[%s21923_s1 + $0x3088] ss:$16 sps:$4 sm:$0xff]   ;;  %v16768_v50 = vld [vmem:[%s21923_s1 + $0x30a4] ss:$16 sps:$4 sm:$0xff]  }
 0x5d7   :  { %11712 = vmatpush1.bf16.msra.mxu0 %v16668_v51  ;;  %11876 = vmatpush1.bf16.msra.mxu1 %v16671_v52  ;;  %v16771_v51 = vld [vmem:[%s21923_s1 + $0x30ac] ss:$16 sps:$4 sm:$0xff]   ;;  %v16766_v52 = vld [vmem:[%s21923_s1 + $0x30a0] ss:$16 sps:$4 sm:$0xff]  }
 0x5d8   :  { %11713 = vmatprep.subr.bf16.mxu0 %v16676_v53  ;;  %11877 = vmatprep.subr.bf16.mxu1 %v16679_v46  ;;  %v16769_v53 = vld [vmem:[%s21923_s1 + $0x30a8] ss:$16 sps:$4 sm:$0xff]   ;;  %v16774_v46 = vld [vmem:[%s21923_s1 + $0x30c4] ss:$16 sps:$4 sm:$0xff]  }
 0x5db   :  { %11714 = vmatpush1.bf16.msra.mxu0 %v16674_v54  ;;  %11878 = vmatpush1.bf16.msra.mxu1 %v16677_v55  ;;  %v16777_v54 = vld [vmem:[%s21923_s1 + $0x30cc] ss:$16 sps:$4 sm:$0xff]   ;;  %v16772_v55 = vld [vmem:[%s21923_s1 + $0x30c0] ss:$16 sps:$4 sm:$0xff]  }
 0x5dc   :  { %11715 = vmatprep.subr.bf16.mxu0 %v16682_v57  ;;  %11879 = vmatprep.subr.bf16.mxu1 %v16685_v49  ;;  %v16775_v57 = vld [vmem:[%s21923_s1 + $0x30c8] ss:$16 sps:$4 sm:$0xff]   ;;  %v16780_v49 = vld [vmem:[%s21923_s1 + $0x30e4] ss:$16 sps:$4 sm:$0xff]  }
 0x5df   :  { %11716 = vmatpush1.bf16.msra.mxu0 %v16680_v58  ;;  %11880 = vmatpush1.bf16.msra.mxu1 %v16683_v59  ;;  %v16783_v58 = vld [vmem:[%s21923_s1 + $0x30ec] ss:$16 sps:$4 sm:$0xff]   ;;  %v16778_v59 = vld [vmem:[%s21923_s1 + $0x30e0] ss:$16 sps:$4 sm:$0xff]  }
 0x5e0   :  { %11717 = vmatprep.subr.bf16.mxu0 %v16688_v45  ;;  %11881 = vmatprep.subr.bf16.mxu1 %v16691_v61  ;;  %v16781_v45 = vld [vmem:[%s21923_s1 + $0x30e8] ss:$16 sps:$4 sm:$0xff]   ;;  %v16784_v61 = vld [vmem:[%s21924_s0 + $0xc0] ss:$0 sps:$4 sm:$0xff]  }
 0x5e3   :  { %11718 = vmatpush1.bf16.msra.mxu0 %v16686_v56  ;;  %11882 = vmatpush1.bf16.msra.mxu1 %v16689_v62  ;;  %v16785_v56 = vld [vmem:[%s21925_s4 + $0x40] sm:$0xff]  }
 0x5e4   :  { %11719 = vmatprep.subr.bf16.mxu0 %v16694_v0  ;;  %11883 = vmatprep.subr.bf16.mxu1 %v16697_v1  ;;  %v16786_v62 = vld [vmem:[%s21925_s4 + $0xc0] sm:$0xff]  }
 0x5e5   :  { %v16787_v0 = vld [vmem:[%s21925_s4] sm:$0xff]  }
 0x5e6   :  { %v16788_v1 = vld [vmem:[%s21925_s4 + $0x80] sm:$0xff]  }
 0x5e7   :  { %11720 = vmatpush1.bf16.msra.mxu0 %v16692_v60  ;;  %11884 = vmatpush1.bf16.msra.mxu1 %v16695_v2  ;;  %v16789_v60 = vld [vmem:[%s21925_s4 + $0x48] sm:$0xff]  }
 0x5e8   :  { %11721 = vmatprep.subr.bf16.mxu0 %v16700_v3  ;;  %11885 = vmatprep.subr.bf16.mxu1 %v16703_v4  ;;  %v16790_v2 = vld [vmem:[%s21925_s4 + $0xc8] sm:$0xff]  }
 0x5e9   :  { %v16791_v3 = vld [vmem:[%s21925_s4 + $0x8] sm:$0xff]  }
 0x5ea   :  { %v16792_v4 = vld [vmem:[%s21925_s4 + $0x88] sm:$0xff]  }
 0x5eb   :  { %11722 = vmatpush1.bf16.msra.mxu0 %v16698_v5  ;;  %11886 = vmatpush1.bf16.msra.mxu1 %v16701_v63  ;;  %v16793_v5 = vld [vmem:[%s21925_s4 + $0x50] sm:$0xff]  }
 0x5ec   :  { %11723 = vmatprep.subr.bf16.mxu0 %v16706_v6  ;;  %11887 = vmatprep.subr.bf16.mxu1 %v16709_v7  ;;  %v16794_v63 = vld [vmem:[%s21925_s4 + $0xd0] sm:$0xff]  }
 0x5ed   :  { %v16795_v6 = vld [vmem:[%s21925_s4 + $0x10] sm:$0xff]  }
 0x5ee   :  { %v16796_v7 = vld [vmem:[%s21925_s4 + $0x90] sm:$0xff]  }
 0x5ef   :  { %11724 = vmatpush1.bf16.msra.mxu0 %v16704_v9  ;;  %11888 = vmatpush1.bf16.msra.mxu1 %v16707_v10  ;;  %v16797_v9 = vld [vmem:[%s21925_s4 + $0x58] sm:$0xff]  }
 0x5f0   :  { %11725 = vmatprep.subr.bf16.mxu0 %v16712_v12  ;;  %11889 = vmatprep.subr.bf16.mxu1 %v16715_v14  ;;  %v16798_v10 = vld [vmem:[%s21925_s4 + $0xd8] sm:$0xff]  }
 0x5f1   :  { %v16799_v12 = vld [vmem:[%s21925_s4 + $0x18] sm:$0xff]  }
 0x5f2   :  { %v16800_v14 = vld [vmem:[%s21925_s4 + $0x98] sm:$0xff]  }
 0x5f3   :  { %11726 = vmatpush1.bf16.msra.mxu0 %v16710_v11  ;;  %11890 = vmatpush1.bf16.msra.mxu1 %v16713_v15  ;;  %v16801_v11 = vld [vmem:[%s21925_s4 + $0x60] sm:$0xff]  }
 0x5f4   :  { %11727 = vmatprep.subr.bf16.mxu0 %v16718_v16  ;;  %11891 = vmatprep.subr.bf16.mxu1 %v16721_v17  ;;  %v16802_v15 = vld [vmem:[%s21925_s4 + $0xe0] sm:$0xff]  }
 0x5f5   :  { %v16803_v16 = vld [vmem:[%s21925_s4 + $0x20] sm:$0xff]  }
 0x5f6   :  { %v16804_v17 = vld [vmem:[%s21925_s4 + $0xa0] sm:$0xff]  }
 0x5f7   :  { %11728 = vmatpush1.bf16.msra.mxu0 %v16716_v18  ;;  %11892 = vmatpush1.bf16.msra.mxu1 %v16719_v21  ;;  %v16805_v18 = vld [vmem:[%s21925_s4 + $0x68] sm:$0xff]  }
 0x5f8   :  { %11729 = vmatprep.subr.bf16.mxu0 %v16724_v13  ;;  %11893 = vmatprep.subr.bf16.mxu1 %v16727_v22  ;;  %v16806_v21 = vld [vmem:[%s21925_s4 + $0xe8] sm:$0xff]  }
 0x5f9   :  { %v16807_v13 = vld [vmem:[%s21925_s4 + $0x28] sm:$0xff]  }
 0x5fa   :  { %v16808_v22 = vld [vmem:[%s21925_s4 + $0xa8] sm:$0xff]  }
 0x5fb   :  { %11730 = vmatpush1.bf16.msra.mxu0 %v16722_v23  ;;  %11894 = vmatpush1.bf16.msra.mxu1 %v16725_v8  ;;  %v16809_v23 = vld [vmem:[%s21925_s4 + $0x70] sm:$0xff]  }
 0x5fc   :  { %11731 = vmatprep.subr.bf16.mxu0 %v16730_v25  ;;  %11895 = vmatprep.subr.bf16.mxu1 %v16733_v20  ;;  %v16810_v8 = vld [vmem:[%s21925_s4 + $0xf0] sm:$0xff]  }
 0x5fd   :  { %v16811_v25 = vld [vmem:[%s21925_s4 + $0x30] sm:$0xff]  }
 0x5fe   :  { %v16812_v20 = vld [vmem:[%s21925_s4 + $0xb0] sm:$0xff]  }
 0x5ff   :  { %11732 = vmatpush1.bf16.msra.mxu0 %v16728_v26  ;;  %11896 = vmatpush1.bf16.msra.mxu1 %v16731_v29  ;;  %v16813_v26 = vld [vmem:[%s21925_s4 + $0x78] sm:$0xff]  }
 0x600   :  { %11742 = vmatprep.subr.bf16.mxu0 %v16738_v30  ;;  %11906 = vmatprep.subr.bf16.mxu1 %v16741_v24  ;;  %v16814_v29 = vld [vmem:[%s21925_s4 + $0xf8] sm:$0xff]  }
 0x601   :  { %v16815_v30 = vld [vmem:[%s21925_s4 + $0x38] sm:$0xff]  }
 0x602   :  { %11734 = vmatmul.mubr.bf16.vlgmr.msra.gmra.mrb[0].mxu0 %v13863_v32  ;;  %11898 = vmatmul.mubr.bf16.vlgmr.msra.gmra.mrb[0].mxu1 %v13863_v32  ;;  %v16816_v24 = vld [vmem:[%s21925_s4 + $0xb8] sm:$0xff]  }
 0x603   :  { %11743 = vmatpush1.bf16.msra.mxu0 %v16736_v33  ;;  %11907 = vmatpush1.bf16.msra.mxu1 %v16739_v34 }
 0x604   :  { %11744 = vmatprep.subr.bf16.mxu0 %v16744_v35  ;;  %11908 = vmatprep.subr.bf16.mxu1 %v16747_v28 }
 0x605   :  { %11774 = vmatprep.mubr.bf16.mxu0 %v16829_v19  ;;  %11938 = vmatprep.mubr.bf16.mxu1 %v16829_v19  ;;  %v16759_v19 = vld [vmem:[%s21923_s1 + $0x306c] ss:$16 sps:$4 sm:$0xff]  }
 0x607   :  { %11745 = vmatpush1.bf16.msra.mxu0 %v16742_v36  ;;  %11909 = vmatpush1.bf16.msra.mxu1 %v16745_v37 }
 0x608   :  { %11746 = vmatprep.subr.bf16.mxu0 %v16750_v39  ;;  %11910 = vmatprep.subr.bf16.mxu1 %v16753_v31 }
 0x60b   :  { %11747 = vmatpush1.bf16.msra.mxu0 %v16748_v40  ;;  %11911 = vmatpush1.bf16.msra.mxu1 %v16751_v41 }
 0x60c   :  { %11748 = vmatprep.subr.bf16.mxu0 %v16756_v27  ;;  %11912 = vmatprep.subr.bf16.mxu1 %v16759_v19 }
 0x60f   :  { %11749 = vmatpush1.bf16.msra.mxu0 %v16754_v43  ;;  %11913 = vmatpush1.bf16.msra.mxu1 %v16757_v38 }
 0x610   :  { %11750 = vmatprep.subr.bf16.mxu0 %v16762_v44  ;;  %11914 = vmatprep.subr.bf16.mxu1 %v16765_v47 }
 0x613   :  { %11751 = vmatpush1.bf16.msra.mxu0 %v16760_v48  ;;  %11915 = vmatpush1.bf16.msra.mxu1 %v16763_v42 }
 0x614   :  { %11752 = vmatprep.subr.bf16.mxu0 %v16768_v50  ;;  %11916 = vmatprep.subr.bf16.mxu1 %v16771_v51 }
 0x617   :  { %11753 = vmatpush1.bf16.msra.mxu0 %v16766_v52  ;;  %11917 = vmatpush1.bf16.msra.mxu1 %v16769_v53 }
 0x618   :  { %11754 = vmatprep.subr.bf16.mxu0 %v16774_v46  ;;  %11918 = vmatprep.subr.bf16.mxu1 %v16777_v54 }
 0x61b   :  { %11755 = vmatpush1.bf16.msra.mxu0 %v16772_v55  ;;  %11919 = vmatpush1.bf16.msra.mxu1 %v16775_v57 }
 0x61c   :  { %11756 = vmatprep.subr.bf16.mxu0 %v16780_v49  ;;  %11920 = vmatprep.subr.bf16.mxu1 %v16783_v58 }
 0x61f   :  { %11757 = vmatpush1.bf16.msra.mxu0 %v16778_v59  ;;  %11921 = vmatpush1.bf16.msra.mxu1 %v16781_v45 }
 0x620   :  { %14123 = vmatprep.subr.bf16.mxu0 %v16785_v56  ;;  %14145 = vmatprep.subr.bf16.mxu1 %v16786_v62 }
 0x622   :  { %11775 = vmatmul.mubr.bf16.vlgmr.msra.gmra.mrb[0].mxu0 %v16784_v61  ;;  %11939 = vmatmul.mubr.bf16.vlgmr.msra.gmra.mrb[0].mxu1 %v16784_v61 }
 0x623   :  { %14124 = vmatpush3.bf16.msra.mxu0 %v16787_v0  ;;  %14146 = vmatpush3.bf16.msra.mxu1 %v16788_v1 }
 0x624   :  { %14125 = vmatprep.subr.bf16.mxu0 %v16789_v60  ;;  %14147 = vmatprep.subr.bf16.mxu1 %v16790_v2 }
 0x627   :  { %14126 = vmatpush3.bf16.msra.mxu0 %v16791_v3  ;;  %14148 = vmatpush3.bf16.msra.mxu1 %v16792_v4 }
 0x628   :  { %14127 = vmatprep.subr.bf16.mxu0 %v16793_v5  ;;  %14149 = vmatprep.subr.bf16.mxu1 %v16794_v63 }
 0x62b   :  { %14128 = vmatpush3.bf16.msra.mxu0 %v16795_v6  ;;  %14150 = vmatpush3.bf16.msra.mxu1 %v16796_v7 }
 0x62c   :  { %14129 = vmatprep.subr.bf16.mxu0 %v16797_v9  ;;  %14151 = vmatprep.subr.bf16.mxu1 %v16798_v10 }
 0x62f   :  { %14130 = vmatpush3.bf16.msra.mxu0 %v16799_v12  ;;  %14152 = vmatpush3.bf16.msra.mxu1 %v16800_v14 }
 0x630   :  { %14131 = vmatprep.subr.bf16.mxu0 %v16801_v11  ;;  %14153 = vmatprep.subr.bf16.mxu1 %v16802_v15 }
 0x633   :  { %14132 = vmatpush3.bf16.msra.mxu0 %v16803_v16  ;;  %14154 = vmatpush3.bf16.msra.mxu1 %v16804_v17 }
 0x634   :  { %14133 = vmatprep.subr.bf16.mxu0 %v16805_v18  ;;  %14155 = vmatprep.subr.bf16.mxu1 %v16806_v21 }
 0x637   :  { %14134 = vmatpush3.bf16.msra.mxu0 %v16807_v13  ;;  %14156 = vmatpush3.bf16.msra.mxu1 %v16808_v22 }
 0x638   :  { %14135 = vmatprep.subr.bf16.mxu0 %v16809_v23  ;;  %14157 = vmatprep.subr.bf16.mxu1 %v16810_v8 }
 0x63b   :  { %14136 = vmatpush3.bf16.msra.mxu0 %v16811_v25  ;;  %14158 = vmatpush3.bf16.msra.mxu1 %v16812_v20 }
 0x63c   :  { %14137 = vmatprep.subr.bf16.mxu0 %v16813_v26  ;;  %14159 = vmatprep.subr.bf16.mxu1 %v16814_v29 }
 0x63f   :  { %14138 = vmatpush3.bf16.msra.mxu0 %v16815_v30  ;;  %14160 = vmatpush3.bf16.msra.mxu1 %v16816_v24 }
 0x6f5   :  { %v21883_v32 = vpop.f32.mrb[0].mxu0  ;;  %v21885_v33 = vpop.f32.mrb[0].mxu1 }
 0x6f6   :  { %v11951_v34 = vrot.slane %v21883_v32, 4  ;;  %v11979_v35 = vmul.f32 %v21883_v32, %v21883_v32  ;;  %v11963_v28 = vrot.slane %v21885_v33, 4  ;;  %v11981_v36 = vmul.f32 %v21885_v33, %v21885_v33  ;;  %v21893_v37 = vpop.f32.mrb[1].mxu0  ;;  %v21895_v39 = vpop.f32.mrb[1].mxu1 }
 0x6f7   :  { %v11957_v31 = vrot.slane %v21893_v37, 4  ;;  %v11980_v40 = vmul.f32 %v21893_v37, %v21893_v37  ;;  %v11969_v41 = vrot.slane %v21895_v39, 4  ;;  %v11982_v27 = vmul.f32 %v21895_v39, %v21895_v39  ;;  %v11780_v19 = vpop.f32.mrb[2].mxu0  ;;  %v11944_v43 = vpop.f32.mrb[2].mxu1 }
 0x6f8   :  { %v11952_v38 = vadd.f32 %v11951_v34, %v21883_v32  ;;  %v11983_v44 = vrot.slane %v11979_v35, 4  ;;  %v11964_v47 = vadd.f32 %v11963_v28, %v21885_v33  ;;  %v11995_v48 = vrot.slane %v11981_v36, 4  ;;  %v11781_v42 = vpop.f32.mrb[3].mxu0  ;;  %v11945_v50 = vpop.f32.mrb[3].mxu1 }
 0x6f9   :  { %v11958_v51 = vadd.f32 %v11957_v31, %v21893_v37  ;;  %v11989_v52 = vrot.slane %v11980_v40, 4  ;;  %v11970_v53 = vadd.f32 %v11969_v41, %v21895_v39  ;;  %v12001_v46 = vrot.slane %v11982_v27, 4 }
 0x6fa   :  { %v11953_v54 = vrot.slane %v11952_v38, 2  ;;  %v11984_v55 = vadd.f32 %v11983_v44, %v11979_v35  ;;  %v11965_v57 = vrot.slane %v11964_v47, 2  ;;  %v11996_v49 = vadd.f32 %v11995_v48, %v11981_v36 }
 0x6fb   :  { %v11959_v58 = vrot.slane %v11958_v51, 2  ;;  %v11990_v59 = vadd.f32 %v11989_v52, %v11980_v40  ;;  %v11971_v45 = vrot.slane %v11970_v53, 2  ;;  %v12002_v61 = vadd.f32 %v12001_v46, %v11982_v27  ;;  %v12027_v46 = vld [vmem:[%s21926_s2] sm:$0xf] }
 0x6fc   :  { %v11954_v56 = vadd.f32 %v11953_v54, %v11952_v38  ;;  %v11985_v62 = vrot.slane %v11984_v55, 2  ;;  %v11966_v0 = vadd.f32 %v11965_v57, %v11964_v47  ;;  %v11997_v1 = vrot.slane %v11996_v49, 2 }
 0x6fd   :  { %v11960_v60 = vadd.f32 %v11959_v58, %v11958_v51  ;;  %v11991_v2 = vrot.slane %v11990_v59, 2  ;;  %v11972_v3 = vadd.f32 %v11971_v45, %v11970_v53  ;;  %v12003_v4 = vrot.slane %v12002_v61, 2 }
 0x6fe   :  { %v11955_v5 = vrot.slane %v11954_v56, 1  ;;  %v11986_v63 = vadd.f32 %v11985_v62, %v11984_v55  ;;  %v11967_v6 = vrot.slane %v11966_v0, 1  ;;  %v11998_v7 = vadd.f32 %v11997_v1, %v11996_v49 }
 0x6ff   :  { %v11961_v9 = vrot.slane %v11960_v60, 1  ;;  %v11992_v10 = vadd.f32 %v11991_v2, %v11990_v59  ;;  %v11973_v12 = vrot.slane %v11972_v3, 1  ;;  %v12004_v14 = vadd.f32 %v12003_v4, %v12002_v61  ;;  %v12077_v61 = vld [vmem:[%s21927_s3] sm:$0xf] }
 0x700   :  { %v11956_v11 = vadd.f32 %v11955_v5, %v11954_v56  ;;  %v11987_v15 = vrot.slane %v11986_v63, 1  ;;  %v11968_v16 = vadd.f32 %v11967_v6, %v11966_v0  ;;  %v11999_v17 = vrot.slane %v11998_v7, 1 }
 0x701   :  { %v11962_v18 = vadd.f32 %v11961_v9, %v11960_v60  ;;  %v11993_v21 = vrot.slane %v11992_v10, 1  ;;  %v11974_v13 = vadd.f32 %v11973_v12, %v11972_v3  ;;  %v12005_v22 = vrot.slane %v12004_v14, 1 }
 0x702   :  { %v11975_v23 = vmul.f32 0.5, %v11956_v11  ;;  %v11988_v8 = vadd.f32 %v11987_v15, %v11986_v63  ;;  %v11977_v25 = vmul.f32 0.5, %v11968_v16  ;;  %v12000_v20 = vadd.f32 %v11999_v17, %v11998_v7 }
 0x703   :  { %v11976_v26 = vmul.f32 0.5, %v11962_v18  ;;  %v11994_v29 = vadd.f32 %v11993_v21, %v11992_v10  ;;  %v11978_v30 = vmul.f32 0.5, %v11974_v13  ;;  %v12006_v24 = vadd.f32 %v12005_v22, %v12004_v14 }
 0x704   :  { %v12007_v34 = vmul.f32 0.5, %v11988_v8  ;;  %v12011_v35 = vmul.f32 %v11975_v23, %v11975_v23  ;;  %v12009_v28 = vmul.f32 0.5, %v12000_v20  ;;  %v12029_v36 = vlaneseq }
 0x705   :  { %v12013_v31 = vmul.f32 %v11977_v25, %v11977_v25  ;;  %v12008_v40 = vmul.f32 0.5, %v11994_v29  ;;  %v12012_v41 = vmul.f32 %v11976_v26, %v11976_v26  ;;  %v12010_v19 = vmul.f32 0.5, %v12006_v24 }
 0x706   :  { %v12015_v27 = vsub.f32 %v12007_v34, %v12011_v35  ;;  %v12014_v43 = vmul.f32 %v11978_v30, %v11978_v30  ;;  %v12030_v42 = vshrl.u32 %v12029_v36, 7  ;;  %v12053_v3 = vsub.f32 %v21883_v32, %v11975_v23 }
 0x707   :  { %v12017_v38 = vsub.f32 %v12009_v28, %v12013_v31  ;;  %v12016_v44 = vsub.f32 %v12008_v40, %v12012_v41  ;;  %v12055_v6 = vsub.f32 %v21885_v33, %v11977_v25  ;;  %v12054_v14 = vsub.f32 %v21893_v37, %v11976_v26  ;;  %v14090_v41 = vld [vmem:[%s21928_s5] ss:$0 sm:$0xff] }
 0x708   :  { %v12019_v47 = vadd.f32 1e-05, %v12015_v27  ;;  %v12018_v48 = vsub.f32 %v12010_v19, %v12014_v43  ;;  %v12031_v53 = vsub.s32 0, %v12030_v42  ;;  %v12039_v54 = vsub.s32 2, %v12030_v42 }
 0x709   :  { %v12021_v50 = vadd.f32 1e-05, %v12017_v38  ;;  %v12020_v51 = vadd.f32 1e-05, %v12016_v44  ;;  %v12035_v55 = vsub.s32 1, %v12030_v42  ;;  %v12043_v57 = vsub.s32 3, %v12030_v42 }
 0x70a   :  { %16817 = vrsqrt.f32 %v12019_v47  ;;  %v12022_v52 = vadd.f32 1e-05, %v12018_v48  ;;  %v12032_v49 = vrot.slane %v12027_v46, %v12031_v53  ;;  %v12040_v58 = vrot.slane %v12027_v46, %v12039_v54 }
 0x70b   :  { %16819 = vrsqrt.f32 %v12021_v50  ;;  %v12036_v59 = vrot.slane %v12027_v46, %v12035_v55  ;;  %v12044_v56 = vrot.slane %v12027_v46, %v12043_v57  ;;  %v12082_v5 = vrot.slane %v12077_v61, %v12031_v53 }
 0x70c   :  { %16821 = vrsqrt.f32 %v12020_v51  ;;  %v12090_v9 = vrot.slane %v12077_v61, %v12039_v54  ;;  %v12086_v15 = vrot.slane %v12077_v61, %v12035_v55  ;;  %v12056_v17 = vsub.f32 %v21895_v39, %v11978_v30 }
 0x70d   :  { %16823 = vrsqrt.f32 %v12022_v52  ;;  %v12094_v21 = vrot.slane %v12077_v61, %v12043_v57 }
 0x714   :  { %v16818_v45 = vpop.eup %16817 }
 0x715   :  { %v16820_v62 = vpop.eup %16819  ;;  %v12049_v0 = vmul.f32 %v16818_v45, %v12032_v49 }
 0x716   :  { %v16822_v1 = vpop.eup %16821  ;;  %v12051_v60 = vmul.f32 %v16820_v62, %v12040_v58 }
 0x717   :  { %v16824_v2 = vpop.eup %16823  ;;  %v12060_v4 = vrot.slane %v12049_v0, %v12031_v53  ;;  %v12050_v63 = vmul.f32 %v16822_v1, %v12036_v59 }
 0x718   :  { %v12068_v7 = vrot.slane %v12051_v60, %v12031_v53  ;;  %v12052_v10 = vmul.f32 %v16824_v2, %v12044_v56 }
 0x719   :  { %v12073_v12 = vmul.f32 %v12060_v4, %v12053_v3  ;;  %v12064_v11 = vrot.slane %v12050_v63, %v12031_v53 }
 0x71a   :  { %v12075_v16 = vmul.f32 %v12068_v7, %v12055_v6  ;;  %v12072_v18 = vrot.slane %v12052_v10, %v12031_v53 }
 0x71b   :  { %v12099_v13 = vadd.f32 %v12082_v5, %v12073_v12  ;;  %v12074_v32 = vmul.f32 %v12064_v11, %v12054_v14 }
 0x71c   :  { %v12101_v22 = vadd.f32 %v12090_v9, %v12075_v16  ;;  %v12076_v23 = vmul.f32 %v12072_v18, %v12056_v17 }
 0x71d   :  { %v12100_v8 = vadd.f32 %v12086_v15, %v12074_v32  ;;  %vm12103_vm0 = vcmp.ge.f32.partialorder %v12099_v13, 0.0  ;;  %v12107_v33 = vmul.f32 0.2, %v12099_v13 }
 0x71e   :  { %v12102_v25 = vadd.f32 %v12094_v21, %v12076_v23  ;;  %vm12105_vm1 = vcmp.ge.f32.partialorder %v12101_v22, 0.0  ;;  %v12109_v20 = vmul.f32 0.2, %v12101_v22 }
 0x71f   :  { %vm12104_vm2 = vcmp.ge.f32.partialorder %v12100_v8, 0.0  ;;  %v12108_v29 = vmul.f32 0.2, %v12100_v8  ;;  %v12111_v26 = vsel %vm12103_vm0, %v12099_v13, %v12107_v33 }
 0x720   :  { %vm12106_vm3 = vcmp.ge.f32.partialorder %v12102_v25, 0.0  ;;  %v12110_v37 = vmul.f32 0.2, %v12102_v25  ;;  %v12113_v34 = vsel %vm12105_vm1, %v12101_v22, %v12109_v20  ;;  %v12115_v28 = vpack.c.bf16 %v12111_v26, %v12111_v26 }
 0x721   :  { %v12112_v24 = vsel %vm12104_vm2, %v12100_v8, %v12108_v29  ;;  %v12117_v36 = vpack.c.bf16 %v12113_v34, %v12113_v34 }
 0x722   :  { %v12116_v39 = vpack.c.bf16 %v12112_v24, %v12112_v24  ;;  %v12114_v30 = vsel %vm12106_vm3, %v12102_v25, %v12110_v37 }
 0x723   :  { %v12118_v35 = vpack.c.bf16 %v12114_v30, %v12114_v30 }
 0x724   :  { %12414 = vmatprep.mubr.bf16.mxu0 %v12116_v39 }
 0x725   :  { %12454 = vmatprep.mubr.bf16.mxu1 %v12118_v35  ;;  %12415 = vmatmul.mubr.bf16.vlgmr.msra.gmra.mrb[4].mxu0 %v12115_v28 }
 0x726   :  { %12455 = vmatmul.mubr.bf16.vlgmr.msra.gmra.mrb[4].mxu1 %v12117_v36 }
 0x7f8   :  { %v14139_v31 = vpop.f32.mrb[4].mxu0 }
 0x7f9   :  { %v14161_v40 = vpop.f32.mrb[4].mxu1  ;;  %v14140_v27 = vpop.f32.mrb[5].mxu0 }
 0x7fa   :  { %v14141_v19 = vadd.f32 %v14140_v27, %v14139_v31  ;;  %v14162_v43 = vpop.f32.mrb[5].mxu1  ;;  %v14142_v38 = vpop.f32.mrb[6].mxu0 }
 0x7fb   :  { %v14163_v44 = vadd.f32 %v14162_v43, %v14161_v40  ;;  %v14164_v47 = vpop.f32.mrb[6].mxu1  ;;  %v14143_v48 = vpop.f32.mrb[7].mxu0 }
 0x7fc   :  { %v12417_v42 = vadd.f32 %v14141_v19, %v14090_v41  ;;  %v14165_v50 = vpop.f32.mrb[7].mxu1 }
 0x7fe   :  { %v12457_v51 = vadd.f32 %v14163_v44, %v12417_v42 }
 0x800   :  { %v12462_v52 = vsub.f32 0.0, %v12457_v51 }
 0x802   :  { %v12463_v53 = vmul.f32 1.442695, %v12462_v52 }
 0x804   :  { %16825 = vpow2.f32 %v12463_v53 }
 0x80e   :  { %v16826_v46 = vpop.eup %16825 }
 0x80f   :  { %v12465_v54 = vadd.f32 1.0, %v16826_v46 }
 0x811   :  { %16827 = vrcp.f32 %v12465_v54 }
 0x81b   :  { %v16828_v55 = vpop.eup %16827 }
 0x81c   :  { %12468 = vst [vmem:[%s21929_s6] sm:$0xff] %v16828_v55 }

</bundles_post_ra>
